<compile_context>
chip_gen: v7x
topology: tpu7x:2x2x1
jax: 0.10.0
libtpu: 0.0.40
codegen_flags: <defaults>
</compile_context>

<pallas_src>
import functools
import math

import jax
import jax.numpy as jnp
from jax import lax
from jax.experimental import pallas as pl
from jax.experimental.pallas import tpu as pltpu


# ----------------------------- Pallas kernel ------------------------------- #

def block_kernel(x_ref, wqkv_ref, wo_ref, wfc_ref, wmp_ref, o_ref,
                 *, n_head, memory):
    """One grid step == `Bb` full sequences of one transformer Block."""
    Bb, T, C = x_ref.shape
    hd = C // n_head

    x = x_ref[...]                                   # (Bb, T, C) f32
    x2 = x.reshape(Bb * T, C)                        # flatten -> MXU rows

    # Fused QKV projection: one (Bb*T, C) @ (C, 3C) bf16 matmul, f32 accumulation.
    # 1/sqrt(hd) is already folded into the q-columns of wqkv (weight prep).
    qkv = jnp.dot(x2.astype(jnp.bfloat16), wqkv_ref[...],
                  preferred_element_type=jnp.float32)
    qkv3 = qkv.reshape(Bb, T, 3 * C)                 # [ q | k | v ] along lanes

    # Causal (optionally banded "memory") additive mask, finite sentinel
    # (no inf-inf NaN risk).  Broadcast ONCE, outside the head loop.
    row = lax.broadcasted_iota(jnp.int32, (T, T), 0)
    col = lax.broadcasted_iota(jnp.int32, (T, T), 1)
    mask = col <= row
    if memory >= 0:                                  # M1 * ~M2 from the module
        mask = jnp.logical_and(mask, (row - col) <= memory)
    neg_bias = jnp.where(mask, 0.0, -1e30).astype(jnp.float32)       # (T, T)
    neg_bias_b = jnp.broadcast_to(neg_bias[None], (Bb, T, T))        # hoisted

    # Per-head attention (small static loop), batched over the Bb sequences.
    # Head contexts are concatenated along lanes and projected through W_o with a
    # single K=C matmul (no per-head K=hd projections, no VPU accumulation chain).
    y_heads = []
    for h in range(n_head):
        c0 = h * hd
        q = qkv3[:, :, c0:c0 + hd].astype(jnp.bfloat16)              # (Bb, T, hd)
        k = qkv3[:, :, C + c0:C + c0 + hd].astype(jnp.bfloat16)
        v = qkv3[:, :, 2 * C + c0:2 * C + c0 + hd].astype(jnp.bfloat16)

        s = jnp.einsum("bqd,bkd->bqk", q, k,
                       preferred_element_type=jnp.float32)           # (Bb, T, T) f32
        s = s + neg_bias_b
        m = jnp.max(s, axis=-1, keepdims=True)
        p = jnp.exp(s - m)
        inv = pl.reciprocal(jnp.sum(p, axis=-1, keepdims=True), approx=True)
        p = (p * inv).astype(jnp.bfloat16)                           # softmax (EUP recip)

        y_heads.append(jnp.einsum("bqk,bkd->bqd", p, v,
                                  preferred_element_type=jnp.float32))  # (Bb, T, hd)

    y = jnp.concatenate(y_heads, axis=-1)            # (Bb, T, C), PyTorch head order
    attn2 = jnp.dot(y.reshape(Bb * T, C).astype(jnp.bfloat16), wo_ref[...],
                    preferred_element_type=jnp.float32)              # (Bb*T, C)

    # Residual + MLP (Linear -> ReLU -> Linear) + residual, residuals in f32.
    z2 = x2 + attn2
    h2 = jnp.maximum(
        jnp.dot(z2.astype(jnp.bfloat16), wfc_ref[...],
                preferred_element_type=jnp.float32), 0.0)
    m2 = jnp.dot(h2.astype(jnp.bfloat16), wmp_ref[...],
                 preferred_element_type=jnp.float32)
    out2 = z2 + m2

    o_ref[...] = out2.reshape(Bb, T, C)


# ------------------------------ JAX wrapper -------------------------------- #

_FALLBACK_ERRORS = (TypeError, NotImplementedError, ValueError,
                    getattr(pltpu, "LoweringException", TypeError))


def _tensorcores_per_chip():
    """Best-effort TC count per chip (v7x has 2, v5e/v6e have 1)."""
    try:
        kind = jax.devices()[0].device_kind.lower().replace(" ", "")
    except (RuntimeError, IndexError, AttributeError):
        return 1
    return 2 if ("v7" in kind or "tpu7" in kind) else 1


def _run_pallas(x, w_qkv, w_o, w_fc, w_mp, *, n_head, memory, batch_block,
                single_buffer):
    B, T, C = x.shape
    grid = (B // batch_block,)

    def wspec(shape):
        idx_map = {2: (lambda b: (0, 0))}[len(shape)]
        if single_buffer and hasattr(pl, "Buffered"):
            # Constant weight blocks gain nothing from double buffering.
            return pl.BlockSpec(shape, idx_map, pipeline_mode=pl.Buffered(1))
        return pl.BlockSpec(shape, idx_map)

    kernel = functools.partial(block_kernel, n_head=n_head, memory=memory)

    fn = pl.pallas_call(
        kernel,
        out_shape=jax.ShapeDtypeStruct((B, T, C), jnp.float32),
        grid=grid,
        in_specs=[
            pl.BlockSpec((batch_block, T, C), lambda b: (b, 0, 0)),  # activations
            wspec((C, 3 * C)),                                       # fused W_qkv (in,out)
            wspec((C, C)),                                           # attn c_proj (in,out)
            wspec((C, 4 * C)),                                       # mlp c_fc   (in,out)
            wspec((4 * C, C)),                                       # mlp c_proj (in,out)
        ],
        out_specs=pl.BlockSpec((batch_block, T, C), lambda b: (b, 0, 0)),
        compiler_params=pltpu.CompilerParams(
            dimension_semantics=("parallel",),        # batch tiles -> megacore shardable
            vmem_limit_bytes=32 * 1024 * 1024),       # actual footprint is a few MiB
    )
    return fn(x, w_qkv, w_o, w_fc, w_mp)


def block_forward(x, params, *, n_head, memory, batch_block=None):
    """Block.forward. x: (B, T, C) float32. Weights in PyTorch (out, in) layout."""
    B, T, C = x.shape
    hd = C // n_head

    if batch_block is None:
        # Single-TC chips (v5e/v6e): collapse to one grid step (per-step overhead
        # dominates at this size; 256 rows also fill the 256-row v6e MXU).
        # Dual-TC (v7x): keep >= 2 parallel steps so both TensorCores get work.
        target_steps = max(_tensorcores_per_chip(), 1)
        batch_block = max(1, B // target_steps)
        while B % batch_block:
            batch_block -= 1

    # Weight prep (one-time, host side):
    #   * transpose to (in, out) layout, fuse QKV into a single (C, 3C) weight,
    #   * fold 1/sqrt(hd) into the q-columns,
    #   * cast to bf16 (matmul operands); accumulation stays f32 in-kernel.
    w_qkv = params["w_attn"].T.astype(jnp.float32)     # (C, 3C), cols = [q | k | v]
    scale = jnp.float32(1.0 / math.sqrt(hd))
    w_qkv = jnp.concatenate([w_qkv[:, :C] * scale, w_qkv[:, C:]], axis=1)
    w_qkv = w_qkv.astype(jnp.bfloat16)
    w_o = params["w_o"].T.astype(jnp.bfloat16)          # (C, C)
    w_fc = params["w_fc"].T.astype(jnp.bfloat16)         # (C, 4C)
    w_mp = params["w_mp"].T.astype(jnp.bfloat16)         # (4C, C)

    run = functools.partial(_run_pallas, x, w_qkv, w_o, w_fc, w_mp,
                            n_head=n_head, memory=memory,
                            batch_block=batch_block)
    try:
        return run(single_buffer=True)
    except _FALLBACK_ERRORS:
        # Narrow fallback: only if Buffered(1) on constant weight blocks is rejected
        # by this Pallas version; fall back to default double-buffering.
        return run(single_buffer=False)


# ------------------------- pure-JAX reference ------------------------------ #

def ref_block_forward(x, params, *, n_head, memory):
    B, T, C = x.shape
    hd = C // n_head
    hp = lax.Precision.HIGHEST

    qkv = jnp.einsum("btc,oc->bto", x, params["w_attn"], precision=hp)
    q, k, v = jnp.split(qkv, 3, axis=-1)

    def heads(t):
        return t.reshape(B, T, n_head, hd).transpose(0, 2, 1, 3)

    q, k, v = heads(q), heads(k), heads(v)
    s = jnp.einsum("bhqd,bhkd->bhqk", q, k, precision=hp) / math.sqrt(hd)

    row = jnp.arange(T)[:, None]
    col = jnp.arange(T)[None, :]
    mask = col <= row
    if memory >= 0:
        mask = jnp.logical_and(mask, (row - col) <= memory)
    s = jnp.where(mask[None, None], s, -jnp.inf)
    p = jax.nn.softmax(s, axis=-1)

    y = jnp.einsum("bhqk,bhkd->bhqd", p, v, precision=hp)
    y = y.transpose(0, 2, 1, 3).reshape(B, T, C)
    y = jnp.einsum("btc,oc->bto", y, params["w_o"], precision=hp)
    z = x + y
    h = jax.nn.relu(jnp.einsum("btc,oc->bto", z, params["w_fc"], precision=hp))
    m = jnp.einsum("bto,co->btc", h, params["w_mp"], precision=hp)
    return z + m


# --------------------------------- main ------------------------------------ #

if __name__ == "__main__":
    # Small config: batch=8, seq=32, embed=128 (lane-dense), 4 heads (hd=32).
    # config.dropout = 0.0 -> dropout layers are identity; config.bias = False.
    B, T, C, H = 8, 32, 128, 4

    key = jax.random.PRNGKey(0)
    ks = jax.random.split(key, 6)
    std = 0.02
    params = {
        "w_attn": std * jax.random.normal(ks[0], (3 * C, C), jnp.float32),  # c_attn.weight
        "w_o":    std * jax.random.normal(ks[1], (C, C), jnp.float32),      # attn c_proj.weight
        "w_fc":   std * jax.random.normal(ks[2], (4 * C, C), jnp.float32),  # mlp c_fc.weight
        "w_mp":   std * jax.random.normal(ks[3], (C, 4 * C), jnp.float32),  # mlp c_proj.weight
    }
    x = jax.random.normal(ks[4], (B, T, C), jnp.float32)

    for memory in (-1, 4):   # plain causal and banded-"memory" masks
        out = jax.block_until_ready(block_forward(x, params, n_head=H, memory=memory))
        ref = ref_block_forward(x, params, n_head=H, memory=memory)
        assert out.shape == (B, T, C)
        assert bool(jnp.all(jnp.isfinite(out)))
        # Tolerance accounts for bf16 matmul operands (f32 accumulation) and the
        # approx (EUP) reciprocal in the softmax denominator.
        assert jnp.allclose(out, ref, rtol=2e-2, atol=1e-2), (
            f"mismatch vs pure-JAX reference (memory={memory})")

    print("KERNEL_OK")
</pallas_src>

<mosaic_0001>
module attributes {stable_mosaic.version = 11 : i64} {
  func.func @block_kernel(%arg0: i32, %arg1: memref<8x32x128xf32, #tpu.memory_space<vmem>>, %arg2: memref<128x384xbf16, #tpu.memory_space<vmem>>, %arg3: memref<128x128xbf16, #tpu.memory_space<vmem>>, %arg4: memref<128x512xbf16, #tpu.memory_space<vmem>>, %arg5: memref<512x128xbf16, #tpu.memory_space<vmem>>, %arg6: memref<8x32x128xf32, #tpu.memory_space<vmem>>) attributes {dimension_semantics = [#tpu.dimension_semantics<parallel>], iteration_bounds = array<i64: 1>, scalar_prefetch = 0 : i64, scratch_operands = 0 : i64, tpu.core_type = #tpu.core_type<tc>, window_params = [{transform_indices = @transform_0, window_bounds = array<i64: 8, 32, 128>}, {pipeline_mode = #tpu.pipeline_mode<synchronous>, transform_indices = @transform_1, window_bounds = array<i64: 128, 384>}, {pipeline_mode = #tpu.pipeline_mode<synchronous>, transform_indices = @transform_2, window_bounds = array<i64: 128, 128>}, {pipeline_mode = #tpu.pipeline_mode<synchronous>, transform_indices = @transform_3, window_bounds = array<i64: 128, 512>}, {pipeline_mode = #tpu.pipeline_mode<synchronous>, transform_indices = @transform_4, window_bounds = array<i64: 512, 128>}, {transform_indices = @transform_5, window_bounds = array<i64: 8, 32, 128>}]} {
    %c0 = arith.constant 0 : index
    %c0_0 = arith.constant 0 : index
    %c0_1 = arith.constant 0 : index
    %0 = vector.load %arg1[%c0, %c0_0, %c0_1] : memref<8x32x128xf32, #tpu.memory_space<vmem>>, vector<8x32x128xf32>
    %1 = vector.shape_cast %0 : vector<8x32x128xf32> to vector<256x128xf32>
    %2 = arith.truncf %1 : vector<256x128xf32> to vector<256x128xbf16>
    %c0_2 = arith.constant 0 : index
    %c0_3 = arith.constant 0 : index
    %3 = vector.load %arg2[%c0_2, %c0_3] : memref<128x384xbf16, #tpu.memory_space<vmem>>, vector<128x384xbf16>
    %cst = arith.constant dense<0.000000e+00> : vector<256x384xf32>
    %4 = tpu.matmul %2, %3, %cst {dimension_numbers = #tpu.dot_dimension_numbers<[1], [0], [0], [1], [0, 0, 1, 1], [], []>} : vector<256x128xbf16>, vector<128x384xbf16>, vector<256x384xf32> -> vector<256x384xf32>
    %5 = vector.shape_cast %4 : vector<256x384xf32> to vector<8x32x384xf32>
    %6 = tpu.iota {dimensions = array<i32: 0>} : vector<32x32xi32>
    %7 = tpu.iota {dimensions = array<i32: 1>} : vector<32x32xi32>
    %8 = arith.cmpi sle, %7, %6 : vector<32x32xi32>
    %cst_4 = arith.constant 0.000000e+00 : f32
    %cst_5 = arith.constant -1.000000e+30 : f32
    %9 = vector.broadcast %cst_4 : f32 to vector<32x32xf32>
    %10 = vector.broadcast %cst_5 : f32 to vector<32x32xf32>
    %11 = arith.select %8, %9, %10 : vector<32x32xi1>, vector<32x32xf32>
    %12 = vector.shape_cast %11 : vector<32x32xf32> to vector<1x32x32xf32>
    %13 = vector.shape_cast %12 : vector<1x32x32xf32> to vector<1x32x32xf32>
    %14 = vector.broadcast %13 : vector<1x32x32xf32> to vector<8x32x32xf32>
    %15 = vector.extract_strided_slice %5 {offsets = [0, 0, 0], sizes = [8, 32, 32], strides = [1, 1, 1]} : vector<8x32x384xf32> to vector<8x32x32xf32>
    %16 = arith.truncf %15 : vector<8x32x32xf32> to vector<8x32x32xbf16>
    %17 = vector.extract_strided_slice %5 {offsets = [0, 0, 128], sizes = [8, 32, 32], strides = [1, 1, 1]} : vector<8x32x384xf32> to vector<8x32x32xf32>
    %18 = arith.truncf %17 : vector<8x32x32xf32> to vector<8x32x32xbf16>
    %19 = vector.extract_strided_slice %5 {offsets = [0, 0, 256], sizes = [8, 32, 32], strides = [1, 1, 1]} : vector<8x32x384xf32> to vector<8x32x32xf32>
    %20 = arith.truncf %19 : vector<8x32x32xf32> to vector<8x32x32xbf16>
    "tpu.trace_start"() <{level = 10 : i32, message = "bqd,bkd->bqk"}> : () -> ()
    %cst_6 = arith.constant dense<0.000000e+00> : vector<8x32x32xf32>
    %21 = tpu.matmul %16, %18, %cst_6 {dimension_numbers = #tpu.dot_dimension_numbers<[2], [2], [1], [1], [0, 0, 0, 1, 1, 1], [0], [0]>} : vector<8x32x32xbf16>, vector<8x32x32xbf16>, vector<8x32x32xf32> -> vector<8x32x32xf32>
    "tpu.trace_stop"() : () -> ()
    %22 = arith.addf %21, %14 : vector<8x32x32xf32>
    %cst_7 = arith.constant dense<0xFF800000> : vector<8x32xf32>
    %23 = vector.multi_reduction <maximumf>, %22, %cst_7 [2] : vector<8x32x32xf32> to vector<8x32xf32>
    %24 = vector.shape_cast %23 : vector<8x32xf32> to vector<8x32x1xf32>
    %25 = vector.broadcast %24 : vector<8x32x1xf32> to vector<8x32x32xf32>
    %26 = arith.subf %22, %25 : vector<8x32x32xf32>
    %27 = math.exp %26 : vector<8x32x32xf32>
    %cst_8 = arith.constant dense<0.000000e+00> : vector<8x32xf32>
    %28 = vector.multi_reduction <add>, %27, %cst_8 [2] : vector<8x32x32xf32> to vector<8x32xf32>
    %29 = vector.shape_cast %28 : vector<8x32xf32> to vector<8x32x1xf32>
    %30 = tpu.reciprocal %29 {approx = true} : vector<8x32x1xf32> -> vector<8x32x1xf32>
    %31 = vector.broadcast %30 : vector<8x32x1xf32> to vector<8x32x32xf32>
    %32 = arith.mulf %27, %31 : vector<8x32x32xf32>
    %33 = arith.truncf %32 : vector<8x32x32xf32> to vector<8x32x32xbf16>
    "tpu.trace_start"() <{level = 10 : i32, message = "bqk,bkd->bqd"}> : () -> ()
    %cst_9 = arith.constant dense<0.000000e+00> : vector<8x32x32xf32>
    %34 = tpu.matmul %33, %20, %cst_9 {dimension_numbers = #tpu.dot_dimension_numbers<[2], [1], [1], [2], [0, 0, 0, 1, 1, 2], [0], [0]>} : vector<8x32x32xbf16>, vector<8x32x32xbf16>, vector<8x32x32xf32> -> vector<8x32x32xf32>
    "tpu.trace_stop"() : () -> ()
    %35 = vector.extract_strided_slice %5 {offsets = [0, 0, 32], sizes = [8, 32, 32], strides = [1, 1, 1]} : vector<8x32x384xf32> to vector<8x32x32xf32>
    %36 = arith.truncf %35 : vector<8x32x32xf32> to vector<8x32x32xbf16>
    %37 = vector.extract_strided_slice %5 {offsets = [0, 0, 160], sizes = [8, 32, 32], strides = [1, 1, 1]} : vector<8x32x384xf32> to vector<8x32x32xf32>
    %38 = arith.truncf %37 : vector<8x32x32xf32> to vector<8x32x32xbf16>
    %39 = vector.extract_strided_slice %5 {offsets = [0, 0, 288], sizes = [8, 32, 32], strides = [1, 1, 1]} : vector<8x32x384xf32> to vector<8x32x32xf32>
    %40 = arith.truncf %39 : vector<8x32x32xf32> to vector<8x32x32xbf16>
    "tpu.trace_start"() <{level = 10 : i32, message = "bqd,bkd->bqk"}> : () -> ()
    %cst_10 = arith.constant dense<0.000000e+00> : vector<8x32x32xf32>
    %41 = tpu.matmul %36, %38, %cst_10 {dimension_numbers = #tpu.dot_dimension_numbers<[2], [2], [1], [1], [0, 0, 0, 1, 1, 1], [0], [0]>} : vector<8x32x32xbf16>, vector<8x32x32xbf16>, vector<8x32x32xf32> -> vector<8x32x32xf32>
    "tpu.trace_stop"() : () -> ()
    %42 = arith.addf %41, %14 : vector<8x32x32xf32>
    %cst_11 = arith.constant dense<0xFF800000> : vector<8x32xf32>
    %43 = vector.multi_reduction <maximumf>, %42, %cst_11 [2] : vector<8x32x32xf32> to vector<8x32xf32>
    %44 = vector.shape_cast %43 : vector<8x32xf32> to vector<8x32x1xf32>
    %45 = vector.broadcast %44 : vector<8x32x1xf32> to vector<8x32x32xf32>
    %46 = arith.subf %42, %45 : vector<8x32x32xf32>
    %47 = math.exp %46 : vector<8x32x32xf32>
    %cst_12 = arith.constant dense<0.000000e+00> : vector<8x32xf32>
    %48 = vector.multi_reduction <add>, %47, %cst_12 [2] : vector<8x32x32xf32> to vector<8x32xf32>
    %49 = vector.shape_cast %48 : vector<8x32xf32> to vector<8x32x1xf32>
    %50 = tpu.reciprocal %49 {approx = true} : vector<8x32x1xf32> -> vector<8x32x1xf32>
    %51 = vector.broadcast %50 : vector<8x32x1xf32> to vector<8x32x32xf32>
    %52 = arith.mulf %47, %51 : vector<8x32x32xf32>
    %53 = arith.truncf %52 : vector<8x32x32xf32> to vector<8x32x32xbf16>
    "tpu.trace_start"() <{level = 10 : i32, message = "bqk,bkd->bqd"}> : () -> ()
    %cst_13 = arith.constant dense<0.000000e+00> : vector<8x32x32xf32>
    %54 = tpu.matmul %53, %40, %cst_13 {dimension_numbers = #tpu.dot_dimension_numbers<[2], [1], [1], [2], [0, 0, 0, 1, 1, 2], [0], [0]>} : vector<8x32x32xbf16>, vector<8x32x32xbf16>, vector<8x32x32xf32> -> vector<8x32x32xf32>
    "tpu.trace_stop"() : () -> ()
    %55 = vector.extract_strided_slice %5 {offsets = [0, 0, 64], sizes = [8, 32, 32], strides = [1, 1, 1]} : vector<8x32x384xf32> to vector<8x32x32xf32>
    %56 = arith.truncf %55 : vector<8x32x32xf32> to vector<8x32x32xbf16>
    %57 = vector.extract_strided_slice %5 {offsets = [0, 0, 192], sizes = [8, 32, 32], strides = [1, 1, 1]} : vector<8x32x384xf32> to vector<8x32x32xf32>
    %58 = arith.truncf %57 : vector<8x32x32xf32> to vector<8x32x32xbf16>
    %59 = vector.extract_strided_slice %5 {offsets = [0, 0, 320], sizes = [8, 32, 32], strides = [1, 1, 1]} : vector<8x32x384xf32> to vector<8x32x32xf32>
    %60 = arith.truncf %59 : vector<8x32x32xf32> to vector<8x32x32xbf16>
    "tpu.trace_start"() <{level = 10 : i32, message = "bqd,bkd->bqk"}> : () -> ()
    %cst_14 = arith.constant dense<0.000000e+00> : vector<8x32x32xf32>
    %61 = tpu.matmul %56, %58, %cst_14 {dimension_numbers = #tpu.dot_dimension_numbers<[2], [2], [1], [1], [0, 0, 0, 1, 1, 1], [0], [0]>} : vector<8x32x32xbf16>, vector<8x32x32xbf16>, vector<8x32x32xf32> -> vector<8x32x32xf32>
    "tpu.trace_stop"() : () -> ()
    %62 = arith.addf %61, %14 : vector<8x32x32xf32>
    %cst_15 = arith.constant dense<0xFF800000> : vector<8x32xf32>
    %63 = vector.multi_reduction <maximumf>, %62, %cst_15 [2] : vector<8x32x32xf32> to vector<8x32xf32>
    %64 = vector.shape_cast %63 : vector<8x32xf32> to vector<8x32x1xf32>
    %65 = vector.broadcast %64 : vector<8x32x1xf32> to vector<8x32x32xf32>
    %66 = arith.subf %62, %65 : vector<8x32x32xf32>
    %67 = math.exp %66 : vector<8x32x32xf32>
    %cst_16 = arith.constant dense<0.000000e+00> : vector<8x32xf32>
    %68 = vector.multi_reduction <add>, %67, %cst_16 [2] : vector<8x32x32xf32> to vector<8x32xf32>
    %69 = vector.shape_cast %68 : vector<8x32xf32> to vector<8x32x1xf32>
    %70 = tpu.reciprocal %69 {approx = true} : vector<8x32x1xf32> -> vector<8x32x1xf32>
    %71 = vector.broadcast %70 : vector<8x32x1xf32> to vector<8x32x32xf32>
    %72 = arith.mulf %67, %71 : vector<8x32x32xf32>
    %73 = arith.truncf %72 : vector<8x32x32xf32> to vector<8x32x32xbf16>
    "tpu.trace_start"() <{level = 10 : i32, message = "bqk,bkd->bqd"}> : () -> ()
    %cst_17 = arith.constant dense<0.000000e+00> : vector<8x32x32xf32>
    %74 = tpu.matmul %73, %60, %cst_17 {dimension_numbers = #tpu.dot_dimension_numbers<[2], [1], [1], [2], [0, 0, 0, 1, 1, 2], [0], [0]>} : vector<8x32x32xbf16>, vector<8x32x32xbf16>, vector<8x32x32xf32> -> vector<8x32x32xf32>
    "tpu.trace_stop"() : () -> ()
    %75 = vector.extract_strided_slice %5 {offsets = [0, 0, 96], sizes = [8, 32, 32], strides = [1, 1, 1]} : vector<8x32x384xf32> to vector<8x32x32xf32>
    %76 = arith.truncf %75 : vector<8x32x32xf32> to vector<8x32x32xbf16>
    %77 = vector.extract_strided_slice %5 {offsets = [0, 0, 224], sizes = [8, 32, 32], strides = [1, 1, 1]} : vector<8x32x384xf32> to vector<8x32x32xf32>
    %78 = arith.truncf %77 : vector<8x32x32xf32> to vector<8x32x32xbf16>
    %79 = vector.extract_strided_slice %5 {offsets = [0, 0, 352], sizes = [8, 32, 32], strides = [1, 1, 1]} : vector<8x32x384xf32> to vector<8x32x32xf32>
    %80 = arith.truncf %79 : vector<8x32x32xf32> to vector<8x32x32xbf16>
    "tpu.trace_start"() <{level = 10 : i32, message = "bqd,bkd->bqk"}> : () -> ()
    %cst_18 = arith.constant dense<0.000000e+00> : vector<8x32x32xf32>
    %81 = tpu.matmul %76, %78, %cst_18 {dimension_numbers = #tpu.dot_dimension_numbers<[2], [2], [1], [1], [0, 0, 0, 1, 1, 1], [0], [0]>} : vector<8x32x32xbf16>, vector<8x32x32xbf16>, vector<8x32x32xf32> -> vector<8x32x32xf32>
    "tpu.trace_stop"() : () -> ()
    %82 = arith.addf %81, %14 : vector<8x32x32xf32>
    %cst_19 = arith.constant dense<0xFF800000> : vector<8x32xf32>
    %83 = vector.multi_reduction <maximumf>, %82, %cst_19 [2] : vector<8x32x32xf32> to vector<8x32xf32>
    %84 = vector.shape_cast %83 : vector<8x32xf32> to vector<8x32x1xf32>
    %85 = vector.broadcast %84 : vector<8x32x1xf32> to vector<8x32x32xf32>
    %86 = arith.subf %82, %85 : vector<8x32x32xf32>
    %87 = math.exp %86 : vector<8x32x32xf32>
    %cst_20 = arith.constant dense<0.000000e+00> : vector<8x32xf32>
    %88 = vector.multi_reduction <add>, %87, %cst_20 [2] : vector<8x32x32xf32> to vector<8x32xf32>
    %89 = vector.shape_cast %88 : vector<8x32xf32> to vector<8x32x1xf32>
    %90 = tpu.reciprocal %89 {approx = true} : vector<8x32x1xf32> -> vector<8x32x1xf32>
    %91 = vector.broadcast %90 : vector<8x32x1xf32> to vector<8x32x32xf32>
    %92 = arith.mulf %87, %91 : vector<8x32x32xf32>
    %93 = arith.truncf %92 : vector<8x32x32xf32> to vector<8x32x32xbf16>
    "tpu.trace_start"() <{level = 10 : i32, message = "bqk,bkd->bqd"}> : () -> ()
    %cst_21 = arith.constant dense<0.000000e+00> : vector<8x32x32xf32>
    %94 = tpu.matmul %93, %80, %cst_21 {dimension_numbers = #tpu.dot_dimension_numbers<[2], [1], [1], [2], [0, 0, 0, 1, 1, 2], [0], [0]>} : vector<8x32x32xbf16>, vector<8x32x32xbf16>, vector<8x32x32xf32> -> vector<8x32x32xf32>
    "tpu.trace_stop"() : () -> ()
    %95 = tpu.concatenate %34, %54, %74, %94 in 2 : vector<8x32x32xf32>, vector<8x32x32xf32>, vector<8x32x32xf32>, vector<8x32x32xf32> -> vector<8x32x128xf32>
    %96 = vector.shape_cast %95 : vector<8x32x128xf32> to vector<256x128xf32>
    %97 = arith.truncf %96 : vector<256x128xf32> to vector<256x128xbf16>
    %c0_22 = arith.constant 0 : index
    %c0_23 = arith.constant 0 : index
    %98 = vector.load %arg3[%c0_22, %c0_23] : memref<128x128xbf16, #tpu.memory_space<vmem>>, vector<128x128xbf16>
    %cst_24 = arith.constant dense<0.000000e+00> : vector<256x128xf32>
    %99 = tpu.matmul %97, %98, %cst_24 {dimension_numbers = #tpu.dot_dimension_numbers<[1], [0], [0], [1], [0, 0, 1, 1], [], []>} : vector<256x128xbf16>, vector<128x128xbf16>, vector<256x128xf32> -> vector<256x128xf32>
    %100 = arith.addf %1, %99 : vector<256x128xf32>
    %101 = arith.truncf %100 : vector<256x128xf32> to vector<256x128xbf16>
    %c0_25 = arith.constant 0 : index
    %c0_26 = arith.constant 0 : index
    %102 = vector.load %arg4[%c0_25, %c0_26] : memref<128x512xbf16, #tpu.memory_space<vmem>>, vector<128x512xbf16>
    %cst_27 = arith.constant dense<0.000000e+00> : vector<256x512xf32>
    %103 = tpu.matmul %101, %102, %cst_27 {dimension_numbers = #tpu.dot_dimension_numbers<[1], [0], [0], [1], [0, 0, 1, 1], [], []>} : vector<256x128xbf16>, vector<128x512xbf16>, vector<256x512xf32> -> vector<256x512xf32>
    %cst_28 = arith.constant 0.000000e+00 : f32
    %104 = vector.broadcast %cst_28 : f32 to vector<256x512xf32>
    %105 = arith.maximumf %103, %104 : vector<256x512xf32>
    %106 = arith.truncf %105 : vector<256x512xf32> to vector<256x512xbf16>
    %c0_29 = arith.constant 0 : index
    %c0_30 = arith.constant 0 : index
    %107 = vector.load %arg5[%c0_29, %c0_30] : memref<512x128xbf16, #tpu.memory_space<vmem>>, vector<512x128xbf16>
    %cst_31 = arith.constant dense<0.000000e+00> : vector<256x128xf32>
    %108 = tpu.matmul %106, %107, %cst_31 {dimension_numbers = #tpu.dot_dimension_numbers<[1], [0], [0], [1], [0, 0, 1, 1], [], []>} : vector<256x512xbf16>, vector<512x128xbf16>, vector<256x128xf32> -> vector<256x128xf32>
    %109 = arith.addf %100, %108 : vector<256x128xf32>
    %110 = vector.shape_cast %109 : vector<256x128xf32> to vector<8x32x128xf32>
    %c0_32 = arith.constant 0 : index
    %c0_33 = arith.constant 0 : index
    %c0_34 = arith.constant 0 : index
    %111 = vector.load %arg6[%c0_32, %c0_33, %c0_34] : memref<8x32x128xf32, #tpu.memory_space<vmem>>, vector<8x32x128xf32>
    tpu.vector_store %arg6[%c0_32, %c0_33, %c0_34], %110 {strides = array<i32>} : memref<8x32x128xf32, #tpu.memory_space<vmem>>, vector<8x32x128xf32>,
    return
  }
  func.func @transform_0(%arg0: i32) -> (i32, i32, i32) {
    %c0_i32 = arith.constant 0 : i32
    %c0_i32_0 = arith.constant 0 : i32
    %c0_i32_1 = arith.constant 0 : i32
    return %arg0, %c0_i32, %c0_i32_0 : i32, i32, i32
  }
  func.func @transform_1(%arg0: i32) -> (i32, i32) {
    %c0_i32 = arith.constant 0 : i32
    %c0_i32_0 = arith.constant 0 : i32
    %c0_i32_1 = arith.constant 0 : i32
    return %c0_i32, %c0_i32_0 : i32, i32
  }
  func.func @transform_2(%arg0: i32) -> (i32, i32) {
    %c0_i32 = arith.constant 0 : i32
    %c0_i32_0 = arith.constant 0 : i32
    %c0_i32_1 = arith.constant 0 : i32
    return %c0_i32, %c0_i32_0 : i32, i32
  }
  func.func @transform_3(%arg0: i32) -> (i32, i32) {
    %c0_i32 = arith.constant 0 : i32
    %c0_i32_0 = arith.constant 0 : i32
    %c0_i32_1 = arith.constant 0 : i32
    return %c0_i32, %c0_i32_0 : i32, i32
  }
  func.func @transform_4(%arg0: i32) -> (i32, i32) {
    %c0_i32 = arith.constant 0 : i32
    %c0_i32_0 = arith.constant 0 : i32
    %c0_i32_1 = arith.constant 0 : i32
    return %c0_i32, %c0_i32_0 : i32, i32
  }
  func.func @transform_5(%arg0: i32) -> (i32, i32, i32) {
    %c0_i32 = arith.constant 0 : i32
    %c0_i32_0 = arith.constant 0 : i32
    %c0_i32_1 = arith.constant 0 : i32
    return %arg0, %c0_i32, %c0_i32_0 : i32, i32, i32
  }
}

</mosaic_0001>

<bundles_post_ra>
// kernel: tpu_custom_call.1
= control target key start
LH: loop header
LB: loop body
LE: loop exit
PB: predicated region body
PF: predicated region fallthrough
CT: control target
= control target key end

     0   :  { %10 = vsyncpa [#allocation3], 0  ;;  %s14147_s0 = inlined_call_operand.hbm [shape: f32[8,32,128], index: 0, kind: input, shape index: {}]   ;;  %s14148_s1 = inlined_call_operand.hbm [shape: bf16[128,384], index: 1, kind: input, shape index: {}]   ;;  %s14149_s2 = inlined_call_operand.hbm [shape: bf16[128,128], index: 2, kind: input, shape index: {}]   ;;  %s14150_s3 = inlined_call_operand.hbm [shape: bf16[128,512], index: 3, kind: input, shape index: {}]   ;;  %s14151_s4 = inlined_call_operand.hbm [shape: bf16[512,128], index: 4, kind: input, shape index: {}]   ;;  %s14152_s5 = inlined_call_operand.hbm [shape: f32[8,32,128], index: 5, kind: output, shape index: {}]  }
   0x1   :  { %11 = vsyncpa [#allocation6], 0 }
   0x2   :  { %12 = vsyncpa [#allocation9], 0 }
   0x3   :  { %13 = vsyncpa [#allocation4], 0  ;;  %s10988_s18 = smov [#allocation5]   ;;  %s10848_s22 = scalar_lea.hbm %s14148_s1, 3072 }
   0x4   :  { %s31_s19 = sshll.u32 %s10988_s18, 4  ;;  %p10849_p0 = scmp.ne.s32.totalorder %s14148_s1, %s10848_s22  ;;  %s32_s19 = int_to_ptr.vmem [resolvable:$true] %s31_s19 }
   0x5   :  { %p10852_p1 = scmp.lt.u32.totalorder %s10848_s22, %s14148_s1 }
   0x7   :  { %p10854_p2 = pnand %p10852_p1, %p10849_p0 }
   0x9   :  { %10857 = shalt.err (!%p10854_p2)
}
   0xa   :  { %s10858_s27 = scalar_lea.vmem %s32_s19, 3072  ;;  %p10863_p4 = scmp.lt.s32.totalorder %s32_s19, %s32_s19 }
   0xb   :  { %p10859_p3 = scmp.ne.s32.totalorder %s32_s19, %s10858_s27  ;;  %p10864_p5 = scmp.lt.s32.totalorder %s10858_s27, %s10858_s27 }
   0xd   :  { %p10865_p6 = por %p10864_p5, %p10863_p4 }
   0xf   :  { %p10866_p7 = pnand %p10865_p6, %p10859_p3 }
  0x11   :  { %10869 = shalt.err (!%p10866_p7)
}
  0x12   :  { %s10989_s28 = smov 192   ;;  %s10990_s29 = smov 12  }
  0x13   :  { %37 = dma.hbm_to_vmem [thread:$0]  %s14148_s1, 3072, %s32_s19, [#allocation6], %s10989_s28, %s10989_s28, %s10990_s29  }
  0x14   :  { %s10991_s7 = smov [#allocation8]   ;;  %s10870_s11 = scalar_lea.hbm %s14150_s3, 4096 }
  0x15   :  { %s55_s8 = sshll.u32 %s10991_s7, 4  ;;  %p10871_p8 = scmp.ne.s32.totalorder %s14150_s3, %s10870_s11  ;;  %s56_s8 = int_to_ptr.vmem [resolvable:$true] %s55_s8 }
  0x16   :  { %p10874_p9 = scmp.lt.u32.totalorder %s10870_s11, %s14150_s3 }
  0x18   :  { %p10876_p10 = pnand %p10874_p9, %p10871_p8 }
  0x1a   :  { %10879 = shalt.err (!%p10876_p10)
}
  0x1b   :  { %s10880_s16 = scalar_lea.vmem %s56_s8, 4096  ;;  %p10885_p12 = scmp.lt.s32.totalorder %s56_s8, %s56_s8 }
  0x1c   :  { %p10881_p11 = scmp.ne.s32.totalorder %s56_s8, %s10880_s16  ;;  %p10886_p13 = scmp.lt.s32.totalorder %s10880_s16, %s10880_s16 }
  0x1e   :  { %p10887_p0 = por %p10886_p13, %p10885_p12 }
  0x20   :  { %p10888_p1 = pnand %p10887_p0, %p10881_p11 }
  0x22   :  { %10891 = shalt.err (!%p10888_p1)
}
  0x23   :  { %s10992_s1 = smov 256   ;;  %s10993_s17 = smov 16  }
  0x24   :  { %61 = dma.hbm_to_vmem [thread:$0]  %s14150_s3, 4096, %s56_s8, [#allocation9], %s10992_s1, %s10992_s1, %s10993_s17  }
  0x25   :  { %s10994_s20 = smov [#allocation2]   ;;  %s10892_s24 = scalar_lea.hbm %s14147_s0, 4096 }
  0x26   :  { %s19_s21 = sshll.u32 %s10994_s20, 4  ;;  %p10893_p2 = scmp.ne.s32.totalorder %s14147_s0, %s10892_s24  ;;  %s20_s21 = int_to_ptr.vmem [resolvable:$true] %s19_s21 }
  0x27   :  { %p10896_p3 = scmp.lt.u32.totalorder %s10892_s24, %s14147_s0 }
  0x29   :  { %p10898_p4 = pnand %p10896_p3, %p10893_p2 }
  0x2b   :  { %10901 = shalt.err (!%p10898_p4)
}
  0x2c   :  { %s10902_s29 = scalar_lea.vmem %s20_s21, 4096  ;;  %p10907_p6 = scmp.lt.s32.totalorder %s20_s21, %s20_s21 }
  0x2d   :  { %p10903_p5 = scmp.ne.s32.totalorder %s20_s21, %s10902_s29  ;;  %p10908_p7 = scmp.lt.s32.totalorder %s10902_s29, %s10902_s29 }
  0x2f   :  { %p10909_p8 = por %p10908_p7, %p10907_p6 }
  0x31   :  { %p10910_p9 = pnand %p10909_p8, %p10903_p5 }
  0x33   :  { %10913 = shalt.err (!%p10910_p9)
}
  0x34   :  { %s10995_s3 = smov 128   ;;  %s10996_s30 = smov 8  }
  0x35   :  { %25 = dma.hbm_to_vmem [thread:$0]  %s14147_s0, 4096, %s20_s21, [#allocation3], %s10995_s3, %s10995_s3, %s10996_s30  }
  0x36   :  { %s10997_s8 = smov [#allocation7]   ;;  %s10914_s12 = scalar_lea.hbm %s14149_s2, 1024 }
  0x37   :  { %s43_s9 = sshll.u32 %s10997_s8, 4  ;;  %p10915_p10 = scmp.ne.s32.totalorder %s14149_s2, %s10914_s12  ;;  %s44_s9 = int_to_ptr.vmem [resolvable:$true] %s43_s9 }
  0x38   :  { %p10918_p11 = scmp.lt.u32.totalorder %s10914_s12, %s14149_s2 }
  0x3a   :  { %p10920_p12 = pnand %p10918_p11, %p10915_p10 }
  0x3c   :  { %10923 = shalt.err (!%p10920_p12)
}
  0x3d   :  { %s10924_s1 = scalar_lea.vmem %s44_s9, 1024  ;;  %p10929_p0 = scmp.lt.s32.totalorder %s44_s9, %s44_s9 }
  0x3e   :  { %p10925_p13 = scmp.ne.s32.totalorder %s44_s9, %s10924_s1  ;;  %p10930_p1 = scmp.lt.s32.totalorder %s10924_s1, %s10924_s1 }
  0x40   :  { %p10931_p2 = por %p10930_p1, %p10929_p0 }
  0x42   :  { %p10932_p3 = pnand %p10931_p2, %p10925_p13 }
  0x44   :  { %10935 = shalt.err (!%p10932_p3)
}
  0x45   :  { %s10998_s0 = smov 64   ;;  %s10999_s17 = smov 4  }
  0x46   :  { %49 = dma.hbm_to_vmem [thread:$0]  %s14149_s2, 1024, %s44_s9, [#allocation6], %s10998_s0, %s10998_s0, %s10999_s17  }
  0x47   :  { %s11000_s20 = smov [#allocation10]   ;;  %s10936_s24 = scalar_lea.hbm %s14151_s4, 4096 }
  0x48   :  { %s67_s21 = sshll.u32 %s11000_s20, 4  ;;  %p10937_p4 = scmp.ne.s32.totalorder %s14151_s4, %s10936_s24  ;;  %s68_s21 = int_to_ptr.vmem [resolvable:$true] %s67_s21 }
  0x49   :  { %p10940_p5 = scmp.lt.u32.totalorder %s10936_s24, %s14151_s4 }
  0x4b   :  { %p10942_p6 = pnand %p10940_p5, %p10937_p4 }
  0x4d   :  { %10945 = shalt.err (!%p10942_p6)
}
  0x4e   :  { %s10946_s29 = scalar_lea.vmem %s68_s21, 4096  ;;  %p10951_p8 = scmp.lt.s32.totalorder %s68_s21, %s68_s21 }
  0x4f   :  { %p10947_p7 = scmp.ne.s32.totalorder %s68_s21, %s10946_s29  ;;  %p10952_p9 = scmp.lt.s32.totalorder %s10946_s29, %s10946_s29 }
  0x51   :  { %p10953_p10 = por %p10952_p9, %p10951_p8 }
  0x53   :  { %p10954_p11 = pnand %p10953_p10, %p10947_p7 }
  0x55   :  { %10957 = shalt.err (!%p10954_p11)
}
  0x56   :  { %73 = dma.hbm_to_vmem [thread:$0]  %s14151_s4, 4096, %s68_s21, [#allocation9], %s10998_s0, %s10998_s0, %s10999_s17  }
  0x57   :  { %10980 = dma.done.wait [#allocation3], 4096  }
  0x58   :  { %10981 = vsyncadd [#allocation3], 4294963200 }
  0x59   :  { %10982 = dma.done.wait [#allocation6], 4096  }
  0x5a   :  { %10983 = vsyncadd [#allocation6], 4294963200 }
  0x5b   :  { %10984 = dma.done.wait [#allocation9], 8192  }
  0x5c   :  { %10985 = vsyncadd [#allocation9], 4294959104  ;;  %v14153_v0 = vmov 0   ;;  %v10184_v1 = vld [vmem:[#allocation5 + $0x4] ss:$12 sps:$4 sm:$0xff]   ;;  %v91_v18 = vld [vmem:[#allocation2 + $0x8] sm:$0xff] }
  0x5d   :  { %330 = vmatprep.mubr.bf16.mxu0 %v14153_v0  ;;  %450 = vmatprep.mubr.bf16.mxu1 %v14153_v0  ;;  %v10186_v2 = vld [vmem:[#allocation5] ss:$12 sps:$4 sm:$0xff]   ;;  %v10187_v3 = vld [vmem:[#allocation5 + $0x1c] ss:$12 sps:$4 sm:$0xff]   ;;  %v10189_v4 = vld [vmem:[#allocation5 + $0x18] ss:$12 sps:$4 sm:$0xff]  }
  0x5e   :  { %298 = vmatprep.subr.bf16.mxu0 %v10184_v1  ;;  %9846 = vmatprep.subr.bf16.mxu1 %v10184_v1  ;;  %v10190_v5 = vld [vmem:[#allocation5 + $0x34] ss:$12 sps:$4 sm:$0xff]   ;;  %v10192_v6 = vld [vmem:[#allocation5 + $0x30] ss:$12 sps:$4 sm:$0xff]   ;;  %v10193_v7 = vld [vmem:[#allocation5 + $0x4c] ss:$12 sps:$4 sm:$0xff]  }
  0x5f   :  { %299 = vmatpush1.bf16.msra.mxu0 %v10186_v2  ;;  %9854 = vmatpush1.bf16.msra.mxu1 %v10186_v2  ;;  %v10195_v8 = vld [vmem:[#allocation5 + $0x48] ss:$12 sps:$4 sm:$0xff]   ;;  %v10196_v9 = vld [vmem:[#allocation5 + $0x64] ss:$12 sps:$4 sm:$0xff]   ;;  %v10198_v10 = vld [vmem:[#allocation5 + $0x60] ss:$12 sps:$4 sm:$0xff]  }
  0x60   :  { %300 = vmatprep.subr.bf16.mxu0 %v10187_v3  ;;  %9847 = vmatprep.subr.bf16.mxu1 %v10187_v3  ;;  %v10199_v11 = vld [vmem:[#allocation5 + $0x7c] ss:$12 sps:$4 sm:$0xff]   ;;  %v10201_v12 = vld [vmem:[#allocation5 + $0x78] ss:$12 sps:$4 sm:$0xff]   ;;  %v10202_v13 = vld [vmem:[#allocation5 + $0x94] ss:$12 sps:$4 sm:$0xff]  }
  0x61   :  { %v10204_v14 = vld [vmem:[#allocation5 + $0x90] ss:$12 sps:$4 sm:$0xff]   ;;  %v10205_v15 = vld [vmem:[#allocation5 + $0xac] ss:$12 sps:$4 sm:$0xff]   ;;  %v10207_v16 = vld [vmem:[#allocation5 + $0xa8] ss:$12 sps:$4 sm:$0xff]  }
  0x62   :  { %v90_v17 = vld [vmem:[#allocation2] sm:$0xff]  ;;  %v115_v20 = vld [vmem:[#allocation2 + $0xc8] sm:$0xff]  ;;  %v92_v25 = vld [vmem:[#allocation2 + $0x10] sm:$0xff]  ;;  %vm715_vm0 = vcmask 261120   ;;  %s11003_s4 = smov 96   ;;  %s11004_s7 = smov 32  }
  0x63   :  { %301 = vmatpush1.bf16.msra.mxu0 %v10189_v4  ;;  %9855 = vmatpush1.bf16.msra.mxu1 %v10189_v4  ;;  %v114_v19 = vld [vmem:[#allocation2 + $0xc0] sm:$0xff]  ;;  %v10208_v21 = vld [vmem:[#allocation5 + $0x8] ss:$12 sps:$4 sm:$0xff]   ;;  %v122_v22 = vpack.c.bf16 %v91_v18, %v90_v17  ;;  %v93_v26 = vld [vmem:[#allocation2 + $0x18] sm:$0xff]  ;;  %vm6700_vm5 = vcmask 523264   ;;  %vm6733_vm6 = vcmask 785408  }
  0x64   :  { %302 = vmatprep.subr.bf16.mxu0 %v10190_v5  ;;  %9848 = vmatprep.subr.bf16.mxu1 %v10190_v5  ;;  %v11105_v23 = vpack.c.bf16 %v115_v20, %v114_v19  ;;  %v10209_v24 = vld [vmem:[#allocation5 + $0x20] ss:$12 sps:$4 sm:$0xff]   ;;  %v116_v27 = vld [vmem:[#allocation2 + $0xd0] sm:$0xff]  ;;  %v117_v28 = vld [vmem:[#allocation2 + $0xd8] sm:$0xff]  ;;  %v123_v30 = vpack.c.bf16 %v93_v26, %v92_v25  ;;  %s11005_s8 = smov [#allocation11]  }
  0x65   :  { %v10210_v29 = vld [vmem:[#allocation5 + $0x38] ss:$12 sps:$4 sm:$0xff]   ;;  %v11110_v31 = vpack.c.bf16 %v117_v28, %v116_v27  ;;  %v10211_v32 = vld [vmem:[#allocation5 + $0x50] ss:$12 sps:$4 sm:$0xff]   ;;  %v95_v34 = vld [vmem:[#allocation2 + $0x28] sm:$0xff]  ;;  %s8472_s9 = sshll.u32 %s11005_s8, 4  ;;  %s8473_s9 = int_to_ptr.vmem [resolvable:$true] %s8472_s9 }
  0x66   :  { %v94_v33 = vld [vmem:[#allocation2 + $0x20] sm:$0xff]  ;;  %v119_v36 = vld [vmem:[#allocation2 + $0xe8] sm:$0xff]  ;;  %v96_v41 = vld [vmem:[#allocation2 + $0x30] sm:$0xff]  ;;  %s10958_s10 = scalar_lea.vmem %s8473_s9, 4096  ;;  %p10963_p13 = scmp.lt.s32.totalorder %s8473_s9, %s8473_s9 }
  0x67   :  { %303 = vmatpush1.bf16.msra.mxu0 %v10192_v6  ;;  %9856 = vmatpush1.bf16.msra.mxu1 %v10192_v6  ;;  %v118_v35 = vld [vmem:[#allocation2 + $0xe0] sm:$0xff]  ;;  %v10212_v37 = vld [vmem:[#allocation5 + $0x68] ss:$12 sps:$4 sm:$0xff]   ;;  %v124_v38 = vpack.c.bf16 %v95_v34, %v94_v33  ;;  %v97_v42 = vld [vmem:[#allocation2 + $0x38] sm:$0xff]  ;;  %p10959_p12 = scmp.ne.s32.totalorder %s8473_s9, %s10958_s10  ;;  %p10964_p0 = scmp.lt.s32.totalorder %s10958_s10, %s10958_s10 }
  0x68   :  { %304 = vmatprep.subr.bf16.mxu0 %v10193_v7  ;;  %9849 = vmatprep.subr.bf16.mxu1 %v10193_v7  ;;  %v11115_v39 = vpack.c.bf16 %v119_v36, %v118_v35  ;;  %v10213_v40 = vld [vmem:[#allocation5 + $0x80] ss:$12 sps:$4 sm:$0xff]   ;;  %v120_v43 = vld [vmem:[#allocation2 + $0xf0] sm:$0xff]  ;;  %v121_v44 = vld [vmem:[#allocation2 + $0xf8] sm:$0xff]  ;;  %v125_v46 = vpack.c.bf16 %v97_v42, %v96_v41 }
  0x69   :  { %v10214_v45 = vld [vmem:[#allocation5 + $0x98] ss:$12 sps:$4 sm:$0xff]   ;;  %v11120_v47 = vpack.c.bf16 %v121_v44, %v120_v43  ;;  %v10215_v48 = vld [vmem:[#allocation5 + $0xb0] ss:$12 sps:$4 sm:$0xff]   ;;  %v99_v50 = vld [vmem:[#allocation2 + $0x48] sm:$0xff]  ;;  %p10965_p1 = por %p10964_p0, %p10963_p13 }
  0x6a   :  { %v98_v49 = vld [vmem:[#allocation2 + $0x40] sm:$0xff]  ;;  %v100_v52 = vld [vmem:[#allocation2 + $0x50] sm:$0xff]  ;;  %v101_v53 = vld [vmem:[#allocation2 + $0x58] sm:$0xff] }
  0x6b   :  { %305 = vmatpush1.bf16.msra.mxu0 %v10195_v8  ;;  %9857 = vmatpush1.bf16.msra.mxu1 %v10195_v8  ;;  %v126_v51 = vpack.c.bf16 %v99_v50, %v98_v49  ;;  %v127_v54 = vpack.c.bf16 %v101_v53, %v100_v52  ;;  %v102_v55 = vld [vmem:[#allocation2 + $0x60] sm:$0xff]  ;;  %v103_v56 = vld [vmem:[#allocation2 + $0x68] sm:$0xff]  ;;  %v104_v58 = vld [vmem:[#allocation2 + $0x70] sm:$0xff]  ;;  %p10966_p2 = pnand %p10965_p1, %p10959_p12 }
  0x6c   :  { %306 = vmatprep.subr.bf16.mxu0 %v10196_v9  ;;  %9850 = vmatprep.subr.bf16.mxu1 %v10196_v9  ;;  %v128_v57 = vpack.c.bf16 %v103_v56, %v102_v55  ;;  %v105_v59 = vld [vmem:[#allocation2 + $0x78] sm:$0xff]  ;;  %v106_v61 = vld [vmem:[#allocation2 + $0x80] sm:$0xff]  ;;  %v107_v62 = vld [vmem:[#allocation2 + $0x88] sm:$0xff] }
  0x6d   :  { %v129_v60 = vpack.c.bf16 %v105_v59, %v104_v58  ;;  %v130_v63 = vpack.c.bf16 %v107_v62, %v106_v61  ;;  %v108_v1 = vld [vmem:[#allocation2 + $0x90] sm:$0xff]  ;;  %v109_v2 = vld [vmem:[#allocation2 + $0x98] sm:$0xff]  ;;  %v110_v3 = vld [vmem:[#allocation2 + $0xa0] sm:$0xff] }
  0x6e   :  { %v111_v4 = vld [vmem:[#allocation2 + $0xa8] sm:$0xff]  ;;  %v131_v5 = vpack.c.bf16 %v109_v2, %v108_v1  ;;  %v112_v7 = vld [vmem:[#allocation2 + $0xb0] sm:$0xff]  ;;  %v113_v8 = vld [vmem:[#allocation2 + $0xb8] sm:$0xff] }
  0x6f   :  { %307 = vmatpush1.bf16.msra.mxu0 %v10198_v10  ;;  %9858 = vmatpush1.bf16.msra.mxu1 %v10198_v10  ;;  %v132_v6 = vpack.c.bf16 %v111_v4, %v110_v3  ;;  %v133_v9 = vpack.c.bf16 %v113_v8, %v112_v7 }
  0x70   :  { %308 = vmatprep.subr.bf16.mxu0 %v10199_v11  ;;  %9851 = vmatprep.subr.bf16.mxu1 %v10199_v11 }
  0x73   :  { %309 = vmatpush1.bf16.msra.mxu0 %v10201_v12  ;;  %9859 = vmatpush1.bf16.msra.mxu1 %v10201_v12 }
  0x74   :  { %310 = vmatprep.subr.bf16.mxu0 %v10202_v13  ;;  %9852 = vmatprep.subr.bf16.mxu1 %v10202_v13 }
  0x77   :  { %311 = vmatpush1.bf16.msra.mxu0 %v10204_v14  ;;  %9860 = vmatpush1.bf16.msra.mxu1 %v10204_v14 }
  0x78   :  { %312 = vmatprep.subr.bf16.mxu0 %v10205_v15  ;;  %9853 = vmatprep.subr.bf16.mxu1 %v10205_v15 }
  0x7b   :  { %313 = vmatpush1.bf16.msra.mxu0 %v10207_v16  ;;  %9861 = vmatpush1.bf16.msra.mxu1 %v10207_v16 }
  0x7c   :  { %9238 = vmatprep.subr.bf16.mxu1 %v10208_v21 }
  0x7e   :  { %331 = vmatmul.mubr.bf16.vlgmr.msra.gmra.mrb[0].mxu0 %v122_v22  ;;  %451 = vmatmul.mubr.bf16.vlgmr.msra.gmra.mrb[0].mxu1 %v11105_v23 }
  0x7f   :  { %340 = vmatprep.mubr.bf16.mxu0 %v14153_v0  ;;  %460 = vmatprep.mubr.bf16.mxu1 %v14153_v0 }
  0x80   :  { %9239 = vmatpush3.bf16.msra.mxu1 %v10208_v21 }
  0x81   :  { %9240 = vmatprep.subr.bf16.mxu1 %v10209_v24 }
  0x84   :  { %9241 = vmatpush3.bf16.msra.mxu1 %v10209_v24 }
  0x85   :  { %9242 = vmatprep.subr.bf16.mxu1 %v10210_v29 }
  0x86   :  { %341 = vmatmul.mubr.bf16.gmra.mrb[4].mxu0 %v123_v30  ;;  %461 = vmatmul.mubr.bf16.gmra.mrb[4].mxu1 %v11110_v31 }
  0x87   :  { %350 = vmatprep.mubr.bf16.mxu0 %v14153_v0  ;;  %470 = vmatprep.mubr.bf16.mxu1 %v14153_v0 }
  0x88   :  { %9243 = vmatpush3.bf16.msra.mxu1 %v10210_v29 }
  0x89   :  { %9244 = vmatprep.subr.bf16.mxu1 %v10211_v32 }
  0x8c   :  { %9245 = vmatpush3.bf16.msra.mxu1 %v10211_v32 }
  0x8d   :  { %9246 = vmatprep.subr.bf16.mxu1 %v10212_v37 }
  0x8e   :  { %351 = vmatmul.mubr.bf16.gmra.mrb[8].mxu0 %v124_v38  ;;  %471 = vmatmul.mubr.bf16.gmra.mrb[8].mxu1 %v11115_v39 }
  0x8f   :  { %360 = vmatprep.mubr.bf16.mxu0 %v14153_v0  ;;  %480 = vmatprep.mubr.bf16.mxu1 %v14153_v0 }
  0x90   :  { %9247 = vmatpush3.bf16.msra.mxu1 %v10212_v37 }
  0x91   :  { %9248 = vmatprep.subr.bf16.mxu1 %v10213_v40 }
  0x94   :  { %9249 = vmatpush3.bf16.msra.mxu1 %v10213_v40 }
  0x95   :  { %9250 = vmatprep.subr.bf16.mxu1 %v10214_v45 }
  0x96   :  { %361 = vmatmul.mubr.bf16.gmra.mrb[12].mxu0 %v125_v46  ;;  %481 = vmatmul.mubr.bf16.gmra.mrb[12].mxu1 %v11120_v47 }
  0x97   :  { %370 = vmatprep.mubr.bf16.mxu0 %v14153_v0  ;;  %9254 = vmatprep.mubr.bf16.mxu1 %v122_v22 }
  0x98   :  { %9251 = vmatpush3.bf16.msra.mxu1 %v10214_v45 }
  0x99   :  { %9252 = vmatprep.subr.bf16.mxu1 %v10215_v48 }
  0x9c   :  { %9253 = vmatpush3.bf16.msra.mxu1 %v10215_v48 }
  0x9e   :  { %371 = vmatmul.mubr.bf16.gmra.mrb[16].mxu0 %v126_v51 }
  0x9f   :  { %380 = vmatprep.mubr.bf16.mxu0 %v14153_v0  ;;  %9255 = vmatmul.mubr.bf16.vlgmr.msra.gmra.mrb[16].mxu1 %v123_v30 }
  0xa0   :  { %9258 = vmatprep.mubr.bf16.mxu1 %v124_v38 }
  0xa6   :  { %381 = vmatmul.mubr.bf16.gmra.mrb[20].mxu0 %v127_v54 }
  0xa7   :  { %390 = vmatprep.mubr.bf16.mxu0 %v14153_v0  ;;  %9259 = vmatmul.mubr.bf16.gmra.mrb[20].mxu1 %v125_v46 }
  0xa8   :  { %9262 = vmatprep.mubr.bf16.mxu1 %v126_v51 }
  0xae   :  { %391 = vmatmul.mubr.bf16.gmra.mrb[24].mxu0 %v128_v57 }
  0xaf   :  { %400 = vmatprep.mubr.bf16.mxu0 %v14153_v0  ;;  %9263 = vmatmul.mubr.bf16.gmra.mrb[24].mxu1 %v127_v54 }
  0xb0   :  { %9266 = vmatprep.mubr.bf16.mxu1 %v128_v57 }
  0xb6   :  { %401 = vmatmul.mubr.bf16.gmra.mrb[28].mxu0 %v129_v60 }
  0xb7   :  { %410 = vmatprep.mubr.bf16.mxu0 %v14153_v0  ;;  %9267 = vmatmul.mubr.bf16.gmra.mrb[28].mxu1 %v129_v60 }
  0xb8   :  { %9270 = vmatprep.mubr.bf16.mxu1 %v130_v63 }
  0xbe   :  { %411 = vmatmul.mubr.bf16.gmra.mrb[32].mxu0 %v130_v63 }
  0xbf   :  { %420 = vmatprep.mubr.bf16.mxu0 %v14153_v0  ;;  %9271 = vmatmul.mubr.bf16.gmra.mrb[32].mxu1 %v131_v5 }
  0xc0   :  { %9274 = vmatprep.mubr.bf16.mxu1 %v132_v6 }
  0xc6   :  { %421 = vmatmul.mubr.bf16.gmra.mrb[36].mxu0 %v131_v5 }
  0xc7   :  { %430 = vmatprep.mubr.bf16.mxu0 %v14153_v0  ;;  %9275 = vmatmul.mubr.bf16.gmra.mrb[36].mxu1 %v133_v9 }
  0xc8   :  { %9278 = vmatprep.mubr.bf16.mxu1 %v11105_v23 }
  0xce   :  { %431 = vmatmul.mubr.bf16.gmra.mrb[40].mxu0 %v132_v6 }
  0xcf   :  { %440 = vmatprep.mubr.bf16.mxu0 %v14153_v0  ;;  %9279 = vmatmul.mubr.bf16.gmra.mrb[40].mxu1 %v11110_v31 }
  0xd0   :  { %9282 = vmatprep.mubr.bf16.mxu1 %v11115_v39 }
  0xd6   :  { %441 = vmatmul.mubr.bf16.gmra.mrb[44].mxu0 %v133_v9 }
  0xd7   :  { %9283 = vmatmul.mubr.bf16.gmra.mrb[44].mxu1 %v11120_v47 }
 0x151   :  { %v332_v10 = vpop.f32.mrb[0].mxu0  ;;  %v452_v11 = vpop.f32.mrb[0].mxu1 }
 0x152   :  { %v334_v12 = vpop.f32.mrb[1].mxu0  ;;  %v454_v13 = vpop.f32.mrb[1].mxu1 }
 0x153   :  { %v336_v14 = vpop.f32.mrb[2].mxu0  ;;  %v456_v15 = vpop.f32.mrb[2].mxu1 }
 0x154   :  { %v11135_v16 = vpack.c.bf16 %v336_v14, %v332_v10  ;;  %v338_v17 = vpop.f32.mrb[3].mxu0  ;;  %v11137_v18 = vpack.c.bf16 %v456_v15, %v452_v11  ;;  %v458_v19 = vpop.f32.mrb[3].mxu1 }
 0x155   :  { %v11139_v20 = vpack.c.bf16 %v338_v17, %v334_v12  ;;  %v11141_v21 = vpack.c.bf16 %v458_v19, %v454_v13 }
 0x156   :  { %14334 = vst [vmem:[#allocation16_spill] sm:$0xff] %v11135_v16  ;;  %14335 = vst [vmem:[#allocation17_spill] sm:$0xff] %v11137_v18  ;;  %9290 = vmatprep.mubr.msk.bf16.mxu1 %vm715_vm0, %v11135_v16 }
 0x157   :  { %14336 = vst [vmem:[#allocation18_spill] sm:$0xff] %v11139_v20  ;;  %14337 = vst [vmem:[#allocation19_spill] sm:$0xff] %v11141_v21  ;;  %9862 = vmatprep.subr.msk.bf16.mxu1 %vm715_vm0, %v11139_v20  ;;  %v723_v22 = vsel %vm715_vm0, %v11139_v20, 0 }
 0x158   :  { %9287 = vmatpush3.bf16.xpose.msra.mxu1 %v723_v22 }
 0x159   :  { %v342_v23 = vpop.f32.mrb[4].mxu0  ;;  %v462_v24 = vpop.f32.mrb[4].mxu1 }
 0x15a   :  { %v344_v25 = vpop.f32.mrb[5].mxu0  ;;  %v464_v26 = vpop.f32.mrb[5].mxu1 }
 0x15b   :  { %v346_v27 = vpop.f32.mrb[6].mxu0  ;;  %v466_v28 = vpop.f32.mrb[6].mxu1 }
 0x15c   :  { %v11149_v29 = vpack.c.bf16 %v346_v27, %v342_v23  ;;  %v348_v30 = vpop.f32.mrb[7].mxu0  ;;  %v11151_v31 = vpack.c.bf16 %v466_v28, %v462_v24  ;;  %v468_v32 = vpop.f32.mrb[7].mxu1 }
 0x15d   :  { %v11153_v33 = vpack.c.bf16 %v348_v30, %v344_v25  ;;  %v11155_v34 = vpack.c.bf16 %v468_v32, %v464_v26 }
 0x15e   :  { %14338 = vst [vmem:[#allocation20_spill] sm:$0xff] %v11151_v31 }
 0x15f   :  { %14339 = vst [vmem:[#allocation21_spill] sm:$0xff] %v11153_v33  ;;  %14340 = vst [vmem:[#allocation22_spill] sm:$0xff] %v11155_v34  ;;  %9863 = vmatprep.subr.msk.bf16.mxu1 %vm715_vm0, %v11153_v33  ;;  %v726_v35 = vsel %vm715_vm0, %v11153_v33, 0 }
 0x160   :  { %9289 = vmatpush3.bf16.xpose.msra.mxu1 %v726_v35 }
 0x161   :  { %v352_v36 = vpop.f32.mrb[8].mxu0  ;;  %v472_v37 = vpop.f32.mrb[8].mxu1 }
 0x162   :  { %v354_v38 = vpop.f32.mrb[9].mxu0  ;;  %v474_v39 = vpop.f32.mrb[9].mxu1 }
 0x163   :  { %v356_v40 = vpop.f32.mrb[10].mxu0  ;;  %v476_v41 = vpop.f32.mrb[10].mxu1 }
 0x164   :  { %v11161_v42 = vpack.c.bf16 %v356_v40, %v352_v36  ;;  %v358_v43 = vpop.f32.mrb[11].mxu0  ;;  %v11163_v44 = vpack.c.bf16 %v476_v41, %v472_v37  ;;  %v478_v45 = vpop.f32.mrb[11].mxu1 }
 0x165   :  { %v11165_v46 = vpack.c.bf16 %v358_v43, %v354_v38  ;;  %v11167_v47 = vpack.c.bf16 %v478_v45, %v474_v39 }
 0x166   :  { %14341 = vst [vmem:[#allocation23_spill] sm:$0xff] %v11163_v44 }
 0x167   :  { %14342 = vst [vmem:[#allocation24_spill] sm:$0xff] %v11165_v46  ;;  %14343 = vst [vmem:[#allocation25_spill] sm:$0xff] %v11167_v47  ;;  %9291 = vmatmul.mubr.msk.bf16.vlgmr.msra.gmra.mrb[48].mxu1 %vm715_vm0, %v11149_v29  ;;  %9864 = vmatprep.subr.msk.bf16.mxu1 %vm715_vm0, %v11165_v46  ;;  %v784_v48 = vsel %vm715_vm0, %v11165_v46, 0 }
 0x168   :  { %9295 = vmatpush3.bf16.xpose.msra.mxu1 %v784_v48  ;;  %9298 = vmatprep.mubr.msk.bf16.mxu1 %vm715_vm0, %v11161_v42 }
 0x169   :  { %v362_v49 = vpop.f32.mrb[12].mxu0  ;;  %v482_v50 = vpop.f32.mrb[12].mxu1 }
 0x16a   :  { %v364_v51 = vpop.f32.mrb[13].mxu0  ;;  %v484_v52 = vpop.f32.mrb[13].mxu1 }
 0x16b   :  { %v366_v53 = vpop.f32.mrb[14].mxu0  ;;  %v486_v54 = vpop.f32.mrb[14].mxu1 }
 0x16c   :  { %v11177_v55 = vpack.c.bf16 %v366_v53, %v362_v49  ;;  %v368_v56 = vpop.f32.mrb[15].mxu0  ;;  %v11179_v57 = vpack.c.bf16 %v486_v54, %v482_v50  ;;  %v488_v58 = vpop.f32.mrb[15].mxu1 }
 0x16d   :  { %v11181_v59 = vpack.c.bf16 %v368_v56, %v364_v51  ;;  %v11183_v60 = vpack.c.bf16 %v488_v58, %v484_v52 }
 0x16e   :  { %14344 = vst [vmem:[#allocation26_spill] sm:$0xff] %v11179_v57 }
 0x16f   :  { %14345 = vst [vmem:[#allocation27_spill] sm:$0xff] %v11183_v60  ;;  %9865 = vmatprep.subr.msk.bf16.mxu1 %vm715_vm0, %v11181_v59  ;;  %v787_v61 = vsel %vm715_vm0, %v11181_v59, 0 }
 0x170   :  { %9297 = vmatpush3.bf16.xpose.msra.mxu1 %v787_v61 }
 0x171   :  { %v372_v62 = vpop.f32.mrb[16].mxu0 }
 0x172   :  { %v374_v63 = vpop.f32.mrb[17].mxu0  ;;  %v9256_v1 = vpop.f32.mrb[16].mxu1 }
 0x173   :  { %v376_v2 = vpop.f32.mrb[18].mxu0  ;;  %v525_v3 = vpop.f32.mrb[17].mxu1 }
 0x174   :  { %v11189_v4 = vpack.c.bf16 %v376_v2, %v372_v62  ;;  %v378_v5 = vpop.f32.mrb[19].mxu0  ;;  %v9257_v6 = vpop.f32.mrb[18].mxu1 }
 0x175   :  { %v11191_v7 = vpack.c.bf16 %v378_v5, %v374_v63  ;;  %v11193_v8 = vpack.c.bf16 %v9257_v6, %v9256_v1  ;;  %v528_v9 = vpop.f32.mrb[19].mxu1 }
 0x176   :  { %14346 = vst [vmem:[#allocation28_spill] sm:$0xff] %v11189_v4  ;;  %v11195_v10 = vpack.c.bf16 %v528_v9, %v525_v3 }
 0x177   :  { %14347 = vst [vmem:[#allocation29_spill] sm:$0xff] %v11191_v7  ;;  %14348 = vst [vmem:[#allocation30_spill] sm:$0xff] %v11193_v8  ;;  %9299 = vmatmul.mubr.msk.bf16.vlgmr.msra.gmra.mrb[52].mxu1 %vm715_vm0, %v11177_v55  ;;  %9866 = vmatprep.subr.msk.bf16.mxu1 %vm715_vm0, %v11191_v7  ;;  %v845_v11 = vsel %vm715_vm0, %v11191_v7, 0 }
 0x178   :  { %14349 = vst [vmem:[#allocation31_spill] sm:$0xff] %v11195_v10  ;;  %9303 = vmatpush3.bf16.xpose.msra.mxu1 %v845_v11  ;;  %9306 = vmatprep.mubr.msk.bf16.mxu1 %vm715_vm0, %v11189_v4 }
 0x179   :  { %v382_v12 = vpop.f32.mrb[20].mxu0 }
 0x17a   :  { %v384_v13 = vpop.f32.mrb[21].mxu0  ;;  %v9260_v14 = vpop.f32.mrb[20].mxu1 }
 0x17b   :  { %v386_v15 = vpop.f32.mrb[22].mxu0  ;;  %v541_v17 = vpop.f32.mrb[21].mxu1 }
 0x17c   :  { %v11205_v19 = vpack.c.bf16 %v386_v15, %v382_v12  ;;  %v388_v22 = vpop.f32.mrb[23].mxu0  ;;  %v9261_v23 = vpop.f32.mrb[22].mxu1 }
 0x17d   :  { %v11207_v24 = vpack.c.bf16 %v388_v22, %v384_v13  ;;  %v11209_v25 = vpack.c.bf16 %v9261_v23, %v9260_v14  ;;  %v544_v26 = vpop.f32.mrb[23].mxu1 }
 0x17e   :  { %14350 = vst [vmem:[#allocation32_spill] sm:$0xff] %v11205_v19  ;;  %v11211_v27 = vpack.c.bf16 %v544_v26, %v541_v17 }
 0x17f   :  { %14351 = vst [vmem:[#allocation33_spill] sm:$0xff] %v11207_v24  ;;  %14352 = vst [vmem:[#allocation34_spill] sm:$0xff] %v11209_v25  ;;  %9867 = vmatprep.subr.msk.bf16.mxu1 %vm715_vm0, %v11207_v24  ;;  %v848_v28 = vsel %vm715_vm0, %v11207_v24, 0 }
 0x180   :  { %14353 = vst [vmem:[#allocation35_spill] sm:$0xff] %v11211_v27  ;;  %9305 = vmatpush3.bf16.xpose.msra.mxu1 %v848_v28 }
 0x181   :  { %v392_v30 = vpop.f32.mrb[24].mxu0 }
 0x182   :  { %v394_v32 = vpop.f32.mrb[25].mxu0  ;;  %v9264_v35 = vpop.f32.mrb[24].mxu1 }
 0x183   :  { %v396_v36 = vpop.f32.mrb[26].mxu0  ;;  %v557_v37 = vpop.f32.mrb[25].mxu1 }
 0x184   :  { %v11217_v38 = vpack.c.bf16 %v396_v36, %v392_v30  ;;  %v398_v39 = vpop.f32.mrb[27].mxu0  ;;  %v9265_v40 = vpop.f32.mrb[26].mxu1 }
 0x185   :  { %v11219_v41 = vpack.c.bf16 %v398_v39, %v394_v32  ;;  %v11221_v43 = vpack.c.bf16 %v9265_v40, %v9264_v35  ;;  %v560_v45 = vpop.f32.mrb[27].mxu1 }
 0x186   :  { %14354 = vst [vmem:[#allocation36_spill] sm:$0xff] %v11217_v38  ;;  %v11223_v48 = vpack.c.bf16 %v560_v45, %v557_v37 }
 0x187   :  { %14355 = vst [vmem:[#allocation37_spill] sm:$0xff] %v11221_v43  ;;  %9307 = vmatmul.mubr.msk.bf16.vlgmr.msra.gmra.mrb[56].mxu1 %vm715_vm0, %v11205_v19  ;;  %9868 = vmatprep.subr.msk.bf16.mxu1 %vm715_vm0, %v11219_v41  ;;  %v906_v49 = vsel %vm715_vm0, %v11219_v41, 0 }
 0x188   :  { %14356 = vst [vmem:[#allocation38_spill] sm:$0xff] %v11223_v48  ;;  %9311 = vmatpush3.bf16.xpose.msra.mxu1 %v906_v49  ;;  %9314 = vmatprep.mubr.msk.bf16.mxu1 %vm715_vm0, %v11217_v38 }
 0x189   :  { %v402_v50 = vpop.f32.mrb[28].mxu0 }
 0x18a   :  { %v404_v51 = vpop.f32.mrb[29].mxu0  ;;  %v9268_v52 = vpop.f32.mrb[28].mxu1 }
 0x18b   :  { %v406_v53 = vpop.f32.mrb[30].mxu0  ;;  %v573_v54 = vpop.f32.mrb[29].mxu1 }
 0x18c   :  { %v11233_v56 = vpack.c.bf16 %v406_v53, %v402_v50  ;;  %v408_v58 = vpop.f32.mrb[31].mxu0  ;;  %v9269_v61 = vpop.f32.mrb[30].mxu1 }
 0x18d   :  { %v11235_v62 = vpack.c.bf16 %v408_v58, %v404_v51  ;;  %v11237_v63 = vpack.c.bf16 %v9269_v61, %v9268_v52  ;;  %v576_v1 = vpop.f32.mrb[31].mxu1 }
 0x18e   :  { %14357 = vst [vmem:[#allocation39_spill] sm:$0xff] %v11233_v56  ;;  %v11239_v2 = vpack.c.bf16 %v576_v1, %v573_v54 }
 0x18f   :  { %14358 = vst [vmem:[#allocation40_spill] sm:$0xff] %v11237_v63  ;;  %9869 = vmatprep.subr.msk.bf16.mxu1 %vm715_vm0, %v11235_v62  ;;  %v909_v3 = vsel %vm715_vm0, %v11235_v62, 0 }
 0x190   :  { %14359 = vst [vmem:[#allocation41_spill] sm:$0xff] %v11239_v2  ;;  %9313 = vmatpush3.bf16.xpose.msra.mxu1 %v909_v3 }
 0x191   :  { %v412_v5 = vpop.f32.mrb[32].mxu0 }
 0x192   :  { %v414_v6 = vpop.f32.mrb[33].mxu0  ;;  %v9272_v9 = vpop.f32.mrb[32].mxu1 }
 0x193   :  { %v416_v11 = vpop.f32.mrb[34].mxu0  ;;  %v589_v12 = vpop.f32.mrb[33].mxu1 }
 0x194   :  { %v11245_v13 = vpack.c.bf16 %v416_v11, %v412_v5  ;;  %v418_v14 = vpop.f32.mrb[35].mxu0  ;;  %v9273_v15 = vpop.f32.mrb[34].mxu1 }
 0x195   :  { %v11247_v17 = vpack.c.bf16 %v418_v14, %v414_v6  ;;  %v11249_v22 = vpack.c.bf16 %v9273_v15, %v9272_v9  ;;  %v592_v23 = vpop.f32.mrb[35].mxu1 }
 0x196   :  { %14360 = vst [vmem:[#allocation42_spill] sm:$0xff] %v11245_v13  ;;  %9322 = vmatprep.mubr.msk.bf16.mxu0 %vm715_vm0, %v11245_v13  ;;  %v11253_v26 = vpack.c.bf16 %v592_v23, %v589_v12  ;;  %v1089_v12 = vsel %vm715_vm0, %v11141_v21, 0 }
 0x197   :  { %14361 = vst [vmem:[#allocation43_spill] sm:$0xff] %v11247_v17  ;;  %14362 = vst [vmem:[#allocation44_spill] sm:$0xff] %v11249_v22  ;;  %9315 = vmatmul.mubr.msk.bf16.vlgmr.msra.gmra.mrb[60].mxu1 %vm715_vm0, %v11233_v56  ;;  %9870 = vmatprep.subr.msk.bf16.mxu0 %vm715_vm0, %v11247_v17  ;;  %v967_v28 = vsel %vm715_vm0, %v11247_v17, 0 }
 0x198   :  { %14363 = vst [vmem:[#allocation45_spill] sm:$0xff] %v11253_v26  ;;  %9319 = vmatpush3.bf16.xpose.msra.mxu0 %v967_v28 }
 0x199   :  { %v422_v30 = vpop.f32.mrb[36].mxu0 }
 0x19a   :  { %v424_v32 = vpop.f32.mrb[37].mxu0  ;;  %v9276_v35 = vpop.f32.mrb[36].mxu1 }
 0x19b   :  { %v426_v36 = vpop.f32.mrb[38].mxu0  ;;  %v605_v37 = vpop.f32.mrb[37].mxu1 }
 0x19c   :  { %v11261_v39 = vpack.c.bf16 %v426_v36, %v422_v30  ;;  %v428_v40 = vpop.f32.mrb[39].mxu0  ;;  %v9277_v45 = vpop.f32.mrb[38].mxu1 }
 0x19d   :  { %v11263_v49 = vpack.c.bf16 %v428_v40, %v424_v32  ;;  %v11265_v50 = vpack.c.bf16 %v9277_v45, %v9276_v35  ;;  %v608_v51 = vpop.f32.mrb[39].mxu1 }
 0x19e   :  { %14364 = vst [vmem:[#allocation46_spill] sm:$0xff] %v11261_v39  ;;  %v11267_v52 = vpack.c.bf16 %v608_v51, %v605_v37 }
 0x19f   :  { %14365 = vst [vmem:[#allocation47_spill] sm:$0xff] %v11263_v49  ;;  %14366 = vst [vmem:[#allocation48_spill] sm:$0xff] %v11265_v50  ;;  %9871 = vmatprep.subr.msk.bf16.mxu0 %vm715_vm0, %v11263_v49  ;;  %v970_v53 = vsel %vm715_vm0, %v11263_v49, 0 }
 0x1a0   :  { %14367 = vst [vmem:[#allocation49_spill] sm:$0xff] %v11267_v52  ;;  %9321 = vmatpush3.bf16.xpose.msra.mxu0 %v970_v53 }
 0x1a1   :  { %v432_v54 = vpop.f32.mrb[40].mxu0  ;;  %9874 = vmatprep.subr.msk.bf16.mxu0 %vm715_vm0, %v11141_v21 }
 0x1a2   :  { %v434_v58 = vpop.f32.mrb[41].mxu0  ;;  %v9280_v61 = vpop.f32.mrb[40].mxu1 }
 0x1a3   :  { %v436_v1 = vpop.f32.mrb[42].mxu0  ;;  %v621_v3 = vpop.f32.mrb[41].mxu1 }
 0x1a4   :  { %v11275_v5 = vpack.c.bf16 %v436_v1, %v432_v54  ;;  %v438_v6 = vpop.f32.mrb[43].mxu0  ;;  %v9281_v9 = vpop.f32.mrb[42].mxu1  ;;  %v1092_v54 = vsel %vm715_vm0, %v11155_v34, 0 }
 0x1a5   :  { %v11277_v11 = vpack.c.bf16 %v438_v6, %v434_v58  ;;  %v11281_v14 = vpack.c.bf16 %v9281_v9, %v9280_v61  ;;  %v624_v15 = vpop.f32.mrb[43].mxu1  ;;  %v1150_v6 = vsel %vm715_vm0, %v11167_v47, 0  ;;  %v1153_v9 = vsel %vm715_vm0, %v11183_v60, 0 }
 0x1a6   :  { %14368 = vst [vmem:[#allocation50_spill] sm:$0xff] %v11275_v5  ;;  %9330 = vmatprep.mubr.msk.bf16.mxu1 %vm715_vm0, %v11275_v5  ;;  %v11285_v23 = vpack.c.bf16 %v624_v15, %v621_v3 }
 0x1a7   :  { %14369 = vst [vmem:[#allocation51_spill] sm:$0xff] %v11277_v11  ;;  %14370 = vst [vmem:[#allocation52_spill] sm:$0xff] %v11281_v14  ;;  %9323 = vmatmul.mubr.msk.bf16.vlgmr.msra.gmra.mrb[48].mxu0 %vm715_vm0, %v11261_v39  ;;  %9872 = vmatprep.subr.msk.bf16.mxu1 %vm715_vm0, %v11277_v11  ;;  %v1028_v28 = vsel %vm715_vm0, %v11277_v11, 0 }
 0x1a8   :  { %14371 = vst [vmem:[#allocation53_spill] sm:$0xff] %v11285_v23  ;;  %9327 = vmatpush3.bf16.xpose.msra.mxu1 %v1028_v28  ;;  %9335 = vmatpush3.bf16.xpose.msra.mxu0 %v1089_v12  ;;  %v652_v12 = vlaneseq }
 0x1a9   :  { %v442_v30 = vpop.f32.mrb[44].mxu0  ;;  %9875 = vmatprep.subr.msk.bf16.mxu0 %vm715_vm0, %v11155_v34  ;;  %9338 = vmatprep.mubr.msk.bf16.mxu0 %vm715_vm0, %v11137_v18 }
 0x1aa   :  { %v444_v32 = vpop.f32.mrb[45].mxu0  ;;  %v9284_v35 = vpop.f32.mrb[44].mxu1  ;;  %v653_v15 = vshrl.u32 %v652_v12, 7 }
 0x1ab   :  { %v446_v36 = vpop.f32.mrb[46].mxu0  ;;  %v637_v37 = vpop.f32.mrb[45].mxu1 }
 0x1ac   :  { %v11297_v40 = vpack.c.bf16 %v446_v36, %v442_v30  ;;  %v448_v45 = vpop.f32.mrb[47].mxu0  ;;  %v9285_v51 = vpop.f32.mrb[46].mxu1  ;;  %v655_v28 = vadd.s32 16, %v653_v15  ;;  %v658_v30 = vand.u32 127, %v652_v12  ;;  %v11002_v36 = vmov -1e+30  }
 0x1ad   :  { %v11299_v53 = vpack.c.bf16 %v448_v45, %v444_v32  ;;  %v11303_v58 = vpack.c.bf16 %v9285_v51, %v9284_v35  ;;  %v640_v61 = vpop.f32.mrb[47].mxu1  ;;  %v656_v32 = vadd.s32 24, %v653_v15  ;;  %v654_v35 = vadd.s32 8, %v653_v15 }
 0x1ae   :  { %14372 = vst [vmem:[#allocation54_spill] sm:$0xff] %v11297_v40  ;;  %v11305_v1 = vpack.c.bf16 %v640_v61, %v637_v37  ;;  %vm661_vm1 = vcmp.le.s32.totalorder %v658_v30, %v655_v28  ;;  %vm659_vm2 = vcmp.le.s32.totalorder %v658_v30, %v653_v15 }
 0x1af   :  { %14373 = vst [vmem:[#allocation55_spill] sm:$0xff] %v11299_v53  ;;  %14374 = vst [vmem:[#allocation56_spill] sm:$0xff] %v11303_v58  ;;  %9873 = vmatprep.subr.msk.bf16.mxu1 %vm715_vm0, %v11299_v53  ;;  %v1031_v3 = vsel %vm715_vm0, %v11299_v53, 0  ;;  %vm662_vm3 = vcmp.le.s32.totalorder %v658_v30, %v656_v32  ;;  %v11337_v37 = vsel %vm661_vm1, 0.0, %v11002_v36  ;;  %vm660_vm4 = vcmp.le.s32.totalorder %v658_v30, %v654_v35 }
 0x1b0   :  { %14375 = vst [vmem:[#allocation57_spill] sm:$0xff] %v11305_v1  ;;  %9329 = vmatpush3.bf16.xpose.msra.mxu1 %v1031_v3  ;;  %9337 = vmatpush3.bf16.xpose.msra.mxu0 %v1092_v54  ;;  %14376 = vst [vmem:[#allocation58_spill] sm:$0xff] %v11337_v37  ;;  %v11339_v45 = vsel %vm659_vm2, 0.0, %v11002_v36  ;;  %v11341_v54 = vsel %vm662_vm3, 0.0, %v11002_v36 }
 0x1b1   :  { %9876 = vmatprep.subr.msk.bf16.mxu1 %vm715_vm0, %v11167_v47  ;;  %9350 = vmatprep.subr.bf16.mxu0 %v11195_v10  ;;  %14377 = vst [vmem:[#allocation59_spill] sm:$0xff] %v11339_v45  ;;  %14378 = vst [vmem:[#allocation60_spill] sm:$0xff] %v11341_v54 }
 0x1b7   :  { %9339 = vmatmul.mubr.msk.bf16.vlgmr.msra.gmra.mrb[52].mxu0 %vm715_vm0, %v11151_v31  ;;  %9331 = vmatmul.mubr.msk.bf16.vlgmr.msra.gmra.mrb[64].mxu1 %vm715_vm0, %v11297_v40 }
 0x1b8   :  { %9343 = vmatpush3.bf16.xpose.msra.mxu1 %v1150_v6  ;;  %9346 = vmatprep.mubr.msk.bf16.mxu1 %vm715_vm0, %v11163_v44  ;;  %v11346_v6 = vsel %vm660_vm4, 0.0, %v11002_v36 }
 0x1b9   :  { %9877 = vmatprep.subr.msk.bf16.mxu1 %vm715_vm0, %v11183_v60  ;;  %9351 = vmatpush3.bf16.msra.mxu0 %v11195_v10  ;;  %14379 = vst [vmem:[#allocation61_spill] sm:$0xff] %v11346_v6 }
 0x1ba   :  { %9352 = vmatprep.subr.bf16.mxu0 %v11193_v8 }
 0x1bd   :  { %9353 = vmatpush3.bf16.msra.mxu0 %v11193_v8 }
 0x1be   :  { %9366 = vmatprep.subr.bf16.mxu0 %v11223_v48 }
 0x1c0   :  { %9345 = vmatpush3.bf16.xpose.msra.mxu1 %v1153_v9 }
 0x1c1   :  { %9358 = vmatprep.subr.bf16.mxu1 %v11211_v27 }
 0x1c7   :  { %9347 = vmatmul.mubr.msk.bf16.vlgmr.msra.gmra.mrb[68].mxu1 %vm715_vm0, %v11179_v57 }
 0x1c8   :  { %9359 = vmatpush3.bf16.msra.mxu1 %v11211_v27 }
 0x1c9   :  { %9360 = vmatprep.subr.bf16.mxu1 %v11209_v25 }
 0x1cc   :  { %9361 = vmatpush3.bf16.msra.mxu1 %v11209_v25 }
 0x1cd   :  { %9374 = vmatprep.subr.bf16.mxu1 %v11239_v2 }
 0x23a   :  { %v9292_v51 = vpop.f32.mrb[48].mxu1 }
 0x23b   :  { %v762_v61 = vpop.f32.mrb[49].mxu1  ;;  %v11344_v3 = vadd.f32 %v9292_v51, %v11337_v37 }
 0x23c   :  { %v9293_v9 = vpop.f32.mrb[50].mxu1  ;;  %v11349_v12 = vadd.f32 %v762_v61, %v11339_v45 }
 0x23d   :  { %v765_v15 = vpop.f32.mrb[51].mxu1  ;;  %v1210_v28 = vsel %vm715_vm0, %v11344_v3, -inf  ;;  %v11354_v30 = vadd.f32 %v9293_v9, %v11341_v54 }
 0x23e   :  { %1211 = vmax.xlane.f32.xlu1 %v1210_v28  ;;  %v1204_v32 = vsel %vm715_vm0, %v11349_v12, -inf  ;;  %v11359_v35 = vadd.f32 %v765_v15, %v11346_v6 }
 0x23f   :  { %1205 = vmax.xlane.f32.xlu0 %v1204_v32  ;;  %v1213_v36 = vsel %vm715_vm0, %v11354_v30, -inf }
 0x240   :  { %v1207_v51 = vsel %vm715_vm0, %v11359_v35, -inf }
 0x242   :  { %1214 = vmax.xlane.f32.xlu1 %v1213_v36 }
 0x243   :  { %1208 = vmax.xlane.f32.xlu0 %v1207_v51 }
 0x24a   :  { %v9300_v61 = vpop.f32.mrb[52].mxu1 }
 0x24b   :  { %v823_v0 = vpop.f32.mrb[53].mxu1  ;;  %v11366_v9 = vadd.f32 %v9300_v61, %v11337_v37 }
 0x24c   :  { %v9301_v28 = vpop.f32.mrb[54].mxu1  ;;  %v11374_v25 = vadd.f32 %v823_v0, %v11339_v45 }
 0x24d   :  { %v826_v58 = vpop.f32.mrb[55].mxu1  ;;  %v1222_v15 = vsel %vm715_vm0, %v11366_v9, -inf  ;;  %v11371_v32 = vadd.f32 %v9301_v28, %v11341_v54 }
 0x24e   :  { %1223 = vmax.xlane.f32.xlu0 %v1222_v15  ;;  %v11379_v51 = vadd.f32 %v826_v58, %v11346_v6  ;;  %v1216_v61 = vsel %vm715_vm0, %v11374_v25, -inf }
 0x24f   :  { %v1225_v36 = vsel %vm715_vm0, %v11371_v32, -inf }
 0x250   :  { %1226 = vmax.xlane.f32.xlu1 %v1225_v36  ;;  %v1219_v8 = vsel %vm715_vm0, %v11379_v51, -inf }
 0x252   :  { %1217 = vmax.xlane.f32.xlu0 %v1216_v61 }
 0x254   :  { %1220 = vmax.xlane.f32.xlu1 %v1219_v8 }
 0x25a   :  { %v9308_v28 = vpop.f32.mrb[56].mxu1 }
 0x25b   :  { %v11386_v0 = vadd.f32 %v9308_v28, %v11337_v37  ;;  %v884_v15 = vpop.f32.mrb[57].mxu1 }
 0x25c   :  { %v9309_v57 = vpop.f32.mrb[58].mxu1  ;;  %v11389_v60 = vadd.f32 %v884_v15, %v11339_v45 }
 0x25d   :  { %v11392_v58 = vadd.f32 %v9309_v57, %v11341_v54  ;;  %v887_v36 = vpop.f32.mrb[59].mxu1  ;;  %v1234_v61 = vsel %vm715_vm0, %v11386_v0, -inf }
 0x25e   :  { %1235 = vmax.xlane.f32.xlu0 %v1234_v61  ;;  %v11397_v47 = vadd.f32 %v887_v36, %v11346_v6  ;;  %v1228_v28 = vsel %vm715_vm0, %v11389_v60, -inf }
 0x25f   :  { %v1237_v8 = vsel %vm715_vm0, %v11392_v58, -inf }
 0x260   :  { %1238 = vmax.xlane.f32.xlu1 %v1237_v8  ;;  %v1231_v57 = vsel %vm715_vm0, %v11397_v47, -inf }
 0x262   :  { %1229 = vmax.xlane.f32.xlu0 %v1228_v28 }
 0x264   :  { %1232 = vmax.xlane.f32.xlu1 %v1231_v57 }
 0x26a   :  { %v9316_v15 = vpop.f32.mrb[60].mxu1 }
 0x26b   :  { %v11406_v5 = vadd.f32 %v9316_v15, %v11337_v37  ;;  %v945_v61 = vpop.f32.mrb[61].mxu1 }
 0x26c   :  { %v9317_v34 = vpop.f32.mrb[62].mxu1  ;;  %v11409_v36 = vadd.f32 %v945_v61, %v11339_v45 }
 0x26d   :  { %v11412_v39 = vadd.f32 %v9317_v34, %v11341_v54  ;;  %v948_v8 = vpop.f32.mrb[63].mxu1  ;;  %v1246_v28 = vsel %vm715_vm0, %v11406_v5, -inf }
 0x26e   :  { %1247 = vmax.xlane.f32.xlu0 %v1246_v28  ;;  %v11417_v21 = vadd.f32 %v948_v8, %v11346_v6  ;;  %v1240_v15 = vsel %vm715_vm0, %v11409_v36, -inf }
 0x26f   :  { %v1249_v57 = vsel %vm715_vm0, %v11412_v39, -inf }
 0x270   :  { %1250 = vmax.xlane.f32.xlu1 %v1249_v57  ;;  %v1243_v34 = vsel %vm715_vm0, %v11417_v21, -inf }
 0x272   :  { %1241 = vmax.xlane.f32.xlu0 %v1240_v15 }
 0x274   :  { %1244 = vmax.xlane.f32.xlu1 %v1243_v34 }
 0x27a   :  { %v9324_v61 = vpop.f32.mrb[48].mxu0 }
 0x27b   :  { %v1006_v13 = vpop.f32.mrb[49].mxu0  ;;  %v11426_v27 = vadd.f32 %v9324_v61, %v11337_v37 }
 0x27c   :  { %v9325_v28 = vpop.f32.mrb[50].mxu0  ;;  %v11434_v14 = vadd.f32 %v1006_v13, %v11339_v45 }
 0x27d   :  { %v1258_v8 = vsel %vm715_vm0, %v11426_v27, -inf  ;;  %v11431_v49 = vadd.f32 %v9325_v28, %v11341_v54  ;;  %v1009_v57 = vpop.f32.mrb[51].mxu0 }
 0x27e   :  { %1259 = vmax.xlane.f32.xlu0 %v1258_v8  ;;  %v11439_v34 = vadd.f32 %v1009_v57, %v11346_v6  ;;  %v1252_v61 = vsel %vm715_vm0, %v11434_v14, -inf }
 0x27f   :  { %v1261_v15 = vsel %vm715_vm0, %v11431_v49, -inf }
 0x280   :  { %1262 = vmax.xlane.f32.xlu1 %v1261_v15  ;;  %v1255_v28 = vsel %vm715_vm0, %v11439_v34, -inf }
 0x282   :  { %1253 = vmax.xlane.f32.xlu0 %v1252_v61 }
 0x284   :  { %1256 = vmax.xlane.f32.xlu1 %v1255_v28 }
 0x28a   :  { %v9340_v19 = vpop.f32.mrb[52].mxu0  ;;  %v9332_v10 = vpop.f32.mrb[64].mxu1 }
 0x28b   :  { %v1128_v13 = vpop.f32.mrb[53].mxu0  ;;  %v11446_v8 = vadd.f32 %v9340_v19, %v11337_v37  ;;  %v11449_v17 = vadd.f32 %v9332_v10, %v11337_v37  ;;  %v1067_v57 = vpop.f32.mrb[65].mxu1 }
 0x28c   :  { %v9341_v44 = vpop.f32.mrb[54].mxu0  ;;  %v9333_v15 = vpop.f32.mrb[66].mxu1  ;;  %v11464_v24 = vadd.f32 %v1128_v13, %v11339_v45 }
 0x28d   :  { %v1282_v4 = vsel %vm715_vm0, %v11446_v8, -inf  ;;  %v11454_v61 = vadd.f32 %v9341_v44, %v11341_v54  ;;  %v11457_v28 = vadd.f32 %v9333_v15, %v11341_v54  ;;  %v1131_v40 = vpop.f32.mrb[55].mxu0  ;;  %v1070_v1 = vpop.f32.mrb[67].mxu1  ;;  %v1270_v10 = vsel %vm715_vm0, %v11449_v17, -inf }
 0x28e   :  { %1283 = vmax.xlane.f32.xlu0 %v1282_v4  ;;  %v11469_v31 = vadd.f32 %v1131_v40, %v11346_v6  ;;  %v11472_v15 = vadd.f32 %v1067_v57, %v11339_v45  ;;  %v1276_v4 = vsel %vm715_vm0, %v11464_v24, -inf  ;;  %v11479_v13 = vadd.f32 %v1070_v1, %v11346_v6 }
 0x28f   :  { %v1285_v19 = vsel %vm715_vm0, %v11454_v61, -inf  ;;  %v1273_v44 = vsel %vm715_vm0, %v11457_v28, -inf }
 0x290   :  { %1286 = vmax.xlane.f32.xlu1 %v1285_v19  ;;  %v1279_v50 = vsel %vm715_vm0, %v11469_v31, -inf  ;;  %v1264_v19 = vsel %vm715_vm0, %v11472_v15, -inf  ;;  %v1267_v40 = vsel %vm715_vm0, %v11479_v13, -inf }
 0x292   :  { %1271 = vmax.xlane.f32.xlu0 %v1270_v10 }
 0x294   :  { %1274 = vmax.xlane.f32.xlu1 %v1273_v44 }
 0x296   :  { %1277 = vmax.xlane.f32.xlu0 %v1276_v4 }
 0x298   :  { %1280 = vmax.xlane.f32.xlu1 %v1279_v50 }
 0x29a   :  { %v9348_v57 = vpop.f32.mrb[68].mxu1  ;;  %1265 = vmax.xlane.f32.xlu0 %v1264_v19 }
 0x29b   :  { %v11486_v10 = vadd.f32 %v9348_v57, %v11337_v37  ;;  %v1189_v44 = vpop.f32.mrb[69].mxu1 }
 0x29c   :  { %v11489_v18 = vadd.f32 %v1189_v44, %v11339_v45  ;;  %v9349_v53 = vpop.f32.mrb[70].mxu1  ;;  %1268 = vmax.xlane.f32.xlu1 %v1267_v40 }
 0x29d   :  { %v11492_v1 = vadd.f32 %v9349_v53, %v11341_v54  ;;  %v1294_v50 = vsel %vm715_vm0, %v11486_v10, -inf  ;;  %v1192_v4 = vpop.f32.mrb[71].mxu1 }
 0x29e   :  { %1295 = vmax.xlane.f32.xlu0 %v1294_v50  ;;  %v11497_v56 = vadd.f32 %v1192_v4, %v11346_v6  ;;  %v1288_v57 = vsel %vm715_vm0, %v11489_v18, -inf }
 0x29f   :  { %v1297_v19 = vsel %vm715_vm0, %v11492_v1, -inf }
 0x2a0   :  { %1298 = vmax.xlane.f32.xlu1 %v1297_v19  ;;  %v1291_v40 = vsel %vm715_vm0, %v11497_v56, -inf }
 0x2a2   :  { %1289 = vmax.xlane.f32.xlu0 %v1288_v57 }
 0x2a4   :  { %1292 = vmax.xlane.f32.xlu1 %v1291_v40 }
 0x2cb   :  { %v1212_v53 = vpop.xlane.xlu1 %1211 }
 0x2cc   :  { %v1302_v44 = vsub.f32 %v11344_v3, %v1212_v53  ;;  %v1206_v54 = vpop.xlane.xlu0 %1205 }
 0x2cd   :  { %v1300_v50 = vsub.f32 %v11349_v12, %v1206_v54 }
 0x2ce   :  { %v1336_v4 = vmul.f32 1.442695, %v1302_v44 }
 0x2cf   :  { %v1332_v6 = vmul.f32 1.442695, %v1300_v50  ;;  %v1215_v45 = vpop.xlane.xlu1 %1214 }
 0x2d0   :  { %10304 = vpow2.f32 %v1336_v4  ;;  %v1303_v37 = vsub.f32 %v11354_v30, %v1215_v45  ;;  %v1209_v23 = vpop.xlane.xlu0 %1208 }
 0x2d1   :  { %v1301_v19 = vsub.f32 %v11359_v35, %v1209_v23  ;;  %10306 = vpow2.f32 %v1332_v6 }
 0x2d2   :  { %v1338_v11 = vmul.f32 1.442695, %v1303_v37 }
 0x2d3   :  { %v1334_v22 = vmul.f32 1.442695, %v1301_v19 }
 0x2d4   :  { %10308 = vpow2.f32 %v1338_v11 }
 0x2d5   :  { %10310 = vpow2.f32 %v1334_v22 }
 0x2da   :  { %v11509_v57 = vpop.eup %10304 }
 0x2db   :  { %v1224_v3 = vpop.xlane.xlu0 %1223  ;;  %v1402_v54 = vsel %vm715_vm0, %v11509_v57, 0.0  ;;  %v11513_v12 = vpop.eup %10306 }
 0x2dc   :  { %v1306_v40 = vsub.f32 %v11366_v9, %v1224_v3  ;;  %1403 = vadd.xlane.f32.xlu0 %v1402_v54  ;;  %v1396_v11 = vsel %vm715_vm0, %v11513_v12, 0.0 }
 0x2dd   :  { %v1227_v45 = vpop.xlane.xlu1 %1226 }
 0x2de   :  { %v11516_v30 = vpop.eup %10308  ;;  %v1344_v23 = vmul.f32 1.442695, %v1306_v40  ;;  %v1307_v37 = vsub.f32 %v11371_v32, %v1227_v45 }
 0x2df   :  { %v1218_v6 = vpop.xlane.xlu0 %1217  ;;  %v1405_v22 = vsel %vm715_vm0, %v11516_v30, 0.0  ;;  %v11523_v35 = vpop.eup %10310 }
 0x2e0   :  { %10312 = vpow2.f32 %v1344_v23  ;;  %v1346_v53 = vmul.f32 1.442695, %v1307_v37  ;;  %v1304_v9 = vsub.f32 %v11374_v25, %v1218_v6  ;;  %1406 = vadd.xlane.f32.xlu1 %v1405_v22  ;;  %1397 = vadd.xlane.f32.xlu0 %v1396_v11  ;;  %v1399_v4 = vsel %vm715_vm0, %v11523_v35, 0.0 }
 0x2e1   :  { %v1221_v44 = vpop.xlane.xlu1 %1220 }
 0x2e2   :  { %10314 = vpow2.f32 %v1346_v53  ;;  %v1340_v50 = vmul.f32 1.442695, %v1304_v9  ;;  %v1305_v32 = vsub.f32 %v11379_v51, %v1221_v44 }
 0x2e4   :  { %10316 = vpow2.f32 %v1340_v50  ;;  %v1342_v19 = vmul.f32 1.442695, %v1305_v32  ;;  %1400 = vadd.xlane.f32.xlu1 %v1399_v4 }
 0x2e6   :  { %10318 = vpow2.f32 %v1342_v19 }
 0x2ea   :  { %v11529_v3 = vpop.eup %10312 }
 0x2eb   :  { %v1236_v54 = vpop.xlane.xlu0 %1235  ;;  %v1414_v25 = vsel %vm715_vm0, %v11529_v3, 0.0 }
 0x2ec   :  { %v11533_v40 = vpop.eup %10314  ;;  %v1310_v45 = vsub.f32 %v11386_v0, %v1236_v54  ;;  %1415 = vadd.xlane.f32.xlu0 %v1414_v25 }
 0x2ed   :  { %v1239_v23 = vpop.xlane.xlu1 %1238  ;;  %v1417_v51 = vsel %vm715_vm0, %v11533_v40, 0.0 }
 0x2ee   :  { %v11538_v37 = vpop.eup %10316  ;;  %v1352_v6 = vmul.f32 1.442695, %v1310_v45  ;;  %v1311_v22 = vsub.f32 %v11392_v58, %v1239_v23  ;;  %1418 = vadd.xlane.f32.xlu1 %v1417_v51 }
 0x2ef   :  { %v1230_v11 = vpop.xlane.xlu0 %1229  ;;  %v1408_v53 = vsel %vm715_vm0, %v11538_v37, 0.0 }
 0x2f0   :  { %v11543_v9 = vpop.eup %10318  ;;  %10320 = vpow2.f32 %v1352_v6  ;;  %v1354_v44 = vmul.f32 1.442695, %v1311_v22  ;;  %v1308_v0 = vsub.f32 %v11389_v60, %v1230_v11  ;;  %1409 = vadd.xlane.f32.xlu0 %v1408_v53 }
 0x2f1   :  { %v1233_v50 = vpop.xlane.xlu1 %1232  ;;  %v1411_v32 = vsel %vm715_vm0, %v11543_v9, 0.0 }
 0x2f2   :  { %10322 = vpow2.f32 %v1354_v44  ;;  %v1348_v4 = vmul.f32 1.442695, %v1308_v0  ;;  %v1309_v58 = vsub.f32 %v11397_v47, %v1233_v50  ;;  %1412 = vadd.xlane.f32.xlu1 %v1411_v32 }
 0x2f4   :  { %10324 = vpow2.f32 %v1348_v4  ;;  %v1350_v19 = vmul.f32 1.442695, %v1309_v58 }
 0x2f6   :  { %10326 = vpow2.f32 %v1350_v19 }
 0x2fa   :  { %v11549_v54 = vpop.eup %10320 }
 0x2fb   :  { %v1248_v25 = vpop.xlane.xlu0 %1247  ;;  %v1426_v45 = vsel %vm715_vm0, %v11549_v54, 0.0 }
 0x2fc   :  { %v11553_v60 = vpop.eup %10322  ;;  %v1314_v23 = vsub.f32 %v11406_v5, %v1248_v25  ;;  %1427 = vadd.xlane.f32.xlu0 %v1426_v45 }
 0x2fd   :  { %v1251_v51 = vpop.xlane.xlu1 %1250  ;;  %v1429_v6 = vsel %vm715_vm0, %v11553_v60, 0.0 }
 0x2fe   :  { %v11558_v47 = vpop.eup %10324  ;;  %v1360_v22 = vmul.f32 1.442695, %v1314_v23  ;;  %v1315_v11 = vsub.f32 %v11412_v39, %v1251_v51  ;;  %1430 = vadd.xlane.f32.xlu1 %v1429_v6 }
 0x2ff   :  { %v1242_v53 = vpop.xlane.xlu0 %1241  ;;  %v1420_v44 = vsel %vm715_vm0, %v11558_v47, 0.0 }
 0x300   :  { %v11563_v0 = vpop.eup %10326  ;;  %10328 = vpow2.f32 %v1360_v22  ;;  %v1362_v50 = vmul.f32 1.442695, %v1315_v11  ;;  %v1312_v5 = vsub.f32 %v11409_v36, %v1242_v53  ;;  %1421 = vadd.xlane.f32.xlu0 %v1420_v44 }
 0x301   :  { %v1245_v32 = vpop.xlane.xlu1 %1244  ;;  %v1423_v4 = vsel %vm715_vm0, %v11563_v0, 0.0 }
 0x302   :  { %10330 = vpow2.f32 %v1362_v50  ;;  %v1356_v58 = vmul.f32 1.442695, %v1312_v5  ;;  %v1313_v39 = vsub.f32 %v11417_v21, %v1245_v32  ;;  %1424 = vadd.xlane.f32.xlu1 %v1423_v4 }
 0x304   :  { %10332 = vpow2.f32 %v1356_v58  ;;  %v1358_v19 = vmul.f32 1.442695, %v1313_v39 }
 0x306   :  { %10334 = vpow2.f32 %v1358_v19 }
 0x30a   :  { %v11569_v25 = vpop.eup %10328 }
 0x30b   :  { %v1260_v45 = vpop.xlane.xlu0 %1259  ;;  %v1438_v23 = vsel %vm715_vm0, %v11569_v25, 0.0 }
 0x30c   :  { %v11573_v36 = vpop.eup %10330  ;;  %v1318_v51 = vsub.f32 %v11426_v27, %v1260_v45  ;;  %1439 = vadd.xlane.f32.xlu0 %v1438_v23 }
 0x30d   :  { %v1263_v6 = vpop.xlane.xlu1 %1262  ;;  %v1441_v22 = vsel %vm715_vm0, %v11573_v36, 0.0 }
 0x30e   :  { %v11578_v21 = vpop.eup %10332  ;;  %v1368_v11 = vmul.f32 1.442695, %v1318_v51  ;;  %v1319_v53 = vsub.f32 %v11431_v49, %v1263_v6  ;;  %1442 = vadd.xlane.f32.xlu1 %v1441_v22 }
 0x30f   :  { %v1254_v44 = vpop.xlane.xlu0 %1253  ;;  %v1432_v50 = vsel %vm715_vm0, %v11578_v21, 0.0 }
 0x310   :  { %v11583_v5 = vpop.eup %10334  ;;  %10336 = vpow2.f32 %v1368_v11  ;;  %v1370_v32 = vmul.f32 1.442695, %v1319_v53  ;;  %v1316_v27 = vsub.f32 %v11434_v14, %v1254_v44  ;;  %1433 = vadd.xlane.f32.xlu0 %v1432_v50 }
 0x311   :  { %v1257_v4 = vpop.xlane.xlu1 %1256  ;;  %v1435_v58 = vsel %vm715_vm0, %v11583_v5, 0.0 }
 0x312   :  { %10338 = vpow2.f32 %v1370_v32  ;;  %v1364_v39 = vmul.f32 1.442695, %v1316_v27  ;;  %v1317_v49 = vsub.f32 %v11439_v34, %v1257_v4  ;;  %1436 = vadd.xlane.f32.xlu1 %v1435_v58 }
 0x314   :  { %10340 = vpow2.f32 %v1364_v39  ;;  %v1366_v19 = vmul.f32 1.442695, %v1317_v49 }
 0x316   :  { %10342 = vpow2.f32 %v1366_v19 }
 0x31a   :  { %v11589_v45 = vpop.eup %10336 }
 0x31b   :  { %v1284_v23 = vpop.xlane.xlu0 %1283  ;;  %v1450_v51 = vsel %vm715_vm0, %v11589_v45, 0.0 }
 0x31c   :  { %v11593_v14 = vpop.eup %10338  ;;  %v1326_v6 = vsub.f32 %v11446_v8, %v1284_v23  ;;  %1451 = vadd.xlane.f32.xlu0 %v1450_v51 }
 0x31d   :  { %v1453_v22 = vsel %vm715_vm0, %v11593_v14, 0.0 }
 0x31e   :  { %v11598_v11 = vpop.eup %10340  ;;  %v1384_v34 = vmul.f32 1.442695, %v1326_v6  ;;  %1454 = vadd.xlane.f32.xlu1 %v1453_v22 }
 0x31f   :  { %v1272_v53 = vpop.xlane.xlu0 %1271  ;;  %v1444_v44 = vsel %vm715_vm0, %v11598_v11, 0.0 }
 0x320   :  { %v11602_v50 = vpop.eup %10342  ;;  %10344 = vpow2.f32 %v1384_v34  ;;  %v1322_v32 = vsub.f32 %v11449_v17, %v1272_v53  ;;  %1445 = vadd.xlane.f32.xlu0 %v1444_v44  ;;  %v1287_v44 = vpop.xlane.xlu1 %1286 }
 0x321   :  { %v1447_v8 = vsel %vm715_vm0, %v11602_v50, 0.0 }
 0x322   :  { %v1376_v27 = vmul.f32 1.442695, %v1322_v32  ;;  %1448 = vadd.xlane.f32.xlu1 %v1447_v8  ;;  %v1327_v8 = vsub.f32 %v11454_v61, %v1287_v44 }
 0x323   :  { %v1278_v4 = vpop.xlane.xlu0 %1277 }
 0x324   :  { %10346 = vpow2.f32 %v1376_v27  ;;  %v1324_v58 = vsub.f32 %v11464_v24, %v1278_v4  ;;  %v1275_v32 = vpop.xlane.xlu1 %1274  ;;  %v1386_v4 = vmul.f32 1.442695, %v1327_v8 }
 0x326   :  { %v1380_v39 = vmul.f32 1.442695, %v1324_v58  ;;  %v1323_v58 = vsub.f32 %v11457_v28, %v1275_v32 }
 0x327   :  { %v1266_v49 = vpop.xlane.xlu0 %1265 }
 0x328   :  { %10348 = vpow2.f32 %v1380_v39  ;;  %v1320_v19 = vsub.f32 %v11472_v15, %v1266_v49  ;;  %v1281_v27 = vpop.xlane.xlu1 %1280  ;;  %v1378_v39 = vmul.f32 1.442695, %v1323_v58 }
 0x329   :  { %v1325_v49 = vsub.f32 %v11469_v31, %v1281_v27 }
 0x32a   :  { %v11609_v23 = vpop.eup %10344  ;;  %v1372_v51 = vmul.f32 1.442695, %v1320_v19 }
 0x32b   :  { %v1474_v17 = vsel %vm715_vm0, %v11609_v23, 0.0 }
 0x32c   :  { %10350 = vpow2.f32 %v1372_v51  ;;  %1475 = vadd.xlane.f32.xlu0 %v1474_v17  ;;  %v1269_v19 = vpop.xlane.xlu1 %1268  ;;  %v1296_v51 = vpop.xlane.xlu0 %1295  ;;  %v1382_v17 = vmul.f32 1.442695, %v1325_v49 }
 0x32d   :  { %10352 = vpow2.f32 %v1386_v4 }
 0x32e   :  { %v11613_v6 = vpop.eup %10346  ;;  %10354 = vpow2.f32 %v1378_v39 }
 0x32f   :  { %v1462_v22 = vsel %vm715_vm0, %v11613_v6, 0.0  ;;  %10356 = vpow2.f32 %v1382_v17 }
 0x330   :  { %1463 = vadd.xlane.f32.xlu0 %v1462_v22  ;;  %v1321_v22 = vsub.f32 %v11479_v13, %v1269_v19  ;;  %v1290_v61 = vpop.xlane.xlu0 %1289  ;;  %v11649_v4 = vpop.xlane.xlu1 %1298 }
 0x331   :  { %v1328_v32 = vsub.f32 %v11489_v18, %v1290_v61 }
 0x332   :  { %v11617_v24 = vpop.eup %10348 }
 0x333   :  { %2022 = vrot.lane.b32.xlu1 %v11153_v33, %s11003_s4  ;;  %v1468_v15 = vsel %vm715_vm0, %v11617_v24, 0.0  ;;  %v1388_v27 = vmul.f32 1.442695, %v1328_v32 }
 0x334   :  { %1469 = vadd.xlane.f32.xlu0 %v1468_v15  ;;  %v1330_v15 = vsub.f32 %v11486_v10, %v1296_v51  ;;  %v11657_v49 = vpop.xlane.xlu1 %1292 }
 0x336   :  { %v11623_v34 = vpop.eup %10350  ;;  %v1392_v28 = vmul.f32 1.442695, %v1330_v15 }
 0x337   :  { %2014 = vrot.lane.b32.xlu1 %v11135_v16, %s11003_s4  ;;  %v1456_v53 = vsel %vm715_vm0, %v11623_v34, 0.0  ;;  %v11638_v44 = vpop.eup %10352 }
 0x338   :  { %1457 = vadd.xlane.f32.xlu0 %v1456_v53  ;;  %v1374_v53 = vmul.f32 1.442695, %v1321_v22  ;;  %v1477_v31 = vsel %vm715_vm0, %v11638_v44, 0.0  ;;  %v11643_v8 = vpop.eup %10354 }
 0x339   :  { %v1465_v13 = vsel %vm715_vm0, %v11643_v8, 0.0  ;;  %v11647_v10 = vpop.eup %10356 }
 0x33a   :  { %10358 = vpow2.f32 %v1374_v53  ;;  %v1471_v18 = vsel %vm715_vm0, %v11647_v10, 0.0 }
 0x33b   :  { %2093 = vrot.lane.b32.xlu1 %v11165_v46, %s11003_s4  ;;  %10360 = vpow2.f32 %v1392_v28 }
 0x33c   :  { %10362 = vpow2.f32 %v1388_v27 }
 0x344   :  { %v11653_v58 = vpop.eup %10358 }
 0x345   :  { %v11655_v39 = vpop.eup %10360  ;;  %v1459_v51 = vsel %vm715_vm0, %v11653_v58, 0.0 }
 0x346   :  { %14380 = vst [vmem:[#allocation62_spill] sm:$0xff] %v11655_v39  ;;  %v1486_v17 = vsel %vm715_vm0, %v11655_v39, 0.0  ;;  %v11663_v22 = vpop.eup %10362 }
 0x347   :  { %v1480_v53 = vsel %vm715_vm0, %v11663_v22, 0.0 }
 0x34e   :  { %2020 = vrot.lane.b32.xlu0 %v11139_v20, %s11003_s4 }
 0x35f   :  { %1478 = vadd.xlane.f32.xlu1 %v1477_v31 }
 0x363   :  { %1466 = vadd.xlane.f32.xlu1 %v1465_v13 }
 0x367   :  { %1472 = vadd.xlane.f32.xlu1 %v1471_v18 }
 0x369   :  { %v1404_v19 = vpop.xlane.xlu0 %1403 }
 0x36b   :  { %1460 = vadd.xlane.f32.xlu1 %v1459_v51 }
 0x36d   :  { %v1407_v15 = vpop.xlane.xlu1 %1406  ;;  %1487 = vadd.xlane.f32.xlu0 %v1486_v17  ;;  %v1398_v61 = vpop.xlane.xlu0 %1397 }
 0x36e   :  { %10364 = vrcp.f32 %v1407_v15 }
 0x36f   :  { %10366 = vrcp.f32 %v1398_v61 }
 0x370   :  { %10368 = vrcp.f32 %v1404_v19 }
 0x371   :  { %v1401_v28 = vpop.xlane.xlu1 %1400  ;;  %1481 = vadd.xlane.f32.xlu0 %v1480_v53 }
 0x372   :  { %10370 = vrcp.f32 %v1401_v28 }
 0x378   :  { %v10365_v32 = vpop.eup %10364 }
 0x379   :  { %v1416_v31 = vpop.xlane.xlu0 %1415  ;;  %v10367_v27 = vpop.eup %10366  ;;  %v1527_v46 = vmul.f32 %v10365_v32, %v11516_v30  ;;  %v1331_v32 = vsub.f32 %v11492_v1, %v11649_v4 }
 0x37a   :  { %v10369_v13 = vpop.eup %10368  ;;  %v1524_v15 = vmul.f32 %v10367_v27, %v11513_v12 }
 0x37b   :  { %v1419_v18 = vpop.xlane.xlu1 %1418  ;;  %v1526_v61 = vmul.f32 %v10369_v13, %v11509_v57 }
 0x37c   :  { %v10371_v51 = vpop.eup %10370  ;;  %2016 = vrot.lane.b32.xlu1 %v11149_v29, %s11003_s4  ;;  %10372 = vrcp.f32 %v1419_v18 }
 0x37d   :  { %v1410_v17 = vpop.xlane.xlu0 %1409  ;;  %v1525_v19 = vmul.f32 %v10371_v51, %v11523_v35  ;;  %v1557_v39 = vpack.c.bf16 %v1527_v46, %v1526_v61 }
 0x37e   :  { %10374 = vrcp.f32 %v1410_v17 }
 0x37f   :  { %10376 = vrcp.f32 %v1416_v31  ;;  %v1413_v53 = vpop.xlane.xlu1 %1412  ;;  %v1556_v28 = vpack.c.bf16 %v1525_v19, %v1524_v15  ;;  %v1394_v15 = vmul.f32 1.442695, %v1331_v32  ;;  %v1329_v19 = vsub.f32 %v11497_v56, %v11657_v49 }
 0x380   :  { %10378 = vrcp.f32 %v1413_v53 }
 0x381   :  { %9354 = vmatprep.mubr.msk.bf16.mxu0 %vm715_vm0, %v1556_v28 }
 0x382   :  { %9355 = vmatmul.mubr.msk.bf16.vlgmr.msra.gmra.mrb[56].mxu0 %vm715_vm0, %v1557_v39 }
 0x383   :  { %9367 = vmatpush3.bf16.msra.mxu0 %v11223_v48 }
 0x384   :  { %9368 = vmatprep.subr.bf16.mxu0 %v11221_v43 }
 0x386   :  { %v10373_v30 = vpop.eup %10372 }
 0x387   :  { %9369 = vmatpush3.bf16.msra.mxu0 %v11221_v43  ;;  %2166 = vrot.lane.b32.xlu0 %v11191_v7, %s11003_s4  ;;  %v1531_v39 = vmul.f32 %v10373_v30, %v11533_v40 }
 0x388   :  { %v10375_v57 = vpop.eup %10374  ;;  %9382 = vmatprep.subr.bf16.mxu0 %v11253_v26 }
 0x389   :  { %v10377_v12 = vpop.eup %10376  ;;  %v1428_v35 = vpop.xlane.xlu0 %1427  ;;  %v1528_v27 = vmul.f32 %v10375_v57, %v11538_v37 }
 0x38a   :  { %v10379_v46 = vpop.eup %10378  ;;  %v1530_v18 = vmul.f32 %v10377_v12, %v11529_v3  ;;  %v1390_v3 = vmul.f32 1.442695, %v1329_v19 }
 0x38b   :  { %v1431_v31 = vpop.xlane.xlu1 %1430  ;;  %2095 = vrot.lane.b32.xlu0 %v11181_v59, %s11003_s4  ;;  %v1529_v13 = vmul.f32 %v10379_v46, %v11543_v9 }
 0x38c   :  { %10380 = vrcp.f32 %v1431_v31  ;;  %v1559_v1 = vpack.c.bf16 %v1531_v39, %v1530_v18  ;;  %v14384_v18 = vld [vmem:[#allocation39_spill] sm:$0xff] }
 0x38d   :  { %v1422_v51 = vpop.xlane.xlu0 %1421  ;;  %v1558_v17 = vpack.c.bf16 %v1529_v13, %v1528_v27  ;;  %v14383_v27 = vld [vmem:[#allocation53_spill] sm:$0xff] }
 0x38e   :  { %10382 = vrcp.f32 %v1422_v51 }
 0x38f   :  { %10384 = vrcp.f32 %v1428_v35  ;;  %v1425_v40 = vpop.xlane.xlu1 %1424  ;;  %2087 = vrot.lane.b32.xlu0 %v11161_v42, %s11003_s4  ;;  %9362 = vmatprep.mubr.msk.bf16.mxu1 %vm715_vm0, %v1558_v17 }
 0x390   :  { %10386 = vrcp.f32 %v1425_v40  ;;  %9363 = vmatmul.mubr.msk.bf16.vlgmr.msra.gmra.mrb[72].mxu1 %vm715_vm0, %v1559_v1 }
 0x391   :  { %9375 = vmatpush3.bf16.msra.mxu1 %v11239_v2  ;;  %10388 = vpow2.f32 %v1394_v15 }
 0x392   :  { %9376 = vmatprep.subr.bf16.mxu1 %v11237_v63  ;;  %10390 = vpow2.f32 %v1390_v3  ;;  %v14385_v3 = vld [vmem:[#allocation55_spill] sm:$0xff] }
 0x393   :  { %2239 = vrot.lane.b32.xlu0 %v11219_v41, %s11003_s4 }
 0x395   :  { %9377 = vmatpush3.bf16.msra.mxu1 %v11237_v63 }
 0x396   :  { %9390 = vmatprep.subr.bf16.mxu1 %v11267_v52  ;;  %v10381_v56 = vpop.eup %10380 }
 0x397   :  { %2089 = vrot.lane.b32.xlu0 %v11177_v55, %s11003_s4  ;;  %v1535_v61 = vmul.f32 %v10381_v56, %v11553_v60 }
 0x398   :  { %v10383_v37 = vpop.eup %10382 }
 0x399   :  { %v10385_v9 = vpop.eup %10384  ;;  %v1440_v4 = vpop.xlane.xlu0 %1439  ;;  %v1532_v28 = vmul.f32 %v10383_v37, %v11558_v47 }
 0x39a   :  { %v10387_v49 = vpop.eup %10386  ;;  %v1534_v12 = vmul.f32 %v10385_v9, %v11549_v54  ;;  %v14381_v54 = vld [vmem:[#allocation44_spill] sm:$0xff] }
 0x39b   :  { %v1443_v53 = vpop.xlane.xlu1 %1442  ;;  %2241 = vrot.lane.b32.xlu0 %v11235_v62, %s11003_s4  ;;  %v1533_v30 = vmul.f32 %v10387_v49, %v11563_v0  ;;  %v11708_v57 = vpop.eup %10388  ;;  %v14382_v0 = vld [vmem:[#allocation51_spill] sm:$0xff] }
 0x39c   :  { %10392 = vrcp.f32 %v1443_v53  ;;  %v1561_v32 = vpack.c.bf16 %v1535_v61, %v1534_v12  ;;  %v1489_v60 = vsel %vm715_vm0, %v11708_v57, 0.0  ;;  %v11716_v47 = vpop.eup %10390  ;;  %v14391_v12 = vld [vmem:[#allocation54_spill] sm:$0xff] }
 0x39d   :  { %v1434_v35 = vpop.xlane.xlu0 %1433  ;;  %v1560_v46 = vpack.c.bf16 %v1533_v30, %v1532_v28  ;;  %v1483_v31 = vsel %vm715_vm0, %v11716_v47, 0.0  ;;  %v14386_v28 = vld [vmem:[#allocation17_spill] sm:$0xff] }
 0x39e   :  { %10394 = vrcp.f32 %v1434_v35 }
 0x39f   :  { %10396 = vrcp.f32 %v1440_v4  ;;  %v1437_v39 = vpop.xlane.xlu1 %1436  ;;  %2233 = vrot.lane.b32.xlu0 %v11217_v38, %s11003_s4  ;;  %9370 = vmatprep.mubr.msk.bf16.mxu0 %vm715_vm0, %v1560_v46 }
 0x3a0   :  { %10398 = vrcp.f32 %v1437_v39  ;;  %1490 = vadd.xlane.f32.xlu1 %v1489_v60  ;;  %9371 = vmatmul.mubr.msk.bf16.vlgmr.msra.gmra.mrb[60].mxu0 %vm715_vm0, %v1561_v32  ;;  %v14392_v32 = vld [vmem:[#allocation28_spill] sm:$0xff] }
 0x3a1   :  { %9383 = vmatpush3.bf16.msra.mxu0 %v11253_v26 }
 0x3a2   :  { %9384 = vmatprep.subr.bf16.mxu0 %v14381_v54 }
 0x3a3   :  { %2385 = vrot.lane.b32.xlu0 %v14382_v0, %s11003_s4 }
 0x3a4   :  { %1484 = vadd.xlane.f32.xlu1 %v1483_v31 }
 0x3a5   :  { %9385 = vmatpush3.bf16.msra.mxu0 %v14381_v54 }
 0x3a6   :  { %9398 = vmatprep.subr.bf16.mxu0 %v14383_v27  ;;  %v10393_v13 = vpop.eup %10392 }
 0x3a7   :  { %2235 = vrot.lane.b32.xlu0 %v14384_v18, %s11003_s4  ;;  %v1539_v1 = vmul.f32 %v10393_v13, %v11573_v36  ;;  %v14387_v36 = vld [vmem:[#allocation48_spill] sm:$0xff]  ;;  %v14393_v13 = vld [vmem:[#allocation23_spill] sm:$0xff] }
 0x3a8   :  { %v10395_v51 = vpop.eup %10394 }
 0x3a9   :  { %v10397_v17 = vpop.eup %10396  ;;  %v1452_v15 = vpop.xlane.xlu0 %1451  ;;  %v1536_v56 = vmul.f32 %v10395_v51, %v11578_v21  ;;  %v14389_v21 = vld [vmem:[#allocation33_spill] sm:$0xff] }
 0x3aa   :  { %v10399_v19 = vpop.eup %10398  ;;  %v1538_v9 = vmul.f32 %v10397_v17, %v11569_v25  ;;  %v14388_v25 = vld [vmem:[#allocation20_spill] sm:$0xff] }
 0x3ab   :  { %v1455_v40 = vpop.xlane.xlu1 %1454  ;;  %2387 = vrot.lane.b32.xlu0 %v14385_v3, %s11003_s4  ;;  %v1537_v37 = vmul.f32 %v10399_v19, %v11583_v5  ;;  %v14390_v5 = vld [vmem:[#allocation57_spill] sm:$0xff]  ;;  %v14394_v19 = vld [vmem:[#allocation43_spill] sm:$0xff] }
 0x3ac   :  { %10400 = vrcp.f32 %v1455_v40  ;;  %v1563_v61 = vpack.c.bf16 %v1539_v1, %v1538_v9 }
 0x3ad   :  { %v1446_v4 = vpop.xlane.xlu0 %1445  ;;  %v1562_v49 = vpack.c.bf16 %v1537_v37, %v1536_v56  ;;  %v14395_v37 = vld [vmem:[#allocation31_spill] sm:$0xff] }
 0x3ae   :  { %10402 = vrcp.f32 %v1446_v4  ;;  %v14399_v4 = vld [vmem:[#allocation35_spill] sm:$0xff] }
 0x3af   :  { %10404 = vrcp.f32 %v1452_v15  ;;  %v1449_v53 = vpop.xlane.xlu1 %1448  ;;  %2452 = vrot.lane.b32.xlu0 %v14386_v28, %s11003_s4  ;;  %9378 = vmatprep.mubr.msk.bf16.mxu1 %vm715_vm0, %v1562_v49  ;;  %v14400_v49 = vld [vmem:[#allocation42_spill] sm:$0xff] }
 0x3b0   :  { %10406 = vrcp.f32 %v1449_v53  ;;  %9379 = vmatmul.mubr.msk.bf16.vlgmr.msra.gmra.mrb[76].mxu1 %vm715_vm0, %v1563_v61  ;;  %v14401_v53 = vld [vmem:[#allocation19_spill] sm:$0xff] }
 0x3b1   :  { %9391 = vmatpush3.bf16.msra.mxu1 %v11267_v52 }
 0x3b2   :  { %9392 = vmatprep.subr.bf16.mxu1 %v14387_v36 }
 0x3b3   :  { %2454 = vrot.lane.b32.xlu0 %v14388_v25, %s11003_s4 }
 0x3b5   :  { %9393 = vmatpush3.bf16.msra.mxu1 %v14387_v36  ;;  %2168 = vrot.lane.b32.xlu1 %v14389_v21, %s11003_s4 }
 0x3b6   :  { %9406 = vmatprep.subr.bf16.mxu1 %v14390_v5  ;;  %v10401_v30 = vpop.eup %10400 }
 0x3b7   :  { %2381 = vrot.lane.b32.xlu0 %v14391_v12, %s11003_s4  ;;  %v1543_v31 = vmul.f32 %v10401_v30, %v11593_v14  ;;  %v14396_v14 = vld [vmem:[#allocation32_spill] sm:$0xff]  ;;  %v14402_v30 = vld [vmem:[#allocation46_spill] sm:$0xff] }
 0x3b8   :  { %v10403_v35 = vpop.eup %10402 }
 0x3b9   :  { %v10405_v46 = vpop.eup %10404  ;;  %2160 = vrot.lane.b32.xlu1 %v14392_v32, %s11003_s4  ;;  %v1476_v39 = vpop.xlane.xlu0 %1475  ;;  %v1540_v51 = vmul.f32 %v10403_v35, %v11598_v11  ;;  %v14403_v35 = vld [vmem:[#allocation22_spill] sm:$0xff] }
 0x3ba   :  { %v10407_v60 = vpop.eup %10406  ;;  %v1542_v15 = vmul.f32 %v10405_v46, %v11589_v45  ;;  %v14397_v45 = vld [vmem:[#allocation52_spill] sm:$0xff]  ;;  %v14404_v46 = vld [vmem:[#allocation50_spill] sm:$0xff] }
 0x3bb   :  { %2525 = vrot.lane.b32.xlu0 %v14393_v13, %s11003_s4  ;;  %v1541_v17 = vmul.f32 %v10407_v60, %v11602_v50  ;;  %v14398_v50 = vld [vmem:[#allocation47_spill] sm:$0xff]  ;;  %v2023_v60 = vpop.permute.xlu1 %2022  ;;  %v14409_v13 = vld [vmem:[#allocation34_spill] sm:$0xff] }
 0x3bc   :  { %v1565_v56 = vpack.c.bf16 %v1543_v31, %v1542_v15  ;;  %v14405_v31 = vld [vmem:[#allocation25_spill] sm:$0xff]  ;;  %v14407_v15 = vld [vmem:[#allocation26_spill] sm:$0xff] }
 0x3bd   :  { %2312 = vrot.lane.b32.xlu1 %v14394_v19, %s11003_s4  ;;  %v1464_v1 = vpop.xlane.xlu0 %1463  ;;  %v1564_v40 = vpack.c.bf16 %v1541_v17, %v1540_v51  ;;  %v14406_v51 = vld [vmem:[#allocation27_spill] sm:$0xff] }
 0x3bf   :  { %2966 = vrot.lane.b32.xlu0 %v14395_v37, %s11003_s4  ;;  %9386 = vmatprep.mubr.msk.bf16.mxu0 %vm715_vm0, %v1564_v40  ;;  %v2015_v17 = vpop.permute.xlu1 %2014 }
 0x3c0   :  { %9387 = vmatmul.mubr.msk.bf16.vlgmr.msra.gmra.mrb[64].mxu0 %vm715_vm0, %v1565_v56  ;;  %v14408_v56 = vld [vmem:[#allocation30_spill] sm:$0xff] }
 0x3c1   :  { %9399 = vmatpush3.bf16.msra.mxu0 %v14383_v27  ;;  %2162 = vrot.lane.b32.xlu1 %v14396_v14, %s11003_s4  ;;  %v1470_v11 = vpop.xlane.xlu0 %1469 }
 0x3c2   :  { %9400 = vmatprep.subr.bf16.mxu0 %v14397_v45 }
 0x3c3   :  { %3092 = vrot.lane.b32.xlu0 %v11223_v48, %s11003_s4  ;;  %v11799_v40 = vpop.permute.xlu1 %2093 }
 0x3c5   :  { %9401 = vmatpush3.bf16.msra.mxu0 %v14397_v45  ;;  %2314 = vrot.lane.b32.xlu1 %v14398_v50, %s11003_s4  ;;  %v1458_v9 = vpop.xlane.xlu0 %1457 }
 0x3c7   :  { %3029 = vrot.lane.b32.xlu0 %v14399_v4, %s11003_s4 }
 0x3c9   :  { %2306 = vrot.lane.b32.xlu1 %v14400_v49, %s11003_s4  ;;  %v2021_v61 = vpop.permute.xlu0 %2020 }
 0x3ca   :  { %9878 = vmatprep.subr.msk.bf16.mxu0 %vm715_vm0, %v2021_v61 }
 0x3cb   :  { %3344 = vrot.lane.b32.xlu0 %v14383_v27, %s11003_s4 }
 0x3cd   :  { %2458 = vrot.lane.b32.xlu1 %v14401_v53, %s11003_s4 }
 0x3cf   :  { %3346 = vrot.lane.b32.xlu0 %v14397_v45, %s11003_s4 }
 0x3d1   :  { %2308 = vrot.lane.b32.xlu1 %v14402_v30, %s11003_s4 }
 0x3d3   :  { %3407 = vrot.lane.b32.xlu0 %v14390_v5, %s11003_s4 }
 0x3d5   :  { %2460 = vrot.lane.b32.xlu1 %v14403_v35, %s11003_s4 }
 0x3d7   :  { %3474 = vrot.lane.b32.xlu0 %v11153_v33, %s10998_s0 }
 0x3d9   :  { %2379 = vrot.lane.b32.xlu1 %v14404_v46, %s11003_s4 }
 0x3dd   :  { %2531 = vrot.lane.b32.xlu1 %v14405_v31, %s11003_s4 }
 0x3e1   :  { %2533 = vrot.lane.b32.xlu1 %v14406_v51, %s11003_s4 }
 0x3e5   :  { %2527 = vrot.lane.b32.xlu1 %v14407_v15, %s11003_s4 }
 0x3e9   :  { %2968 = vrot.lane.b32.xlu1 %v14408_v56, %s11003_s4 }
 0x3ec   :  { %v1479_v33 = vpop.xlane.xlu1 %1478 }
 0x3ed   :  { %3094 = vrot.lane.b32.xlu1 %v11221_v43, %s11003_s4  ;;  %10408 = vrcp.f32 %v1479_v33 }
 0x3ee   :  { %10410 = vrcp.f32 %v1470_v11 }
 0x3ef   :  { %10412 = vrcp.f32 %v1476_v39 }
 0x3f0   :  { %v1467_v45 = vpop.xlane.xlu1 %1466 }
 0x3f1   :  { %3218 = vrot.lane.b32.xlu1 %v11253_v26, %s11003_s4 }
 0x3f4   :  { %v1473_v27 = vpop.xlane.xlu1 %1472 }
 0x3f5   :  { %10414 = vrcp.f32 %v1473_v27  ;;  %3031 = vrot.lane.b32.xlu1 %v14409_v13, %s11003_s4 }
 0x3f6   :  { %10416 = vrcp.f32 %v1467_v45 }
 0x3f7   :  { %10418 = vrcp.f32 %v1458_v9  ;;  %v10409_v43 = vpop.eup %10408 }
 0x3f8   :  { %10420 = vrcp.f32 %v1464_v1  ;;  %v1461_v56 = vpop.xlane.xlu1 %1460  ;;  %v10411_v12 = vpop.eup %10410  ;;  %v1551_v27 = vmul.f32 %v10409_v43, %v11638_v44 }
 0x3f9   :  { %10422 = vrcp.f32 %v1461_v56  ;;  %3220 = vrot.lane.b32.xlu1 %v14381_v54, %s11003_s4  ;;  %v10413_v33 = vpop.eup %10412  ;;  %v1548_v45 = vmul.f32 %v10411_v12, %v11617_v24 }
 0x3fa   :  { %v1488_v4 = vpop.xlane.xlu0 %1487  ;;  %v1550_v56 = vmul.f32 %v10413_v33, %v11609_v23  ;;  %v2031_v23 = vsel %vm715_vm0, %v2021_v61, 0 }
 0x3fc   :  { %v1569_v25 = vpack.c.bf16 %v1551_v27, %v1550_v56 }
 0x3fd   :  { %3155 = vrot.lane.b32.xlu1 %v11239_v2, %s11003_s4 }
 0x3fe   :  { %v1482_v13 = vpop.xlane.xlu0 %1481 }
 0x3ff   :  { %v10415_v39 = vpop.eup %10414 }
 0x400   :  { %v10417_v11 = vpop.eup %10416  ;;  %v1549_v1 = vmul.f32 %v10415_v39, %v11647_v10 }
 0x401   :  { %v10419_v9 = vpop.eup %10418  ;;  %3157 = vrot.lane.b32.xlu1 %v11237_v63, %s11003_s4  ;;  %v1547_v2 = vmul.f32 %v10417_v11, %v11643_v8 }
 0x402   :  { %v10421_v54 = vpop.eup %10420  ;;  %v1568_v26 = vpack.c.bf16 %v1549_v1, %v1548_v45  ;;  %v1544_v43 = vmul.f32 %v10419_v9, %v11623_v34  ;;  %v2167_v10 = vpop.permute.xlu0 %2166 }
 0x403   :  { %v10423_v48 = vpop.eup %10422  ;;  %v1546_v44 = vmul.f32 %v10421_v54, %v11613_v6  ;;  %v2034_v6 = vsel %vm715_vm0, %v2023_v60, 0  ;;  %v2177_v54 = vsel %vm715_vm0, %v2167_v10, 0 }
 0x404   :  { %9402 = vmatprep.mubr.msk.bf16.mxu0 %vm715_vm0, %v1568_v26  ;;  %v1545_v24 = vmul.f32 %v10423_v48, %v11653_v58  ;;  %v14410_v48 = vld [vmem:[#allocation56_spill] sm:$0xff] }
 0x405   :  { %3281 = vrot.lane.b32.xlu1 %v11267_v52, %s11003_s4  ;;  %9403 = vmatmul.mubr.msk.bf16.vlgmr.msra.gmra.mrb[68].mxu0 %vm715_vm0, %v1569_v25  ;;  %v1567_v26 = vpack.c.bf16 %v1547_v2, %v1546_v44  ;;  %v2017_v2 = vpop.permute.xlu1 %2016 }
 0x406   :  { %9415 = vmatpush3.bf16.xpose.msra.mxu0 %v2031_v23  ;;  %9418 = vmatprep.mubr.msk.bf16.mxu0 %vm715_vm0, %v2015_v17  ;;  %v1566_v8 = vpack.c.bf16 %v1545_v24, %v1544_v43  ;;  %v2096_v34 = vpop.permute.xlu0 %2095 }
 0x407   :  { %9879 = vmatprep.subr.msk.bf16.mxu0 %vm715_vm0, %v2023_v60 }
 0x408   :  { %9394 = vmatprep.mubr.msk.bf16.mxu1 %vm715_vm0, %v1566_v8  ;;  %v14411_v8 = vld [vmem:[#allocation62_spill] sm:$0xff] }
 0x409   :  { %3283 = vrot.lane.b32.xlu1 %v14387_v36, %s11003_s4  ;;  %9395 = vmatmul.mubr.msk.bf16.vlgmr.msra.gmra.mrb[80].mxu1 %vm715_vm0, %v1567_v26 }
 0x40a   :  { %9407 = vmatpush3.bf16.msra.mxu1 %v14390_v5  ;;  %v2088_v58 = vpop.permute.xlu0 %2087 }
 0x40b   :  { %9408 = vmatprep.subr.bf16.mxu1 %v14410_v48 }
 0x40d   :  { %3472 = vrot.lane.b32.xlu1 %v11139_v20, %s10998_s0 }
 0x40e   :  { %9409 = vmatpush3.bf16.msra.mxu1 %v14410_v48  ;;  %9417 = vmatpush3.bf16.xpose.msra.mxu0 %v2034_v6  ;;  %v2240_v25 = vpop.permute.xlu0 %2239 }
 0x40f   :  { %9880 = vmatprep.subr.msk.bf16.mxu1 %vm715_vm0, %v11799_v40  ;;  %9882 = vmatprep.subr.msk.bf16.mxu0 %vm715_vm0, %v2167_v10 }
 0x411   :  { %3409 = vrot.lane.b32.xlu1 %v14410_v48, %s11003_s4 }
 0x412   :  { %v2090_v12 = vpop.permute.xlu0 %2089 }
 0x415   :  { %9419 = vmatmul.mubr.msk.bf16.vlgmr.msra.gmra.mrb[72].mxu0 %vm715_vm0, %v2017_v2  ;;  %3468 = vrot.lane.b32.xlu1 %v11135_v16, %s10998_s0 }
 0x416   :  { %9431 = vmatpush3.bf16.xpose.msra.mxu0 %v2177_v54  ;;  %v11849_v61 = vpop.permute.xlu0 %2241 }
 0x41a   :  { %v2234_v60 = vpop.permute.xlu0 %2233 }
 0x41e   :  { %v11851_v39 = vpop.permute.xlu0 %2385 }
 0x422   :  { %v11855_v45 = vpop.permute.xlu0 %2235 }
 0x426   :  { %v11862_v10 = vpop.permute.xlu0 %2387 }
 0x42d   :  { %v1491_v17 = vpop.xlane.xlu1 %1490 }
 0x42e   :  { %10424 = vrcp.f32 %v1491_v17 }
 0x42f   :  { %10426 = vrcp.f32 %v1482_v13 }
 0x430   :  { %10428 = vrcp.f32 %v1488_v4 }
 0x431   :  { %v1485_v33 = vpop.xlane.xlu1 %1484 }
 0x432   :  { %10430 = vrcp.f32 %v1485_v33 }
 0x435   :  { %v2169_v27 = vpop.permute.xlu1 %2168 }
 0x436   :  { %9883 = vmatprep.subr.msk.bf16.mxu0 %vm715_vm0, %v2169_v27  ;;  %v2180_v11 = vsel %vm715_vm0, %v2169_v27, 0 }
 0x437   :  { %9433 = vmatpush3.bf16.xpose.msra.mxu0 %v2180_v11  ;;  %v2107_v11 = vsel %vm715_vm0, %v2096_v34, 0 }
 0x438   :  { %v10425_v1 = vpop.eup %10424 }
 0x439   :  { %v2161_v9 = vpop.permute.xlu1 %2160  ;;  %v10427_v56 = vpop.eup %10426  ;;  %v1555_v4 = vmul.f32 %v10425_v1, %v11708_v57  ;;  %v2104_v57 = vsel %vm715_vm0, %v11799_v40, 0 }
 0x43a   :  { %9434 = vmatprep.mubr.msk.bf16.mxu0 %vm715_vm0, %v2161_v9  ;;  %v10429_v43 = vpop.eup %10428  ;;  %v1552_v44 = vmul.f32 %v10427_v56, %v11663_v22  ;;  %v2250_v56 = vsel %vm715_vm0, %v2240_v25, 0 }
 0x43b   :  { %v1554_v26 = vmul.f32 %v10429_v43, %v14411_v8 }
 0x43c   :  { %v10431_v13 = vpop.eup %10430 }
 0x43d   :  { %v2313_v24 = vpop.permute.xlu1 %2312  ;;  %v1553_v23 = vmul.f32 %v10431_v13, %v11716_v47  ;;  %v1571_v2 = vpack.c.bf16 %v1555_v4, %v1554_v26  ;;  %v2453_v47 = vpop.permute.xlu0 %2452 }
 0x43e   :  { %9886 = vmatprep.subr.msk.bf16.mxu0 %vm715_vm0, %v2313_v24  ;;  %v2323_v22 = vsel %vm715_vm0, %v2313_v24, 0 }
 0x43f   :  { %v1570_v6 = vpack.c.bf16 %v1553_v23, %v1552_v44  ;;  %v2253_v44 = vsel %vm715_vm0, %v11849_v61, 0 }
 0x441   :  { %v2163_v54 = vpop.permute.xlu1 %2162  ;;  %9410 = vmatprep.mubr.msk.bf16.mxu1 %vm715_vm0, %v1570_v6  ;;  %v2455_v27 = vpop.permute.xlu0 %2454 }
 0x442   :  { %9411 = vmatmul.mubr.msk.bf16.vlgmr.msra.gmra.mrb[84].mxu1 %vm715_vm0, %v1571_v2  ;;  %9435 = vmatmul.mubr.msk.bf16.vlgmr.msra.gmra.mrb[76].mxu0 %vm715_vm0, %v2163_v54  ;;  %v2396_v2 = vsel %vm715_vm0, %v11851_v39, 0 }
 0x443   :  { %9423 = vmatpush3.bf16.xpose.msra.mxu1 %v2104_v57  ;;  %9447 = vmatpush3.bf16.xpose.msra.mxu0 %v2323_v22 }
 0x444   :  { %9881 = vmatprep.subr.msk.bf16.mxu1 %vm715_vm0, %v2096_v34  ;;  %9426 = vmatprep.mubr.msk.bf16.mxu1 %vm715_vm0, %v2088_v58 }
 0x445   :  { %v2315_v17 = vpop.permute.xlu1 %2314  ;;  %v2382_v9 = vpop.permute.xlu0 %2381 }
 0x446   :  { %9887 = vmatprep.subr.msk.bf16.mxu0 %vm715_vm0, %v2315_v17  ;;  %v2326_v40 = vsel %vm715_vm0, %v2315_v17, 0 }
 0x449   :  { %v2307_v33 = vpop.permute.xlu1 %2306  ;;  %v2526_v4 = vpop.permute.xlu0 %2525 }
 0x44a   :  { %9450 = vmatprep.mubr.msk.bf16.mxu0 %vm715_vm0, %v2307_v33 }
 0x44b   :  { %9425 = vmatpush3.bf16.xpose.msra.mxu1 %v2107_v11  ;;  %9449 = vmatpush3.bf16.xpose.msra.mxu0 %v2326_v40 }
 0x44c   :  { %9884 = vmatprep.subr.msk.bf16.mxu1 %vm715_vm0, %v2240_v25 }
 0x44d   :  { %v2459_v1 = vpop.permute.xlu1 %2458  ;;  %v2967_v8 = vpop.permute.xlu0 %2966 }
 0x44e   :  { %9890 = vmatprep.subr.msk.bf16.mxu0 %vm715_vm0, %v2459_v1  ;;  %v2469_v34 = vsel %vm715_vm0, %v2459_v1, 0 }
 0x451   :  { %v2309_v58 = vpop.permute.xlu1 %2308  ;;  %v11919_v17 = vpop.permute.xlu0 %3092 }
 0x452   :  { %9427 = vmatmul.mubr.msk.bf16.vlgmr.msra.gmra.mrb[88].mxu1 %vm715_vm0, %v2090_v12  ;;  %9451 = vmatmul.mubr.msk.bf16.vlgmr.msra.gmra.mrb[80].mxu0 %vm715_vm0, %v2309_v58 }
 0x453   :  { %9439 = vmatpush3.bf16.xpose.msra.mxu1 %v2250_v56  ;;  %9442 = vmatprep.mubr.msk.bf16.mxu1 %vm715_vm0, %v2234_v60 }
 0x454   :  { %9463 = vmatpush3.bf16.xpose.msra.mxu0 %v2469_v34  ;;  %9885 = vmatprep.subr.msk.bf16.mxu1 %vm715_vm0, %v11849_v61 }
 0x455   :  { %9466 = vmatprep.mubr.msk.bf16.mxu0 %vm715_vm0, %v2453_v47  ;;  %v2461_v43 = vpop.permute.xlu1 %2460  ;;  %v11887_v13 = vpop.f32.mrb[56].mxu0 }
 0x456   :  { %14412 = vst [vmem:[#allocation33_spill] sm:$0xff] %v11887_v13  ;;  %v11889_v12 = vpop.f32.mrb[57].mxu0  ;;  %9891 = vmatprep.subr.msk.bf16.mxu0 %vm715_vm0, %v2461_v43  ;;  %v2472_v23 = vsel %vm715_vm0, %v2461_v43, 0 }
 0x457   :  { %14413 = vst [vmem:[#allocation28_spill] sm:$0xff] %v11889_v12  ;;  %v11892_v25 = vpop.f32.mrb[58].mxu0 }
 0x458   :  { %14414 = vst [vmem:[#allocation32_spill] sm:$0xff] %v11892_v25  ;;  %v11894_v24 = vpop.f32.mrb[59].mxu0 }
 0x459   :  { %14415 = vst [vmem:[#allocation47_spill] sm:$0xff] %v11894_v24  ;;  %v2380_v60 = vpop.permute.xlu1 %2379 }
 0x45b   :  { %9441 = vmatpush3.bf16.xpose.msra.mxu1 %v2253_v44 }
 0x45c   :  { %9465 = vmatpush3.bf16.xpose.msra.mxu0 %v2472_v23  ;;  %9888 = vmatprep.subr.msk.bf16.mxu1 %vm715_vm0, %v11851_v39  ;;  %v2399_v39 = vsel %vm715_vm0, %v11862_v10, 0 }
 0x45d   :  { %9478 = vmatprep.subr.bf16.mxu0 %v2967_v8  ;;  %v2532_v26 = vpop.permute.xlu1 %2531 }
 0x461   :  { %v2534_v6 = vpop.permute.xlu1 %2533 }
 0x462   :  { %9443 = vmatmul.mubr.msk.bf16.vlgmr.msra.gmra.mrb[92].mxu1 %vm715_vm0, %v11855_v45  ;;  %v2545_v56 = vsel %vm715_vm0, %v2534_v6, 0 }
 0x463   :  { %9467 = vmatmul.mubr.msk.bf16.vlgmr.msra.gmra.mrb[84].mxu0 %vm715_vm0, %v2455_v27  ;;  %9455 = vmatpush3.bf16.xpose.msra.mxu1 %v2396_v2  ;;  %v11906_v61 = vpop.f32.mrb[72].mxu1  ;;  %v2542_v27 = vsel %vm715_vm0, %v2532_v26, 0 }
 0x464   :  { %14416 = vst [vmem:[#allocation46_spill] sm:$0xff] %v11906_v61  ;;  %9458 = vmatprep.mubr.msk.bf16.mxu1 %vm715_vm0, %v2380_v60  ;;  %9479 = vmatpush3.bf16.msra.mxu0 %v2967_v8  ;;  %v11909_v54 = vpop.f32.mrb[73].mxu1 }
 0x465   :  { %14417 = vst [vmem:[#allocation22_spill] sm:$0xff] %v11909_v54  ;;  %9889 = vmatprep.subr.msk.bf16.mxu1 %vm715_vm0, %v11862_v10  ;;  %v2528_v57 = vpop.permute.xlu1 %2527  ;;  %v11913_v22 = vpop.f32.mrb[74].mxu1 }
 0x466   :  { %14418 = vst [vmem:[#allocation62_spill] sm:$0xff] %v11913_v22  ;;  %v11915_v45 = vpop.f32.mrb[75].mxu1 }
 0x467   :  { %14419 = vst [vmem:[#allocation63_spill] sm:$0xff] %v11915_v45 }
 0x469   :  { %v2969_v47 = vpop.permute.xlu1 %2968 }
 0x46a   :  { %9480 = vmatprep.subr.bf16.mxu0 %v2969_v47 }
 0x46b   :  { %9457 = vmatpush3.bf16.xpose.msra.mxu1 %v2399_v39  ;;  %9481 = vmatpush3.bf16.msra.mxu0 %v2969_v47 }
 0x46c   :  { %9892 = vmatprep.subr.msk.bf16.mxu1 %vm715_vm0, %v2532_v26  ;;  %9494 = vmatprep.subr.bf16.mxu0 %v11919_v17 }
 0x46d   :  { %v11923_v33 = vpop.permute.xlu1 %3094 }
 0x471   :  { %v11933_v40 = vpop.permute.xlu1 %3218 }
 0x472   :  { %9459 = vmatmul.mubr.msk.bf16.vlgmr.msra.gmra.mrb[96].mxu1 %vm715_vm0, %v2382_v9  ;;  %v3030_v9 = vpop.permute.xlu0 %3029 }
 0x473   :  { %9471 = vmatpush3.bf16.xpose.msra.mxu1 %v2542_v27  ;;  %9474 = vmatprep.mubr.msk.bf16.mxu1 %vm715_vm0, %v2526_v4  ;;  %v11928_v11 = vpop.f32.mrb[60].mxu0 }
 0x474   :  { %14420 = vst [vmem:[#allocation64_spill] sm:$0xff] %v11928_v11  ;;  %9893 = vmatprep.subr.msk.bf16.mxu1 %vm715_vm0, %v2534_v6  ;;  %v11931_v10 = vpop.f32.mrb[61].mxu0 }
 0x475   :  { %14421 = vst [vmem:[#allocation65_spill] sm:$0xff] %v11931_v10  ;;  %v11935_v1 = vpop.f32.mrb[62].mxu0  ;;  %v3032_v34 = vpop.permute.xlu1 %3031 }
 0x476   :  { %14422 = vst [vmem:[#allocation66_spill] sm:$0xff] %v11935_v1  ;;  %v11937_v58 = vpop.f32.mrb[63].mxu0 }
 0x477   :  { %14423 = vst [vmem:[#allocation67_spill] sm:$0xff] %v11937_v58 }
 0x479   :  { %v11940_v43 = vpop.permute.xlu1 %3220 }
 0x47a   :  { %14424 = vst [vmem:[#allocation68_spill] sm:$0xff] %v11940_v43 }
 0x47b   :  { %9473 = vmatpush3.bf16.xpose.msra.mxu1 %v2545_v56 }
 0x47c   :  { %9486 = vmatprep.subr.bf16.mxu1 %v3030_v9 }
 0x47d   :  { %v11951_v8 = vpop.permute.xlu1 %3155 }
 0x47e   :  { %14429 = vst [vmem:[#allocation73_spill] sm:$0xff] %v11951_v8 }
 0x482   :  { %9475 = vmatmul.mubr.msk.bf16.vlgmr.msra.gmra.mrb[100].mxu1 %vm715_vm0, %v2528_v57 }
 0x483   :  { %9487 = vmatpush3.bf16.msra.mxu1 %v3030_v9  ;;  %v11943_v4 = vpop.f32.mrb[76].mxu1 }
 0x484   :  { %14425 = vst [vmem:[#allocation69_spill] sm:$0xff] %v11943_v4  ;;  %9488 = vmatprep.subr.bf16.mxu1 %v3032_v34  ;;  %v11945_v60 = vpop.f32.mrb[77].mxu1  ;;  %v14443_v4 = vld [vmem:[#allocation59_spill] sm:$0xff] }
 0x485   :  { %14426 = vst [vmem:[#allocation70_spill] sm:$0xff] %v11945_v60  ;;  %v11947_v44 = vpop.f32.mrb[78].mxu1 }
 0x486   :  { %14427 = vst [vmem:[#allocation71_spill] sm:$0xff] %v11947_v44  ;;  %v11949_v23 = vpop.f32.mrb[79].mxu1 }
 0x487   :  { %14428 = vst [vmem:[#allocation72_spill] sm:$0xff] %v11949_v23  ;;  %9489 = vmatpush3.bf16.msra.mxu1 %v3032_v34 }
 0x488   :  { %9502 = vmatprep.subr.bf16.mxu1 %v11951_v8 }
 0x493   :  { %v11954_v26 = vpop.f32.mrb[64].mxu0 }
 0x494   :  { %14430 = vst [vmem:[#allocation74_spill] sm:$0xff] %v11954_v26  ;;  %v11956_v6 = vpop.f32.mrb[65].mxu0 }
 0x495   :  { %14431 = vst [vmem:[#allocation75_spill] sm:$0xff] %v11956_v6  ;;  %v11958_v2 = vpop.f32.mrb[66].mxu0 }
 0x496   :  { %14432 = vst [vmem:[#allocation76_spill] sm:$0xff] %v11958_v2  ;;  %v11960_v57 = vpop.f32.mrb[67].mxu0  ;;  %v14442_v2 = vld [vmem:[#allocation58_spill] sm:$0xff] }
 0x497   :  { %14433 = vst [vmem:[#allocation77_spill] sm:$0xff] %v11960_v57 }
 0x4d8   :  { %v11962_v47 = vpop.f32.mrb[68].mxu0 }
 0x4d9   :  { %14434 = vst [vmem:[#allocation78_spill] sm:$0xff] %v11962_v47  ;;  %v11964_v39 = vpop.f32.mrb[69].mxu0 }
 0x4da   :  { %14435 = vst [vmem:[#allocation79_spill] sm:$0xff] %v11964_v39  ;;  %v11966_v27 = vpop.f32.mrb[70].mxu0 }
 0x4db   :  { %14436 = vst [vmem:[#allocation80_spill] sm:$0xff] %v11966_v27  ;;  %v11968_v56 = vpop.f32.mrb[71].mxu0 }
 0x4dc   :  { %14437 = vst [vmem:[#allocation81_spill] sm:$0xff] %v11968_v56  ;;  %v11970_v9 = vpop.f32.mrb[80].mxu1 }
 0x4dd   :  { %14438 = vst [vmem:[#allocation82_spill] sm:$0xff] %v11970_v9  ;;  %v11972_v34 = vpop.f32.mrb[81].mxu1  ;;  %v14444_v9 = vld [vmem:[#allocation61_spill] sm:$0xff] }
 0x4de   :  { %14439 = vst [vmem:[#allocation83_spill] sm:$0xff] %v11972_v34  ;;  %v11974_v60 = vpop.f32.mrb[82].mxu1 }
 0x4df   :  { %14440 = vst [vmem:[#allocation84_spill] sm:$0xff] %v11974_v60  ;;  %v11976_v26 = vpop.f32.mrb[83].mxu1 }
 0x4e0   :  { %14441 = vst [vmem:[#allocation85_spill] sm:$0xff] %v11976_v26  ;;  %v14445_v26 = vld [vmem:[#allocation60_spill] sm:$0xff] }
 0x4e8   :  { %v9420_v6 = vpop.f32.mrb[72].mxu0 }
 0x4e9   :  { %v11979_v23 = vadd.f32 %v9420_v6, %v14442_v2  ;;  %v2070_v57 = vpop.f32.mrb[73].mxu0 }
 0x4ea   :  { %v9421_v47 = vpop.f32.mrb[74].mxu0  ;;  %v11982_v39 = vadd.f32 %v2070_v57, %v14443_v4 }
 0x4eb   :  { %v2073_v27 = vpop.f32.mrb[75].mxu0  ;;  %v2602_v56 = vsel %vm715_vm0, %v11979_v23, -inf  ;;  %v11992_v60 = vadd.f32 %v9421_v47, %v14445_v26 }
 0x4ec   :  { %v11987_v44 = vadd.f32 %v2073_v27, %v14444_v9  ;;  %2603 = vmax.xlane.f32.xlu0 %v2602_v56  ;;  %v2596_v6 = vsel %vm715_vm0, %v11982_v39, -inf }
 0x4ed   :  { %v2605_v57 = vsel %vm715_vm0, %v11992_v60, -inf }
 0x4ee   :  { %v2599_v34 = vsel %vm715_vm0, %v11987_v44, -inf }
 0x4ef   :  { %2600 = vmax.xlane.f32.xlu1 %v2599_v34 }
 0x4f0   :  { %2597 = vmax.xlane.f32.xlu0 %v2596_v6 }
 0x4f4   :  { %2606 = vmax.xlane.f32.xlu0 %v2605_v57 }
 0x515   :  { %v11998_v10 = vpop.f32.mrb[84].mxu1  ;;  %v9436_v27 = vpop.f32.mrb[76].mxu0 }
 0x516   :  { %14446 = vst [vmem:[#allocation86_spill] sm:$0xff] %v11998_v10  ;;  %v12001_v56 = vadd.f32 %v9436_v27, %v14442_v2  ;;  %v12003_v58 = vpop.f32.mrb[85].mxu1  ;;  %v2216_v11 = vpop.f32.mrb[77].mxu0 }
 0x517   :  { %14447 = vst [vmem:[#allocation87_spill] sm:$0xff] %v12003_v58  ;;  %v12005_v47 = vpop.f32.mrb[86].mxu1  ;;  %v9437_v34 = vpop.f32.mrb[78].mxu0 }
 0x518   :  { %14448 = vst [vmem:[#allocation88_spill] sm:$0xff] %v12005_v47  ;;  %v12008_v1 = vadd.f32 %v9437_v34, %v14445_v26  ;;  %v12010_v6 = vpop.f32.mrb[87].mxu1  ;;  %v2219_v54 = vpop.f32.mrb[79].mxu0  ;;  %v2626_v57 = vsel %vm715_vm0, %v12001_v56, -inf }
 0x519   :  { %14449 = vst [vmem:[#allocation89_spill] sm:$0xff] %v12010_v6  ;;  %2627 = vmax.xlane.f32.xlu0 %v2626_v57  ;;  %v12020_v6 = vadd.f32 %v2216_v11, %v14443_v4  ;;  %v12028_v12 = vadd.f32 %v2219_v54, %v14444_v9 }
 0x51a   :  { %v2629_v27 = vsel %vm715_vm0, %v12008_v1, -inf }
 0x51b   :  { %2630 = vmax.xlane.f32.xlu1 %v2629_v27  ;;  %v2620_v11 = vsel %vm715_vm0, %v12020_v6, -inf }
 0x525   :  { %v9428_v10 = vpop.f32.mrb[88].mxu1  ;;  %v9452_v58 = vpop.f32.mrb[80].mxu0 }
 0x526   :  { %v12017_v45 = vadd.f32 %v9428_v10, %v14442_v2  ;;  %v2143_v47 = vpop.f32.mrb[89].mxu1  ;;  %v2362_v61 = vpop.f32.mrb[81].mxu0  ;;  %v12043_v54 = vadd.f32 %v9452_v58, %v14442_v2 }
 0x527   :  { %v9429_v34 = vpop.f32.mrb[90].mxu1  ;;  %v9453_v22 = vpop.f32.mrb[82].mxu0  ;;  %v12033_v24 = vadd.f32 %v2143_v47, %v14443_v4  ;;  %v12060_v52 = vadd.f32 %v2362_v61, %v14443_v4 }
 0x528   :  { %v12023_v13 = vadd.f32 %v9429_v34, %v14445_v26  ;;  %v2146_v57 = vpop.f32.mrb[91].mxu1  ;;  %v2365_v25 = vpop.f32.mrb[83].mxu0  ;;  %v2614_v27 = vsel %vm715_vm0, %v12017_v45, -inf  ;;  %v12048_v47 = vadd.f32 %v9453_v22, %v14445_v26 }
 0x529   :  { %2615 = vmax.xlane.f32.xlu0 %v2614_v27  ;;  %v12038_v34 = vadd.f32 %v2146_v57, %v14444_v9  ;;  %v2623_v27 = vsel %vm715_vm0, %v12028_v12, -inf  ;;  %v2650_v57 = vsel %vm715_vm0, %v12043_v54, -inf  ;;  %v12068_v20 = vadd.f32 %v2365_v25, %v14444_v9 }
 0x52a   :  { %v2617_v10 = vsel %vm715_vm0, %v12023_v13, -inf }
 0x52b   :  { %2618 = vmax.xlane.f32.xlu1 %v2617_v10  ;;  %v2608_v10 = vsel %vm715_vm0, %v12033_v24, -inf }
 0x52d   :  { %2621 = vmax.xlane.f32.xlu0 %v2620_v11  ;;  %v2611_v11 = vsel %vm715_vm0, %v12038_v34, -inf }
 0x52f   :  { %2624 = vmax.xlane.f32.xlu1 %v2623_v27 }
 0x531   :  { %2609 = vmax.xlane.f32.xlu0 %v2608_v10  ;;  %v2653_v10 = vsel %vm715_vm0, %v12048_v47, -inf }
 0x533   :  { %2612 = vmax.xlane.f32.xlu1 %v2611_v11 }
 0x535   :  { %2651 = vmax.xlane.f32.xlu0 %v2650_v57  ;;  %v9444_v16 = vpop.f32.mrb[92].mxu1 }
 0x536   :  { %v12055_v27 = vadd.f32 %v9444_v16, %v14442_v2  ;;  %v9468_v58 = vpop.f32.mrb[84].mxu0  ;;  %v2289_v5 = vpop.f32.mrb[93].mxu1 }
 0x537   :  { %v2508_v36 = vpop.f32.mrb[85].mxu0  ;;  %2654 = vmax.xlane.f32.xlu1 %v2653_v10  ;;  %v9445_v22 = vpop.f32.mrb[94].mxu1  ;;  %v12073_v61 = vadd.f32 %v2289_v5, %v14443_v4  ;;  %v12083_v25 = vadd.f32 %v9468_v58, %v14442_v2 }
 0x538   :  { %v12063_v11 = vadd.f32 %v9445_v22, %v14445_v26  ;;  %v9469_v63 = vpop.f32.mrb[86].mxu0  ;;  %v2292_v57 = vpop.f32.mrb[95].mxu1  ;;  %v2638_v16 = vsel %vm715_vm0, %v12055_v27, -inf  ;;  %v2644_v22 = vsel %vm715_vm0, %v12060_v52, -inf }
 0x539   :  { %v2511_v48 = vpop.f32.mrb[87].mxu0  ;;  %2639 = vmax.xlane.f32.xlu0 %v2638_v16  ;;  %v12078_v37 = vadd.f32 %v2292_v57, %v14444_v9  ;;  %v2647_v16 = vsel %vm715_vm0, %v12068_v20, -inf  ;;  %v12088_v5 = vadd.f32 %v9469_v63, %v14445_v26  ;;  %v2674_v57 = vsel %vm715_vm0, %v12083_v25, -inf }
 0x53a   :  { %v2641_v10 = vsel %vm715_vm0, %v12063_v11, -inf  ;;  %v12100_v63 = vadd.f32 %v2508_v36, %v14443_v4 }
 0x53b   :  { %2642 = vmax.xlane.f32.xlu1 %v2641_v10  ;;  %v2632_v10 = vsel %vm715_vm0, %v12073_v61, -inf  ;;  %v2677_v15 = vsel %vm715_vm0, %v12088_v5, -inf }
 0x53c   :  { %v2668_v36 = vsel %vm715_vm0, %v12100_v63, -inf }
 0x53d   :  { %2645 = vmax.xlane.f32.xlu0 %v2644_v22  ;;  %v2635_v22 = vsel %vm715_vm0, %v12078_v37, -inf }
 0x53f   :  { %2648 = vmax.xlane.f32.xlu1 %v2647_v16 }
 0x541   :  { %2633 = vmax.xlane.f32.xlu0 %v2632_v10 }
 0x543   :  { %2636 = vmax.xlane.f32.xlu1 %v2635_v22 }
 0x545   :  { %2675 = vmax.xlane.f32.xlu0 %v2674_v57  ;;  %v9460_v28 = vpop.f32.mrb[96].mxu1 }
 0x546   :  { %v12095_v16 = vadd.f32 %v9460_v28, %v14442_v2  ;;  %v2435_v58 = vpop.f32.mrb[97].mxu1  ;;  %v12108_v28 = vadd.f32 %v2511_v48, %v14444_v9 }
 0x547   :  { %2678 = vmax.xlane.f32.xlu1 %v2677_v15  ;;  %v9461_v10 = vpop.f32.mrb[98].mxu1  ;;  %v12113_v15 = vadd.f32 %v2435_v58, %v14443_v4 }
 0x548   :  { %v12103_v3 = vadd.f32 %v9461_v10, %v14445_v26  ;;  %v2438_v22 = vpop.f32.mrb[99].mxu1  ;;  %v2662_v57 = vsel %vm715_vm0, %v12095_v16, -inf }
 0x549   :  { %2663 = vmax.xlane.f32.xlu0 %v2662_v57  ;;  %v12118_v10 = vadd.f32 %v2438_v22, %v14444_v9  ;;  %v2671_v57 = vsel %vm715_vm0, %v12108_v28, -inf  ;;  %v2656_v48 = vsel %vm715_vm0, %v12113_v15, -inf }
 0x54a   :  { %v2665_v8 = vsel %vm715_vm0, %v12103_v3, -inf }
 0x54b   :  { %2666 = vmax.xlane.f32.xlu1 %v2665_v8  ;;  %v2659_v8 = vsel %vm715_vm0, %v12118_v10, -inf }
 0x54d   :  { %2669 = vmax.xlane.f32.xlu0 %v2668_v36 }
 0x54f   :  { %2672 = vmax.xlane.f32.xlu1 %v2671_v57 }
 0x551   :  { %2657 = vmax.xlane.f32.xlu0 %v2656_v48 }
 0x553   :  { %2660 = vmax.xlane.f32.xlu1 %v2659_v8 }
 0x555   :  { %v9476_v58 = vpop.f32.mrb[100].mxu1 }
 0x556   :  { %v12127_v51 = vadd.f32 %v9476_v58, %v14442_v2  ;;  %v2581_v36 = vpop.f32.mrb[101].mxu1  ;;  %v12142_v58 = vpop.permute.xlu1 %3157 }
 0x557   :  { %v9477_v18 = vpop.f32.mrb[102].mxu1  ;;  %v12130_v22 = vadd.f32 %v2581_v36, %v14443_v4  ;;  %14450 = vst [vmem:[#allocation90_spill] sm:$0xff] %v12142_v58 }
 0x558   :  { %v12133_v43 = vadd.f32 %v9477_v18, %v14445_v26  ;;  %v2584_v57 = vpop.f32.mrb[103].mxu1  ;;  %v2686_v48 = vsel %vm715_vm0, %v12127_v51, -inf }
 0x559   :  { %2687 = vmax.xlane.f32.xlu0 %v2686_v48  ;;  %v12138_v31 = vadd.f32 %v2584_v57, %v14444_v9  ;;  %v2680_v36 = vsel %vm715_vm0, %v12130_v22, -inf  ;;  %v12150_v48 = vpop.permute.xlu0 %3344 }
 0x55a   :  { %v2689_v8 = vsel %vm715_vm0, %v12133_v43, -inf  ;;  %v12148_v26 = vpop.permute.xlu1 %3281  ;;  %14452 = vst [vmem:[#allocation92_spill] sm:$0xff] %v12150_v48 }
 0x55b   :  { %2690 = vmax.xlane.f32.xlu1 %v2689_v8  ;;  %v2683_v18 = vsel %vm715_vm0, %v12138_v31, -inf  ;;  %14451 = vst [vmem:[#allocation91_spill] sm:$0xff] %v12148_v26 }
 0x55d   :  { %2681 = vmax.xlane.f32.xlu0 %v2680_v36  ;;  %v12154_v9 = vpop.permute.xlu0 %3346 }
 0x55e   :  { %v12152_v57 = vpop.permute.xlu1 %3283  ;;  %14454 = vst [vmem:[#allocation94_spill] sm:$0xff] %v12154_v9 }
 0x55f   :  { %2684 = vmax.xlane.f32.xlu1 %v2683_v18  ;;  %14453 = vst [vmem:[#allocation93_spill] sm:$0xff] %v12152_v57 }
 0x561   :  { %v12158_v2 = vpop.permute.xlu0 %3407 }
 0x562   :  { %v12156_v4 = vpop.permute.xlu1 %3472  ;;  %14456 = vst [vmem:[#allocation96_spill] sm:$0xff] %v12158_v2 }
 0x563   :  { %14455 = vst [vmem:[#allocation95_spill] sm:$0xff] %v12156_v4 }
 0x565   :  { %v12162_v58 = vpop.permute.xlu0 %3474 }
 0x566   :  { %v12160_v8 = vpop.permute.xlu1 %3409  ;;  %14458 = vst [vmem:[#allocation98_spill] sm:$0xff] %v12162_v58 }
 0x567   :  { %14457 = vst [vmem:[#allocation97_spill] sm:$0xff] %v12160_v8 }
 0x56a   :  { %v12164_v36 = vpop.permute.xlu1 %3468 }
 0x56b   :  { %14459 = vst [vmem:[#allocation99_spill] sm:$0xff] %v12164_v36 }
 0x579   :  { %v2604_v0 = vpop.xlane.xlu0 %2603 }
 0x57a   :  { %v2694_v18 = vsub.f32 %v11979_v23, %v2604_v0 }
 0x57c   :  { %v2728_v26 = vmul.f32 1.442695, %v2694_v18  ;;  %v2601_v46 = vpop.xlane.xlu1 %2600 }
 0x57d   :  { %v2598_v48 = vpop.xlane.xlu0 %2597  ;;  %v2693_v9 = vsub.f32 %v11987_v44, %v2601_v46 }
 0x57e   :  { %10432 = vpow2.f32 %v2728_v26  ;;  %v2692_v57 = vsub.f32 %v11982_v39, %v2598_v48 }
 0x57f   :  { %v2726_v2 = vmul.f32 1.442695, %v2693_v9 }
 0x580   :  { %v2724_v4 = vmul.f32 1.442695, %v2692_v57 }
 0x581   :  { %v2607_v38 = vpop.xlane.xlu0 %2606 }
 0x582   :  { %10434 = vpow2.f32 %v2724_v4  ;;  %v2695_v8 = vsub.f32 %v11992_v60, %v2607_v38 }
 0x584   :  { %v2730_v58 = vmul.f32 1.442695, %v2695_v8 }
 0x586   :  { %10436 = vpow2.f32 %v2730_v58 }
 0x587   :  { %10438 = vpow2.f32 %v2726_v2 }
 0x588   :  { %v12170_v36 = vpop.eup %10432 }
 0x589   :  { %v2794_v0 = vsel %vm715_vm0, %v12170_v36, 0.0 }
 0x58a   :  { %2795 = vadd.xlane.f32.xlu0 %v2794_v0 }
 0x58c   :  { %v12174_v23 = vpop.eup %10434 }
 0x58d   :  { %v2788_v46 = vsel %vm715_vm0, %v12174_v23, 0.0 }
 0x58e   :  { %2789 = vadd.xlane.f32.xlu0 %v2788_v46 }
 0x590   :  { %v12178_v44 = vpop.eup %10436 }
 0x591   :  { %v2797_v38 = vsel %vm715_vm0, %v12178_v44, 0.0  ;;  %v12182_v4 = vpop.eup %10438 }
 0x592   :  { %2798 = vadd.xlane.f32.xlu1 %v2797_v38  ;;  %v2791_v60 = vsel %vm715_vm0, %v12182_v4, 0.0 }
 0x596   :  { %2792 = vadd.xlane.f32.xlu1 %v2791_v60 }
 0x5a6   :  { %v2628_v26 = vpop.xlane.xlu0 %2627 }
 0x5a7   :  { %v2702_v2 = vsub.f32 %v12001_v56, %v2628_v26 }
 0x5a8   :  { %v2631_v39 = vpop.xlane.xlu1 %2630 }
 0x5a9   :  { %v2744_v9 = vmul.f32 1.442695, %v2702_v2  ;;  %v2703_v58 = vsub.f32 %v12008_v1, %v2631_v39 }
 0x5ab   :  { %10440 = vpow2.f32 %v2744_v9  ;;  %v2746_v48 = vmul.f32 1.442695, %v2703_v58 }
 0x5ad   :  { %10442 = vpow2.f32 %v2746_v48 }
 0x5b5   :  { %v12188_v57 = vpop.eup %10440 }
 0x5b6   :  { %14460 = vst [vmem:[#allocation100_spill] sm:$0xff] %v12188_v57  ;;  %v2616_v8 = vpop.xlane.xlu0 %2615  ;;  %v2818_v18 = vsel %vm715_vm0, %v12188_v57, 0.0 }
 0x5b7   :  { %v12192_v0 = vpop.eup %10442  ;;  %v2698_v46 = vsub.f32 %v12017_v45, %v2616_v8  ;;  %2819 = vadd.xlane.f32.xlu0 %v2818_v18 }
 0x5b8   :  { %v2619_v38 = vpop.xlane.xlu1 %2618  ;;  %v2821_v56 = vsel %vm715_vm0, %v12192_v0, 0.0 }
 0x5b9   :  { %v2736_v60 = vmul.f32 1.442695, %v2698_v46  ;;  %v2699_v1 = vsub.f32 %v12023_v13, %v2619_v38  ;;  %2822 = vadd.xlane.f32.xlu1 %v2821_v56 }
 0x5ba   :  { %v2622_v26 = vpop.xlane.xlu0 %2621 }
 0x5bb   :  { %10444 = vpow2.f32 %v2736_v60  ;;  %v2738_v2 = vmul.f32 1.442695, %v2699_v1  ;;  %v2700_v39 = vsub.f32 %v12020_v6, %v2622_v26 }
 0x5bc   :  { %v2625_v9 = vpop.xlane.xlu1 %2624 }
 0x5bd   :  { %10446 = vpow2.f32 %v2738_v2  ;;  %v2740_v58 = vmul.f32 1.442695, %v2700_v39  ;;  %v2701_v48 = vsub.f32 %v12028_v12, %v2625_v9 }
 0x5be   :  { %v2610_v45 = vpop.xlane.xlu0 %2609 }
 0x5bf   :  { %10448 = vpow2.f32 %v2740_v58  ;;  %v2742_v8 = vmul.f32 1.442695, %v2701_v48  ;;  %v2696_v18 = vsub.f32 %v12033_v24, %v2610_v45 }
 0x5c0   :  { %v2613_v57 = vpop.xlane.xlu1 %2612 }
 0x5c1   :  { %10450 = vpow2.f32 %v2742_v8  ;;  %v2732_v46 = vmul.f32 1.442695, %v2696_v18  ;;  %v2697_v13 = vsub.f32 %v12038_v34, %v2613_v57 }
 0x5c2   :  { %v2652_v38 = vpop.xlane.xlu0 %2651 }
 0x5c3   :  { %10452 = vpow2.f32 %v2732_v46  ;;  %v2734_v56 = vmul.f32 1.442695, %v2697_v13  ;;  %v2710_v6 = vsub.f32 %v12043_v54, %v2652_v38 }
 0x5c4   :  { %v2655_v60 = vpop.xlane.xlu1 %2654 }
 0x5c5   :  { %v12203_v1 = vpop.eup %10444  ;;  %10454 = vpow2.f32 %v2734_v56  ;;  %v2760_v12 = vmul.f32 1.442695, %v2710_v6  ;;  %v2711_v46 = vsub.f32 %v12048_v47, %v2655_v60 }
 0x5c6   :  { %v2640_v26 = vpop.xlane.xlu0 %2639  ;;  %v2806_v2 = vsel %vm715_vm0, %v12203_v1, 0.0 }
 0x5c7   :  { %v12207_v24 = vpop.eup %10446  ;;  %10456 = vpow2.f32 %v2760_v12  ;;  %v2706_v39 = vsub.f32 %v12055_v27, %v2640_v26  ;;  %2807 = vadd.xlane.f32.xlu0 %v2806_v2 }
 0x5c8   :  { %v2809_v34 = vsel %vm715_vm0, %v12207_v24, 0.0  ;;  %v2643_v9 = vpop.xlane.xlu1 %2642 }
 0x5c9   :  { %v12212_v57 = vpop.eup %10448  ;;  %v2752_v54 = vmul.f32 1.442695, %v2706_v39  ;;  %2810 = vadd.xlane.f32.xlu1 %v2809_v34  ;;  %v2762_v39 = vmul.f32 1.442695, %v2711_v46  ;;  %v2707_v47 = vsub.f32 %v12063_v11, %v2643_v9 }
 0x5ca   :  { %v2646_v58 = vpop.xlane.xlu0 %2645  ;;  %v2812_v48 = vsel %vm715_vm0, %v12212_v57, 0.0 }
 0x5cb   :  { %v12216_v45 = vpop.eup %10450  ;;  %10458 = vpow2.f32 %v2752_v54  ;;  %v2708_v8 = vsub.f32 %v12060_v52, %v2646_v58  ;;  %2813 = vadd.xlane.f32.xlu0 %v2812_v48 }
 0x5cc   :  { %v2815_v27 = vsel %vm715_vm0, %v12216_v45, 0.0  ;;  %v2649_v52 = vpop.xlane.xlu1 %2648 }
 0x5cd   :  { %v12221_v18 = vpop.eup %10452  ;;  %v2756_v13 = vmul.f32 1.442695, %v2708_v8  ;;  %2816 = vadd.xlane.f32.xlu1 %v2815_v27  ;;  %v2709_v48 = vsub.f32 %v12068_v20, %v2649_v52 }
 0x5ce   :  { %v2634_v38 = vpop.xlane.xlu0 %2633  ;;  %v2800_v56 = vsel %vm715_vm0, %v12221_v18, 0.0 }
 0x5cf   :  { %v12226_v6 = vpop.eup %10454  ;;  %10460 = vpow2.f32 %v2756_v13  ;;  %v2704_v12 = vsub.f32 %v12073_v61, %v2634_v38  ;;  %2801 = vadd.xlane.f32.xlu0 %v2800_v56  ;;  %v2754_v61 = vmul.f32 1.442695, %v2707_v47  ;;  %v2758_v9 = vmul.f32 1.442695, %v2709_v48 }
 0x5d0   :  { %v2803_v26 = vsel %vm715_vm0, %v12226_v6, 0.0  ;;  %v2637_v8 = vpop.xlane.xlu1 %2636 }
 0x5d1   :  { %v12231_v2 = vpop.eup %10456  ;;  %v2748_v60 = vmul.f32 1.442695, %v2704_v12  ;;  %2804 = vadd.xlane.f32.xlu1 %v2803_v26  ;;  %v2705_v13 = vsub.f32 %v12078_v37, %v2637_v8 }
 0x5d2   :  { %v2676_v34 = vpop.xlane.xlu0 %2675  ;;  %v2842_v54 = vsel %vm715_vm0, %v12231_v2, 0.0 }
 0x5d3   :  { %10462 = vpow2.f32 %v2748_v60  ;;  %2843 = vadd.xlane.f32.xlu0 %v2842_v54  ;;  %v2750_v26 = vmul.f32 1.442695, %v2705_v13 }
 0x5d4   :  { %10464 = vpow2.f32 %v2762_v39  ;;  %v2679_v20 = vpop.xlane.xlu1 %2678  ;;  %v2718_v39 = vsub.f32 %v12083_v25, %v2676_v34 }
 0x5d5   :  { %v12236_v58 = vpop.eup %10458  ;;  %10466 = vpow2.f32 %v2754_v61 }
 0x5d6   :  { %v2664_v27 = vpop.xlane.xlu0 %2663  ;;  %v2830_v46 = vsel %vm715_vm0, %v12236_v58, 0.0  ;;  %10468 = vpow2.f32 %v2758_v9  ;;  %v2719_v9 = vsub.f32 %v12088_v5, %v2679_v20 }
 0x5d7   :  { %2831 = vadd.xlane.f32.xlu1 %v2830_v46  ;;  %v2714_v48 = vsub.f32 %v12095_v16, %v2664_v27 }
 0x5d8   :  { %v2667_v46 = vpop.xlane.xlu1 %2666 }
 0x5d9   :  { %v12241_v11 = vpop.eup %10460  ;;  %v2768_v13 = vmul.f32 1.442695, %v2714_v48 }
 0x5da   :  { %v2670_v38 = vpop.xlane.xlu0 %2669  ;;  %v2836_v56 = vsel %vm715_vm0, %v12241_v11, 0.0 }
 0x5db   :  { %v2716_v12 = vsub.f32 %v12100_v63, %v2670_v38  ;;  %2837 = vadd.xlane.f32.xlu0 %v2836_v56  ;;  %v2776_v63 = vmul.f32 1.442695, %v2718_v39  ;;  %v2778_v56 = vmul.f32 1.442695, %v2719_v9 }
 0x5dc   :  { %v2673_v16 = vpop.xlane.xlu1 %2672 }
 0x5dd   :  { %v12247_v52 = vpop.eup %10462  ;;  %v2772_v47 = vmul.f32 1.442695, %v2716_v12  ;;  %v2715_v12 = vsub.f32 %v12103_v3, %v2667_v46 }
 0x5de   :  { %v2658_v60 = vpop.xlane.xlu0 %2657  ;;  %v2824_v54 = vsel %vm715_vm0, %v12247_v52, 0.0  ;;  %v12252_v37 = vpop.eup %10464 }
 0x5df   :  { %10470 = vpow2.f32 %v2772_v47  ;;  %v2712_v61 = vsub.f32 %v12113_v15, %v2658_v60  ;;  %2825 = vadd.xlane.f32.xlu1 %v2824_v54  ;;  %v2845_v25 = vsel %vm715_vm0, %v12252_v37, 0.0  ;;  %v12258_v34 = vpop.eup %10466  ;;  %v2770_v47 = vmul.f32 1.442695, %v2715_v12 }
 0x5e0   :  { %10472 = vpow2.f32 %v2750_v26  ;;  %v2833_v15 = vsel %vm715_vm0, %v12258_v34, 0.0  ;;  %v12263_v38 = vpop.eup %10468  ;;  %v2717_v60 = vsub.f32 %v12108_v28, %v2673_v16  ;;  %v2661_v54 = vpop.xlane.xlu1 %2660 }
 0x5e1   :  { %v2764_v8 = vmul.f32 1.442695, %v2712_v61  ;;  %v2839_v26 = vsel %vm715_vm0, %v12263_v38, 0.0 }
 0x5e2   :  { %v2774_v48 = vmul.f32 1.442695, %v2717_v60 }
 0x5e3   :  { %10474 = vpow2.f32 %v2764_v8  ;;  %2846 = vadd.xlane.f32.xlu1 %v2845_v25  ;;  %v2713_v8 = vsub.f32 %v12118_v10, %v2661_v54 }
 0x5e4   :  { %10476 = vpow2.f32 %v2776_v63 }
 0x5e5   :  { %10478 = vpow2.f32 %v2768_v13  ;;  %v2766_v28 = vmul.f32 1.442695, %v2713_v8 }
 0x5e6   :  { %10480 = vpow2.f32 %v2778_v56 }
 0x5e7   :  { %2834 = vadd.xlane.f32.xlu1 %v2833_v15  ;;  %10482 = vpow2.f32 %v2770_v47 }
 0x5e8   :  { %10484 = vpow2.f32 %v2774_v48  ;;  %v2691_v60 = vpop.xlane.xlu1 %2690 }
 0x5e9   :  { %v12265_v27 = vpop.eup %10470  ;;  %10486 = vpow2.f32 %v2766_v28  ;;  %v2723_v54 = vsub.f32 %v12133_v43, %v2691_v60 }
 0x5ea   :  { %v2860_v5 = vsel %vm715_vm0, %v12265_v27, 0.0  ;;  %v12272_v20 = vpop.eup %10472 }
 0x5eb   :  { %2840 = vadd.xlane.f32.xlu1 %v2839_v26  ;;  %2861 = vadd.xlane.f32.xlu0 %v2860_v5  ;;  %v2827_v3 = vsel %vm715_vm0, %v12272_v20, 0.0  ;;  %v14461_v5 = vld [vmem:[#allocation24_spill] sm:$0xff]  ;;  %v2786_v48 = vmul.f32 1.442695, %v2723_v54 }
 0x5ed   :  { %v12274_v39 = vpop.eup %10474  ;;  %10488 = vpow2.f32 %v2786_v48 }
 0x5ee   :  { %v2848_v61 = vsel %vm715_vm0, %v12274_v39, 0.0  ;;  %v12281_v63 = vpop.eup %10476 }
 0x5ef   :  { %2828 = vadd.xlane.f32.xlu1 %v2827_v3  ;;  %2849 = vadd.xlane.f32.xlu0 %v2848_v61  ;;  %v2866_v46 = vsel %vm715_vm0, %v12281_v63, 0.0  ;;  %v12286_v25 = vpop.eup %10478  ;;  %v2688_v3 = vpop.xlane.xlu0 %2687 }
 0x5f0   :  { %v2854_v9 = vsel %vm715_vm0, %v12286_v25, 0.0  ;;  %v12290_v13 = vpop.eup %10480  ;;  %v2685_v61 = vpop.xlane.xlu1 %2684  ;;  %v2722_v60 = vsub.f32 %v12127_v51, %v2688_v3 }
 0x5f1   :  { %v2869_v15 = vsel %vm715_vm0, %v12290_v13, 0.0  ;;  %v12294_v16 = vpop.eup %10482  ;;  %v2721_v8 = vsub.f32 %v12138_v31, %v2685_v61 }
 0x5f2   :  { %v2857_v10 = vsel %vm715_vm0, %v12294_v16, 0.0  ;;  %v12298_v56 = vpop.eup %10484  ;;  %v2784_v61 = vmul.f32 1.442695, %v2722_v60 }
 0x5f3   :  { %2867 = vadd.xlane.f32.xlu1 %v2866_v46  ;;  %v2863_v12 = vsel %vm715_vm0, %v12298_v56, 0.0  ;;  %v12302_v26 = vpop.eup %10486  ;;  %v2682_v46 = vpop.xlane.xlu0 %2681  ;;  %v2782_v28 = vmul.f32 1.442695, %v2721_v8 }
 0x5f4   :  { %v2851_v47 = vsel %vm715_vm0, %v12302_v26, 0.0  ;;  %v2720_v48 = vsub.f32 %v12130_v22, %v2682_v46 }
 0x5f5   :  { %10490 = vpow2.f32 %v2782_v28 }
 0x5f7   :  { %2855 = vadd.xlane.f32.xlu1 %v2854_v9 }
 0x5fb   :  { %2870 = vadd.xlane.f32.xlu1 %v2869_v15 }
 0x5ff   :  { %2858 = vadd.xlane.f32.xlu1 %v2857_v10 }
 0x603   :  { %2864 = vadd.xlane.f32.xlu1 %v2863_v12  ;;  %v12312_v12 = vpop.eup %10488 }
 0x604   :  { %v12316_v31 = vpop.eup %10490 }
 0x605   :  { %3541 = vrot.lane.b32.xlu0 %v14461_v5, %s10998_s0  ;;  %v2875_v54 = vsel %vm715_vm0, %v12316_v31, 0.0 }
 0x607   :  { %2852 = vadd.xlane.f32.xlu1 %v2851_v47  ;;  %v2881_v47 = vsel %vm715_vm0, %v12312_v12, 0.0 }
 0x617   :  { %v2796_v9 = vpop.xlane.xlu0 %2795 }
 0x618   :  { %3610 = vrot.lane.b32.xlu1 %v11191_v7, %s10998_s0 }
 0x61b   :  { %v2790_v15 = vpop.xlane.xlu0 %2789 }
 0x61f   :  { %v2799_v10 = vpop.xlane.xlu1 %2798 }
 0x620   :  { %10492 = vrcp.f32 %v2799_v10  ;;  %v2780_v10 = vmul.f32 1.442695, %v2720_v48 }
 0x621   :  { %10494 = vrcp.f32 %v2790_v15 }
 0x622   :  { %10496 = vrcp.f32 %v2796_v9 }
 0x623   :  { %v2793_v43 = vpop.xlane.xlu1 %2792 }
 0x624   :  { %10498 = vrcp.f32 %v2793_v43  ;;  %2882 = vadd.xlane.f32.xlu0 %v2881_v47 }
 0x625   :  { %10500 = vpow2.f32 %v2784_v61 }
 0x626   :  { %10502 = vpow2.f32 %v2780_v10 }
 0x628   :  { %2876 = vadd.xlane.f32.xlu0 %v2875_v54 }
 0x62a   :  { %v10493_v8 = vpop.eup %10492 }
 0x62b   :  { %v10495_v28 = vpop.eup %10494  ;;  %v2919_v7 = vmul.f32 %v10493_v8, %v12178_v44 }
 0x62c   :  { %v10497_v9 = vpop.eup %10496  ;;  %v2916_v43 = vmul.f32 %v10495_v28, %v12174_v23 }
 0x62d   :  { %v2918_v51 = vmul.f32 %v10497_v9, %v12170_v36 }
 0x62e   :  { %v10499_v15 = vpop.eup %10498 }
 0x62f   :  { %v2917_v47 = vmul.f32 %v10499_v15, %v12182_v4  ;;  %v2949_v54 = vpack.c.bf16 %v2919_v7, %v2918_v51  ;;  %v12330_v22 = vpop.eup %10500  ;;  %v14463_v51 = vld [vmem:[#allocation50_spill] sm:$0xff] }
 0x630   :  { %v2878_v36 = vsel %vm715_vm0, %v12330_v22, 0.0  ;;  %v12336_v23 = vpop.eup %10502 }
 0x631   :  { %v2948_v3 = vpack.c.bf16 %v2917_v47, %v2916_v43  ;;  %v2872_v7 = vsel %vm715_vm0, %v12336_v23, 0.0  ;;  %v14462_v43 = vld [vmem:[#allocation36_spill] sm:$0xff] }
 0x633   :  { %9482 = vmatprep.mubr.msk.bf16.mxu0 %vm715_vm0, %v2948_v3 }
 0x634   :  { %9483 = vmatmul.mubr.msk.bf16.vlgmr.msra.gmra.mrb[88].mxu0 %vm715_vm0, %v2949_v54 }
 0x635   :  { %9495 = vmatpush3.bf16.msra.mxu0 %v11919_v17 }
 0x636   :  { %9496 = vmatprep.subr.bf16.mxu0 %v11923_v33 }
 0x639   :  { %9497 = vmatpush3.bf16.msra.mxu0 %v11923_v33 }
 0x63a   :  { %9510 = vmatprep.subr.bf16.mxu0 %v11933_v40 }
 0x63c   :  { %2879 = vadd.xlane.f32.xlu1 %v2878_v36 }
 0x63e   :  { %3470 = vrot.lane.b32.xlu0 %v11149_v29, %s10998_s0 }
 0x640   :  { %2873 = vadd.xlane.f32.xlu1 %v2872_v7  ;;  %v14464_v7 = vld [vmem:[#allocation100_spill] sm:$0xff] }
 0x642   :  { %3612 = vrot.lane.b32.xlu0 %v14389_v21, %s10998_s0 }
 0x644   :  { %v2820_v17 = vpop.xlane.xlu0 %2819 }
 0x646   :  { %3606 = vrot.lane.b32.xlu0 %v14392_v32, %s10998_s0  ;;  %v2823_v33 = vpop.xlane.xlu1 %2822 }
 0x647   :  { %10504 = vrcp.f32 %v2823_v33 }
 0x64a   :  { %3748 = vrot.lane.b32.xlu0 %v14394_v19, %s10998_s0 }
 0x64e   :  { %3608 = vrot.lane.b32.xlu0 %v14396_v14, %s10998_s0 }
 0x651   :  { %3543 = vrot.lane.b32.xlu1 %v11181_v59, %s10998_s0  ;;  %v10505_v8 = vpop.eup %10504 }
 0x652   :  { %3750 = vrot.lane.b32.xlu0 %v14398_v50, %s10998_s0  ;;  %v2927_v10 = vmul.f32 %v10505_v8, %v12192_v0 }
 0x654   :  { %v2808_v44 = vpop.xlane.xlu0 %2807 }
 0x655   :  { %3537 = vrot.lane.b32.xlu1 %v11161_v42, %s10998_s0 }
 0x656   :  { %v2811_v4 = vpop.xlane.xlu1 %2810  ;;  %3744 = vrot.lane.b32.xlu0 %v14400_v49, %s10998_s0 }
 0x658   :  { %v2814_v46 = vpop.xlane.xlu0 %2813 }
 0x659   :  { %10506 = vrcp.f32 %v2814_v46  ;;  %3679 = vrot.lane.b32.xlu1 %v11219_v41, %s10998_s0 }
 0x65a   :  { %10508 = vrcp.f32 %v2820_v17  ;;  %v2817_v60 = vpop.xlane.xlu1 %2816  ;;  %3886 = vrot.lane.b32.xlu0 %v14401_v53, %s10998_s0  ;;  %v14484_v53 = vld [vmem:[#allocation30_spill] sm:$0xff] }
 0x65b   :  { %10510 = vrcp.f32 %v2817_v60  ;;  %v14465_v60 = vld [vmem:[#allocation51_spill] sm:$0xff] }
 0x65c   :  { %10512 = vrcp.f32 %v2811_v4  ;;  %v2802_v61 = vpop.xlane.xlu0 %2801 }
 0x65d   :  { %10514 = vrcp.f32 %v2802_v61  ;;  %3539 = vrot.lane.b32.xlu1 %v11177_v55, %s10998_s0 }
 0x65e   :  { %10516 = vrcp.f32 %v2808_v44  ;;  %v2805_v48 = vpop.xlane.xlu1 %2804  ;;  %3746 = vrot.lane.b32.xlu0 %v14402_v30, %s10998_s0 }
 0x65f   :  { %10518 = vrcp.f32 %v2805_v48  ;;  %v14466_v48 = vld [vmem:[#allocation25_spill] sm:$0xff] }
 0x661   :  { %3681 = vrot.lane.b32.xlu1 %v11235_v62, %s10998_s0 }
 0x662   :  { %3888 = vrot.lane.b32.xlu0 %v14403_v35, %s10998_s0 }
 0x663   :  { %v10507_v28 = vpop.eup %10506 }
 0x664   :  { %v10509_v9 = vpop.eup %10508  ;;  %v2924_v3 = vmul.f32 %v10507_v28, %v12212_v57  ;;  %v2832_v44 = vpop.xlane.xlu1 %2831 }
 0x665   :  { %v10511_v15 = vpop.eup %10510  ;;  %3675 = vrot.lane.b32.xlu1 %v14462_v43, %s10998_s0  ;;  %v2926_v17 = vmul.f32 %v10509_v9, %v14464_v7  ;;  %v14467_v9 = vld [vmem:[#allocation68_spill] sm:$0xff] }
 0x666   :  { %v10513_v47 = vpop.eup %10512  ;;  %3813 = vrot.lane.b32.xlu0 %v14463_v51, %s10998_s0  ;;  %v2925_v54 = vmul.f32 %v10511_v15, %v12216_v45  ;;  %v14468_v15 = vld [vmem:[#allocation39_spill] sm:$0xff] }
 0x667   :  { %v10515_v36 = vpop.eup %10514  ;;  %v2923_v0 = vmul.f32 %v10513_v47, %v12207_v24  ;;  %v2953_v61 = vpack.c.bf16 %v2927_v10, %v2926_v17  ;;  %v14469_v47 = vld [vmem:[#allocation27_spill] sm:$0xff] }
 0x668   :  { %v10517_v33 = vpop.eup %10516  ;;  %v2952_v4 = vpack.c.bf16 %v2925_v54, %v2924_v3  ;;  %v2920_v57 = vmul.f32 %v10515_v36, %v12221_v18  ;;  %v14470_v18 = vld [vmem:[#allocation73_spill] sm:$0xff]  ;;  %v14472_v3 = vld [vmem:[#allocation92_spill] sm:$0xff]  ;;  %v14473_v54 = vld [vmem:[#allocation55_spill] sm:$0xff] }
 0x669   :  { %v10519_v46 = vpop.eup %10518  ;;  %3817 = vrot.lane.b32.xlu1 %v14465_v60, %s10998_s0  ;;  %v2922_v8 = vmul.f32 %v10517_v33, %v12203_v1  ;;  %v2844_v1 = vpop.xlane.xlu0 %2843  ;;  %v14474_v36 = vld [vmem:[#allocation26_spill] sm:$0xff]  ;;  %v14475_v33 = vld [vmem:[#allocation91_spill] sm:$0xff] }
 0x66a   :  { %3955 = vrot.lane.b32.xlu0 %v14466_v48, %s10998_s0  ;;  %9498 = vmatprep.mubr.msk.bf16.mxu0 %vm715_vm0, %v2952_v4  ;;  %v2921_v45 = vmul.f32 %v10519_v46, %v12226_v6  ;;  %v14471_v6 = vld [vmem:[#allocation90_spill] sm:$0xff]  ;;  %v14476_v4 = vld [vmem:[#allocation17_spill] sm:$0xff]  ;;  %v14477_v46 = vld [vmem:[#allocation31_spill] sm:$0xff] }
 0x66b   :  { %9499 = vmatmul.mubr.msk.bf16.vlgmr.msra.gmra.mrb[92].mxu0 %vm715_vm0, %v2953_v61  ;;  %v2951_v10 = vpack.c.bf16 %v2923_v0, %v2922_v8  ;;  %v14478_v61 = vld [vmem:[#allocation20_spill] sm:$0xff]  ;;  %v14480_v8 = vld [vmem:[#allocation54_spill] sm:$0xff] }
 0x66c   :  { %9511 = vmatpush3.bf16.msra.mxu0 %v11933_v40  ;;  %v2826_v24 = vpop.xlane.xlu1 %2825  ;;  %v2950_v28 = vpack.c.bf16 %v2921_v45, %v2920_v57  ;;  %v14479_v57 = vld [vmem:[#allocation38_spill] sm:$0xff] }
 0x66d   :  { %9512 = vmatprep.subr.bf16.mxu0 %v14467_v9  ;;  %3677 = vrot.lane.b32.xlu1 %v14468_v15, %s10998_s0  ;;  %v2838_v7 = vpop.xlane.xlu0 %2837 }
 0x66e   :  { %3957 = vrot.lane.b32.xlu0 %v14469_v47, %s10998_s0  ;;  %9490 = vmatprep.mubr.msk.bf16.mxu1 %vm715_vm0, %v2950_v28  ;;  %v14481_v28 = vld [vmem:[#allocation35_spill] sm:$0xff] }
 0x66f   :  { %9491 = vmatmul.mubr.msk.bf16.vlgmr.msra.gmra.mrb[104].mxu1 %vm715_vm0, %v2951_v10 }
 0x670   :  { %9503 = vmatpush3.bf16.msra.mxu1 %v14470_v18  ;;  %9513 = vmatpush3.bf16.msra.mxu0 %v14467_v9  ;;  %v2847_v40 = vpop.xlane.xlu1 %2846 }
 0x671   :  { %9504 = vmatprep.subr.bf16.mxu1 %v14471_v6  ;;  %9526 = vmatprep.subr.bf16.mxu0 %v14472_v3  ;;  %10520 = vrcp.f32 %v2847_v40  ;;  %v14482_v40 = vld [vmem:[#allocation23_spill] sm:$0xff] }
 0x672   :  { %3819 = vrot.lane.b32.xlu1 %v14473_v54, %s10998_s0  ;;  %3953 = vrot.lane.b32.xlu0 %v14474_v36, %s10998_s0  ;;  %10522 = vrcp.f32 %v2838_v7 }
 0x673   :  { %10524 = vrcp.f32 %v2844_v1 }
 0x674   :  { %9505 = vmatpush3.bf16.msra.mxu1 %v14471_v6  ;;  %v2835_v17 = vpop.xlane.xlu1 %2834  ;;  %v14483_v6 = vld [vmem:[#allocation53_spill] sm:$0xff] }
 0x675   :  { %9518 = vmatprep.subr.bf16.mxu1 %v14475_v33 }
 0x676   :  { %3882 = vrot.lane.b32.xlu1 %v14476_v4, %s10998_s0  ;;  %4388 = vrot.lane.b32.xlu0 %v14477_v46, %s10998_s0 }
 0x678   :  { %v2841_v0 = vpop.xlane.xlu1 %2840 }
 0x679   :  { %10526 = vrcp.f32 %v2841_v0 }
 0x67a   :  { %10528 = vrcp.f32 %v2835_v17  ;;  %3884 = vrot.lane.b32.xlu1 %v14478_v61, %s10998_s0  ;;  %4510 = vrot.lane.b32.xlu0 %v14479_v57, %s10998_s0 }
 0x67b   :  { %10530 = vrcp.f32 %v2826_v24  ;;  %v10521_v9 = vpop.eup %10520 }
 0x67c   :  { %10532 = vrcp.f32 %v2832_v44  ;;  %v2829_v45 = vpop.xlane.xlu1 %2828  ;;  %v10523_v1 = vpop.eup %10522  ;;  %v2935_v44 = vmul.f32 %v10521_v9, %v12252_v37 }
 0x67d   :  { %10534 = vrcp.f32 %v2829_v45  ;;  %v10525_v18 = vpop.eup %10524  ;;  %v2932_v0 = vmul.f32 %v10523_v1, %v12241_v11  ;;  %v2862_v1 = vpop.xlane.xlu0 %2861 }
 0x67e   :  { %3815 = vrot.lane.b32.xlu1 %v14480_v8, %s10998_s0  ;;  %4449 = vrot.lane.b32.xlu0 %v14481_v28, %s10998_s0  ;;  %v2934_v48 = vmul.f32 %v10525_v18, %v12231_v2  ;;  %v14486_v18 = vld [vmem:[#allocation37_spill] sm:$0xff] }
 0x680   :  { %v2868_v10 = vpop.xlane.xlu1 %2867  ;;  %v2957_v9 = vpack.c.bf16 %v2935_v44, %v2934_v48  ;;  %v14488_v48 = vld [vmem:[#allocation94_spill] sm:$0xff] }
 0x682   :  { %3951 = vrot.lane.b32.xlu1 %v14482_v40, %s10998_s0  ;;  %4754 = vrot.lane.b32.xlu0 %v14483_v6, %s10998_s0  ;;  %v14485_v40 = vld [vmem:[#allocation52_spill] sm:$0xff] }
 0x683   :  { %v10527_v24 = vpop.eup %10526 }
 0x684   :  { %v10529_v7 = vpop.eup %10528  ;;  %v2856_v17 = vpop.xlane.xlu1 %2855  ;;  %v2933_v45 = vmul.f32 %v10527_v24, %v12263_v38 }
 0x685   :  { %v10531_v28 = vpop.eup %10530  ;;  %v2931_v37 = vmul.f32 %v10529_v7, %v12258_v34  ;;  %v14487_v34 = vld [vmem:[#allocation18_spill] sm:$0xff] }
 0x686   :  { %v10533_v4 = vpop.eup %10532  ;;  %4390 = vrot.lane.b32.xlu1 %v14484_v53, %s10998_s0  ;;  %4756 = vrot.lane.b32.xlu0 %v14485_v40, %s10998_s0  ;;  %v2956_v6 = vpack.c.bf16 %v2933_v45, %v2932_v0  ;;  %v2928_v11 = vmul.f32 %v10531_v28, %v12247_v52 }
 0x687   :  { %v10535_v57 = vpop.eup %10534  ;;  %v2930_v2 = vmul.f32 %v10533_v4, %v12236_v58  ;;  %v14489_v58 = vld [vmem:[#allocation45_spill] sm:$0xff] }
 0x688   :  { %v2871_v51 = vpop.xlane.xlu1 %2870  ;;  %9514 = vmatprep.mubr.msk.bf16.mxu0 %vm715_vm0, %v2956_v6  ;;  %v2929_v38 = vmul.f32 %v10535_v57, %v12272_v20  ;;  %v14490_v20 = vld [vmem:[#allocation56_spill] sm:$0xff]  ;;  %v14491_v4 = vld [vmem:[#allocation93_spill] sm:$0xff]  ;;  %v14492_v57 = vld [vmem:[#allocation95_spill] sm:$0xff] }
 0x689   :  { %9515 = vmatmul.mubr.msk.bf16.vlgmr.msra.gmra.mrb[96].mxu0 %vm715_vm0, %v2957_v9  ;;  %v2955_v52 = vpack.c.bf16 %v2931_v37, %v2930_v2  ;;  %10536 = vrcp.f32 %v2871_v51  ;;  %v14493_v51 = vld [vmem:[#allocation34_spill] sm:$0xff]  ;;  %v14496_v37 = vld [vmem:[#allocation41_spill] sm:$0xff] }
 0x68a   :  { %4512 = vrot.lane.b32.xlu1 %v14486_v18, %s10998_s0  ;;  %9527 = vmatpush3.bf16.msra.mxu0 %v14472_v3  ;;  %v2954_v24 = vpack.c.bf16 %v2929_v38, %v2928_v11  ;;  %10538 = vrcp.f32 %v2862_v1  ;;  %v2850_v3 = vpop.xlane.xlu0 %2849 }
 0x68b   :  { %4880 = vrot.lane.b32.xlu0 %v14487_v34, %s11004_s7  ;;  %9528 = vmatprep.subr.bf16.mxu0 %v14488_v48  ;;  %10540 = vrcp.f32 %v2868_v10  ;;  %v14495_v10 = vld [vmem:[#allocation44_spill] sm:$0xff] }
 0x68c   :  { %v2859_v28 = vpop.xlane.xlu1 %2858  ;;  %9506 = vmatprep.mubr.msk.bf16.mxu1 %vm715_vm0, %v2954_v24 }
 0x68d   :  { %9507 = vmatmul.mubr.msk.bf16.vlgmr.msra.gmra.mrb[108].mxu1 %vm715_vm0, %v2955_v52 }
 0x68e   :  { %4632 = vrot.lane.b32.xlu1 %v14489_v58, %s10998_s0  ;;  %9519 = vmatpush3.bf16.msra.mxu1 %v14475_v33  ;;  %v14494_v33 = vld [vmem:[#allocation96_spill] sm:$0xff] }
 0x68f   :  { %9529 = vmatpush3.bf16.msra.mxu0 %v14488_v48  ;;  %4817 = vrot.lane.b32.xlu0 %v14490_v20, %s10998_s0  ;;  %v14497_v48 = vld [vmem:[#allocation40_spill] sm:$0xff] }
 0x690   :  { %9520 = vmatprep.subr.bf16.mxu1 %v14491_v4  ;;  %9894 = vmatprep.subr.msk.bf16.mxu0 %vm715_vm0, %v14492_v57  ;;  %v2865_v6 = vpop.xlane.xlu1 %2864 }
 0x691   :  { %10542 = vrcp.f32 %v2865_v6  ;;  %v14498_v6 = vld [vmem:[#allocation49_spill] sm:$0xff] }
 0x692   :  { %10544 = vrcp.f32 %v2859_v28  ;;  %4451 = vrot.lane.b32.xlu1 %v14493_v51, %s10998_s0  ;;  %9521 = vmatpush3.bf16.msra.mxu1 %v14491_v4 }
 0x693   :  { %10546 = vrcp.f32 %v2850_v3  ;;  %9534 = vmatprep.subr.bf16.mxu1 %v14494_v33  ;;  %v10537_v7 = vpop.eup %10536 }
 0x694   :  { %10548 = vrcp.f32 %v2856_v17  ;;  %v2853_v44 = vpop.xlane.xlu1 %2852  ;;  %v10539_v0 = vpop.eup %10538  ;;  %v2943_v11 = vmul.f32 %v10537_v7, %v12290_v13  ;;  %v14500_v7 = vld [vmem:[#allocation99_spill] sm:$0xff] }
 0x695   :  { %10550 = vrcp.f32 %v2853_v44  ;;  %v10541_v45 = vpop.eup %10540  ;;  %v2940_v2 = vmul.f32 %v10539_v0, %v12265_v27  ;;  %v14503_v0 = vld [vmem:[#allocation57_spill] sm:$0xff] }
 0x696   :  { %4634 = vrot.lane.b32.xlu1 %v14495_v10, %s10998_s0  ;;  %v2942_v24 = vmul.f32 %v10541_v45, %v12281_v63  ;;  %v3483_v63 = vsel %vm715_vm0, %v14492_v57, 0  ;;  %v3542_v57 = vpop.permute.xlu0 %3541 }
 0x698   :  { %v2961_v4 = vpack.c.bf16 %v2943_v11, %v2942_v24 }
 0x69a   :  { %4571 = vrot.lane.b32.xlu1 %v14496_v37, %s10998_s0 }
 0x69b   :  { %v10543_v9 = vpop.eup %10542 }
 0x69c   :  { %v10545_v38 = vpop.eup %10544  ;;  %v2941_v1 = vmul.f32 %v10543_v9, %v12298_v56  ;;  %v3611_v9 = vpop.permute.xlu1 %3610 }
 0x69d   :  { %v10547_v17 = vpop.eup %10546  ;;  %v2939_v3 = vmul.f32 %v10545_v38, %v12294_v16  ;;  %v14499_v16 = vld [vmem:[#allocation98_spill] sm:$0xff] }
 0x69e   :  { %v10549_v34 = vpop.eup %10548  ;;  %4573 = vrot.lane.b32.xlu1 %v14497_v48, %s10998_s0  ;;  %v2960_v52 = vpack.c.bf16 %v2941_v1, %v2940_v2  ;;  %v2936_v13 = vmul.f32 %v10547_v17, %v12274_v39  ;;  %v3486_v45 = vsel %vm715_vm0, %v14499_v16, 0  ;;  %v3621_v2 = vsel %vm715_vm0, %v3611_v9, 0 }
 0x69f   :  { %v10551_v28 = vpop.eup %10550  ;;  %v2938_v56 = vmul.f32 %v10549_v34, %v12286_v25  ;;  %v14501_v25 = vld [vmem:[#allocation48_spill] sm:$0xff] }
 0x6a0   :  { %9530 = vmatprep.mubr.msk.bf16.mxu0 %vm715_vm0, %v2960_v52  ;;  %v2937_v27 = vmul.f32 %v10551_v28, %v12302_v26  ;;  %v14502_v26 = vld [vmem:[#allocation97_spill] sm:$0xff] }
 0x6a1   :  { %9531 = vmatmul.mubr.msk.bf16.vlgmr.msra.gmra.mrb[100].mxu0 %vm715_vm0, %v2961_v4  ;;  %v2959_v39 = vpack.c.bf16 %v2939_v3, %v2938_v56 }
 0x6a2   :  { %4693 = vrot.lane.b32.xlu1 %v14498_v6, %s10998_s0  ;;  %9543 = vmatpush3.bf16.xpose.msra.mxu0 %v3483_v63  ;;  %v2958_v44 = vpack.c.bf16 %v2937_v27, %v2936_v13 }
 0x6a3   :  { %9895 = vmatprep.subr.msk.bf16.mxu0 %vm715_vm0, %v14499_v16  ;;  %9546 = vmatprep.mubr.msk.bf16.mxu0 %vm715_vm0, %v14500_v7 }
 0x6a4   :  { %9522 = vmatprep.mubr.msk.bf16.mxu1 %vm715_vm0, %v2958_v44 }
 0x6a5   :  { %9523 = vmatmul.mubr.msk.bf16.vlgmr.msra.gmra.mrb[112].mxu1 %vm715_vm0, %v2959_v39 }
 0x6a6   :  { %4695 = vrot.lane.b32.xlu1 %v14501_v25, %s10998_s0  ;;  %9535 = vmatpush3.bf16.msra.mxu1 %v14494_v33 }
 0x6a7   :  { %9536 = vmatprep.subr.bf16.mxu1 %v14502_v26 }
 0x6aa   :  { %4815 = vrot.lane.b32.xlu1 %v14503_v0, %s10998_s0  ;;  %9537 = vmatpush3.bf16.msra.mxu1 %v14502_v26 }
 0x6ab   :  { %9545 = vmatpush3.bf16.xpose.msra.mxu0 %v3486_v45  ;;  %9896 = vmatprep.subr.msk.bf16.mxu1 %vm715_vm0, %v3542_v57 }
 0x6ac   :  { %9898 = vmatprep.subr.msk.bf16.mxu0 %vm715_vm0, %v3611_v9 }
 0x6b1   :  { %v2883_v11 = vpop.xlane.xlu0 %2882 }
 0x6b5   :  { %v2877_v38 = vpop.xlane.xlu0 %2876 }
 0x6b9   :  { %v3471_v33 = vpop.permute.xlu0 %3470 }
 0x6ba   :  { %9547 = vmatmul.mubr.msk.bf16.vlgmr.msra.gmra.mrb[104].mxu0 %vm715_vm0, %v3471_v33 }
 0x6bb   :  { %9559 = vmatpush3.bf16.xpose.msra.mxu0 %v3621_v2 }
 0x6bd   :  { %v3613_v1 = vpop.permute.xlu0 %3612 }
 0x6be   :  { %9899 = vmatprep.subr.msk.bf16.mxu0 %vm715_vm0, %v3613_v1  ;;  %v3624_v24 = vsel %vm715_vm0, %v3613_v1, 0 }
 0x6c1   :  { %v3607_v17 = vpop.permute.xlu0 %3606 }
 0x6c2   :  { %9562 = vmatprep.mubr.msk.bf16.mxu0 %vm715_vm0, %v3607_v17 }
 0x6c3   :  { %9561 = vmatpush3.bf16.xpose.msra.mxu0 %v3624_v24 }
 0x6c5   :  { %v3749_v34 = vpop.permute.xlu0 %3748 }
 0x6c6   :  { %9902 = vmatprep.subr.msk.bf16.mxu0 %vm715_vm0, %v3749_v34  ;;  %v3759_v3 = vsel %vm715_vm0, %v3749_v34, 0 }
 0x6c9   :  { %v2880_v52 = vpop.xlane.xlu1 %2879  ;;  %v3609_v28 = vpop.permute.xlu0 %3608 }
 0x6ca   :  { %9563 = vmatmul.mubr.msk.bf16.vlgmr.msra.gmra.mrb[108].mxu0 %vm715_vm0, %v3609_v28  ;;  %10552 = vrcp.f32 %v2880_v52 }
 0x6cb   :  { %9575 = vmatpush3.bf16.xpose.msra.mxu0 %v3759_v3  ;;  %10554 = vrcp.f32 %v2877_v38 }
 0x6cc   :  { %10556 = vrcp.f32 %v2883_v11 }
 0x6cd   :  { %v2874_v4 = vpop.xlane.xlu1 %2873  ;;  %v3751_v13 = vpop.permute.xlu0 %3750 }
 0x6ce   :  { %10558 = vrcp.f32 %v2874_v4  ;;  %9903 = vmatprep.subr.msk.bf16.mxu0 %vm715_vm0, %v3751_v13  ;;  %v3762_v63 = vsel %vm715_vm0, %v3751_v13, 0 }
 0x6d1   :  { %v3544_v27 = vpop.permute.xlu1 %3543  ;;  %v3745_v56 = vpop.permute.xlu0 %3744 }
 0x6d2   :  { %9578 = vmatprep.mubr.msk.bf16.mxu0 %vm715_vm0, %v3745_v56  ;;  %v3555_v13 = vsel %vm715_vm0, %v3544_v27, 0 }
 0x6d3   :  { %9577 = vmatpush3.bf16.xpose.msra.mxu0 %v3762_v63 }
 0x6d4   :  { %v10553_v44 = vpop.eup %10552 }
 0x6d5   :  { %v3538_v16 = vpop.permute.xlu1 %3537  ;;  %v3887_v7 = vpop.permute.xlu0 %3886  ;;  %v2946_v9 = vmul.f32 %v10553_v44, %v12330_v22  ;;  %v3552_v22 = vsel %vm715_vm0, %v3542_v57, 0 }
 0x6d6   :  { %v10555_v39 = vpop.eup %10554  ;;  %9906 = vmatprep.subr.msk.bf16.mxu0 %vm715_vm0, %v3887_v7  ;;  %v3897_v17 = vsel %vm715_vm0, %v3887_v7, 0 }
 0x6d7   :  { %v10557_v26 = vpop.eup %10556  ;;  %v2945_v2 = vmul.f32 %v10555_v39, %v12316_v31 }
 0x6d8   :  { %v10559_v45 = vpop.eup %10558  ;;  %v2947_v1 = vmul.f32 %v10557_v26, %v12312_v12 }
 0x6d9   :  { %v3680_v11 = vpop.permute.xlu1 %3679  ;;  %v3747_v38 = vpop.permute.xlu0 %3746  ;;  %v2944_v33 = vmul.f32 %v10559_v45, %v12336_v23 }
 0x6da   :  { %9579 = vmatmul.mubr.msk.bf16.vlgmr.msra.gmra.mrb[112].mxu0 %vm715_vm0, %v3747_v38  ;;  %v2963_v34 = vpack.c.bf16 %v2947_v1, %v2946_v9 }
 0x6db   :  { %9591 = vmatpush3.bf16.xpose.msra.mxu0 %v3897_v17  ;;  %v2962_v24 = vpack.c.bf16 %v2945_v2, %v2944_v33 }
 0x6dd   :  { %v3540_v52 = vpop.permute.xlu1 %3539  ;;  %9538 = vmatprep.mubr.msk.bf16.mxu1 %vm715_vm0, %v2962_v24  ;;  %v3889_v28 = vpop.permute.xlu0 %3888 }
 0x6de   :  { %9539 = vmatmul.mubr.msk.bf16.vlgmr.msra.gmra.mrb[116].mxu1 %vm715_vm0, %v2963_v34  ;;  %9907 = vmatprep.subr.msk.bf16.mxu0 %vm715_vm0, %v3889_v28  ;;  %v3900_v23 = vsel %vm715_vm0, %v3889_v28, 0 }
 0x6df   :  { %9551 = vmatpush3.bf16.xpose.msra.mxu1 %v3552_v22  ;;  %9554 = vmatprep.mubr.msk.bf16.mxu1 %vm715_vm0, %v3538_v16  ;;  %v3690_v16 = vsel %vm715_vm0, %v3680_v11, 0 }
 0x6e0   :  { %9897 = vmatprep.subr.msk.bf16.mxu1 %vm715_vm0, %v3544_v27 }
 0x6e1   :  { %v3682_v12 = vpop.permute.xlu1 %3681  ;;  %v3814_v31 = vpop.permute.xlu0 %3813 }
 0x6e2   :  { %v3693_v26 = vsel %vm715_vm0, %v3682_v12, 0 }
 0x6e3   :  { %9593 = vmatpush3.bf16.xpose.msra.mxu0 %v3900_v23 }
 0x6e5   :  { %v3676_v3 = vpop.permute.xlu1 %3675  ;;  %v3956_v4 = vpop.permute.xlu0 %3955 }
 0x6e7   :  { %9553 = vmatpush3.bf16.xpose.msra.mxu1 %v3555_v13 }
 0x6e8   :  { %9900 = vmatprep.subr.msk.bf16.mxu1 %vm715_vm0, %v3680_v11 }
 0x6e9   :  { %v3818_v57 = vpop.permute.xlu1 %3817  ;;  %v3958_v56 = vpop.permute.xlu0 %3957 }
 0x6ea   :  { %v3828_v11 = vsel %vm715_vm0, %v3818_v57, 0 }
 0x6ed   :  { %v3678_v63 = vpop.permute.xlu1 %3677  ;;  %v3954_v44 = vpop.permute.xlu0 %3953 }
 0x6ee   :  { %9555 = vmatmul.mubr.msk.bf16.vlgmr.msra.gmra.mrb[120].mxu1 %vm715_vm0, %v3540_v52 }
 0x6ef   :  { %9567 = vmatpush3.bf16.xpose.msra.mxu1 %v3690_v16  ;;  %9570 = vmatprep.mubr.msk.bf16.mxu1 %vm715_vm0, %v3676_v3  ;;  %v3969_v3 = vsel %vm715_vm0, %v3958_v56, 0 }
 0x6f0   :  { %9901 = vmatprep.subr.msk.bf16.mxu1 %vm715_vm0, %v3682_v12 }
 0x6f1   :  { %v3820_v7 = vpop.permute.xlu1 %3819  ;;  %v4389_v39 = vpop.permute.xlu0 %4388 }
 0x6f2   :  { %9606 = vmatprep.subr.bf16.mxu0 %v4389_v39  ;;  %v3831_v2 = vsel %vm715_vm0, %v3820_v7, 0 }
 0x6f5   :  { %v3883_v27 = vpop.permute.xlu1 %3882  ;;  %v12534_v1 = vpop.permute.xlu0 %4510 }
 0x6f6   :  { %9594 = vmatprep.mubr.msk.bf16.mxu0 %vm715_vm0, %v3883_v27 }
 0x6f7   :  { %9569 = vmatpush3.bf16.xpose.msra.mxu1 %v3693_v26 }
 0x6f8   :  { %9904 = vmatprep.subr.msk.bf16.mxu1 %vm715_vm0, %v3818_v57 }
 0x6f9   :  { %v3885_v45 = vpop.permute.xlu1 %3884  ;;  %v4450_v13 = vpop.permute.xlu0 %4449 }
 0x6fa   :  { %9595 = vmatmul.mubr.msk.bf16.vlgmr.msra.gmra.mrb[116].mxu0 %vm715_vm0, %v3885_v45 }
 0x6fb   :  { %9607 = vmatpush3.bf16.msra.mxu0 %v4389_v39 }
 0x6fd   :  { %v3816_v9 = vpop.permute.xlu1 %3815 }
 0x6fe   :  { %9571 = vmatmul.mubr.msk.bf16.vlgmr.msra.gmra.mrb[124].mxu1 %vm715_vm0, %v3678_v63 }
 0x6ff   :  { %9583 = vmatpush3.bf16.xpose.msra.mxu1 %v3828_v11  ;;  %9586 = vmatprep.mubr.msk.bf16.mxu1 %vm715_vm0, %v3814_v31  ;;  %v3966_v31 = vsel %vm715_vm0, %v3956_v4, 0 }
 0x700   :  { %9905 = vmatprep.subr.msk.bf16.mxu1 %vm715_vm0, %v3820_v7 }
 0x701   :  { %v3952_v38 = vpop.permute.xlu1 %3951 }
 0x705   :  { %v4391_v33 = vpop.permute.xlu1 %4390 }
 0x706   :  { %9608 = vmatprep.subr.bf16.mxu0 %v4391_v33 }
 0x707   :  { %9585 = vmatpush3.bf16.xpose.msra.mxu1 %v3831_v2  ;;  %v12536_v17 = vpop.f32.mrb[88].mxu0  ;;  %9609 = vmatpush3.bf16.msra.mxu0 %v4391_v33 }
 0x708   :  { %14504 = vst [vmem:[#allocation24_spill] sm:$0xff] %v12536_v17  ;;  %9908 = vmatprep.subr.msk.bf16.mxu1 %vm715_vm0, %v3956_v4  ;;  %v12539_v24 = vpop.f32.mrb[89].mxu0  ;;  %9622 = vmatprep.subr.bf16.mxu0 %v12534_v1 }
 0x709   :  { %14505 = vst [vmem:[#allocation100_spill] sm:$0xff] %v12539_v24  ;;  %v12542_v34 = vpop.f32.mrb[90].mxu0  ;;  %v12548_v22 = vpop.permute.xlu1 %4512 }
 0x70a   :  { %14506 = vst [vmem:[#allocation68_spill] sm:$0xff] %v12542_v34  ;;  %v12546_v28 = vpop.f32.mrb[91].mxu0 }
 0x70b   :  { %14507 = vst [vmem:[#allocation39_spill] sm:$0xff] %v12546_v28 }
 0x70d   :  { %v12556_v23 = vpop.permute.xlu1 %4632 }
 0x70e   :  { %9587 = vmatmul.mubr.msk.bf16.vlgmr.msra.gmra.mrb[128].mxu1 %vm715_vm0, %v3816_v9 }
 0x70f   :  { %9599 = vmatpush3.bf16.xpose.msra.mxu1 %v3966_v31  ;;  %9602 = vmatprep.mubr.msk.bf16.mxu1 %vm715_vm0, %v3952_v38 }
 0x710   :  { %9909 = vmatprep.subr.msk.bf16.mxu1 %vm715_vm0, %v3958_v56 }
 0x711   :  { %v4452_v57 = vpop.permute.xlu1 %4451 }
 0x715   :  { %v12559_v63 = vpop.permute.xlu1 %4634 }
 0x716   :  { %14508 = vst [vmem:[#allocation73_spill] sm:$0xff] %v12559_v63 }
 0x717   :  { %9601 = vmatpush3.bf16.xpose.msra.mxu1 %v3969_v3 }
 0x718   :  { %9614 = vmatprep.subr.bf16.mxu1 %v4450_v13 }
 0x719   :  { %v12562_v4 = vpop.permute.xlu1 %4571 }
 0x71a   :  { %14509 = vst [vmem:[#allocation90_spill] sm:$0xff] %v12562_v4 }
 0x71e   :  { %9603 = vmatmul.mubr.msk.bf16.vlgmr.msra.gmra.mrb[132].mxu1 %vm715_vm0, %v3954_v44 }
 0x71f   :  { %9615 = vmatpush3.bf16.msra.mxu1 %v4450_v13 }
 0x720   :  { %9616 = vmatprep.subr.bf16.mxu1 %v4452_v57 }
 0x723   :  { %9617 = vmatpush3.bf16.msra.mxu1 %v4452_v57 }
 0x724   :  { %9630 = vmatprep.subr.bf16.mxu1 %v12562_v4 }
 0x73e   :  { %v12565_v16 = vpop.f32.mrb[92].mxu0 }
 0x73f   :  { %14510 = vst [vmem:[#allocation92_spill] sm:$0xff] %v12565_v16  ;;  %v12567_v7 = vpop.f32.mrb[93].mxu0 }
 0x740   :  { %14511 = vst [vmem:[#allocation55_spill] sm:$0xff] %v12567_v7  ;;  %v12569_v56 = vpop.f32.mrb[94].mxu0 }
 0x741   :  { %14512 = vst [vmem:[#allocation91_spill] sm:$0xff] %v12569_v56  ;;  %v12573_v27 = vpop.f32.mrb[95].mxu0 }
 0x742   :  { %14513 = vst [vmem:[#allocation54_spill] sm:$0xff] %v12573_v27  ;;  %v12577_v26 = vpop.f32.mrb[104].mxu1 }
 0x743   :  { %14514 = vst [vmem:[#allocation18_spill] sm:$0xff] %v12577_v26  ;;  %v12579_v45 = vpop.f32.mrb[105].mxu1 }
 0x744   :  { %14515 = vst [vmem:[#allocation94_spill] sm:$0xff] %v12579_v45  ;;  %v12581_v9 = vpop.f32.mrb[106].mxu1  ;;  %v14536_v45 = vld [vmem:[#allocation60_spill] sm:$0xff] }
 0x745   :  { %14516 = vst [vmem:[#allocation93_spill] sm:$0xff] %v12581_v9  ;;  %v12585_v38 = vpop.f32.mrb[107].mxu1 }
 0x746   :  { %14517 = vst [vmem:[#allocation95_spill] sm:$0xff] %v12585_v38 }
 0x75c   :  { %v12589_v2 = vpop.f32.mrb[96].mxu0 }
 0x75d   :  { %14518 = vst [vmem:[#allocation96_spill] sm:$0xff] %v12589_v2  ;;  %v12591_v31 = vpop.f32.mrb[97].mxu0 }
 0x75e   :  { %14519 = vst [vmem:[#allocation98_spill] sm:$0xff] %v12591_v31  ;;  %v12593_v3 = vpop.f32.mrb[98].mxu0 }
 0x75f   :  { %14520 = vst [vmem:[#allocation99_spill] sm:$0xff] %v12593_v3  ;;  %v12597_v57 = vpop.f32.mrb[99].mxu0 }
 0x760   :  { %14521 = vst [vmem:[#allocation97_spill] sm:$0xff] %v12597_v57  ;;  %v12601_v39 = vpop.f32.mrb[108].mxu1  ;;  %v14535_v57 = vld [vmem:[#allocation59_spill] sm:$0xff] }
 0x761   :  { %14522 = vst [vmem:[#allocation101_spill] sm:$0xff] %v12601_v39  ;;  %v12603_v11 = vpop.f32.mrb[109].mxu1 }
 0x762   :  { %14523 = vst [vmem:[#allocation102_spill] sm:$0xff] %v12603_v11  ;;  %v12605_v52 = vpop.f32.mrb[110].mxu1 }
 0x763   :  { %14524 = vst [vmem:[#allocation103_spill] sm:$0xff] %v12605_v52  ;;  %v12609_v12 = vpop.f32.mrb[111].mxu1 }
 0x764   :  { %14525 = vst [vmem:[#allocation104_spill] sm:$0xff] %v12609_v12 }
 0x774   :  { %v12613_v13 = vpop.f32.mrb[100].mxu0 }
 0x775   :  { %14526 = vst [vmem:[#allocation105_spill] sm:$0xff] %v12613_v13  ;;  %v12615_v2 = vpop.f32.mrb[101].mxu0  ;;  %v14534_v13 = vld [vmem:[#allocation58_spill] sm:$0xff] }
 0x776   :  { %14527 = vst [vmem:[#allocation106_spill] sm:$0xff] %v12615_v2  ;;  %v12617_v3 = vpop.f32.mrb[102].mxu0 }
 0x777   :  { %14528 = vst [vmem:[#allocation107_spill] sm:$0xff] %v12617_v3  ;;  %v12621_v31 = vpop.f32.mrb[103].mxu0 }
 0x778   :  { %14529 = vst [vmem:[#allocation108_spill] sm:$0xff] %v12621_v31  ;;  %v12625_v33 = vpop.f32.mrb[112].mxu1 }
 0x779   :  { %14530 = vst [vmem:[#allocation109_spill] sm:$0xff] %v12625_v33  ;;  %v12627_v39 = vpop.f32.mrb[113].mxu1  ;;  %v14537_v33 = vld [vmem:[#allocation61_spill] sm:$0xff] }
 0x77a   :  { %14531 = vst [vmem:[#allocation110_spill] sm:$0xff] %v12627_v39  ;;  %v12629_v52 = vpop.f32.mrb[114].mxu1 }
 0x77b   :  { %14532 = vst [vmem:[#allocation111_spill] sm:$0xff] %v12629_v52  ;;  %v12633_v11 = vpop.f32.mrb[115].mxu1 }
 0x77c   :  { %14533 = vst [vmem:[#allocation112_spill] sm:$0xff] %v12633_v11 }
 0x78d   :  { %v9548_v44 = vpop.f32.mrb[104].mxu0 }
 0x78e   :  { %v12638_v3 = vadd.f32 %v9548_v44, %v14534_v13  ;;  %v3522_v27 = vpop.f32.mrb[105].mxu0 }
 0x78f   :  { %v12641_v2 = vadd.f32 %v3522_v27, %v14535_v57  ;;  %v9549_v31 = vpop.f32.mrb[106].mxu0 }
 0x790   :  { %v3525_v16 = vpop.f32.mrb[107].mxu0  ;;  %v4026_v56 = vsel %vm715_vm0, %v12638_v3, -inf  ;;  %v12646_v7 = vadd.f32 %v9549_v31, %v14536_v45 }
 0x791   :  { %v12649_v52 = vadd.f32 %v3525_v16, %v14537_v33  ;;  %4027 = vmax.xlane.f32.xlu0 %v4026_v56  ;;  %v4020_v44 = vsel %vm715_vm0, %v12641_v2, -inf }
 0x792   :  { %4021 = vmax.xlane.f32.xlu1 %v4020_v44  ;;  %v4029_v12 = vsel %vm715_vm0, %v12646_v7, -inf }
 0x793   :  { %v4023_v27 = vsel %vm715_vm0, %v12649_v52, -inf }
 0x795   :  { %4024 = vmax.xlane.f32.xlu0 %v4023_v27 }
 0x796   :  { %4030 = vmax.xlane.f32.xlu1 %v4029_v12 }
 0x79d   :  { %v9564_v39 = vpop.f32.mrb[108].mxu0 }
 0x79e   :  { %v12658_v31 = vadd.f32 %v9564_v39, %v14534_v13  ;;  %v3660_v11 = vpop.f32.mrb[109].mxu0 }
 0x79f   :  { %v9565_v16 = vpop.f32.mrb[110].mxu0  ;;  %v12683_v40 = vadd.f32 %v3660_v11, %v14535_v57 }
 0x7a0   :  { %v12661_v56 = vadd.f32 %v9565_v16, %v14536_v45  ;;  %v3663_v38 = vpop.f32.mrb[111].mxu0  ;;  %v4050_v44 = vsel %vm715_vm0, %v12658_v31, -inf }
 0x7a1   :  { %4051 = vmax.xlane.f32.xlu0 %v4050_v44  ;;  %v4044_v11 = vsel %vm715_vm0, %v12683_v40, -inf }
 0x7a2   :  { %v4053_v27 = vsel %vm715_vm0, %v12661_v56, -inf }
 0x7a3   :  { %4054 = vmax.xlane.f32.xlu1 %v4053_v27 }
 0x7ad   :  { %v9580_v26 = vpop.f32.mrb[112].mxu0 }
 0x7ae   :  { %v3798_v12 = vpop.f32.mrb[113].mxu0 }
 0x7af   :  { %v9581_v9 = vpop.f32.mrb[114].mxu0  ;;  %v12723_v10 = vadd.f32 %v3798_v12, %v14535_v57 }
 0x7b0   :  { %v3801_v17 = vpop.f32.mrb[115].mxu0 }
 0x7b1   :  { %v12667_v39 = vpop.f32.mrb[116].mxu1  ;;  %v4068_v12 = vsel %vm715_vm0, %v12723_v10, -inf }
 0x7b2   :  { %14538 = vst [vmem:[#allocation113_spill] sm:$0xff] %v12667_v39  ;;  %v12669_v34 = vpop.f32.mrb[117].mxu1  ;;  %v12691_v39 = vadd.f32 %v3663_v38, %v14537_v33  ;;  %v12706_v38 = vadd.f32 %v9580_v26, %v14534_v13 }
 0x7b3   :  { %14539 = vst [vmem:[#allocation114_spill] sm:$0xff] %v12669_v34  ;;  %v12671_v0 = vpop.f32.mrb[118].mxu1  ;;  %v12711_v34 = vadd.f32 %v9581_v9, %v14536_v45 }
 0x7b4   :  { %14540 = vst [vmem:[#allocation115_spill] sm:$0xff] %v12671_v0  ;;  %v12675_v24 = vpop.f32.mrb[119].mxu1 }
 0x7b5   :  { %14541 = vst [vmem:[#allocation116_spill] sm:$0xff] %v12675_v24  ;;  %v4077_v9 = vsel %vm715_vm0, %v12711_v34, -inf }
 0x7c1   :  { %v9556_v28 = vpop.f32.mrb[120].mxu1 }
 0x7c2   :  { %v12680_v27 = vadd.f32 %v9556_v28, %v14534_v13  ;;  %v3591_v20 = vpop.f32.mrb[121].mxu1 }
 0x7c3   :  { %v9557_v25 = vpop.f32.mrb[122].mxu1  ;;  %v12696_v44 = vadd.f32 %v3591_v20, %v14535_v57 }
 0x7c4   :  { %v12686_v6 = vadd.f32 %v9557_v25, %v14536_v45  ;;  %v3594_v48 = vpop.f32.mrb[123].mxu1  ;;  %v4038_v16 = vsel %vm715_vm0, %v12680_v27, -inf }
 0x7c5   :  { %4039 = vmax.xlane.f32.xlu0 %v4038_v16  ;;  %v12701_v25 = vadd.f32 %v3594_v48, %v14537_v33  ;;  %v4047_v16 = vsel %vm715_vm0, %v12691_v39, -inf }
 0x7c6   :  { %v4041_v28 = vsel %vm715_vm0, %v12686_v6, -inf }
 0x7c7   :  { %4042 = vmax.xlane.f32.xlu1 %v4041_v28  ;;  %v4032_v28 = vsel %vm715_vm0, %v12696_v44, -inf }
 0x7c9   :  { %4045 = vmax.xlane.f32.xlu0 %v4044_v11  ;;  %v4035_v11 = vsel %vm715_vm0, %v12701_v25, -inf }
 0x7cb   :  { %4048 = vmax.xlane.f32.xlu1 %v4047_v16  ;;  %v4074_v16 = vsel %vm715_vm0, %v12706_v38, -inf }
 0x7cd   :  { %4033 = vmax.xlane.f32.xlu0 %v4032_v28  ;;  %v9596_v20 = vpop.f32.mrb[116].mxu0 }
 0x7ce   :  { %v3936_v48 = vpop.f32.mrb[117].mxu0 }
 0x7cf   :  { %4036 = vmax.xlane.f32.xlu1 %v4035_v11  ;;  %v9597_v24 = vpop.f32.mrb[118].mxu0 }
 0x7d0   :  { %v3939_v0 = vpop.f32.mrb[119].mxu0 }
 0x7d1   :  { %v9572_v26 = vpop.f32.mrb[124].mxu1  ;;  %4075 = vmax.xlane.f32.xlu0 %v4074_v16  ;;  %v12731_v16 = vadd.f32 %v3801_v17, %v14537_v33  ;;  %v12746_v17 = vadd.f32 %v9596_v20, %v14534_v13 }
 0x7d2   :  { %v12718_v37 = vadd.f32 %v9572_v26, %v14534_v13  ;;  %v3729_v28 = vpop.f32.mrb[125].mxu1 }
 0x7d3   :  { %v9573_v51 = vpop.f32.mrb[126].mxu1  ;;  %4078 = vmax.xlane.f32.xlu1 %v4077_v9  ;;  %v12736_v9 = vadd.f32 %v3729_v28, %v14535_v57  ;;  %v12751_v28 = vadd.f32 %v9597_v24, %v14536_v45  ;;  %v12763_v24 = vadd.f32 %v3936_v48, %v14535_v57 }
 0x7d4   :  { %v12726_v11 = vadd.f32 %v9573_v51, %v14536_v45  ;;  %v3732_v4 = vpop.f32.mrb[127].mxu1  ;;  %v4062_v63 = vsel %vm715_vm0, %v12718_v37, -inf }
 0x7d5   :  { %4063 = vmax.xlane.f32.xlu0 %v4062_v63  ;;  %v12741_v51 = vadd.f32 %v3732_v4, %v14537_v33  ;;  %v4071_v63 = vsel %vm715_vm0, %v12731_v16, -inf  ;;  %v4098_v4 = vsel %vm715_vm0, %v12746_v17, -inf  ;;  %v4101_v18 = vsel %vm715_vm0, %v12751_v28, -inf }
 0x7d6   :  { %v4065_v26 = vsel %vm715_vm0, %v12726_v11, -inf  ;;  %v4092_v48 = vsel %vm715_vm0, %v12763_v24, -inf }
 0x7d7   :  { %4066 = vmax.xlane.f32.xlu1 %v4065_v26  ;;  %v4056_v26 = vsel %vm715_vm0, %v12736_v9, -inf }
 0x7d9   :  { %4069 = vmax.xlane.f32.xlu0 %v4068_v12  ;;  %v4059_v12 = vsel %vm715_vm0, %v12741_v51, -inf }
 0x7db   :  { %4072 = vmax.xlane.f32.xlu1 %v4071_v63 }
 0x7dd   :  { %4057 = vmax.xlane.f32.xlu0 %v4056_v26 }
 0x7df   :  { %4060 = vmax.xlane.f32.xlu1 %v4059_v12 }
 0x7e1   :  { %4099 = vmax.xlane.f32.xlu0 %v4098_v4  ;;  %v9588_v58 = vpop.f32.mrb[128].mxu1 }
 0x7e2   :  { %v12758_v63 = vadd.f32 %v9588_v58, %v14534_v13  ;;  %v3867_v20 = vpop.f32.mrb[129].mxu1  ;;  %v12771_v58 = vadd.f32 %v3939_v0, %v14537_v33 }
 0x7e3   :  { %4102 = vmax.xlane.f32.xlu1 %v4101_v18  ;;  %v9589_v26 = vpop.f32.mrb[130].mxu1  ;;  %v12776_v18 = vadd.f32 %v3867_v20, %v14535_v57 }
 0x7e4   :  { %v12766_v53 = vadd.f32 %v9589_v26, %v14536_v45  ;;  %v3870_v12 = vpop.f32.mrb[131].mxu1  ;;  %v4086_v4 = vsel %vm715_vm0, %v12758_v63, -inf }
 0x7e5   :  { %4087 = vmax.xlane.f32.xlu0 %v4086_v4  ;;  %v12781_v26 = vadd.f32 %v3870_v12, %v14537_v33  ;;  %v4095_v4 = vsel %vm715_vm0, %v12771_v58, -inf  ;;  %v4080_v0 = vsel %vm715_vm0, %v12776_v18, -inf }
 0x7e6   :  { %v4089_v60 = vsel %vm715_vm0, %v12766_v53, -inf }
 0x7e7   :  { %4090 = vmax.xlane.f32.xlu1 %v4089_v60  ;;  %v4083_v60 = vsel %vm715_vm0, %v12781_v26, -inf }
 0x7e9   :  { %4093 = vmax.xlane.f32.xlu0 %v4092_v48 }
 0x7eb   :  { %4096 = vmax.xlane.f32.xlu1 %v4095_v4 }
 0x7ed   :  { %4081 = vmax.xlane.f32.xlu0 %v4080_v0 }
 0x7ef   :  { %4084 = vmax.xlane.f32.xlu1 %v4083_v60 }
 0x7f1   :  { %v9604_v20 = vpop.f32.mrb[132].mxu1 }
 0x7f2   :  { %v12790_v46 = vadd.f32 %v9604_v20, %v14534_v13  ;;  %v4005_v48 = vpop.f32.mrb[133].mxu1 }
 0x7f3   :  { %v9605_v49 = vpop.f32.mrb[134].mxu1  ;;  %v12793_v12 = vadd.f32 %v4005_v48, %v14535_v57  ;;  %v12809_v48 = vpop.permute.xlu0 %4754 }
 0x7f4   :  { %v12796_v36 = vadd.f32 %v9605_v49, %v14536_v45  ;;  %v4008_v4 = vpop.f32.mrb[135].mxu1  ;;  %v4110_v0 = vsel %vm715_vm0, %v12790_v46, -inf  ;;  %14542 = vst [vmem:[#allocation117_spill] sm:$0xff] %v12809_v48  ;;  %v12811_v45 = vpop.permute.xlu1 %4573 }
 0x7f5   :  { %4111 = vmax.xlane.f32.xlu0 %v4110_v0  ;;  %v12801_v19 = vadd.f32 %v4008_v4, %v14537_v33  ;;  %v4104_v20 = vsel %vm715_vm0, %v12793_v12, -inf  ;;  %14543 = vst [vmem:[#allocation118_spill] sm:$0xff] %v12811_v45  ;;  %v14544_v0 = vld [vmem:[#allocation21_spill] sm:$0xff] }
 0x7f6   :  { %v4113_v60 = vsel %vm715_vm0, %v12796_v36, -inf }
 0x7f7   :  { %4114 = vmax.xlane.f32.xlu1 %v4113_v60  ;;  %v4107_v49 = vsel %vm715_vm0, %v12801_v19, -inf  ;;  %v12815_v4 = vpop.permute.xlu0 %4756 }
 0x7f8   :  { %14545 = vst [vmem:[#allocation21_spill] sm:$0xff] %v12815_v4  ;;  %v12817_v33 = vpop.permute.xlu1 %4693 }
 0x7f9   :  { %4105 = vmax.xlane.f32.xlu0 %v4104_v20  ;;  %14546 = vst [vmem:[#allocation119_spill] sm:$0xff] %v12817_v33 }
 0x7fb   :  { %4108 = vmax.xlane.f32.xlu1 %v4107_v49  ;;  %v12819_v60 = vpop.permute.xlu0 %4880 }
 0x7fc   :  { %14547 = vst [vmem:[#allocation120_spill] sm:$0xff] %v12819_v60  ;;  %v12821_v57 = vpop.permute.xlu1 %4695 }
 0x7fd   :  { %14548 = vst [vmem:[#allocation121_spill] sm:$0xff] %v12821_v57 }
 0x7ff   :  { %v12823_v20 = vpop.permute.xlu0 %4817 }
 0x800   :  { %14549 = vst [vmem:[#allocation122_spill] sm:$0xff] %v12823_v20  ;;  %v12825_v13 = vpop.permute.xlu1 %4815 }
 0x801   :  { %14550 = vst [vmem:[#allocation123_spill] sm:$0xff] %v12825_v13 }
 0x80c   :  { %4882 = vrot.lane.b32.xlu1 %v14544_v0, %s11004_s7 }
 0x81e   :  { %v4028_v49 = vpop.xlane.xlu0 %4027 }
 0x81f   :  { %v4118_v48 = vsub.f32 %v12638_v3, %v4028_v49  ;;  %v4022_v47 = vpop.xlane.xlu1 %4021 }
 0x820   :  { %v4116_v45 = vsub.f32 %v12641_v2, %v4022_v47 }
 0x821   :  { %v4152_v43 = vmul.f32 1.442695, %v4118_v48 }
 0x822   :  { %v4148_v0 = vmul.f32 1.442695, %v4116_v45  ;;  %v4025_v61 = vpop.xlane.xlu0 %4024 }
 0x823   :  { %10560 = vpow2.f32 %v4152_v43  ;;  %v4117_v4 = vsub.f32 %v12649_v52, %v4025_v61  ;;  %v4031_v33 = vpop.xlane.xlu1 %4030 }
 0x824   :  { %v4119_v60 = vsub.f32 %v12646_v7, %v4031_v33  ;;  %10562 = vpow2.f32 %v4148_v0 }
 0x825   :  { %v4150_v57 = vmul.f32 1.442695, %v4117_v4 }
 0x826   :  { %v4154_v20 = vmul.f32 1.442695, %v4119_v60 }
 0x828   :  { %10564 = vpow2.f32 %v4154_v20 }
 0x829   :  { %10566 = vpow2.f32 %v4150_v57 }
 0x82d   :  { %v12831_v13 = vpop.eup %10560 }
 0x82e   :  { %v4052_v3 = vpop.xlane.xlu0 %4051  ;;  %v4218_v47 = vsel %vm715_vm0, %v12831_v13, 0.0  ;;  %v12835_v2 = vpop.eup %10562 }
 0x82f   :  { %v4126_v43 = vsub.f32 %v12658_v31, %v4052_v3  ;;  %4219 = vadd.xlane.f32.xlu0 %v4218_v47  ;;  %v4212_v33 = vsel %vm715_vm0, %v12835_v2, 0.0 }
 0x830   :  { %v4055_v61 = vpop.xlane.xlu1 %4054 }
 0x831   :  { %v4168_v52 = vmul.f32 1.442695, %v4126_v43  ;;  %v4127_v7 = vsub.f32 %v12661_v56, %v4055_v61 }
 0x832   :  { %v12839_v45 = vpop.eup %10564 }
 0x833   :  { %10568 = vpow2.f32 %v4168_v52  ;;  %v4170_v57 = vmul.f32 1.442695, %v4127_v7  ;;  %4213 = vadd.xlane.f32.xlu0 %v4212_v33  ;;  %v4221_v48 = vsel %vm715_vm0, %v12839_v45, 0.0  ;;  %v12845_v4 = vpop.eup %10566 }
 0x834   :  { %4222 = vadd.xlane.f32.xlu1 %v4221_v48  ;;  %v4215_v31 = vsel %vm715_vm0, %v12845_v4, 0.0 }
 0x835   :  { %10570 = vpow2.f32 %v4170_v57 }
 0x838   :  { %4216 = vadd.xlane.f32.xlu1 %v4215_v31 }
 0x83d   :  { %v12849_v56 = vpop.eup %10568 }
 0x83e   :  { %14551 = vst [vmem:[#allocation124_spill] sm:$0xff] %v12849_v56  ;;  %v4242_v60 = vsel %vm715_vm0, %v12849_v56, 0.0 }
 0x83f   :  { %v12853_v20 = vpop.eup %10570  ;;  %4243 = vadd.xlane.f32.xlu0 %v4242_v60 }
 0x840   :  { %v4245_v49 = vsel %vm715_vm0, %v12853_v20, 0.0 }
 0x841   :  { %4246 = vadd.xlane.f32.xlu1 %v4245_v49 }
 0x852   :  { %v4040_v0 = vpop.xlane.xlu0 %4039 }
 0x853   :  { %v4122_v3 = vsub.f32 %v12680_v27, %v4040_v0 }
 0x854   :  { %v4043_v47 = vpop.xlane.xlu1 %4042 }
 0x855   :  { %v4160_v43 = vmul.f32 1.442695, %v4122_v3  ;;  %v4123_v61 = vsub.f32 %v12686_v6, %v4043_v47 }
 0x856   :  { %v4046_v52 = vpop.xlane.xlu0 %4045 }
 0x857   :  { %10572 = vpow2.f32 %v4160_v43  ;;  %v4162_v7 = vmul.f32 1.442695, %v4123_v61  ;;  %v4124_v33 = vsub.f32 %v12683_v40, %v4046_v52 }
 0x858   :  { %v4049_v57 = vpop.xlane.xlu1 %4048 }
 0x859   :  { %10574 = vpow2.f32 %v4162_v7  ;;  %v4164_v48 = vmul.f32 1.442695, %v4124_v33  ;;  %v4125_v31 = vsub.f32 %v12691_v39, %v4049_v57 }
 0x85a   :  { %v4034_v60 = vpop.xlane.xlu0 %4033 }
 0x85b   :  { %10576 = vpow2.f32 %v4164_v48  ;;  %v4166_v49 = vmul.f32 1.442695, %v4125_v31  ;;  %v4120_v56 = vsub.f32 %v12696_v44, %v4034_v60 }
 0x85c   :  { %v4037_v27 = vpop.xlane.xlu1 %4036 }
 0x85d   :  { %10578 = vpow2.f32 %v4166_v49  ;;  %v4156_v0 = vmul.f32 1.442695, %v4120_v56  ;;  %v4121_v6 = vsub.f32 %v12701_v25, %v4037_v27 }
 0x85e   :  { %v4076_v3 = vpop.xlane.xlu0 %4075 }
 0x85f   :  { %10580 = vpow2.f32 %v4156_v0  ;;  %v4158_v47 = vmul.f32 1.442695, %v4121_v6  ;;  %v4134_v40 = vsub.f32 %v12706_v38, %v4076_v3 }
 0x860   :  { %v4079_v43 = vpop.xlane.xlu1 %4078 }
 0x861   :  { %v12864_v61 = vpop.eup %10572  ;;  %10582 = vpow2.f32 %v4158_v47  ;;  %v4184_v39 = vmul.f32 1.442695, %v4134_v40  ;;  %v4135_v6 = vsub.f32 %v12711_v34, %v4079_v43 }
 0x862   :  { %v4064_v52 = vpop.xlane.xlu0 %4063  ;;  %v4230_v7 = vsel %vm715_vm0, %v12864_v61, 0.0 }
 0x863   :  { %v12868_v44 = vpop.eup %10574  ;;  %10584 = vpow2.f32 %v4184_v39  ;;  %v4130_v56 = vsub.f32 %v12718_v37, %v4064_v52  ;;  %4231 = vadd.xlane.f32.xlu0 %v4230_v7 }
 0x864   :  { %v4067_v25 = vpop.xlane.xlu1 %4066  ;;  %v4233_v33 = vsel %vm715_vm0, %v12868_v44, 0.0 }
 0x865   :  { %v12873_v38 = vpop.eup %10576  ;;  %v4176_v57 = vmul.f32 1.442695, %v4130_v56  ;;  %4234 = vadd.xlane.f32.xlu1 %v4233_v33  ;;  %v4186_v33 = vmul.f32 1.442695, %v4135_v6  ;;  %v4131_v34 = vsub.f32 %v12726_v11, %v4067_v25 }
 0x866   :  { %v4070_v48 = vpop.xlane.xlu0 %4069  ;;  %v4236_v31 = vsel %vm715_vm0, %v12873_v38, 0.0 }
 0x867   :  { %v12877_v60 = vpop.eup %10578  ;;  %10586 = vpow2.f32 %v4176_v57  ;;  %v4132_v49 = vsub.f32 %v12723_v10, %v4070_v48  ;;  %4237 = vadd.xlane.f32.xlu0 %v4236_v31 }
 0x868   :  { %v4073_v37 = vpop.xlane.xlu1 %4072  ;;  %v4239_v27 = vsel %vm715_vm0, %v12877_v60, 0.0 }
 0x869   :  { %v12882_v0 = vpop.eup %10580  ;;  %v4180_v3 = vmul.f32 1.442695, %v4132_v49  ;;  %4240 = vadd.xlane.f32.xlu1 %v4239_v27  ;;  %v4133_v49 = vsub.f32 %v12731_v16, %v4073_v37 }
 0x86a   :  { %v4058_v47 = vpop.xlane.xlu0 %4057  ;;  %v4224_v40 = vsel %vm715_vm0, %v12882_v0, 0.0 }
 0x86b   :  { %v12887_v39 = vpop.eup %10582  ;;  %10588 = vpow2.f32 %v4180_v3  ;;  %v4128_v10 = vsub.f32 %v12736_v9, %v4058_v47  ;;  %4225 = vadd.xlane.f32.xlu0 %v4224_v40  ;;  %v4178_v9 = vmul.f32 1.442695, %v4131_v34  ;;  %v4182_v47 = vmul.f32 1.442695, %v4133_v49 }
 0x86c   :  { %v4061_v52 = vpop.xlane.xlu1 %4060  ;;  %v4227_v7 = vsel %vm715_vm0, %v12887_v39, 0.0 }
 0x86d   :  { %v12892_v56 = vpop.eup %10584  ;;  %v4172_v43 = vmul.f32 1.442695, %v4128_v10  ;;  %4228 = vadd.xlane.f32.xlu1 %v4227_v7  ;;  %v4129_v11 = vsub.f32 %v12741_v51, %v4061_v52 }
 0x86e   :  { %v4100_v57 = vpop.xlane.xlu0 %4099  ;;  %v4266_v48 = vsel %vm715_vm0, %v12892_v56, 0.0 }
 0x86f   :  { %10590 = vpow2.f32 %v4172_v43  ;;  %4267 = vadd.xlane.f32.xlu0 %v4266_v48  ;;  %v4174_v37 = vmul.f32 1.442695, %v4129_v11  ;;  %v4142_v34 = vsub.f32 %v12746_v17, %v4100_v57 }
 0x870   :  { %10592 = vpow2.f32 %v4186_v33  ;;  %v4103_v27 = vpop.xlane.xlu1 %4102 }
 0x871   :  { %v12897_v31 = vpop.eup %10586  ;;  %10594 = vpow2.f32 %v4178_v9  ;;  %v4143_v40 = vsub.f32 %v12751_v28, %v4103_v27  ;;  %v4200_v28 = vmul.f32 1.442695, %v4142_v34 }
 0x872   :  { %v4088_v3 = vpop.xlane.xlu0 %4087  ;;  %v4254_v6 = vsel %vm715_vm0, %v12897_v31, 0.0  ;;  %10596 = vpow2.f32 %v4182_v47 }
 0x873   :  { %4255 = vadd.xlane.f32.xlu1 %v4254_v6  ;;  %v4202_v51 = vmul.f32 1.442695, %v4143_v40 }
 0x874   :  { %v4091_v9 = vpop.xlane.xlu1 %4090 }
 0x875   :  { %v12903_v25 = vpop.eup %10588 }
 0x876   :  { %v4094_v10 = vpop.xlane.xlu0 %4093  ;;  %v4260_v7 = vsel %vm715_vm0, %v12903_v25, 0.0 }
 0x877   :  { %v4140_v16 = vsub.f32 %v12763_v24, %v4094_v10  ;;  %4261 = vadd.xlane.f32.xlu0 %v4260_v7  ;;  %v4138_v24 = vsub.f32 %v12758_v63, %v4088_v3  ;;  %v4139_v3 = vsub.f32 %v12766_v53, %v4091_v9 }
 0x878   :  { %v4097_v40 = vpop.xlane.xlu1 %4096 }
 0x879   :  { %v12909_v33 = vpop.eup %10590  ;;  %v4196_v52 = vmul.f32 1.442695, %v4140_v16  ;;  %v4192_v57 = vmul.f32 1.442695, %v4138_v24  ;;  %v4194_v34 = vmul.f32 1.442695, %v4139_v3 }
 0x87a   :  { %v4248_v43 = vsel %vm715_vm0, %v12909_v33, 0.0  ;;  %v12914_v48 = vpop.eup %10592  ;;  %v4082_v49 = vpop.xlane.xlu0 %4081 }
 0x87b   :  { %10598 = vpow2.f32 %v4196_v52  ;;  %4249 = vadd.xlane.f32.xlu1 %v4248_v43  ;;  %v4269_v27 = vsel %vm715_vm0, %v12914_v48, 0.0  ;;  %v12919_v17 = vpop.eup %10594  ;;  %v4136_v6 = vsub.f32 %v12776_v18, %v4082_v49 }
 0x87c   :  { %10600 = vpow2.f32 %v4174_v37  ;;  %v4257_v11 = vsel %vm715_vm0, %v12919_v17, 0.0  ;;  %v12924_v47 = vpop.eup %10596  ;;  %v4085_v52 = vpop.xlane.xlu1 %4084 }
 0x87d   :  { %10602 = vpow2.f32 %v4202_v51  ;;  %v4188_v10 = vmul.f32 1.442695, %v4136_v6  ;;  %v4263_v16 = vsel %vm715_vm0, %v12924_v47, 0.0  ;;  %v4141_v51 = vsub.f32 %v12771_v58, %v4097_v40 }
 0x87e   :  { %10604 = vpow2.f32 %v4200_v28  ;;  %v4137_v49 = vsub.f32 %v12781_v26, %v4085_v52 }
 0x87f   :  { %4270 = vadd.xlane.f32.xlu1 %v4269_v27  ;;  %10606 = vpow2.f32 %v4192_v57  ;;  %v4198_v9 = vmul.f32 1.442695, %v4141_v51 }
 0x880   :  { %10608 = vpow2.f32 %v4188_v10  ;;  %v4190_v57 = vmul.f32 1.442695, %v4137_v49 }
 0x881   :  { %10610 = vpow2.f32 %v4194_v34 }
 0x882   :  { %v4112_v24 = vpop.xlane.xlu0 %4111  ;;  %10612 = vpow2.f32 %v4198_v9 }
 0x883   :  { %4258 = vadd.xlane.f32.xlu1 %v4257_v11  ;;  %v4146_v6 = vsub.f32 %v12790_v46, %v4112_v24  ;;  %10614 = vpow2.f32 %v4190_v57 }
 0x884   :  { %v4115_v9 = vpop.xlane.xlu1 %4114 }
 0x885   :  { %v12926_v63 = vpop.eup %10598  ;;  %v4208_v10 = vmul.f32 1.442695, %v4146_v6  ;;  %v4147_v57 = vsub.f32 %v12796_v36, %v4115_v9 }
 0x886   :  { %v12929_v7 = vpop.eup %10600  ;;  %v4284_v18 = vsel %vm715_vm0, %v12926_v63, 0.0  ;;  %v4106_v11 = vpop.xlane.xlu0 %4105 }
 0x887   :  { %v12935_v37 = vpop.eup %10602  ;;  %4264 = vadd.xlane.f32.xlu1 %v4263_v16  ;;  %4285 = vadd.xlane.f32.xlu0 %v4284_v18  ;;  %v4251_v53 = vsel %vm715_vm0, %v12929_v7, 0.0  ;;  %v4144_v26 = vsub.f32 %v12793_v12, %v4106_v11  ;;  %10616 = vpow2.f32 %v4208_v10  ;;  %v14552_v12 = vld [vmem:[#allocation16_spill] sm:$0xff] }
 0x888   :  { %v4293_v43 = vsel %vm715_vm0, %v12935_v37, 0.0  ;;  %v12942_v28 = vpop.eup %10604  ;;  %v4109_v11 = vpop.xlane.xlu1 %4108 }
 0x889   :  { %v4290_v58 = vsel %vm715_vm0, %v12942_v28, 0.0  ;;  %v12947_v27 = vpop.eup %10606  ;;  %v4204_v34 = vmul.f32 1.442695, %v4144_v26  ;;  %v4145_v10 = vsub.f32 %v12801_v19, %v4109_v11 }
 0x88a   :  { %v4278_v40 = vsel %vm715_vm0, %v12947_v27, 0.0  ;;  %v12952_v3 = vpop.eup %10608 }
 0x88b   :  { %4252 = vadd.xlane.f32.xlu1 %v4251_v53  ;;  %4294 = vadd.xlane.f32.xlu0 %v4293_v43  ;;  %v4272_v16 = vsel %vm715_vm0, %v12952_v3, 0.0  ;;  %v12957_v18 = vpop.eup %10610  ;;  %10618 = vpow2.f32 %v4204_v34  ;;  %v4206_v26 = vmul.f32 1.442695, %v4145_v10 }
 0x88c   :  { %v4281_v46 = vsel %vm715_vm0, %v12957_v18, 0.0  ;;  %v12961_v51 = vpop.eup %10612 }
 0x88d   :  { %v4287_v52 = vsel %vm715_vm0, %v12961_v51, 0.0  ;;  %v12965_v53 = vpop.eup %10614 }
 0x88e   :  { %v4275_v43 = vsel %vm715_vm0, %v12965_v53, 0.0 }
 0x88f   :  { %4291 = vadd.xlane.f32.xlu1 %v4290_v58 }
 0x891   :  { %v12971_v24 = vpop.eup %10616 }
 0x892   :  { %v4302_v49 = vsel %vm715_vm0, %v12971_v24, 0.0 }
 0x893   :  { %4279 = vadd.xlane.f32.xlu1 %v4278_v40  ;;  %v4210_v40 = vmul.f32 1.442695, %v4147_v57 }
 0x895   :  { %v12975_v58 = vpop.eup %10618  ;;  %10620 = vpow2.f32 %v4210_v40 }
 0x896   :  { %v4296_v6 = vsel %vm715_vm0, %v12975_v58, 0.0  ;;  %10622 = vpow2.f32 %v4206_v26 }
 0x897   :  { %4273 = vadd.xlane.f32.xlu1 %v4272_v16 }
 0x89b   :  { %4282 = vadd.xlane.f32.xlu1 %v4281_v46  ;;  %v12985_v46 = vpop.permute.xlu1 %4882 }
 0x89f   :  { %4288 = vadd.xlane.f32.xlu1 %v4287_v52  ;;  %v12981_v16 = vpop.eup %10620 }
 0x8a0   :  { %v4305_v36 = vsel %vm715_vm0, %v12981_v16, 0.0  ;;  %v12989_v52 = vpop.eup %10622 }
 0x8a1   :  { %4876 = vrot.lane.b32.xlu0 %v14552_v12, %s11004_s7 }
 0x8a3   :  { %4276 = vadd.xlane.f32.xlu1 %v4275_v43  ;;  %v4299_v43 = vsel %vm715_vm0, %v12989_v52, 0.0 }
 0x8a7   :  { %4303 = vadd.xlane.f32.xlu1 %v4302_v49 }
 0x8ab   :  { %4297 = vadd.xlane.f32.xlu1 %v4296_v6 }
 0x8bc   :  { %4878 = vrot.lane.b32.xlu1 %v11149_v29, %s11004_s7  ;;  %v4220_v34 = vpop.xlane.xlu0 %4219 }
 0x8c0   :  { %4306 = vadd.xlane.f32.xlu0 %v4305_v36  ;;  %4951 = vrot.lane.b32.xlu1 %v11181_v59, %s11004_s7  ;;  %v4214_v19 = vpop.xlane.xlu0 %4213 }
 0x8c1   :  { %v4223_v12 = vpop.xlane.xlu1 %4222 }
 0x8c2   :  { %10624 = vrcp.f32 %v4223_v12  ;;  %v14564_v12 = vld [vmem:[#allocation38_spill] sm:$0xff] }
 0x8c3   :  { %10626 = vrcp.f32 %v4214_v19 }
 0x8c4   :  { %4300 = vadd.xlane.f32.xlu0 %v4299_v43  ;;  %4947 = vrot.lane.b32.xlu1 %v11177_v55, %s11004_s7  ;;  %10628 = vrcp.f32 %v4220_v34  ;;  %v14563_v34 = vld [vmem:[#allocation50_spill] sm:$0xff] }
 0x8c5   :  { %v4217_v29 = vpop.xlane.xlu1 %4216 }
 0x8c6   :  { %10630 = vrcp.f32 %v4217_v29 }
 0x8c8   :  { %5020 = vrot.lane.b32.xlu1 %v14389_v21, %s11004_s7 }
 0x8cc   :  { %5016 = vrot.lane.b32.xlu1 %v14396_v14, %s11004_s7  ;;  %v10625_v59 = vpop.eup %10624  ;;  %v4244_v14 = vpop.xlane.xlu0 %4243 }
 0x8cd   :  { %v10627_v9 = vpop.eup %10626  ;;  %v4343_v6 = vmul.f32 %v10625_v59, %v12839_v45  ;;  %v14561_v45 = vld [vmem:[#allocation51_spill] sm:$0xff] }
 0x8ce   :  { %v10629_v49 = vpop.eup %10628  ;;  %v4340_v55 = vmul.f32 %v10627_v9, %v12835_v2  ;;  %v14565_v9 = vld [vmem:[#allocation19_spill] sm:$0xff] }
 0x8cf   :  { %v4342_v40 = vmul.f32 %v10629_v49, %v12831_v13 }
 0x8d0   :  { %v10631_v57 = vpop.eup %10630  ;;  %5089 = vrot.lane.b32.xlu1 %v11235_v62, %s11004_s7  ;;  %v14553_v62 = vld [vmem:[#allocation29_spill] sm:$0xff] }
 0x8d1   :  { %v4341_v11 = vmul.f32 %v10631_v57, %v12845_v4  ;;  %v4373_v21 = vpack.c.bf16 %v4343_v6, %v4342_v40  ;;  %v14562_v4 = vld [vmem:[#allocation30_spill] sm:$0xff] }
 0x8d3   :  { %v4372_v10 = vpack.c.bf16 %v4341_v11, %v4340_v55  ;;  %v14566_v55 = vld [vmem:[#allocation124_spill] sm:$0xff] }
 0x8d4   :  { %5085 = vrot.lane.b32.xlu1 %v14468_v15, %s11004_s7 }
 0x8d5   :  { %9610 = vmatprep.mubr.msk.bf16.mxu0 %vm715_vm0, %v4372_v10 }
 0x8d6   :  { %9611 = vmatmul.mubr.msk.bf16.vlgmr.msra.gmra.mrb[120].mxu0 %vm715_vm0, %v4373_v21  ;;  %v14567_v21 = vld [vmem:[#allocation37_spill] sm:$0xff] }
 0x8d7   :  { %9623 = vmatpush3.bf16.msra.mxu0 %v12534_v1  ;;  %v14559_v1 = vld [vmem:[#allocation42_spill] sm:$0xff] }
 0x8d8   :  { %5158 = vrot.lane.b32.xlu1 %v14398_v50, %s11004_s7  ;;  %9624 = vmatprep.subr.bf16.mxu0 %v12548_v22  ;;  %v4247_v50 = vpop.xlane.xlu1 %4246 }
 0x8d9   :  { %10632 = vrcp.f32 %v4247_v50  ;;  %v14568_v50 = vld [vmem:[#allocation17_spill] sm:$0xff] }
 0x8da   :  { %4949 = vrot.lane.b32.xlu0 %v14461_v5, %s11004_s7  ;;  %v14556_v5 = vld [vmem:[#allocation27_spill] sm:$0xff] }
 0x8db   :  { %9625 = vmatpush3.bf16.msra.mxu0 %v12548_v22  ;;  %v14560_v22 = vld [vmem:[#allocation31_spill] sm:$0xff] }
 0x8dc   :  { %5154 = vrot.lane.b32.xlu1 %v14402_v30, %s11004_s7  ;;  %9638 = vmatprep.subr.bf16.mxu0 %v12556_v23  ;;  %v14555_v30 = vld [vmem:[#allocation36_spill] sm:$0xff] }
 0x8de   :  { %4945 = vrot.lane.b32.xlu0 %v11161_v42, %s11004_s7  ;;  %v14554_v42 = vld [vmem:[#allocation20_spill] sm:$0xff] }
 0x8e0   :  { %5227 = vrot.lane.b32.xlu1 %v14473_v54, %s11004_s7 }
 0x8e2   :  { %5018 = vrot.lane.b32.xlu0 %v14553_v62, %s11004_s7 }
 0x8e3   :  { %v10633_v26 = vpop.eup %10632 }
 0x8e4   :  { %5223 = vrot.lane.b32.xlu1 %v14480_v8, %s11004_s7  ;;  %v4351_v29 = vmul.f32 %v10633_v26, %v12853_v20  ;;  %v14579_v26 = vld [vmem:[#allocation34_spill] sm:$0xff] }
 0x8e6   :  { %5014 = vrot.lane.b32.xlu0 %v14392_v32, %s11004_s7  ;;  %v14557_v32 = vld [vmem:[#allocation43_spill] sm:$0xff] }
 0x8e8   :  { %5296 = vrot.lane.b32.xlu1 %v14403_v35, %s11004_s7  ;;  %v14558_v35 = vld [vmem:[#allocation26_spill] sm:$0xff] }
 0x8ea   :  { %5087 = vrot.lane.b32.xlu0 %v11219_v41, %s11004_s7 }
 0x8ec   :  { %5292 = vrot.lane.b32.xlu1 %v14554_v42, %s11004_s7 }
 0x8ee   :  { %5083 = vrot.lane.b32.xlu0 %v14555_v30, %s11004_s7 }
 0x8f0   :  { %5365 = vrot.lane.b32.xlu1 %v14556_v5, %s11004_s7  ;;  %v4232_v15 = vpop.xlane.xlu0 %4231 }
 0x8f2   :  { %v4235_v54 = vpop.xlane.xlu1 %4234  ;;  %5156 = vrot.lane.b32.xlu0 %v14557_v32, %s11004_s7 }
 0x8f4   :  { %5361 = vrot.lane.b32.xlu1 %v14558_v35, %s11004_s7  ;;  %v4238_v41 = vpop.xlane.xlu0 %4237  ;;  %v14571_v35 = vld [vmem:[#allocation25_spill] sm:$0xff] }
 0x8f5   :  { %10634 = vrcp.f32 %v4238_v41  ;;  %v14574_v41 = vld [vmem:[#allocation118_spill] sm:$0xff] }
 0x8f6   :  { %10636 = vrcp.f32 %v4244_v14  ;;  %v4241_v8 = vpop.xlane.xlu1 %4240  ;;  %5152 = vrot.lane.b32.xlu0 %v14559_v1, %s11004_s7  ;;  %v14576_v1 = vld [vmem:[#allocation23_spill] sm:$0xff] }
 0x8f7   :  { %10638 = vrcp.f32 %v4241_v8  ;;  %v14575_v8 = vld [vmem:[#allocation117_spill] sm:$0xff] }
 0x8f8   :  { %10640 = vrcp.f32 %v4235_v54  ;;  %5796 = vrot.lane.b32.xlu1 %v14560_v22, %s11004_s7  ;;  %v4226_v13 = vpop.xlane.xlu0 %4225  ;;  %v14570_v54 = vld [vmem:[#allocation73_spill] sm:$0xff] }
 0x8f9   :  { %10642 = vrcp.f32 %v4226_v13 }
 0x8fa   :  { %10644 = vrcp.f32 %v4232_v15  ;;  %v4229_v2 = vpop.xlane.xlu1 %4228  ;;  %5225 = vrot.lane.b32.xlu0 %v14561_v45, %s11004_s7  ;;  %v14569_v15 = vld [vmem:[#allocation45_spill] sm:$0xff]  ;;  %v14578_v45 = vld [vmem:[#allocation35_spill] sm:$0xff] }
 0x8fb   :  { %10646 = vrcp.f32 %v4229_v2  ;;  %v14577_v2 = vld [vmem:[#allocation119_spill] sm:$0xff] }
 0x8fc   :  { %5798 = vrot.lane.b32.xlu1 %v14562_v4, %s11004_s7 }
 0x8fe   :  { %5221 = vrot.lane.b32.xlu0 %v14563_v34, %s11004_s7 }
 0x8ff   :  { %v10635_v36 = vpop.eup %10634 }
 0x900   :  { %v10637_v19 = vpop.eup %10636  ;;  %5918 = vrot.lane.b32.xlu1 %v14564_v12, %s11004_s7  ;;  %v4348_v49 = vmul.f32 %v10635_v36, %v12873_v38  ;;  %v4256_v10 = vpop.xlane.xlu1 %4255  ;;  %v14580_v36 = vld [vmem:[#allocation41_spill] sm:$0xff] }
 0x901   :  { %v10639_v43 = vpop.eup %10638  ;;  %v4350_v11 = vmul.f32 %v10637_v19, %v14566_v55 }
 0x902   :  { %v10641_v59 = vpop.eup %10640  ;;  %5294 = vrot.lane.b32.xlu0 %v14565_v9, %s11004_s7  ;;  %v4349_v57 = vmul.f32 %v10639_v43, %v12877_v60 }
 0x903   :  { %v10643_v6 = vpop.eup %10642  ;;  %v4347_v20 = vmul.f32 %v10641_v59, %v12868_v44  ;;  %v4377_v42 = vpack.c.bf16 %v4351_v29, %v4350_v11  ;;  %v14581_v59 = vld [vmem:[#allocation40_spill] sm:$0xff] }
 0x904   :  { %v10645_v40 = vpop.eup %10644  ;;  %5920 = vrot.lane.b32.xlu1 %v14567_v21, %s11004_s7  ;;  %v4376_v62 = vpack.c.bf16 %v4349_v57, %v4348_v49  ;;  %v4344_v38 = vmul.f32 %v10643_v6, %v12882_v0  ;;  %v14572_v0 = vld [vmem:[#allocation90_spill] sm:$0xff] }
 0x905   :  { %v10647_v14 = vpop.eup %10646  ;;  %v4346_v30 = vmul.f32 %v10645_v40, %v12864_v61  ;;  %v4268_v61 = vpop.xlane.xlu0 %4267 }
 0x906   :  { %5290 = vrot.lane.b32.xlu0 %v14568_v50, %s11004_s7  ;;  %9626 = vmatprep.mubr.msk.bf16.mxu0 %vm715_vm0, %v4376_v62  ;;  %v4345_v60 = vmul.f32 %v10647_v14, %v12887_v39  ;;  %v14573_v39 = vld [vmem:[#allocation44_spill] sm:$0xff] }
 0x907   :  { %9627 = vmatmul.mubr.msk.bf16.vlgmr.msra.gmra.mrb[124].mxu0 %vm715_vm0, %v4377_v42  ;;  %v4375_v32 = vpack.c.bf16 %v4347_v20, %v4346_v30 }
 0x908   :  { %9639 = vmatpush3.bf16.msra.mxu0 %v12556_v23  ;;  %v4250_v5 = vpop.xlane.xlu1 %4249  ;;  %6040 = vrot.lane.b32.xlu1 %v14569_v15, %s11004_s7  ;;  %v4374_v44 = vpack.c.bf16 %v4345_v60, %v4344_v38  ;;  %v14585_v15 = vld [vmem:[#allocation123_spill] sm:$0xff] }
 0x909   :  { %9640 = vmatprep.subr.bf16.mxu0 %v14570_v54  ;;  %v4262_v22 = vpop.xlane.xlu0 %4261 }
 0x90a   :  { %5363 = vrot.lane.b32.xlu0 %v14571_v35, %s11004_s7  ;;  %9618 = vmatprep.mubr.msk.bf16.mxu1 %vm715_vm0, %v4374_v44 }
 0x90b   :  { %9619 = vmatmul.mubr.msk.bf16.vlgmr.msra.gmra.mrb[136].mxu1 %vm715_vm0, %v4375_v32 }
 0x90c   :  { %9631 = vmatpush3.bf16.msra.mxu1 %v14572_v0  ;;  %9641 = vmatpush3.bf16.msra.mxu0 %v14570_v54  ;;  %v4271_v23 = vpop.xlane.xlu1 %4270 }
 0x90d   :  { %6042 = vrot.lane.b32.xlu1 %v14573_v39, %s11004_s7  ;;  %9632 = vmatprep.subr.bf16.mxu1 %v14574_v41  ;;  %10648 = vrcp.f32 %v4271_v23 }
 0x90e   :  { %9654 = vmatprep.subr.bf16.mxu0 %v14575_v8  ;;  %5359 = vrot.lane.b32.xlu0 %v14576_v1, %s11004_s7  ;;  %10650 = vrcp.f32 %v4262_v22 }
 0x90f   :  { %10652 = vrcp.f32 %v4268_v61 }
 0x910   :  { %9633 = vmatpush3.bf16.msra.mxu1 %v14574_v41  ;;  %v4259_v13 = vpop.xlane.xlu1 %4258 }
 0x911   :  { %9646 = vmatprep.subr.bf16.mxu1 %v14577_v2 }
 0x912   :  { %5857 = vrot.lane.b32.xlu0 %v14578_v45, %s11004_s7 }
 0x914   :  { %v4265_v4 = vpop.xlane.xlu1 %4264  ;;  %v4286_v42 = vpop.xlane.xlu0 %4285 }
 0x915   :  { %10654 = vrcp.f32 %v4265_v4 }
 0x916   :  { %10656 = vrcp.f32 %v4259_v13  ;;  %5859 = vrot.lane.b32.xlu0 %v14579_v26, %s11004_s7 }
 0x917   :  { %10658 = vrcp.f32 %v4250_v5  ;;  %v10649_v19 = vpop.eup %10648 }
 0x918   :  { %10660 = vrcp.f32 %v4256_v10  ;;  %v4253_v34 = vpop.xlane.xlu1 %4252  ;;  %v10651_v43 = vpop.eup %10650  ;;  %v4359_v49 = vmul.f32 %v10649_v19, %v12914_v48 }
 0x919   :  { %10662 = vrcp.f32 %v4253_v34  ;;  %v10653_v29 = vpop.eup %10652  ;;  %v4356_v55 = vmul.f32 %v10651_v43, %v12903_v25  ;;  %v4295_v5 = vpop.xlane.xlu0 %4294 }
 0x91a   :  { %5979 = vrot.lane.b32.xlu0 %v14580_v36, %s11004_s7  ;;  %v4358_v10 = vmul.f32 %v10653_v29, %v12892_v56 }
 0x91c   :  { %v4292_v12 = vpop.xlane.xlu1 %4291  ;;  %v4381_v50 = vpack.c.bf16 %v4359_v49, %v4358_v10 }
 0x91d   :  { %10664 = vrcp.f32 %v4292_v12  ;;  %v4877_v12 = vpop.permute.xlu0 %4876 }
 0x91e   :  { %5981 = vrot.lane.b32.xlu0 %v14581_v59, %s11004_s7  ;;  %10666 = vrcp.f32 %v4286_v42 }
 0x91f   :  { %v10655_v9 = vpop.eup %10654  ;;  %10668 = vrcp.f32 %v4295_v5 }
 0x920   :  { %v10657_v57 = vpop.eup %10656  ;;  %v4280_v6 = vpop.xlane.xlu1 %4279  ;;  %v4357_v11 = vmul.f32 %v10655_v9, %v12924_v47  ;;  %v14582_v47 = vld [vmem:[#allocation21_spill] sm:$0xff] }
 0x921   :  { %v10659_v40 = vpop.eup %10658  ;;  %v4355_v20 = vmul.f32 %v10657_v57, %v12919_v17 }
 0x922   :  { %v10661_v21 = vpop.eup %10660  ;;  %v4380_v62 = vpack.c.bf16 %v4357_v11, %v4356_v55  ;;  %v4352_v48 = vmul.f32 %v10659_v40, %v12909_v33  ;;  %v14584_v33 = vld [vmem:[#allocation120_spill] sm:$0xff] }
 0x923   :  { %v10663_v14 = vpop.eup %10662  ;;  %v4354_v25 = vmul.f32 %v10661_v21, %v12897_v31  ;;  %v14583_v31 = vld [vmem:[#allocation121_spill] sm:$0xff] }
 0x924   :  { %v4274_v38 = vpop.xlane.xlu1 %4273  ;;  %9642 = vmatprep.mubr.msk.bf16.mxu0 %vm715_vm0, %v4380_v62  ;;  %v4353_v60 = vmul.f32 %v10663_v14, %v12929_v7 }
 0x925   :  { %9643 = vmatmul.mubr.msk.bf16.vlgmr.msra.gmra.mrb[128].mxu0 %vm715_vm0, %v4381_v50  ;;  %v4379_v30 = vpack.c.bf16 %v4355_v20, %v4354_v25 }
 0x926   :  { %9655 = vmatpush3.bf16.msra.mxu0 %v14575_v8  ;;  %v4378_v56 = vpack.c.bf16 %v4353_v60, %v4352_v48 }
 0x927   :  { %9656 = vmatprep.subr.bf16.mxu0 %v14582_v47  ;;  %v10665_v54 = vpop.eup %10664 }
 0x928   :  { %v4283_v17 = vpop.xlane.xlu1 %4282  ;;  %9634 = vmatprep.mubr.msk.bf16.mxu1 %vm715_vm0, %v4378_v56  ;;  %v10667_v35 = vpop.eup %10666  ;;  %v4366_v23 = vmul.f32 %v10665_v54, %v12942_v28 }
 0x929   :  { %9635 = vmatmul.mubr.msk.bf16.vlgmr.msra.gmra.mrb[140].mxu1 %vm715_vm0, %v4379_v30  ;;  %v10669_v61 = vpop.eup %10668  ;;  %v4364_v8 = vmul.f32 %v10667_v35, %v12926_v63 }
 0x92a   :  { %9647 = vmatpush3.bf16.msra.mxu1 %v14577_v2  ;;  %9657 = vmatpush3.bf16.msra.mxu0 %v14582_v47  ;;  %v4367_v13 = vmul.f32 %v10669_v61, %v12935_v37  ;;  %v4891_v37 = vsel %vm715_vm0, %v14584_v33, 0 }
 0x92b   :  { %9648 = vmatprep.subr.bf16.mxu1 %v14583_v31  ;;  %9910 = vmatprep.subr.msk.bf16.mxu0 %vm715_vm0, %v14584_v33 }
 0x92c   :  { %v4289_v7 = vpop.xlane.xlu1 %4288  ;;  %v4385_v34 = vpack.c.bf16 %v4367_v13, %v4366_v23 }
 0x92d   :  { %10670 = vrcp.f32 %v4289_v7 }
 0x92e   :  { %10672 = vrcp.f32 %v4283_v17  ;;  %9649 = vmatpush3.bf16.msra.mxu1 %v14583_v31 }
 0x92f   :  { %10674 = vrcp.f32 %v4274_v38  ;;  %9662 = vmatprep.subr.bf16.mxu1 %v14585_v15 }
 0x930   :  { %10676 = vrcp.f32 %v4280_v6  ;;  %v4277_v44 = vpop.xlane.xlu1 %4276 }
 0x931   :  { %10678 = vrcp.f32 %v4277_v44 }
 0x934   :  { %v4304_v32 = vpop.xlane.xlu1 %4303 }
 0x937   :  { %v10671_v0 = vpop.eup %10670 }
 0x938   :  { %v10673_v39 = vpop.eup %10672  ;;  %v4298_v41 = vpop.xlane.xlu1 %4297  ;;  %v4365_v1 = vmul.f32 %v10671_v0, %v12961_v51 }
 0x939   :  { %v10675_v22 = vpop.eup %10674  ;;  %v4363_v26 = vmul.f32 %v10673_v39, %v12957_v18 }
 0x93a   :  { %v10677_v2 = vpop.eup %10676  ;;  %v4384_v45 = vpack.c.bf16 %v4365_v1, %v4364_v8  ;;  %v4360_v28 = vmul.f32 %v10675_v22, %v12952_v3 }
 0x93b   :  { %v10679_v4 = vpop.eup %10678  ;;  %v4362_v63 = vmul.f32 %v10677_v2, %v12947_v27  ;;  %v14586_v27 = vld [vmem:[#allocation122_spill] sm:$0xff] }
 0x93c   :  { %v4879_v36 = vpop.permute.xlu1 %4878  ;;  %9658 = vmatprep.mubr.msk.bf16.mxu0 %vm715_vm0, %v4384_v45  ;;  %v4361_v19 = vmul.f32 %v10679_v4, %v12965_v53  ;;  %v4894_v53 = vsel %vm715_vm0, %v12985_v46, 0 }
 0x93d   :  { %9659 = vmatmul.mubr.msk.bf16.vlgmr.msra.gmra.mrb[132].mxu0 %vm715_vm0, %v4385_v34  ;;  %v4383_v51 = vpack.c.bf16 %v4363_v26, %v4362_v63 }
 0x93e   :  { %9671 = vmatpush3.bf16.xpose.msra.mxu0 %v4891_v37  ;;  %9674 = vmatprep.mubr.msk.bf16.mxu0 %vm715_vm0, %v4877_v12  ;;  %v4382_v18 = vpack.c.bf16 %v4361_v19, %v4360_v28 }
 0x93f   :  { %9911 = vmatprep.subr.msk.bf16.mxu0 %vm715_vm0, %v12985_v46 }
 0x940   :  { %v4952_v43 = vpop.permute.xlu1 %4951  ;;  %9650 = vmatprep.mubr.msk.bf16.mxu1 %vm715_vm0, %v4382_v18 }
 0x941   :  { %9651 = vmatmul.mubr.msk.bf16.vlgmr.msra.gmra.mrb[144].mxu1 %vm715_vm0, %v4383_v51  ;;  %v4963_v5 = vsel %vm715_vm0, %v4952_v43, 0 }
 0x942   :  { %9663 = vmatpush3.bf16.msra.mxu1 %v14585_v15 }
 0x943   :  { %9664 = vmatprep.subr.bf16.mxu1 %v14586_v27 }
 0x944   :  { %v4948_v3 = vpop.permute.xlu1 %4947 }
 0x946   :  { %9665 = vmatpush3.bf16.msra.mxu1 %v14586_v27  ;;  %9673 = vmatpush3.bf16.xpose.msra.mxu0 %v4894_v53 }
 0x948   :  { %v5021_v29 = vpop.permute.xlu1 %5020 }
 0x949   :  { %v5032_v47 = vsel %vm715_vm0, %v5021_v29, 0 }
 0x94c   :  { %v5017_v59 = vpop.permute.xlu1 %5016 }
 0x94d   :  { %9675 = vmatmul.mubr.msk.bf16.vlgmr.msra.gmra.mrb[136].mxu0 %vm715_vm0, %v4879_v36  ;;  %v4307_v9 = vpop.xlane.xlu0 %4306 }
 0x94e   :  { %10680 = vrcp.f32 %v4307_v9 }
 0x94f   :  { %10682 = vrcp.f32 %v4298_v41 }
 0x950   :  { %v5090_v49 = vpop.permute.xlu1 %5089  ;;  %10684 = vrcp.f32 %v4304_v32 }
 0x951   :  { %v4301_v57 = vpop.xlane.xlu0 %4300  ;;  %v5101_v0 = vsel %vm715_vm0, %v5090_v49, 0 }
 0x952   :  { %10686 = vrcp.f32 %v4301_v57 }
 0x954   :  { %v13143_v6 = vpop.permute.xlu1 %5085 }
 0x955   :  { %v4950_v55 = vpop.permute.xlu0 %4949 }
 0x956   :  { %9912 = vmatprep.subr.msk.bf16.mxu1 %vm715_vm0, %v4950_v55 }
 0x958   :  { %v5159_v46 = vpop.permute.xlu1 %5158  ;;  %v10681_v11 = vpop.eup %10680 }
 0x959   :  { %v4946_v40 = vpop.permute.xlu0 %4945  ;;  %v10683_v10 = vpop.eup %10682  ;;  %v4371_v14 = vmul.f32 %v10681_v11, %v12981_v16  ;;  %v5170_v35 = vsel %vm715_vm0, %v5159_v46, 0 }
 0x95a   :  { %v10685_v21 = vpop.eup %10684  ;;  %v4368_v50 = vmul.f32 %v10683_v10, %v12975_v58  ;;  %v4960_v58 = vsel %vm715_vm0, %v4950_v55, 0 }
 0x95b   :  { %v4370_v48 = vmul.f32 %v10685_v21, %v12971_v24 }
 0x95c   :  { %v10687_v62 = vpop.eup %10686  ;;  %v5155_v20 = vpop.permute.xlu1 %5154 }
 0x95d   :  { %v5019_v42 = vpop.permute.xlu0 %5018  ;;  %v4369_v38 = vmul.f32 %v10687_v62, %v12989_v52  ;;  %v4387_v56 = vpack.c.bf16 %v4371_v14, %v4370_v48 }
 0x95e   :  { %9914 = vmatprep.subr.msk.bf16.mxu0 %vm715_vm0, %v5019_v42  ;;  %v5029_v60 = vsel %vm715_vm0, %v5019_v42, 0 }
 0x95f   :  { %9687 = vmatpush3.bf16.xpose.msra.mxu0 %v5029_v60  ;;  %v4386_v25 = vpack.c.bf16 %v4369_v38, %v4368_v50 }
 0x960   :  { %9915 = vmatprep.subr.msk.bf16.mxu0 %vm715_vm0, %v5021_v29  ;;  %v5228_v52 = vpop.permute.xlu1 %5227 }
 0x961   :  { %9666 = vmatprep.mubr.msk.bf16.mxu1 %vm715_vm0, %v4386_v25  ;;  %v5015_v16 = vpop.permute.xlu0 %5014  ;;  %v5239_v45 = vsel %vm715_vm0, %v5228_v52, 0 }
 0x962   :  { %9667 = vmatmul.mubr.msk.bf16.vlgmr.msra.gmra.mrb[148].mxu1 %vm715_vm0, %v4387_v56  ;;  %9690 = vmatprep.mubr.msk.bf16.mxu0 %vm715_vm0, %v5015_v16 }
 0x963   :  { %9679 = vmatpush3.bf16.xpose.msra.mxu1 %v4960_v58  ;;  %9682 = vmatprep.mubr.msk.bf16.mxu1 %vm715_vm0, %v4946_v40 }
 0x964   :  { %9913 = vmatprep.subr.msk.bf16.mxu1 %vm715_vm0, %v4952_v43  ;;  %v5224_v30 = vpop.permute.xlu1 %5223 }
 0x965   :  { %v5088_v24 = vpop.permute.xlu0 %5087 }
 0x966   :  { %v5098_v44 = vsel %vm715_vm0, %v5088_v24, 0 }
 0x967   :  { %9689 = vmatpush3.bf16.xpose.msra.mxu0 %v5032_v47 }
 0x968   :  { %v5297_v7 = vpop.permute.xlu1 %5296 }
 0x969   :  { %v5084_v17 = vpop.permute.xlu0 %5083  ;;  %v5308_v13 = vsel %vm715_vm0, %v5297_v7, 0 }
 0x96b   :  { %9681 = vmatpush3.bf16.xpose.msra.mxu1 %v4963_v5 }
 0x96c   :  { %9916 = vmatprep.subr.msk.bf16.mxu1 %vm715_vm0, %v5088_v24  ;;  %v5293_v54 = vpop.permute.xlu1 %5292 }
 0x96d   :  { %v5157_v31 = vpop.permute.xlu0 %5156 }
 0x96e   :  { %9691 = vmatmul.mubr.msk.bf16.vlgmr.msra.gmra.mrb[140].mxu0 %vm715_vm0, %v5017_v59  ;;  %9918 = vmatprep.subr.msk.bf16.mxu0 %vm715_vm0, %v5157_v31  ;;  %v5167_v33 = vsel %vm715_vm0, %v5157_v31, 0 }
 0x96f   :  { %9703 = vmatpush3.bf16.xpose.msra.mxu0 %v5167_v33 }
 0x970   :  { %9919 = vmatprep.subr.msk.bf16.mxu0 %vm715_vm0, %v5159_v46  ;;  %v5366_v23 = vpop.permute.xlu1 %5365 }
 0x971   :  { %v5153_v15 = vpop.permute.xlu0 %5152  ;;  %v5377_v19 = vsel %vm715_vm0, %v5366_v23, 0 }
 0x972   :  { %9683 = vmatmul.mubr.msk.bf16.vlgmr.msra.gmra.mrb[152].mxu1 %vm715_vm0, %v4948_v3  ;;  %9706 = vmatprep.mubr.msk.bf16.mxu0 %vm715_vm0, %v5153_v15 }
 0x973   :  { %9695 = vmatpush3.bf16.xpose.msra.mxu1 %v5098_v44  ;;  %9698 = vmatprep.mubr.msk.bf16.mxu1 %vm715_vm0, %v5084_v17 }
 0x974   :  { %9917 = vmatprep.subr.msk.bf16.mxu1 %vm715_vm0, %v5090_v49  ;;  %v5362_v8 = vpop.permute.xlu1 %5361 }
 0x975   :  { %v5226_v32 = vpop.permute.xlu0 %5225 }
 0x976   :  { %v5236_v22 = vsel %vm715_vm0, %v5226_v32, 0 }
 0x977   :  { %9705 = vmatpush3.bf16.xpose.msra.mxu0 %v5170_v35  ;;  %v14607_v35 = vld [vmem:[#allocation58_spill] sm:$0xff] }
 0x978   :  { %v5797_v2 = vpop.permute.xlu1 %5796 }
 0x979   :  { %v5222_v61 = vpop.permute.xlu0 %5221 }
 0x97b   :  { %9697 = vmatpush3.bf16.xpose.msra.mxu1 %v5101_v0 }
 0x97c   :  { %9920 = vmatprep.subr.msk.bf16.mxu1 %vm715_vm0, %v5226_v32  ;;  %v5799_v26 = vpop.permute.xlu1 %5798 }
 0x97d   :  { %v5295_v39 = vpop.permute.xlu0 %5294 }
 0x97e   :  { %9707 = vmatmul.mubr.msk.bf16.vlgmr.msra.gmra.mrb[144].mxu0 %vm715_vm0, %v5155_v20  ;;  %9922 = vmatprep.subr.msk.bf16.mxu0 %vm715_vm0, %v5295_v39  ;;  %v5305_v41 = vsel %vm715_vm0, %v5295_v39, 0  ;;  %v14608_v39 = vld [vmem:[#allocation59_spill] sm:$0xff] }
 0x97f   :  { %9719 = vmatpush3.bf16.xpose.msra.mxu0 %v5305_v41 }
 0x980   :  { %9923 = vmatprep.subr.msk.bf16.mxu0 %vm715_vm0, %v5297_v7  ;;  %v13191_v28 = vpop.permute.xlu1 %5918 }
 0x981   :  { %v5291_v1 = vpop.permute.xlu0 %5290 }
 0x982   :  { %9699 = vmatmul.mubr.msk.bf16.vlgmr.msra.gmra.mrb[156].mxu1 %vm715_vm0, %v13143_v6  ;;  %9722 = vmatprep.mubr.msk.bf16.mxu0 %vm715_vm0, %v5291_v1 }
 0x983   :  { %9711 = vmatpush3.bf16.xpose.msra.mxu1 %v5236_v22  ;;  %9714 = vmatprep.mubr.msk.bf16.mxu1 %vm715_vm0, %v5222_v61  ;;  %v14609_v22 = vld [vmem:[#allocation61_spill] sm:$0xff] }
 0x984   :  { %9921 = vmatprep.subr.msk.bf16.mxu1 %vm715_vm0, %v5228_v52 }
 0x985   :  { %v5364_v4 = vpop.permute.xlu0 %5363 }
 0x986   :  { %v5374_v36 = vsel %vm715_vm0, %v5364_v4, 0 }
 0x987   :  { %9721 = vmatpush3.bf16.xpose.msra.mxu0 %v5308_v13 }
 0x988   :  { %9734 = vmatprep.subr.bf16.mxu0 %v5797_v2 }
 0x989   :  { %v5360_v34 = vpop.permute.xlu0 %5359 }
 0x98b   :  { %9713 = vmatpush3.bf16.xpose.msra.mxu1 %v5239_v45  ;;  %v14610_v45 = vld [vmem:[#allocation60_spill] sm:$0xff] }
 0x98c   :  { %9924 = vmatprep.subr.msk.bf16.mxu1 %vm715_vm0, %v5364_v4 }
 0x98d   :  { %v5858_v12 = vpop.permute.xlu0 %5857 }
 0x98e   :  { %9723 = vmatmul.mubr.msk.bf16.vlgmr.msra.gmra.mrb[148].mxu0 %vm715_vm0, %v5293_v54 }
 0x98f   :  { %9735 = vmatpush3.bf16.msra.mxu0 %v5797_v2 }
 0x990   :  { %9736 = vmatprep.subr.bf16.mxu0 %v5799_v26 }
 0x991   :  { %v5860_v63 = vpop.permute.xlu0 %5859 }
 0x992   :  { %9715 = vmatmul.mubr.msk.bf16.vlgmr.msra.gmra.mrb[160].mxu1 %vm715_vm0, %v5224_v30 }
 0x993   :  { %9727 = vmatpush3.bf16.xpose.msra.mxu1 %v5374_v36  ;;  %9730 = vmatprep.mubr.msk.bf16.mxu1 %vm715_vm0, %v5360_v34 }
 0x994   :  { %9925 = vmatprep.subr.msk.bf16.mxu1 %vm715_vm0, %v5366_v23  ;;  %9737 = vmatpush3.bf16.msra.mxu0 %v5799_v26 }
 0x995   :  { %9750 = vmatprep.subr.bf16.mxu0 %v13191_v28  ;;  %v13197_v37 = vpop.permute.xlu0 %5979 }
 0x99b   :  { %9729 = vmatpush3.bf16.xpose.msra.mxu1 %v5377_v19 }
 0x99c   :  { %9742 = vmatprep.subr.bf16.mxu1 %v5858_v12 }
 0x9a2   :  { %9731 = vmatmul.mubr.msk.bf16.vlgmr.msra.gmra.mrb[164].mxu1 %vm715_vm0, %v5362_v8 }
 0x9a3   :  { %9743 = vmatpush3.bf16.msra.mxu1 %v5858_v12 }
 0x9a4   :  { %9744 = vmatprep.subr.bf16.mxu1 %v5860_v63 }
 0x9a7   :  { %9745 = vmatpush3.bf16.msra.mxu1 %v5860_v63 }
 0x9a8   :  { %9758 = vmatprep.subr.bf16.mxu1 %v13197_v37 }
 0x9a9   :  { %v13200_v18 = vpop.f32.mrb[120].mxu0 }
 0x9aa   :  { %v13202_v51 = vpop.f32.mrb[121].mxu0 }
 0x9ab   :  { %v13204_v43 = vpop.f32.mrb[122].mxu0 }
 0x9ac   :  { %v13208_v3 = vpop.f32.mrb[123].mxu0 }
 0x9da   :  { %v13212_v29 = vpop.f32.mrb[124].mxu0 }
 0x9db   :  { %14587 = vst [vmem:[#allocation16_spill] sm:$0xff] %v13212_v29  ;;  %v13214_v59 = vpop.f32.mrb[125].mxu0 }
 0x9dc   :  { %14588 = vst [vmem:[#allocation29_spill] sm:$0xff] %v13214_v59  ;;  %v13216_v9 = vpop.f32.mrb[126].mxu0 }
 0x9dd   :  { %14589 = vst [vmem:[#allocation20_spill] sm:$0xff] %v13216_v9  ;;  %v13220_v57 = vpop.f32.mrb[127].mxu0 }
 0x9de   :  { %14590 = vst [vmem:[#allocation36_spill] sm:$0xff] %v13220_v57  ;;  %v13224_v55 = vpop.f32.mrb[136].mxu1 }
 0x9df   :  { %v13226_v46 = vpop.f32.mrb[137].mxu1 }
 0x9e0   :  { %v13228_v11 = vpop.f32.mrb[138].mxu1 }
 0x9e1   :  { %v13232_v10 = vpop.f32.mrb[139].mxu1 }
 0x9f8   :  { %v13236_v62 = vpop.f32.mrb[128].mxu0 }
 0x9f9   :  { %14591 = vst [vmem:[#allocation27_spill] sm:$0xff] %v13236_v62  ;;  %v13238_v14 = vpop.f32.mrb[129].mxu0 }
 0x9fa   :  { %14592 = vst [vmem:[#allocation43_spill] sm:$0xff] %v13238_v14  ;;  %v13240_v20 = vpop.f32.mrb[130].mxu0 }
 0x9fb   :  { %14593 = vst [vmem:[#allocation26_spill] sm:$0xff] %v13240_v20  ;;  %v13244_v50 = vpop.f32.mrb[131].mxu0 }
 0x9fc   :  { %14594 = vst [vmem:[#allocation42_spill] sm:$0xff] %v13244_v50  ;;  %v13248_v48 = vpop.f32.mrb[140].mxu1 }
 0x9fd   :  { %14595 = vst [vmem:[#allocation31_spill] sm:$0xff] %v13248_v48  ;;  %v13250_v60 = vpop.f32.mrb[141].mxu1 }
 0x9fe   :  { %14596 = vst [vmem:[#allocation51_spill] sm:$0xff] %v13250_v60  ;;  %v13252_v25 = vpop.f32.mrb[142].mxu1 }
 0x9ff   :  { %14597 = vst [vmem:[#allocation30_spill] sm:$0xff] %v13252_v25  ;;  %v13256_v16 = vpop.f32.mrb[143].mxu1 }
 0xa00   :  { %14598 = vst [vmem:[#allocation50_spill] sm:$0xff] %v13256_v16 }
 0xa10   :  { %v13260_v52 = vpop.f32.mrb[132].mxu0 }
 0xa11   :  { %14599 = vst [vmem:[#allocation38_spill] sm:$0xff] %v13260_v52  ;;  %v13262_v24 = vpop.f32.mrb[133].mxu0 }
 0xa12   :  { %14600 = vst [vmem:[#allocation19_spill] sm:$0xff] %v13262_v24  ;;  %v13264_v47 = vpop.f32.mrb[134].mxu0 }
 0xa13   :  { %14601 = vst [vmem:[#allocation124_spill] sm:$0xff] %v13264_v47  ;;  %v13268_v17 = vpop.f32.mrb[135].mxu0 }
 0xa14   :  { %14602 = vst [vmem:[#allocation37_spill] sm:$0xff] %v13268_v17  ;;  %v13272_v31 = vpop.f32.mrb[144].mxu1 }
 0xa15   :  { %14603 = vst [vmem:[#allocation17_spill] sm:$0xff] %v13272_v31  ;;  %v13274_v33 = vpop.f32.mrb[145].mxu1 }
 0xa16   :  { %14604 = vst [vmem:[#allocation45_spill] sm:$0xff] %v13274_v33  ;;  %v13276_v7 = vpop.f32.mrb[146].mxu1 }
 0xa17   :  { %14605 = vst [vmem:[#allocation73_spill] sm:$0xff] %v13276_v7  ;;  %v13280_v44 = vpop.f32.mrb[147].mxu1 }
 0xa18   :  { %14606 = vst [vmem:[#allocation25_spill] sm:$0xff] %v13280_v44 }
 0xa20   :  { %v9676_v32 = vpop.f32.mrb[136].mxu0 }
 0xa21   :  { %v13285_v61 = vadd.f32 %v9676_v32, %v14607_v35  ;;  %v4930_v0 = vpop.f32.mrb[137].mxu0 }
 0xa22   :  { %v9677_v23 = vpop.f32.mrb[138].mxu0  ;;  %v13288_v41 = vadd.f32 %v4930_v0, %v14608_v39 }
 0xa23   :  { %v4933_v8 = vpop.f32.mrb[139].mxu0  ;;  %v5434_v1 = vsel %vm715_vm0, %v13285_v61, -inf  ;;  %v13298_v4 = vadd.f32 %v9677_v23, %v14610_v45 }
 0xa24   :  { %v13293_v13 = vadd.f32 %v4933_v8, %v14609_v22  ;;  %5435 = vmax.xlane.f32.xlu0 %v5434_v1  ;;  %v5428_v26 = vsel %vm715_vm0, %v13288_v41, -inf }
 0xa25   :  { %v5437_v34 = vsel %vm715_vm0, %v13298_v4, -inf }
 0xa26   :  { %v5431_v2 = vsel %vm715_vm0, %v13293_v13, -inf }
 0xa27   :  { %5432 = vmax.xlane.f32.xlu1 %v5431_v2 }
 0xa28   :  { %5429 = vmax.xlane.f32.xlu0 %v5428_v26 }
 0xa2c   :  { %5438 = vmax.xlane.f32.xlu0 %v5437_v34 }
 0xa35   :  { %v13304_v36 = vpop.f32.mrb[148].mxu1 }
 0xa36   :  { %14611 = vst [vmem:[#allocation90_spill] sm:$0xff] %v13304_v36  ;;  %v13306_v19 = vpop.f32.mrb[149].mxu1 }
 0xa37   :  { %14612 = vst [vmem:[#allocation44_spill] sm:$0xff] %v13306_v19  ;;  %v13308_v12 = vpop.f32.mrb[150].mxu1 }
 0xa38   :  { %14613 = vst [vmem:[#allocation118_spill] sm:$0xff] %v13308_v12  ;;  %v13312_v32 = vpop.f32.mrb[151].mxu1 }
 0xa39   :  { %14614 = vst [vmem:[#allocation117_spill] sm:$0xff] %v13312_v32 }
 0xa41   :  { %v9692_v23 = vpop.f32.mrb[140].mxu0 }
 0xa42   :  { %v5068_v8 = vpop.f32.mrb[141].mxu0  ;;  %v13320_v54 = vadd.f32 %v9692_v23, %v14607_v35 }
 0xa43   :  { %v9693_v1 = vpop.f32.mrb[142].mxu0 }
 0xa44   :  { %v5071_v2 = vpop.f32.mrb[143].mxu0  ;;  %v13328_v38 = vadd.f32 %v9693_v1, %v14610_v45  ;;  %v5458_v23 = vsel %vm715_vm0, %v13320_v54, -inf  ;;  %v13343_v1 = vadd.f32 %v5068_v8, %v14608_v39 }
 0xa45   :  { %v9684_v26 = vpop.f32.mrb[152].mxu1  ;;  %v13348_v58 = vadd.f32 %v5071_v2, %v14609_v22 }
 0xa46   :  { %v13317_v34 = vadd.f32 %v9684_v26, %v14607_v35  ;;  %v4999_v5 = vpop.f32.mrb[153].mxu1 }
 0xa47   :  { %v9685_v30 = vpop.f32.mrb[154].mxu1  ;;  %v13333_v42 = vadd.f32 %v4999_v5, %v14608_v39  ;;  %v5455_v2 = vsel %vm715_vm0, %v13348_v58, -inf }
 0xa48   :  { %v13323_v63 = vadd.f32 %v9685_v30, %v14610_v45  ;;  %v5002_v15 = vpop.f32.mrb[155].mxu1  ;;  %v5446_v0 = vsel %vm715_vm0, %v13317_v34, -inf }
 0xa49   :  { %5447 = vmax.xlane.f32.xlu1 %v5446_v0  ;;  %v13338_v30 = vadd.f32 %v5002_v15, %v14609_v22  ;;  %v5461_v0 = vsel %vm715_vm0, %v13328_v38, -inf }
 0xa4a   :  { %v5449_v26 = vsel %vm715_vm0, %v13323_v63, -inf }
 0xa4b   :  { %5450 = vmax.xlane.f32.xlu0 %v5449_v26  ;;  %v5440_v26 = vsel %vm715_vm0, %v13333_v42, -inf }
 0xa4d   :  { %5459 = vmax.xlane.f32.xlu1 %v5458_v23  ;;  %v5443_v23 = vsel %vm715_vm0, %v13338_v30, -inf }
 0xa4f   :  { %5462 = vmax.xlane.f32.xlu0 %v5461_v0  ;;  %v5452_v0 = vsel %vm715_vm0, %v13343_v1, -inf }
 0xa51   :  { %5441 = vmax.xlane.f32.xlu1 %v5440_v26  ;;  %v9708_v5 = vpop.f32.mrb[144].mxu0 }
 0xa52   :  { %v5206_v15 = vpop.f32.mrb[145].mxu0  ;;  %v13360_v40 = vadd.f32 %v9708_v5, %v14607_v35 }
 0xa53   :  { %5444 = vmax.xlane.f32.xlu0 %v5443_v23  ;;  %v9709_v56 = vpop.f32.mrb[146].mxu0 }
 0xa54   :  { %v5209_v6 = vpop.f32.mrb[147].mxu0  ;;  %v5482_v5 = vsel %vm715_vm0, %v13360_v40, -inf }
 0xa55   :  { %5453 = vmax.xlane.f32.xlu1 %v5452_v0  ;;  %v9700_v8 = vpop.f32.mrb[156].mxu1  ;;  %v13388_v19 = vadd.f32 %v5209_v6, %v14609_v22 }
 0xa56   :  { %v13355_v49 = vadd.f32 %v9700_v8, %v14607_v35  ;;  %v5137_v26 = vpop.f32.mrb[157].mxu1  ;;  %v13368_v8 = vadd.f32 %v9709_v56, %v14610_v45  ;;  %v13383_v56 = vadd.f32 %v5206_v15, %v14608_v39 }
 0xa57   :  { %5456 = vmax.xlane.f32.xlu0 %v5455_v2  ;;  %v9701_v21 = vpop.f32.mrb[158].mxu1  ;;  %v13373_v2 = vadd.f32 %v5137_v26, %v14608_v39  ;;  %v5479_v6 = vsel %vm715_vm0, %v13388_v19, -inf }
 0xa58   :  { %v13363_v23 = vadd.f32 %v9701_v21, %v14610_v45  ;;  %v5140_v27 = vpop.f32.mrb[159].mxu1  ;;  %v5470_v0 = vsel %vm715_vm0, %v13355_v49, -inf }
 0xa59   :  { %5471 = vmax.xlane.f32.xlu1 %v5470_v0  ;;  %v13378_v21 = vadd.f32 %v5140_v27, %v14609_v22  ;;  %v5485_v0 = vsel %vm715_vm0, %v13368_v8, -inf }
 0xa5a   :  { %v5473_v53 = vsel %vm715_vm0, %v13363_v23, -inf }
 0xa5b   :  { %5474 = vmax.xlane.f32.xlu0 %v5473_v53  ;;  %v5464_v53 = vsel %vm715_vm0, %v13373_v2, -inf }
 0xa5d   :  { %5483 = vmax.xlane.f32.xlu1 %v5482_v5  ;;  %v5467_v5 = vsel %vm715_vm0, %v13378_v21, -inf }
 0xa5f   :  { %5486 = vmax.xlane.f32.xlu0 %v5485_v0  ;;  %v5476_v0 = vsel %vm715_vm0, %v13383_v56, -inf }
 0xa61   :  { %5465 = vmax.xlane.f32.xlu1 %v5464_v53  ;;  %v9724_v26 = vpop.f32.mrb[148].mxu0 }
 0xa62   :  { %v5344_v27 = vpop.f32.mrb[149].mxu0  ;;  %v13400_v17 = vadd.f32 %v9724_v26, %v14607_v35 }
 0xa63   :  { %5468 = vmax.xlane.f32.xlu0 %v5467_v5  ;;  %v9725_v32 = vpop.f32.mrb[150].mxu0 }
 0xa64   :  { %v5347_v36 = vpop.f32.mrb[151].mxu0  ;;  %v5506_v26 = vsel %vm715_vm0, %v13400_v17, -inf }
 0xa65   :  { %5477 = vmax.xlane.f32.xlu1 %v5476_v0  ;;  %v9716_v15 = vpop.f32.mrb[160].mxu1 }
 0xa66   :  { %v13395_v12 = vadd.f32 %v9716_v15, %v14607_v35  ;;  %v5275_v53 = vpop.f32.mrb[161].mxu1  ;;  %v13408_v15 = vadd.f32 %v9725_v32, %v14610_v45  ;;  %v13423_v32 = vadd.f32 %v5344_v27, %v14608_v39 }
 0xa67   :  { %5480 = vmax.xlane.f32.xlu0 %v5479_v6  ;;  %v9717_v24 = vpop.f32.mrb[162].mxu1  ;;  %v13413_v6 = vadd.f32 %v5275_v53, %v14608_v39  ;;  %v13428_v53 = vadd.f32 %v5347_v36, %v14609_v22 }
 0xa68   :  { %v13403_v5 = vadd.f32 %v9717_v24, %v14610_v45  ;;  %v5278_v52 = vpop.f32.mrb[163].mxu1  ;;  %v5494_v0 = vsel %vm715_vm0, %v13395_v12, -inf }
 0xa69   :  { %5495 = vmax.xlane.f32.xlu1 %v5494_v0  ;;  %v13418_v24 = vadd.f32 %v5278_v52, %v14609_v22  ;;  %v5509_v0 = vsel %vm715_vm0, %v13408_v15, -inf  ;;  %v5500_v52 = vsel %vm715_vm0, %v13423_v32, -inf  ;;  %v5503_v44 = vsel %vm715_vm0, %v13428_v53, -inf }
 0xa6a   :  { %v5497_v47 = vsel %vm715_vm0, %v13403_v5, -inf }
 0xa6b   :  { %5498 = vmax.xlane.f32.xlu0 %v5497_v47  ;;  %v5488_v47 = vsel %vm715_vm0, %v13413_v6, -inf }
 0xa6d   :  { %5507 = vmax.xlane.f32.xlu1 %v5506_v26  ;;  %v5491_v26 = vsel %vm715_vm0, %v13418_v24, -inf }
 0xa6f   :  { %5510 = vmax.xlane.f32.xlu0 %v5509_v0 }
 0xa71   :  { %5489 = vmax.xlane.f32.xlu1 %v5488_v47 }
 0xa73   :  { %5492 = vmax.xlane.f32.xlu0 %v5491_v26 }
 0xa75   :  { %5501 = vmax.xlane.f32.xlu1 %v5500_v52  ;;  %v9732_v33 = vpop.f32.mrb[164].mxu1 }
 0xa76   :  { %v13435_v0 = vadd.f32 %v9732_v33, %v14607_v35  ;;  %v5413_v27 = vpop.f32.mrb[165].mxu1 }
 0xa77   :  { %5504 = vmax.xlane.f32.xlu0 %v5503_v44  ;;  %v9733_v47 = vpop.f32.mrb[166].mxu1  ;;  %v13440_v31 = vadd.f32 %v5413_v27, %v14608_v39  ;;  %v13456_v27 = vpop.permute.xlu1 %5920 }
 0xa78   :  { %v5416_v36 = vpop.f32.mrb[167].mxu1  ;;  %v5518_v26 = vsel %vm715_vm0, %v13435_v0, -inf  ;;  %v13445_v52 = vadd.f32 %v9733_v47, %v14610_v45  ;;  %v13460_v45 = vpop.permute.xlu0 %5981 }
 0xa79   :  { %v5512_v33 = vsel %vm715_vm0, %v13440_v31, -inf  ;;  %v13450_v35 = vadd.f32 %v5416_v36, %v14609_v22 }
 0xa7a   :  { %v5521_v44 = vsel %vm715_vm0, %v13445_v52, -inf }
 0xa7b   :  { %5519 = vmax.xlane.f32.xlu0 %v5518_v26  ;;  %v5515_v39 = vsel %vm715_vm0, %v13450_v35, -inf  ;;  %v13458_v26 = vpop.permute.xlu1 %6040 }
 0xa7f   :  { %5513 = vmax.xlane.f32.xlu0 %v5512_v33  ;;  %v13462_v47 = vpop.permute.xlu1 %6042 }
 0xa83   :  { %5522 = vmax.xlane.f32.xlu0 %v5521_v44 }
 0xa87   :  { %5516 = vmax.xlane.f32.xlu0 %v5515_v39 }
 0xab1   :  { %v5436_v33 = vpop.xlane.xlu0 %5435 }
 0xab2   :  { %v5526_v22 = vsub.f32 %v13285_v61, %v5436_v33 }
 0xab4   :  { %v5560_v36 = vmul.f32 1.442695, %v5526_v22  ;;  %v5433_v7 = vpop.xlane.xlu1 %5432 }
 0xab5   :  { %v5430_v14 = vpop.xlane.xlu0 %5429  ;;  %v5525_v50 = vsub.f32 %v13293_v13, %v5433_v7 }
 0xab6   :  { %10688 = vpow2.f32 %v5560_v36  ;;  %v5524_v44 = vsub.f32 %v13288_v41, %v5430_v14 }
 0xab7   :  { %v5558_v60 = vmul.f32 1.442695, %v5525_v50 }
 0xab8   :  { %v5556_v39 = vmul.f32 1.442695, %v5524_v44 }
 0xab9   :  { %v5439_v62 = vpop.xlane.xlu0 %5438 }
 0xaba   :  { %10690 = vpow2.f32 %v5556_v39  ;;  %v5527_v20 = vsub.f32 %v13298_v4, %v5439_v62 }
 0xabc   :  { %v5562_v16 = vmul.f32 1.442695, %v5527_v20 }
 0xabe   :  { %10692 = vpow2.f32 %v5562_v16 }
 0xabf   :  { %10694 = vpow2.f32 %v5558_v60 }
 0xac0   :  { %v13468_v48 = vpop.eup %10688 }
 0xac1   :  { %v5626_v61 = vsel %vm715_vm0, %v13468_v48, 0.0 }
 0xac2   :  { %5627 = vadd.xlane.f32.xlu1 %v5626_v61 }
 0xac4   :  { %v13472_v33 = vpop.eup %10690 }
 0xac5   :  { %v5620_v14 = vsel %vm715_vm0, %v13472_v33, 0.0 }
 0xac6   :  { %5621 = vadd.xlane.f32.xlu1 %v5620_v14 }
 0xac8   :  { %v13476_v7 = vpop.eup %10692 }
 0xac9   :  { %v5629_v62 = vsel %vm715_vm0, %v13476_v7, 0.0  ;;  %v13480_v20 = vpop.eup %10694 }
 0xaca   :  { %5630 = vadd.xlane.f32.xlu0 %v5629_v62  ;;  %v5623_v50 = vsel %vm715_vm0, %v13480_v20, 0.0 }
 0xace   :  { %5624 = vadd.xlane.f32.xlu0 %v5623_v50 }
 0xad6   :  { %v5448_v60 = vpop.xlane.xlu1 %5447 }
 0xad7   :  { %v5530_v16 = vsub.f32 %v13317_v34, %v5448_v60 }
 0xad8   :  { %v5451_v41 = vpop.xlane.xlu0 %5450 }
 0xad9   :  { %v5568_v13 = vmul.f32 1.442695, %v5530_v16  ;;  %v5531_v14 = vsub.f32 %v13323_v63, %v5451_v41 }
 0xada   :  { %v5460_v4 = vpop.xlane.xlu1 %5459 }
 0xadb   :  { %10696 = vpow2.f32 %v5568_v13  ;;  %v5534_v22 = vsub.f32 %v13320_v54, %v5460_v4  ;;  %v5570_v60 = vmul.f32 1.442695, %v5531_v14 }
 0xadc   :  { %v5463_v36 = vpop.xlane.xlu0 %5462 }
 0xadd   :  { %v5576_v44 = vmul.f32 1.442695, %v5534_v22  ;;  %v5535_v16 = vsub.f32 %v13328_v38, %v5463_v36 }
 0xade   :  { %v5442_v39 = vpop.xlane.xlu1 %5441 }
 0xadf   :  { %10698 = vpow2.f32 %v5576_v44  ;;  %v5528_v61 = vsub.f32 %v13333_v42, %v5442_v39 }
 0xae0   :  { %v5445_v62 = vpop.xlane.xlu0 %5444 }
 0xae1   :  { %v5564_v25 = vmul.f32 1.442695, %v5528_v61  ;;  %v5529_v38 = vsub.f32 %v13338_v30, %v5445_v62 }
 0xae2   :  { %v5454_v50 = vpop.xlane.xlu1 %5453 }
 0xae3   :  { %10700 = vpow2.f32 %v5564_v25  ;;  %v5532_v34 = vsub.f32 %v13343_v1, %v5454_v50  ;;  %v5578_v25 = vmul.f32 1.442695, %v5535_v16 }
 0xae4   :  { %v5457_v13 = vpop.xlane.xlu0 %5456 }
 0xae5   :  { %v13490_v59 = vpop.eup %10696  ;;  %v5572_v54 = vmul.f32 1.442695, %v5532_v34  ;;  %v5533_v4 = vsub.f32 %v13348_v58, %v5457_v13  ;;  %v5566_v34 = vmul.f32 1.442695, %v5529_v38 }
 0xae6   :  { %v5472_v22 = vpop.xlane.xlu1 %5471  ;;  %v5638_v42 = vsel %vm715_vm0, %v13490_v59, 0.0 }
 0xae7   :  { %10702 = vpow2.f32 %v5572_v54  ;;  %v5574_v63 = vmul.f32 1.442695, %v5533_v4  ;;  %v5538_v41 = vsub.f32 %v13355_v49, %v5472_v22  ;;  %5639 = vadd.xlane.f32.xlu1 %v5638_v42 }
 0xae8   :  { %10704 = vpow2.f32 %v5570_v60  ;;  %v5475_v1 = vpop.xlane.xlu0 %5474 }
 0xae9   :  { %v13496_v44 = vpop.eup %10698  ;;  %10706 = vpow2.f32 %v5574_v63  ;;  %v5584_v36 = vmul.f32 1.442695, %v5538_v41  ;;  %v5539_v58 = vsub.f32 %v13363_v23, %v5475_v1 }
 0xaea   :  { %v13500_v39 = vpop.xlane.xlu1 %5483  ;;  %v5650_v61 = vsel %vm715_vm0, %v13496_v44, 0.0 }
 0xaeb   :  { %10708 = vpow2.f32 %v5584_v36  ;;  %v5586_v14 = vmul.f32 1.442695, %v5539_v58  ;;  %5651 = vadd.xlane.f32.xlu0 %v5650_v61 }
 0xaec   :  { %v13504_v49 = vpop.xlane.xlu0 %5486  ;;  %10710 = vpow2.f32 %v5578_v25 }
 0xaed   :  { %v13506_v50 = vpop.eup %10700  ;;  %10712 = vpow2.f32 %v5586_v14 }
 0xaee   :  { %v5466_v60 = vpop.xlane.xlu1 %5465  ;;  %v5632_v30 = vsel %vm715_vm0, %v13506_v50, 0.0  ;;  %10714 = vpow2.f32 %v5566_v34 }
 0xaef   :  { %5633 = vadd.xlane.f32.xlu1 %v5632_v30 }
 0xaf0   :  { %v5469_v23 = vpop.xlane.xlu0 %5468 }
 0xaf1   :  { %v13510_v62 = vpop.eup %10702  ;;  %v5537_v16 = vsub.f32 %v13378_v21, %v5469_v23 }
 0xaf2   :  { %v13513_v13 = vpop.eup %10704  ;;  %v5478_v54 = vpop.xlane.xlu1 %5477  ;;  %v5644_v4 = vsel %vm715_vm0, %v13510_v62, 0.0 }
 0xaf3   :  { %v13517_v22 = vpop.eup %10706  ;;  %v5582_v42 = vmul.f32 1.442695, %v5537_v16  ;;  %5645 = vadd.xlane.f32.xlu0 %v5644_v4  ;;  %v5641_v38 = vsel %vm715_vm0, %v13513_v13, 0.0 }
 0xaf4   :  { %v5481_v63 = vpop.xlane.xlu0 %5480  ;;  %v5647_v41 = vsel %vm715_vm0, %v13517_v22, 0.0 }
 0xaf5   :  { %v13521_v25 = vpop.eup %10708  ;;  %10716 = vpow2.f32 %v5582_v42  ;;  %v5541_v1 = vsub.f32 %v13388_v19, %v5481_v63  ;;  %5648 = vadd.xlane.f32.xlu1 %v5647_v41 }
 0xaf6   :  { %v5496_v21 = vpop.xlane.xlu1 %5495  ;;  %v13526_v36 = vpop.eup %10710  ;;  %v5662_v34 = vsel %vm715_vm0, %v13521_v25, 0.0 }
 0xaf7   :  { %v5590_v58 = vmul.f32 1.442695, %v5541_v1  ;;  %v5546_v61 = vsub.f32 %v13395_v12, %v5496_v21  ;;  %5642 = vadd.xlane.f32.xlu0 %v5641_v38  ;;  %v13531_v30 = vpop.eup %10712  ;;  %v5653_v16 = vsel %vm715_vm0, %v13526_v36, 0.0 }
 0xaf8   :  { %v5499_v14 = vpop.xlane.xlu0 %5498  ;;  %v13536_v4 = vpop.eup %10714  ;;  %v5665_v12 = vsel %vm715_vm0, %v13531_v30, 0.0 }
 0xaf9   :  { %10718 = vpow2.f32 %v5590_v58  ;;  %v5600_v23 = vmul.f32 1.442695, %v5546_v61  ;;  %v5547_v19 = vsub.f32 %v13403_v5, %v5499_v14  ;;  %5663 = vadd.xlane.f32.xlu1 %v5662_v34  ;;  %v5635_v63 = vsel %vm715_vm0, %v13536_v4, 0.0  ;;  %v14615_v34 = vld [vmem:[#allocation49_spill] sm:$0xff] }
 0xafb   :  { %10720 = vpow2.f32 %v5600_v23  ;;  %v5602_v42 = vmul.f32 1.442695, %v5547_v19  ;;  %5654 = vadd.xlane.f32.xlu0 %v5653_v16  ;;  %v5542_v23 = vsub.f32 %v13360_v40, %v13500_v39  ;;  %v14616_v19 = vld [vmem:[#allocation53_spill] sm:$0xff] }
 0xafd   :  { %5666 = vadd.xlane.f32.xlu1 %v5665_v12  ;;  %10722 = vpow2.f32 %v5602_v42  ;;  %v5592_v16 = vmul.f32 1.442695, %v5542_v23  ;;  %v5536_v42 = vsub.f32 %v13373_v2, %v5466_v60  ;;  %v5511_v12 = vpop.xlane.xlu0 %5510 }
 0xaff   :  { %v13542_v41 = vpop.eup %10716  ;;  %5636 = vadd.xlane.f32.xlu0 %v5635_v63  ;;  %10724 = vpow2.f32 %v5592_v16  ;;  %v5580_v63 = vmul.f32 1.442695, %v5536_v42 }
 0xb00   :  { %v5659_v5 = vsel %vm715_vm0, %v13542_v41, 0.0 }
 0xb01   :  { %5660 = vadd.xlane.f32.xlu1 %v5659_v5  ;;  %v5540_v5 = vsub.f32 %v13383_v56, %v5478_v54  ;;  %10726 = vpow2.f32 %v5580_v63 }
 0xb03   :  { %v13546_v1 = vpop.eup %10718 }
 0xb04   :  { %v5671_v21 = vsel %vm715_vm0, %v13546_v1, 0.0 }
 0xb05   :  { %v13550_v38 = vpop.eup %10720  ;;  %5672 = vadd.xlane.f32.xlu1 %v5671_v21  ;;  %v5508_v21 = vpop.xlane.xlu1 %5507 }
 0xb06   :  { %v5686_v58 = vsel %vm715_vm0, %v13550_v38, 0.0  ;;  %v5550_v23 = vsub.f32 %v13400_v17, %v5508_v21 }
 0xb07   :  { %v13554_v61 = vpop.eup %10722 }
 0xb08   :  { %v5689_v14 = vsel %vm715_vm0, %v13554_v61, 0.0 }
 0xb09   :  { %5687 = vadd.xlane.f32.xlu1 %v5686_v58  ;;  %v5493_v58 = vpop.xlane.xlu0 %5492  ;;  %v5490_v39 = vpop.xlane.xlu1 %5489 }
 0xb0a   :  { %v5545_v40 = vsub.f32 %v13418_v24, %v5493_v58  ;;  %v13570_v2 = vpop.eup %10724  ;;  %v5544_v56 = vsub.f32 %v13413_v6, %v5490_v39 }
 0xb0c   :  { %v5598_v60 = vmul.f32 1.442695, %v5545_v40  ;;  %v5596_v24 = vmul.f32 1.442695, %v5544_v56 }
 0xb0d   :  { %5690 = vadd.xlane.f32.xlu1 %v5689_v14  ;;  %v5543_v14 = vsub.f32 %v13368_v8, %v13504_v49  ;;  %v5502_v54 = vpop.xlane.xlu1 %5501  ;;  %v5674_v8 = vsel %vm715_vm0, %v13570_v2, 0.0  ;;  %v13575_v49 = vpop.eup %10726 }
 0xb0e   :  { %v5548_v16 = vsub.f32 %v13423_v32, %v5502_v54  ;;  %v5656_v17 = vsel %vm715_vm0, %v13575_v49, 0.0  ;;  %v5505_v63 = vpop.xlane.xlu0 %5504 }
 0xb0f   :  { %v5594_v57 = vmul.f32 1.442695, %v5543_v14 }
 0xb10   :  { %v5604_v6 = vmul.f32 1.442695, %v5548_v16 }
 0xb15   :  { %6101 = vrot.lane.b32.xlu0 %v14615_v34, %s11004_s7  ;;  %v5588_v34 = vmul.f32 1.442695, %v5540_v5 }
 0xb17   :  { %10728 = vpow2.f32 %v5588_v34 }
 0xb18   :  { %10730 = vpow2.f32 %v5594_v57  ;;  %v5551_v57 = vsub.f32 %v13408_v15, %v5511_v12  ;;  %v5520_v15 = vpop.xlane.xlu0 %5519 }
 0xb19   :  { %10732 = vpow2.f32 %v5598_v60 }
 0xb1a   :  { %v5610_v32 = vmul.f32 1.442695, %v5551_v57  ;;  %v14617_v57 = vld [vmem:[#allocation52_spill] sm:$0xff] }
 0xb1e   :  { %6162 = vrot.lane.b32.xlu1 %v14616_v19, %s11004_s7  ;;  %v5608_v19 = vmul.f32 1.442695, %v5550_v23  ;;  %v5514_v23 = vpop.xlane.xlu0 %5513 }
 0xb20   :  { %10734 = vpow2.f32 %v5608_v19 }
 0xb21   :  { %v13580_v42 = vpop.eup %10728  ;;  %10736 = vpow2.f32 %v5596_v24 }
 0xb22   :  { %v5668_v5 = vsel %vm715_vm0, %v13580_v42, 0.0  ;;  %v13585_v21 = vpop.eup %10730  ;;  %10738 = vpow2.f32 %v5604_v6 }
 0xb23   :  { %v13587_v58 = vpop.eup %10732  ;;  %v5677_v14 = vsel %vm715_vm0, %v13585_v21, 0.0  ;;  %10740 = vpow2.f32 %v5610_v32 }
 0xb24   :  { %v5683_v12 = vsel %vm715_vm0, %v13587_v58, 0.0 }
 0xb2a   :  { %v13591_v34 = vpop.eup %10734 }
 0xb2b   :  { %v5698_v40 = vsel %vm715_vm0, %v13591_v34, 0.0  ;;  %v13597_v39 = vpop.eup %10736 }
 0xb2c   :  { %v5680_v60 = vsel %vm715_vm0, %v13597_v39, 0.0  ;;  %v13601_v19 = vpop.eup %10738 }
 0xb2d   :  { %v5692_v56 = vsel %vm715_vm0, %v13601_v19, 0.0  ;;  %v13605_v54 = vpop.eup %10740 }
 0xb2e   :  { %v5701_v24 = vsel %vm715_vm0, %v13605_v54, 0.0 }
 0xb34   :  { %5675 = vadd.xlane.f32.xlu0 %v5674_v8  ;;  %v5523_v8 = vpop.xlane.xlu0 %5522 }
 0xb38   :  { %5657 = vadd.xlane.f32.xlu0 %v5656_v17  ;;  %v5517_v17 = vpop.xlane.xlu0 %5516 }
 0xb3c   :  { %5669 = vadd.xlane.f32.xlu0 %v5668_v5 }
 0xb40   :  { %5678 = vadd.xlane.f32.xlu0 %v5677_v14  ;;  %v5549_v14 = vsub.f32 %v13428_v53, %v5505_v63  ;;  %v5555_v63 = vsub.f32 %v13445_v52, %v5523_v8 }
 0xb42   :  { %5684 = vadd.xlane.f32.xlu1 %v5683_v12 }
 0xb44   :  { %5699 = vadd.xlane.f32.xlu0 %v5698_v40 }
 0xb48   :  { %5681 = vadd.xlane.f32.xlu0 %v5680_v60 }
 0xb4c   :  { %5693 = vadd.xlane.f32.xlu0 %v5692_v56  ;;  %v5606_v56 = vmul.f32 1.442695, %v5549_v14 }
 0xb4f   :  { %v5628_v16 = vpop.xlane.xlu1 %5627 }
 0xb50   :  { %5702 = vadd.xlane.f32.xlu0 %v5701_v24  ;;  %v5554_v24 = vsub.f32 %v13435_v0, %v5520_v15  ;;  %v5618_v0 = vmul.f32 1.442695, %v5555_v63 }
 0xb52   :  { %v5616_v53 = vmul.f32 1.442695, %v5554_v24 }
 0xb53   :  { %6164 = vrot.lane.b32.xlu1 %v14617_v57, %s11004_s7  ;;  %v5622_v6 = vpop.xlane.xlu1 %5621  ;;  %v14618_v57 = vld [vmem:[#allocation48_spill] sm:$0xff] }
 0xb57   :  { %v5631_v5 = vpop.xlane.xlu0 %5630 }
 0xb58   :  { %10742 = vrcp.f32 %v5631_v5 }
 0xb59   :  { %10744 = vrcp.f32 %v5622_v6 }
 0xb5a   :  { %10746 = vrcp.f32 %v5628_v16 }
 0xb5b   :  { %v5625_v32 = vpop.xlane.xlu0 %5624 }
 0xb5c   :  { %10748 = vrcp.f32 %v5625_v32 }
 0xb5d   :  { %10750 = vpow2.f32 %v5606_v56 }
 0xb5e   :  { %10752 = vpow2.f32 %v5616_v53 }
 0xb5f   :  { %10754 = vpow2.f32 %v5618_v0 }
 0xb62   :  { %v10743_v12 = vpop.eup %10742 }
 0xb63   :  { %v10745_v40 = vpop.eup %10744  ;;  %v5751_v9 = vmul.f32 %v10743_v12, %v13476_v7  ;;  %v5553_v7 = vsub.f32 %v13450_v35, %v5517_v17 }
 0xb64   :  { %v10747_v60 = vpop.eup %10746  ;;  %v5748_v5 = vmul.f32 %v10745_v40, %v13472_v33 }
 0xb65   :  { %v5750_v6 = vmul.f32 %v10747_v60, %v13468_v48  ;;  %v5614_v48 = vmul.f32 1.442695, %v5553_v7 }
 0xb66   :  { %v10749_v29 = vpop.eup %10748  ;;  %6103 = vrot.lane.b32.xlu0 %v14618_v57, %s11004_s7 }
 0xb67   :  { %v5749_v16 = vmul.f32 %v10749_v29, %v13480_v20  ;;  %v5781_v14 = vpack.c.bf16 %v5751_v9, %v5750_v6  ;;  %v5552_v29 = vsub.f32 %v13440_v31, %v5514_v23  ;;  %v13628_v9 = vpop.eup %10750  ;;  %10756 = vpow2.f32 %v5614_v48 }
 0xb68   :  { %v5695_v33 = vsel %vm715_vm0, %v13628_v9, 0.0  ;;  %v13632_v35 = vpop.eup %10752 }
 0xb69   :  { %v5780_v32 = vpack.c.bf16 %v5749_v16, %v5748_v5  ;;  %v5612_v52 = vmul.f32 1.442695, %v5552_v29  ;;  %v5710_v31 = vsel %vm715_vm0, %v13632_v35, 0.0  ;;  %v13636_v20 = vpop.eup %10754 }
 0xb6a   :  { %v5713_v23 = vsel %vm715_vm0, %v13636_v20, 0.0 }
 0xb6b   :  { %9738 = vmatprep.mubr.msk.bf16.mxu0 %vm715_vm0, %v5780_v32  ;;  %10758 = vpow2.f32 %v5612_v52 }
 0xb6c   :  { %9739 = vmatmul.mubr.msk.bf16.vlgmr.msra.gmra.mrb[152].mxu0 %vm715_vm0, %v5781_v14 }
 0xb6d   :  { %9751 = vmatpush3.bf16.msra.mxu0 %v13191_v28 }
 0xb6e   :  { %9752 = vmatprep.subr.bf16.mxu0 %v13456_v27 }
 0xb71   :  { %9753 = vmatpush3.bf16.msra.mxu0 %v13456_v27  ;;  %v13640_v8 = vpop.eup %10756 }
 0xb72   :  { %9766 = vmatprep.subr.bf16.mxu0 %v13458_v26  ;;  %v5707_v60 = vsel %vm715_vm0, %v13640_v8, 0.0 }
 0xb74   :  { %v5640_v28 = vpop.xlane.xlu1 %5639 }
 0xb75   :  { %v13642_v12 = vpop.eup %10758 }
 0xb76   :  { %v5704_v24 = vsel %vm715_vm0, %v13642_v12, 0.0 }
 0xb77   :  { %5696 = vadd.xlane.f32.xlu1 %v5695_v33 }
 0xb78   :  { %v5652_v27 = vpop.xlane.xlu0 %5651 }
 0xb7b   :  { %5711 = vadd.xlane.f32.xlu1 %v5710_v31 }
 0xb7c   :  { %v5634_v15 = vpop.xlane.xlu1 %5633 }
 0xb7f   :  { %5714 = vadd.xlane.f32.xlu1 %v5713_v23 }
 0xb80   :  { %v5646_v17 = vpop.xlane.xlu0 %5645 }
 0xb81   :  { %10760 = vrcp.f32 %v5646_v17 }
 0xb82   :  { %v5649_v40 = vpop.xlane.xlu1 %5648 }
 0xb83   :  { %10762 = vrcp.f32 %v5649_v40  ;;  %5708 = vadd.xlane.f32.xlu1 %v5707_v60  ;;  %v14620_v60 = vld [vmem:[#allocation39_spill] sm:$0xff] }
 0xb84   :  { %v5643_v56 = vpop.xlane.xlu0 %5642  ;;  %10764 = vrcp.f32 %v5652_v27 }
 0xb85   :  { %5705 = vadd.xlane.f32.xlu0 %v5704_v24 }
 0xb86   :  { %v5664_v57 = vpop.xlane.xlu1 %5663 }
 0xb88   :  { %v5655_v5 = vpop.xlane.xlu0 %5654 }
 0xb89   :  { %10766 = vrcp.f32 %v5655_v5 }
 0xb8a   :  { %10768 = vrcp.f32 %v5643_v56  ;;  %v5667_v16 = vpop.xlane.xlu1 %5666  ;;  %v14621_v56 = vld [vmem:[#allocation100_spill] sm:$0xff] }
 0xb8b   :  { %v10761_v6 = vpop.eup %10760  ;;  %10770 = vrcp.f32 %v5634_v15  ;;  %v14622_v24 = vpack.i.bf16 %v14620_v60, %v14621_v56 }
 0xb8c   :  { %10772 = vrcp.f32 %v5640_v28  ;;  %v5637_v53 = vpop.xlane.xlu0 %5636  ;;  %v5756_v14 = vmul.f32 %v10761_v6, %v13510_v62  ;;  %v14619_v28 = vld [vmem:[#allocation56_spill] sm:$0xff] }
 0xb8d   :  { %v10763_v63 = vpop.eup %10762  ;;  %10774 = vrcp.f32 %v5637_v53 }
 0xb8e   :  { %v5661_v32 = vpop.xlane.xlu1 %5660  ;;  %v5757_v0 = vmul.f32 %v10763_v63, %v13517_v22  ;;  %v10765_v29 = vpop.eup %10764  ;;  %10776 = vrcp.f32 %v5667_v16 }
 0xb8f   :  { %v5758_v31 = vmul.f32 %v10765_v29, %v13496_v44  ;;  %10778 = vrcp.f32 %v5661_v32 }
 0xb90   :  { %v5784_v7 = vpack.c.bf16 %v5757_v0, %v5756_v14  ;;  %v14624_v14 = vld [vmem:[#allocation68_spill] sm:$0xff]  ;;  %10780 = vrcp.f32 %v5664_v57 }
 0xb91   :  { %v14625_v0 = vld [vmem:[#allocation24_spill] sm:$0xff] }
 0xb92   :  { %v5673_v48 = vpop.xlane.xlu1 %5672  ;;  %9754 = vmatprep.mubr.msk.bf16.mxu0 %vm715_vm0, %v5784_v7  ;;  %v14626_v7 = vpack.i.bf16 %v14624_v14, %v14625_v0 }
 0xb93   :  { %v10767_v52 = vpop.eup %10766 }
 0xb94   :  { %v10769_v33 = vpop.eup %10768  ;;  %v5759_v27 = vmul.f32 %v10767_v52, %v13526_v36  ;;  %6225 = vrot.lane.b32.xlu1 %v14619_v28, %s11004_s7 }
 0xb95   :  { %v10771_v15 = vpop.eup %10770  ;;  %v5755_v22 = vmul.f32 %v10769_v33, %v13513_v13  ;;  %v14623_v13 = vld [vmem:[#allocation57_spill] sm:$0xff] }
 0xb96   :  { %v10773_v23 = vpop.eup %10772  ;;  %v5688_v17 = vpop.xlane.xlu1 %5687  ;;  %v5785_v62 = vpack.c.bf16 %v5759_v27, %v5758_v31  ;;  %v5752_v44 = vmul.f32 %v10771_v15, %v13506_v50 }
 0xb97   :  { %v10775_v40 = vpop.eup %10774  ;;  %v5754_v5 = vmul.f32 %v10773_v23, %v13490_v59  ;;  %v6102_v50 = vpop.permute.xlu0 %6101 }
 0xb98   :  { %9945 = vrot.lane.b32.xlu1 %v14622_v24, %s11004_s7  ;;  %9755 = vmatmul.mubr.msk.bf16.vlgmr.msra.gmra.mrb[156].mxu0 %vm715_vm0, %v5785_v62  ;;  %v5753_v36 = vmul.f32 %v10775_v40, %v13536_v4 }
 0xb99   :  { %9767 = vmatpush3.bf16.msra.mxu0 %v13458_v26  ;;  %v5783_v63 = vpack.c.bf16 %v5755_v22, %v5754_v5  ;;  %v14627_v26 = vpack.i.bf16 %v13208_v3, %v13202_v51  ;;  %v10777_v51 = vpop.eup %10776 }
 0xb9a   :  { %9768 = vmatprep.subr.bf16.mxu0 %v13462_v47  ;;  %v5691_v6 = vpop.xlane.xlu1 %5690  ;;  %v5782_v53 = vpack.c.bf16 %v5753_v36, %v5752_v44  ;;  %v10779_v52 = vpop.eup %10778  ;;  %v5763_v31 = vmul.f32 %v10777_v51, %v13531_v30 }
 0xb9b   :  { %6223 = vrot.lane.b32.xlu0 %v14623_v13, %s11004_s7  ;;  %v5761_v57 = vmul.f32 %v10779_v52, %v13542_v41  ;;  %v10217_v52 = vld [vmem:[#allocation7 + $0x8] sm:$0xff]  }
 0xb9c   :  { %9950 = vrot.lane.b32.xlu1 %v14626_v7, %s11004_s7  ;;  %9746 = vmatprep.mubr.msk.bf16.mxu1 %vm715_vm0, %v5782_v53 }
 0xb9d   :  { %9769 = vmatpush3.bf16.msra.mxu0 %v13462_v47  ;;  %9747 = vmatmul.mubr.msk.bf16.vlgmr.msra.gmra.mrb[168].mxu1 %vm715_vm0, %v5783_v63  ;;  %v14628_v47 = vpack.i.bf16 %v13204_v43, %v13200_v18 }
 0xb9e   :  { %9759 = vmatpush3.bf16.msra.mxu1 %v13197_v37  ;;  %v6163_v59 = vpop.permute.xlu1 %6162 }
 0xb9f   :  { %9760 = vmatprep.subr.bf16.mxu1 %v13460_v45  ;;  %9782 = vmatprep.subr.bf16.mxu0 %v6163_v59 }
 0xba0   :  { %9955 = vrot.lane.b32.xlu1 %v14627_v26, %s10998_s0 }
 0xba2   :  { %9761 = vmatpush3.bf16.msra.mxu1 %v13460_v45  ;;  %v10781_v45 = vpop.eup %10780 }
 0xba3   :  { %9774 = vmatprep.subr.bf16.mxu1 %v6102_v50 }
 0xba4   :  { %9960 = vrot.lane.b32.xlu1 %v14628_v47, %s10998_s0 }
 0xbc1   :  { %v5676_v4 = vpop.xlane.xlu0 %5675 }
 0xbc5   :  { %v5658_v37 = vpop.xlane.xlu0 %5657 }
 0xbc6   :  { %10782 = vrcp.f32 %v5658_v37 }
 0xbc7   :  { %10784 = vrcp.f32 %v5673_v48  ;;  %v5762_v48 = vmul.f32 %v10781_v45, %v13521_v25 }
 0xbc9   :  { %v5670_v29 = vpop.xlane.xlu0 %5669  ;;  %v5787_v15 = vpack.c.bf16 %v5763_v31, %v5762_v48 }
 0xbca   :  { %10786 = vrcp.f32 %v5670_v29 }
 0xbcb   :  { %10788 = vrcp.f32 %v5676_v4 }
 0xbcd   :  { %v5679_v3 = vpop.xlane.xlu0 %5678 }
 0xbce   :  { %10790 = vrcp.f32 %v5679_v3 }
 0xbcf   :  { %v5685_v18 = vpop.xlane.xlu1 %5684  ;;  %10792 = vrcp.f32 %v5691_v6 }
 0xbd0   :  { %v10783_v33 = vpop.eup %10782  ;;  %10794 = vrcp.f32 %v5685_v18 }
 0xbd1   :  { %v5700_v43 = vpop.xlane.xlu0 %5699  ;;  %v5760_v16 = vmul.f32 %v10783_v33, %v13575_v49  ;;  %v10785_v32 = vpop.eup %10784  ;;  %10796 = vrcp.f32 %v5688_v17 }
 0xbd2   :  { %v5765_v62 = vmul.f32 %v10785_v32, %v13546_v1 }
 0xbd3   :  { %v5786_v27 = vpack.c.bf16 %v5761_v57, %v5760_v16  ;;  %v6165_v24 = vpop.permute.xlu1 %6164 }
 0xbd4   :  { %v10787_v28 = vpop.eup %10786 }
 0xbd5   :  { %9762 = vmatprep.mubr.msk.bf16.mxu1 %vm715_vm0, %v5786_v27  ;;  %v5682_v23 = vpop.xlane.xlu0 %5681  ;;  %v5764_v30 = vmul.f32 %v10787_v28, %v13580_v42  ;;  %v10789_v40 = vpop.eup %10788  ;;  %v14629_v27 = vmov 0   ;;  %v10219_v28 = vld [vmem:[#allocation7 + $0x18] sm:$0xff]  }
 0xbd6   :  { %10798 = vrcp.f32 %v5682_v23  ;;  %9763 = vmatmul.mubr.msk.bf16.vlgmr.msra.gmra.mrb[172].mxu1 %vm715_vm0, %v5787_v15  ;;  %v5766_v49 = vmul.f32 %v10789_v40, %v13570_v2  ;;  %v10220_v15 = vld [vmem:[#allocation7 + $0x20] sm:$0xff]  }
 0xbd7   :  { %9775 = vmatpush3.bf16.msra.mxu1 %v6102_v50  ;;  %v5788_v41 = vpack.c.bf16 %v5765_v62, %v5764_v30 }
 0xbd8   :  { %v10791_v25 = vpop.eup %10790 }
 0xbd9   :  { %v5767_v22 = vmul.f32 %v10791_v25, %v13585_v21  ;;  %9770 = vmatprep.mubr.msk.bf16.mxu0 %vm715_vm0, %v5788_v41  ;;  %v5694_v17 = vpop.xlane.xlu0 %5693  ;;  %v10793_v56 = vpop.eup %10792  ;;  %v14630_v25 = vld [vmem:[#allocation93_spill] sm:$0xff] }
 0xbda   :  { %v10795_v1 = vpop.eup %10794  ;;  %v5771_v5 = vmul.f32 %v10793_v56, %v13554_v61 }
 0xbdb   :  { %v5789_v60 = vpack.c.bf16 %v5767_v22, %v5766_v49  ;;  %v10797_v44 = vpop.eup %10796  ;;  %v5769_v21 = vmul.f32 %v10795_v1, %v13587_v58  ;;  %v14631_v49 = vld [vmem:[#allocation18_spill] sm:$0xff]  ;;  %v14637_v1 = vpack.i.bf16 %v13232_v10, %v13226_v46  ;;  %v14639_v46 = vld [vmem:[#allocation92_spill] sm:$0xff] }
 0xbdc   :  { %v5770_v53 = vmul.f32 %v10797_v44, %v13550_v38  ;;  %v14632_v22 = vpack.i.bf16 %v14630_v25, %v14631_v49  ;;  %v14641_v10 = vld [vmem:[#allocation54_spill] sm:$0xff] }
 0xbdd   :  { %9771 = vmatmul.mubr.msk.bf16.vlgmr.msra.gmra.mrb[160].mxu0 %vm715_vm0, %v5789_v60  ;;  %v5703_v42 = vpop.xlane.xlu0 %5702  ;;  %v14634_v60 = vld [vmem:[#allocation94_spill] sm:$0xff] }
 0xbde   :  { %9783 = vmatpush3.bf16.msra.mxu0 %v6163_v59  ;;  %v5791_v63 = vpack.c.bf16 %v5771_v5, %v5770_v53  ;;  %10800 = vrcp.f32 %v5703_v42  ;;  %v14636_v42 = vpack.i.bf16 %v13228_v11, %v13224_v55  ;;  %v14638_v55 = vld [vmem:[#allocation91_spill] sm:$0xff] }
 0xbdf   :  { %9784 = vmatprep.subr.bf16.mxu0 %v6165_v24  ;;  %10802 = vrcp.f32 %v5694_v17  ;;  %v14633_v17 = vld [vmem:[#allocation95_spill] sm:$0xff]  ;;  %v14640_v11 = vpack.i.bf16 %v14638_v55, %v14639_v46  ;;  %v14674_v46 = vld [vmem:[#allocation33_spill] sm:$0xff] }
 0xbe0   :  { %v10799_v36 = vpop.eup %10798  ;;  %10804 = vrcp.f32 %v5700_v43  ;;  %v14635_v56 = vpack.i.bf16 %v14633_v17, %v14634_v60  ;;  %v14666_v17 = vld [vmem:[#allocation98_spill] sm:$0xff] }
 0xbe1   :  { %v6104_v6 = vpop.permute.xlu0 %6103  ;;  %v5768_v2 = vmul.f32 %v10799_v36, %v13597_v39  ;;  %v10216_v39 = vld [vmem:[#allocation7] sm:$0xff]  }
 0xbe2   :  { %9785 = vmatpush3.bf16.msra.mxu0 %v6165_v24  ;;  %9776 = vmatprep.subr.bf16.mxu1 %v6104_v6 }
 0xbe3   :  { %9777 = vmatpush3.bf16.msra.mxu1 %v6104_v6  ;;  %v5790_v13 = vpack.c.bf16 %v5769_v21, %v5768_v2  ;;  %9798 = vmatprep.subr.bf16.mxu0 %v10216_v39 }
 0xbe5   :  { %9778 = vmatprep.mubr.msk.bf16.mxu1 %vm715_vm0, %v5790_v13 }
 0xbe6   :  { %9779 = vmatmul.mubr.msk.bf16.vlgmr.msra.gmra.mrb[176].mxu1 %vm715_vm0, %v5791_v63 }
 0xbe8   :  { %v10801_v0 = vpop.eup %10800 }
 0xbe9   :  { %v10803_v38 = vpop.eup %10802  ;;  %v5775_v26 = vmul.f32 %v10801_v0, %v13605_v54 }
 0xbea   :  { %v10805_v7 = vpop.eup %10804  ;;  %v5772_v47 = vmul.f32 %v10803_v38, %v13601_v19  ;;  %v10218_v19 = vld [vmem:[#allocation7 + $0x10] sm:$0xff]   ;;  %v14645_v38 = vld [vmem:[#allocation16_spill] sm:$0xff] }
 0xbeb   :  { %v5774_v37 = vmul.f32 %v10805_v7, %v13591_v34 }
 0xbed   :  { %v5793_v3 = vpack.c.bf16 %v5775_v26, %v5774_v37  ;;  %v14648_v26 = vld [vmem:[#allocation29_spill] sm:$0xff] }
 0xc04   :  { %v5697_v61 = vpop.xlane.xlu1 %5696 }
 0xc05   :  { %10806 = vrcp.f32 %v5697_v61 }
 0xc08   :  { %v5712_v14 = vpop.xlane.xlu1 %5711 }
 0xc0c   :  { %v5715_v58 = vpop.xlane.xlu1 %5714 }
 0xc0d   :  { %10808 = vrcp.f32 %v5715_v58  ;;  %v14644_v58 = vld [vmem:[#allocation20_spill] sm:$0xff] }
 0xc0e   :  { %v14646_v7 = vpack.i.bf16 %v14644_v58, %v14645_v38  ;;  %v14676_v58 = vld [vmem:[#allocation43_spill] sm:$0xff] }
 0xc0f   :  { %v10807_v59 = vpop.eup %10806 }
 0xc10   :  { %v5709_v50 = vpop.xlane.xlu1 %5708  ;;  %v5773_v4 = vmul.f32 %v10807_v59, %v13628_v9  ;;  %v14647_v59 = vld [vmem:[#allocation36_spill] sm:$0xff] }
 0xc11   :  { %10810 = vrcp.f32 %v5709_v50  ;;  %v14649_v50 = vpack.i.bf16 %v14647_v59, %v14648_v26 }
 0xc12   :  { %10812 = vrcp.f32 %v5712_v14  ;;  %v5706_v29 = vpop.xlane.xlu0 %5705  ;;  %v5792_v51 = vpack.c.bf16 %v5773_v4, %v5772_v47  ;;  %v14650_v47 = vld [vmem:[#allocation103_spill] sm:$0xff]  ;;  %v14651_v4 = vld [vmem:[#allocation101_spill] sm:$0xff] }
 0xc13   :  { %10814 = vrcp.f32 %v5706_v29  ;;  %v14652_v37 = vpack.i.bf16 %v14650_v47, %v14651_v4  ;;  %v14653_v29 = vld [vmem:[#allocation104_spill] sm:$0xff] }
 0xc14   :  { %9786 = vmatprep.mubr.msk.bf16.mxu0 %vm715_vm0, %v5792_v51  ;;  %v6226_v45 = vpop.permute.xlu1 %6225  ;;  %v14654_v51 = vld [vmem:[#allocation102_spill] sm:$0xff] }
 0xc15   :  { %9787 = vmatmul.mubr.msk.bf16.vlgmr.msra.gmra.mrb[164].mxu0 %vm715_vm0, %v5793_v3  ;;  %v14655_v3 = vpack.i.bf16 %v14653_v29, %v14654_v51 }
 0xc16   :  { %v6224_v54 = vpop.permute.xlu0 %6223  ;;  %9799 = vmatpush3.bf16.msra.mxu0 %v10216_v39  ;;  %v14642_v39 = vld [vmem:[#allocation55_spill] sm:$0xff] }
 0xc17   :  { %9790 = vmatprep.subr.bf16.mxu1 %v6224_v54  ;;  %9800 = vmatprep.subr.bf16.mxu0 %v10217_v52  ;;  %v10809_v34 = vpop.eup %10808  ;;  %v14643_v0 = vpack.i.bf16 %v14641_v10, %v14642_v39 }
 0xc18   :  { %9791 = vmatpush3.bf16.msra.mxu1 %v6224_v54  ;;  %v5779_v18 = vmul.f32 %v10809_v34, %v13636_v20  ;;  %v10221_v20 = vld [vmem:[#allocation7 + $0x28] sm:$0xff]   ;;  %v14657_v54 = vld [vmem:[#allocation31_spill] sm:$0xff] }
 0xc19   :  { %9792 = vmatprep.subr.bf16.mxu1 %v6226_v45  ;;  %v14660_v34 = vld [vmem:[#allocation51_spill] sm:$0xff] }
 0xc1a   :  { %9801 = vmatpush3.bf16.msra.mxu0 %v10217_v52  ;;  %v14656_v52 = vld [vmem:[#allocation30_spill] sm:$0xff] }
 0xc1b   :  { %v10811_v9 = vpop.eup %10810  ;;  %9802 = vmatprep.subr.bf16.mxu0 %v10218_v19 }
 0xc1c   :  { %v10813_v33 = vpop.eup %10812  ;;  %9793 = vmatpush3.bf16.msra.mxu1 %v6226_v45  ;;  %v5777_v16 = vmul.f32 %v10811_v9, %v13640_v8  ;;  %v10222_v8 = vld [vmem:[#allocation7 + $0x30] sm:$0xff]  }
 0xc1d   :  { %v10815_v31 = vpop.eup %10814  ;;  %v5778_v57 = vmul.f32 %v10813_v33, %v13632_v35  ;;  %v10223_v35 = vld [vmem:[#allocation7 + $0x38] sm:$0xff]   ;;  %v14659_v45 = vld [vmem:[#allocation50_spill] sm:$0xff]  ;;  %v9946_v33 = vpop.permute.xlu1 %9945 }
 0xc1e   :  { %v5776_v43 = vmul.f32 %v10815_v31, %v13642_v12  ;;  %9803 = vmatpush3.bf16.msra.mxu0 %v10218_v19  ;;  %v14658_v19 = vpack.i.bf16 %v14656_v52, %v14657_v54  ;;  %v14661_v9 = vpack.i.bf16 %v14659_v45, %v14660_v34 }
 0xc1f   :  { %v5795_v48 = vpack.c.bf16 %v5779_v18, %v5778_v57  ;;  %9804 = vmatprep.subr.bf16.mxu0 %v10219_v28 }
 0xc20   :  { %v5794_v32 = vpack.c.bf16 %v5777_v16, %v5776_v43 }
 0xc21   :  { %v9951_v31 = vpop.permute.xlu1 %9950 }
 0xc22   :  { %9794 = vmatprep.mubr.msk.bf16.mxu1 %vm715_vm0, %v5794_v32  ;;  %9805 = vmatpush3.bf16.msra.mxu0 %v10219_v28  ;;  %v9952_v25 = vunpack.i.l.bf16 %v9951_v31 }
 0xc23   :  { %9795 = vmatmul.mubr.msk.bf16.vlgmr.msra.gmra.mrb[180].mxu1 %vm715_vm0, %v5795_v48  ;;  %9806 = vmatprep.subr.bf16.mxu0 %v10220_v15 }
 0xc24   :  { %7279 = vmatprep.mubr.bf16.mxu1 %v14629_v27 }
 0xc25   :  { %v9956_v16 = vpop.permute.xlu1 %9955 }
 0xc26   :  { %9807 = vmatpush3.bf16.msra.mxu0 %v10220_v15 }
 0xc27   :  { %9808 = vmatprep.subr.bf16.mxu0 %v10221_v20 }
 0xc2a   :  { %9809 = vmatpush3.bf16.msra.mxu0 %v10221_v20  ;;  %v9961_v20 = vpop.permute.xlu1 %9960 }
 0xc2b   :  { %9810 = vmatprep.subr.bf16.mxu0 %v10222_v8 }
 0xc2e   :  { %9811 = vmatpush3.bf16.msra.mxu0 %v10222_v8 }
 0xc2f   :  { %9812 = vmatprep.subr.bf16.mxu0 %v10223_v35 }
 0xc32   :  { %9813 = vmatpush3.bf16.msra.mxu0 %v10223_v35  ;;  %v9948_v35 = vunpack.i.h.bf16 %v9946_v33 }
 0xc3f   :  { %v9740_v12 = vpop.f32.mrb[152].mxu0 }
 0xc40   :  { %v5842_v23 = vpop.f32.mrb[153].mxu0 }
 0xc41   :  { %v9741_v30 = vpop.f32.mrb[154].mxu0 }
 0xc42   :  { %v9969_v62 = vpack.i.bf16 %v9741_v30, %v9740_v12  ;;  %v5845_v40 = vpop.f32.mrb[155].mxu0  ;;  %v9947_v12 = vunpack.i.l.bf16 %v9946_v33  ;;  %v14663_v30 = vld [vmem:[#allocation96_spill] sm:$0xff] }
 0xc43   :  { %v9964_v41 = vpack.i.bf16 %v5845_v40, %v5842_v23  ;;  %v14662_v23 = vld [vmem:[#allocation99_spill] sm:$0xff] }
 0xc44   :  { %9970 = vrot.lane.b32.xlu1 %v9969_v62, %s11003_s4  ;;  %v14664_v62 = vpack.i.bf16 %v14662_v23, %v14663_v30  ;;  %v14690_v30 = vld [vmem:[#allocation107_spill] sm:$0xff] }
 0xc45   :  { %9965 = vrot.lane.b32.xlu0 %v9964_v41, %s11003_s4  ;;  %v9953_v41 = vunpack.i.h.bf16 %v9951_v31 }
 0xc48   :  { %9980 = vrot.lane.b32.xlu1 %v14632_v22, %s11004_s7  ;;  %v14665_v22 = vld [vmem:[#allocation97_spill] sm:$0xff] }
 0xc49   :  { %9975 = vrot.lane.b32.xlu0 %v14635_v56, %s11004_s7  ;;  %v14667_v60 = vpack.i.bf16 %v14665_v22, %v14666_v17  ;;  %v14696_v22 = vld [vmem:[#allocation124_spill] sm:$0xff]  ;;  %v14697_v17 = vld [vmem:[#allocation38_spill] sm:$0xff] }
 0xc4c   :  { %9990 = vrot.lane.b32.xlu1 %v14636_v42, %s10998_s0  ;;  %v9963_v42 = vunpack.i.h.bf16 %v9961_v20 }
 0xc4d   :  { %9985 = vrot.lane.b32.xlu0 %v14637_v1, %s10998_s0  ;;  %v9962_v1 = vunpack.i.l.bf16 %v9961_v20  ;;  %v14685_v20 = vld [vmem:[#allocation17_spill] sm:$0xff] }
 0xc6b   :  { %v9756_v24 = vpop.f32.mrb[156].mxu0 }
 0xc6c   :  { %v5964_v44 = vpop.f32.mrb[157].mxu0 }
 0xc6d   :  { %v9757_v36 = vpop.f32.mrb[158].mxu0 }
 0xc6e   :  { %v10029_v5 = vpack.i.bf16 %v9757_v36, %v9756_v24  ;;  %v5967_v6 = vpop.f32.mrb[159].mxu0  ;;  %v9957_v36 = vunpack.i.l.bf16 %v9956_v16 }
 0xc6f   :  { %v10024_v2 = vpack.i.bf16 %v5967_v6, %v5964_v44  ;;  %v9958_v44 = vunpack.i.h.bf16 %v9956_v16  ;;  %v14679_v16 = vld [vmem:[#allocation109_spill] sm:$0xff] }
 0xc70   :  { %v9748_v21 = vpop.f32.mrb[168].mxu1 }
 0xc71   :  { %v5903_v53 = vpop.f32.mrb[169].mxu1 }
 0xc72   :  { %v9749_v13 = vpop.f32.mrb[170].mxu1 }
 0xc73   :  { %v9999_v63 = vpack.i.bf16 %v9749_v13, %v9748_v21  ;;  %v5906_v61 = vpop.f32.mrb[171].mxu1  ;;  %v14670_v13 = vld [vmem:[#allocation26_spill] sm:$0xff] }
 0xc74   :  { %v9994_v14 = vpack.i.bf16 %v5906_v61, %v5903_v53 }
 0xc75   :  { %10000 = vrot.lane.b32.xlu1 %v9999_v63, %s11003_s4  ;;  %v14671_v63 = vld [vmem:[#allocation27_spill] sm:$0xff] }
 0xc76   :  { %9995 = vrot.lane.b32.xlu0 %v9994_v14, %s11003_s4  ;;  %v14672_v61 = vpack.i.bf16 %v14670_v13, %v14671_v63  ;;  %v14673_v14 = vld [vmem:[#allocation32_spill] sm:$0xff] }
 0xc77   :  { %v6671_v55 = vsel %vm715_vm0, %v14673_v14, %v9953_v41  ;;  %v14693_v41 = vld [vmem:[#allocation108_spill] sm:$0xff] }
 0xc78   :  { %v6704_v26 = vsel %vm6700_vm5, %v6671_v55, %v9963_v42  ;;  %v14700_v42 = vld [vmem:[#allocation19_spill] sm:$0xff]  ;;  %v14702_v55 = vld [vmem:[#allocation62_spill] sm:$0xff] }
 0xc79   :  { %10010 = vrot.lane.b32.xlu1 %v14640_v11, %s11004_s7  ;;  %v6670_v11 = vsel %vm715_vm0, %v14674_v46, %v9952_v25  ;;  %v14694_v25 = vld [vmem:[#allocation106_spill] sm:$0xff] }
 0xc7a   :  { %10005 = vrot.lane.b32.xlu0 %v14643_v0, %s11004_s7  ;;  %v14675_v0 = vld [vmem:[#allocation42_spill] sm:$0xff]  ;;  %v6703_v59 = vsel %vm6700_vm5, %v6670_v11, %v9962_v1 }
 0xc7b   :  { %v14677_v38 = vpack.i.bf16 %v14675_v0, %v14676_v58  ;;  %v14703_v11 = vld [vmem:[#allocation46_spill] sm:$0xff]  ;;  %v14704_v0 = vld [vmem:[#allocation63_spill] sm:$0xff] }
 0xc7d   :  { %10020 = vrot.lane.b32.xlu1 %v14646_v7, %s10998_s0 }
 0xc7e   :  { %10015 = vrot.lane.b32.xlu0 %v14649_v50, %s10998_s0 }
 0xc81   :  { %10030 = vrot.lane.b32.xlu1 %v10029_v5, %s11003_s4  ;;  %v14668_v5 = vld [vmem:[#allocation47_spill] sm:$0xff] }
 0xc82   :  { %10025 = vrot.lane.b32.xlu0 %v10024_v2, %s11003_s4  ;;  %v6669_v6 = vsel %vm715_vm0, %v14668_v5, %v9948_v35  ;;  %v14669_v2 = vld [vmem:[#allocation28_spill] sm:$0xff]  ;;  %v14687_v35 = vld [vmem:[#allocation25_spill] sm:$0xff] }
 0xc83   :  { %v6668_v21 = vsel %vm715_vm0, %v14669_v2, %v9947_v12  ;;  %v14688_v12 = vld [vmem:[#allocation45_spill] sm:$0xff] }
 0xc84   :  { %v6701_v4 = vsel %vm6700_vm5, %v6668_v21, %v9957_v36  ;;  %v14689_v23 = vpack.i.bf16 %v14687_v35, %v14688_v12 }
 0xc85   :  { %10040 = vrot.lane.b32.xlu1 %v14652_v37, %s11004_s7  ;;  %v6702_v37 = vsel %vm6700_vm5, %v6669_v6, %v9958_v44 }
 0xc86   :  { %10035 = vrot.lane.b32.xlu0 %v14655_v3, %s11004_s7 }
 0xc89   :  { %10050 = vrot.lane.b32.xlu1 %v14658_v19, %s10998_s0 }
 0xc8a   :  { %10045 = vrot.lane.b32.xlu0 %v14661_v9, %s10998_s0 }
 0xca9   :  { %v9764_v18 = vpop.f32.mrb[172].mxu1 }
 0xcaa   :  { %v6025_v43 = vpop.f32.mrb[173].mxu1 }
 0xcab   :  { %v9765_v57 = vpop.f32.mrb[174].mxu1 }
 0xcac   :  { %v10059_v32 = vpack.i.bf16 %v9765_v57, %v9764_v18  ;;  %v6028_v48 = vpop.f32.mrb[175].mxu1 }
 0xcad   :  { %v10054_v28 = vpack.i.bf16 %v6028_v48, %v6025_v43  ;;  %v14678_v43 = vld [vmem:[#allocation111_spill] sm:$0xff]  ;;  %v14682_v48 = vld [vmem:[#allocation110_spill] sm:$0xff] }
 0xcae   :  { %10060 = vrot.lane.b32.xlu1 %v10059_v32, %s11003_s4  ;;  %v14680_v57 = vpack.i.bf16 %v14678_v43, %v14679_v16  ;;  %v14681_v32 = vld [vmem:[#allocation112_spill] sm:$0xff] }
 0xcaf   :  { %10055 = vrot.lane.b32.xlu0 %v10054_v28, %s11003_s4  ;;  %v14683_v28 = vpack.i.bf16 %v14681_v32, %v14682_v48 }
 0xcb0   :  { %v9772_v15 = vpop.f32.mrb[160].mxu0 }
 0xcb1   :  { %v6086_v8 = vpop.f32.mrb[161].mxu0 }
 0xcb2   :  { %10070 = vrot.lane.b32.xlu1 %v14664_v62, %s11004_s7  ;;  %v9773_v40 = vpop.f32.mrb[162].mxu0  ;;  %v14691_v62 = vld [vmem:[#allocation105_spill] sm:$0xff] }
 0xcb3   :  { %v10089_v49 = vpack.i.bf16 %v9773_v40, %v9772_v15  ;;  %10065 = vrot.lane.b32.xlu0 %v14667_v60, %s11004_s7  ;;  %v6089_v56 = vpop.f32.mrb[163].mxu0  ;;  %v14684_v15 = vld [vmem:[#allocation73_spill] sm:$0xff]  ;;  %v14692_v40 = vpack.i.bf16 %v14690_v30, %v14691_v62  ;;  %v14698_v60 = vpack.i.bf16 %v14696_v22, %v14697_v17  ;;  %v14706_v62 = vld [vmem:[#allocation115_spill] sm:$0xff]  ;;  %v14709_v22 = vld [vmem:[#allocation116_spill] sm:$0xff] }
 0xcb4   :  { %v10084_v24 = vpack.i.bf16 %v6089_v56, %v6086_v8  ;;  %v14686_v8 = vpack.i.bf16 %v14684_v15, %v14685_v20  ;;  %v14699_v56 = vld [vmem:[#allocation37_spill] sm:$0xff]  ;;  %v14710_v17 = vld [vmem:[#allocation114_spill] sm:$0xff] }
 0xcb5   :  { %v14701_v1 = vpack.i.bf16 %v14699_v56, %v14700_v42  ;;  %v14712_v56 = vld [vmem:[#allocation66_spill] sm:$0xff] }
 0xcb6   :  { %v9971_v53 = vpop.permute.xlu1 %9970  ;;  %10080 = vrot.lane.b32.xlu1 %v14672_v61, %s10998_s0 }
 0xcb7   :  { %v9973_v10 = vunpack.i.h.bf16 %v9971_v53  ;;  %v9972_v39 = vunpack.i.l.bf16 %v9971_v53  ;;  %10075 = vrot.lane.b32.xlu0 %v14677_v38, %s10998_s0  ;;  %v9966_v7 = vpop.permute.xlu0 %9965  ;;  %v14705_v38 = vld [vmem:[#allocation22_spill] sm:$0xff] }
 0xcb8   :  { %v9968_v50 = vunpack.i.h.bf16 %v9966_v7  ;;  %v9967_v47 = vunpack.i.l.bf16 %v9966_v7 }
 0xcb9   :  { %v6737_v29 = vsel %vm6733_vm6, %v6704_v26, %v9973_v10  ;;  %v6736_v51 = vsel %vm6733_vm6, %v6703_v59, %v9972_v39  ;;  %v9780_v3 = vpop.f32.mrb[176].mxu1 }
 0xcba   :  { %v6767_v52 = vpack.c.bf16 %v6737_v29, %v6736_v51  ;;  %10090 = vrot.lane.b32.xlu1 %v10089_v49, %s11003_s4  ;;  %v6147_v54 = vpop.f32.mrb[177].mxu1  ;;  %v6734_v19 = vsel %vm6733_vm6, %v6701_v4, %v9967_v47  ;;  %v6735_v45 = vsel %vm6733_vm6, %v6702_v37, %v9968_v50  ;;  %v14695_v49 = vpack.i.bf16 %v14693_v41, %v14694_v25 }
 0xcbb   :  { %10085 = vrot.lane.b32.xlu0 %v10084_v24, %s11003_s4  ;;  %v9781_v34 = vpop.f32.mrb[178].mxu1  ;;  %v6766_v9 = vpack.c.bf16 %v6735_v45, %v6734_v19  ;;  %v9981_v24 = vpop.permute.xlu1 %9980 }
 0xcbc   :  { %v10119_v33 = vpack.i.bf16 %v9781_v34, %v9780_v3  ;;  %v6150_v31 = vpop.f32.mrb[179].mxu1  ;;  %v9976_v44 = vpop.permute.xlu0 %9975  ;;  %v9983_v5 = vunpack.i.h.bf16 %v9981_v24  ;;  %v9982_v6 = vunpack.i.l.bf16 %v9981_v24 }
 0xcbd   :  { %v10114_v18 = vpack.i.bf16 %v6150_v31, %v6147_v54  ;;  %9814 = vmatprep.mubr.bf16.mxu0 %v6766_v9  ;;  %v9978_v21 = vunpack.i.h.bf16 %v9976_v44  ;;  %v9977_v53 = vunpack.i.l.bf16 %v9976_v44 }
 0xcbe   :  { %10100 = vrot.lane.b32.xlu1 %v14680_v57, %s11004_s7  ;;  %9815 = vmatmul.mubr.bf16.vlgmr.msra.gmra.mrb[168].mxu0 %v6767_v52  ;;  %v6675_v46 = vsel %vm715_vm0, %v14702_v55, %v9983_v5  ;;  %v6674_v10 = vsel %vm715_vm0, %v14703_v11, %v9982_v6  ;;  %v14715_v6 = vld [vmem:[#allocation65_spill] sm:$0xff]  ;;  %v14717_v11 = vld [vmem:[#allocation90_spill] sm:$0xff] }
 0xcbf   :  { %10095 = vrot.lane.b32.xlu0 %v14683_v28, %s11004_s7  ;;  %v9991_v36 = vpop.permute.xlu1 %9990  ;;  %v6673_v58 = vsel %vm715_vm0, %v14704_v0, %v9978_v21  ;;  %v6672_v7 = vsel %vm715_vm0, %v14705_v38, %v9977_v53  ;;  %v10226_v0 = vld [vmem:[#allocation8 + $0x4] ss:$16 sps:$4 sm:$0xff]  }
 0xcc0   :  { %v9986_v2 = vpop.permute.xlu0 %9985  ;;  %v9993_v13 = vunpack.i.h.bf16 %v9991_v36  ;;  %v9992_v63 = vunpack.i.l.bf16 %v9991_v36  ;;  %v14714_v36 = vld [vmem:[#allocation67_spill] sm:$0xff]  ;;  %7247 = vmatprep.subr.bf16.mxu1 %v10226_v0 }
 0xcc1   :  { %v9988_v61 = vunpack.i.h.bf16 %v9986_v2  ;;  %v9987_v14 = vunpack.i.l.bf16 %v9986_v2 }
 0xcc2   :  { %10110 = vrot.lane.b32.xlu1 %v14686_v8, %s10998_s0  ;;  %v6707_v4 = vsel %vm6700_vm5, %v6674_v10, %v9992_v63  ;;  %v6708_v37 = vsel %vm6700_vm5, %v6675_v46, %v9993_v13  ;;  %v14716_v46 = vld [vmem:[#allocation118_spill] sm:$0xff] }
 0xcc3   :  { %10105 = vrot.lane.b32.xlu0 %v14689_v23, %s10998_s0  ;;  %v6705_v52 = vsel %vm6700_vm5, %v6672_v7, %v9987_v14  ;;  %v6706_v54 = vsel %vm6700_vm5, %v6673_v58, %v9988_v61  ;;  %v14718_v10 = vpack.i.bf16 %v14716_v46, %v14717_v11  ;;  %v10227_v58 = vld [vmem:[#allocation8 + $0x8] ss:$16 sps:$4 sm:$0xff]  }
 0xcc4   :  { %v14722_v11 = vld [vmem:[#allocation71_spill] sm:$0xff] }
 0xcc6   :  { %10120 = vrot.lane.b32.xlu1 %v10119_v33, %s11003_s4 }
 0xcc7   :  { %10115 = vrot.lane.b32.xlu0 %v10114_v18, %s11003_s4 }
 0xcca   :  { %10130 = vrot.lane.b32.xlu1 %v14692_v40, %s11004_s7  ;;  %v14707_v40 = vld [vmem:[#allocation113_spill] sm:$0xff] }
 0xccb   :  { %10125 = vrot.lane.b32.xlu0 %v14695_v49, %s11004_s7  ;;  %v14708_v41 = vpack.i.bf16 %v14706_v62, %v14707_v40  ;;  %v10251_v62 = vld [vmem:[#allocation8 + $0x88] ss:$16 sps:$4 sm:$0xff]   ;;  %v10256_v40 = vld [vmem:[#allocation8 + $0xa4] ss:$16 sps:$4 sm:$0xff]  }
 0xcce   :  { %10140 = vrot.lane.b32.xlu1 %v14698_v60, %s10998_s0  ;;  %v14711_v60 = vpack.i.bf16 %v14709_v22, %v14710_v17  ;;  %v10262_v22 = vld [vmem:[#allocation8 + $0xc4] ss:$16 sps:$4 sm:$0xff]   ;;  %v10265_v17 = vld [vmem:[#allocation8 + $0xcc] ss:$16 sps:$4 sm:$0xff]  }
 0xccf   :  { %10135 = vrot.lane.b32.xlu0 %v14701_v1, %s10998_s0  ;;  %v14713_v1 = vld [vmem:[#allocation64_spill] sm:$0xff] }
 0xce7   :  { %v10001_v39 = vpop.permute.xlu1 %10000 }
 0xce8   :  { %v10003_v59 = vunpack.i.h.bf16 %v10001_v39  ;;  %v10002_v26 = vunpack.i.l.bf16 %v10001_v39  ;;  %v9788_v50 = vpop.f32.mrb[164].mxu0  ;;  %v9996_v47 = vpop.permute.xlu0 %9995  ;;  %v10224_v39 = vld [vmem:[#allocation8] ss:$16 sps:$4 sm:$0xff]  }
 0xce9   :  { %v9998_v29 = vunpack.i.h.bf16 %v9996_v47  ;;  %v9997_v51 = vunpack.i.l.bf16 %v9996_v47  ;;  %v6208_v3 = vpop.f32.mrb[165].mxu0  ;;  %7248 = vmatpush1.bf16.msra.mxu1 %v10224_v39  ;;  %v14723_v39 = vld [vmem:[#allocation69_spill] sm:$0xff] }
 0xcea   :  { %v9789_v19 = vpop.f32.mrb[166].mxu0  ;;  %v6740_v45 = vsel %vm6733_vm6, %v6707_v4, %v10002_v26  ;;  %v6741_v34 = vsel %vm6733_vm6, %v6708_v37, %v10003_v59  ;;  %v14719_v59 = vld [vmem:[#allocation117_spill] sm:$0xff]  ;;  %v14720_v26 = vld [vmem:[#allocation44_spill] sm:$0xff] }
 0xceb   :  { %v10149_v9 = vpack.i.bf16 %v9789_v19, %v9788_v50  ;;  %v10011_v33 = vpop.permute.xlu1 %10010  ;;  %v6211_v31 = vpop.f32.mrb[167].mxu0  ;;  %v6738_v18 = vsel %vm6733_vm6, %v6705_v52, %v9997_v51  ;;  %v6739_v43 = vsel %vm6733_vm6, %v6706_v54, %v9998_v29  ;;  %v6769_v16 = vpack.c.bf16 %v6741_v34, %v6740_v45  ;;  %v10229_v29 = vld [vmem:[#allocation8 + $0xc] ss:$16 sps:$4 sm:$0xff]   ;;  %v10232_v19 = vld [vmem:[#allocation8 + $0x24] ss:$16 sps:$4 sm:$0xff]  }
 0xcec   :  { %v10144_v57 = vpack.i.bf16 %v6211_v31, %v6208_v3  ;;  %v10006_v32 = vpop.permute.xlu0 %10005  ;;  %v6768_v48 = vpack.c.bf16 %v6739_v43, %v6738_v18  ;;  %v10013_v28 = vunpack.i.h.bf16 %v10011_v33  ;;  %v10012_v15 = vunpack.i.l.bf16 %v10011_v33  ;;  %7440 = vmatprep.subr.bf16.mxu0 %v10229_v29  ;;  %v10235_v33 = vld [vmem:[#allocation8 + $0x2c] ss:$16 sps:$4 sm:$0xff]   ;;  %7249 = vmatprep.subr.bf16.mxu1 %v10232_v19  ;;  %v10233_v43 = vld [vmem:[#allocation8 + $0x28] ss:$16 sps:$4 sm:$0xff]  }
 0xced   :  { %10150 = vrot.lane.b32.xlu1 %v10149_v9, %s11003_s4  ;;  %v10008_v8 = vunpack.i.h.bf16 %v10006_v32  ;;  %v10007_v35 = vunpack.i.l.bf16 %v10006_v32  ;;  %v14721_v50 = vpack.i.bf16 %v14719_v59, %v14720_v26  ;;  %v10230_v9 = vld [vmem:[#allocation8 + $0x20] ss:$16 sps:$4 sm:$0xff]   ;;  %7441 = vmatpush1.bf16.msra.mxu0 %v10227_v58  ;;  %v10241_v32 = vld [vmem:[#allocation8 + $0x4c] ss:$16 sps:$4 sm:$0xff]  }
 0xcee   :  { %10145 = vrot.lane.b32.xlu0 %v10144_v57, %s11003_s4  ;;  %9818 = vmatprep.mubr.bf16.mxu0 %v6768_v48  ;;  %v6679_v42 = vsel %vm715_vm0, %v14712_v56, %v10013_v28  ;;  %v6678_v24 = vsel %vm715_vm0, %v14713_v1, %v10012_v15  ;;  %v10236_v48 = vld [vmem:[#allocation8 + $0x40] ss:$16 sps:$4 sm:$0xff]   ;;  %v10239_v28 = vld [vmem:[#allocation8 + $0x48] ss:$16 sps:$4 sm:$0xff]   ;;  %v10244_v15 = vld [vmem:[#allocation8 + $0x64] ss:$16 sps:$4 sm:$0xff]  }
 0xcef   :  { %v10021_v20 = vpop.permute.xlu1 %10020  ;;  %9819 = vmatmul.mubr.bf16.gmra.mrb[172].mxu0 %v6769_v16  ;;  %v6677_v5 = vsel %vm715_vm0, %v14714_v36, %v10008_v8  ;;  %v6676_v2 = vsel %vm715_vm0, %v14715_v6, %v10007_v35  ;;  %v10238_v16 = vld [vmem:[#allocation8 + $0x44] ss:$16 sps:$4 sm:$0xff]   ;;  %7442 = vmatprep.subr.bf16.mxu0 %v10235_v33  ;;  %v10242_v8 = vld [vmem:[#allocation8 + $0x60] ss:$16 sps:$4 sm:$0xff]   ;;  %v10245_v35 = vld [vmem:[#allocation8 + $0x68] ss:$16 sps:$4 sm:$0xff]  }
 0xcf0   :  { %v10016_v12 = vpop.permute.xlu0 %10015  ;;  %v10023_v23 = vunpack.i.h.bf16 %v10021_v20  ;;  %v10022_v30 = vunpack.i.l.bf16 %v10021_v20  ;;  %7250 = vmatpush1.bf16.msra.mxu1 %v10230_v9  ;;  %v10247_v20 = vld [vmem:[#allocation8 + $0x6c] ss:$16 sps:$4 sm:$0xff]   ;;  %v10263_v56 = vld [vmem:[#allocation8 + $0xc8] ss:$16 sps:$4 sm:$0xff]   ;;  %v14725_v59 = vld [vmem:[#allocation70_spill] sm:$0xff] }
 0xcf1   :  { %10160 = vrot.lane.b32.xlu1 %v14708_v41, %s11004_s7  ;;  %v10018_v25 = vunpack.i.h.bf16 %v10016_v12  ;;  %v10017_v49 = vunpack.i.l.bf16 %v10016_v12  ;;  %7443 = vmatpush1.bf16.msra.mxu0 %v10233_v43  ;;  %v10250_v12 = vld [vmem:[#allocation8 + $0x84] ss:$16 sps:$4 sm:$0xff]   ;;  %v10259_v41 = vld [vmem:[#allocation8 + $0xac] ss:$16 sps:$4 sm:$0xff]   ;;  %v10269_v36 = vld [vmem:[#allocation8 + $0xe8] ss:$16 sps:$4 sm:$0xff]  }
 0xcf2   :  { %10155 = vrot.lane.b32.xlu0 %v14711_v60, %s11004_s7  ;;  %v6711_v63 = vsel %vm6700_vm5, %v6678_v24, %v10022_v30  ;;  %v6712_v61 = vsel %vm6700_vm5, %v6679_v42, %v10023_v23  ;;  %7251 = vmatprep.subr.bf16.mxu1 %v10238_v16  ;;  %v10253_v23 = vld [vmem:[#allocation8 + $0x8c] ss:$16 sps:$4 sm:$0xff]   ;;  %v10248_v30 = vld [vmem:[#allocation8 + $0x80] ss:$16 sps:$4 sm:$0xff]   ;;  %v10268_v42 = vld [vmem:[#allocation8 + $0xe4] ss:$16 sps:$4 sm:$0xff]  }
 0xcf3   :  { %v10031_v44 = vpop.permute.xlu1 %10030  ;;  %v6709_v38 = vsel %vm6700_vm5, %v6676_v2, %v10017_v49  ;;  %v6710_v7 = vsel %vm6700_vm5, %v6677_v5, %v10018_v25  ;;  %7444 = vmatprep.subr.bf16.mxu0 %v10241_v32  ;;  %v10254_v25 = vld [vmem:[#allocation8 + $0xa0] ss:$16 sps:$4 sm:$0xff]   ;;  %v10257_v49 = vld [vmem:[#allocation8 + $0xa8] ss:$16 sps:$4 sm:$0xff]   ;;  %v10271_v1 = vld [vmem:[#allocation8 + $0xec] ss:$16 sps:$4 sm:$0xff]  }
 0xcf4   :  { %v10033_v21 = vunpack.i.h.bf16 %v10031_v44  ;;  %v10032_v53 = vunpack.i.l.bf16 %v10031_v44  ;;  %v10026_v13 = vpop.permute.xlu0 %10025  ;;  %7252 = vmatpush1.bf16.msra.mxu1 %v10236_v48  ;;  %v10260_v60 = vld [vmem:[#allocation8 + $0xc0] ss:$16 sps:$4 sm:$0xff]  }
 0xcf5   :  { %v10028_v14 = vunpack.i.h.bf16 %v10026_v13  ;;  %v10027_v55 = vunpack.i.l.bf16 %v10026_v13  ;;  %10170 = vrot.lane.b32.xlu1 %v14718_v10, %s10998_s0  ;;  %7445 = vmatpush1.bf16.msra.mxu0 %v10239_v28  ;;  %v10266_v44 = vld [vmem:[#allocation8 + $0xe0] ss:$16 sps:$4 sm:$0xff]  }
 0xcf6   :  { %10165 = vrot.lane.b32.xlu0 %v14721_v50, %s10998_s0  ;;  %v9796_v47 = vpop.f32.mrb[180].mxu1  ;;  %v6744_v4 = vsel %vm6733_vm6, %v6711_v63, %v10032_v53  ;;  %v6745_v37 = vsel %vm6733_vm6, %v6712_v61, %v10033_v21  ;;  %7253 = vmatprep.subr.bf16.mxu1 %v10244_v15 }
 0xcf7   :  { %v6269_v51 = vpop.f32.mrb[181].mxu1  ;;  %v6742_v3 = vsel %vm6733_vm6, %v6709_v38, %v10027_v55  ;;  %v6743_v52 = vsel %vm6733_vm6, %v6710_v7, %v10028_v14  ;;  %v6771_v54 = vpack.c.bf16 %v6745_v37, %v6744_v4  ;;  %7446 = vmatprep.subr.bf16.mxu0 %v10247_v20  ;;  %v10041_v24 = vpop.permute.xlu1 %10040  ;;  %v14724_v38 = vld [vmem:[#allocation72_spill] sm:$0xff] }
 0xcf8   :  { %v9797_v45 = vpop.f32.mrb[182].mxu1  ;;  %v6770_v34 = vpack.c.bf16 %v6743_v52, %v6742_v3  ;;  %7254 = vmatpush1.bf16.msra.mxu1 %v10242_v8  ;;  %v10036_v5 = vpop.permute.xlu0 %10035  ;;  %v10043_v2 = vunpack.i.h.bf16 %v10041_v24  ;;  %v10042_v21 = vunpack.i.l.bf16 %v10041_v24 }
 0xcf9   :  { %v10179_v31 = vpack.i.bf16 %v9797_v45, %v9796_v47  ;;  %v6272_v18 = vpop.f32.mrb[183].mxu1  ;;  %7447 = vmatpush1.bf16.msra.mxu0 %v10245_v35  ;;  %7255 = vmatprep.subr.bf16.mxu1 %v10250_v12  ;;  %v10038_v13 = vunpack.i.h.bf16 %v10036_v5  ;;  %v10037_v63 = vunpack.i.l.bf16 %v10036_v5 }
 0xcfa   :  { %v10174_v57 = vpack.i.bf16 %v6272_v18, %v6269_v51  ;;  %9822 = vmatprep.mubr.bf16.mxu0 %v6770_v34  ;;  %7448 = vmatprep.subr.bf16.mxu0 %v10253_v23  ;;  %v6683_v10 = vsel %vm715_vm0, %v14722_v11, %v10043_v2  ;;  %v6682_v0 = vsel %vm715_vm0, %v14723_v39, %v10042_v21  ;;  %v14726_v23 = vld [vmem:[#allocation76_spill] sm:$0xff] }
 0xcfb   :  { %10180 = vrot.lane.b32.xlu1 %v10179_v31, %s11003_s4  ;;  %9823 = vmatmul.mubr.bf16.gmra.mrb[176].mxu0 %v6771_v54  ;;  %v10051_v6 = vpop.permute.xlu1 %10050  ;;  %v6681_v7 = vsel %vm715_vm0, %v14724_v38, %v10038_v13  ;;  %v6680_v26 = vsel %vm715_vm0, %v14725_v59, %v10037_v63 }
 0xcfc   :  { %10175 = vrot.lane.b32.xlu0 %v10174_v57, %s11003_s4  ;;  %7256 = vmatpush1.bf16.msra.mxu1 %v10248_v30  ;;  %v10046_v53 = vpop.permute.xlu0 %10045  ;;  %v10053_v61 = vunpack.i.h.bf16 %v10051_v6  ;;  %v10052_v14 = vunpack.i.l.bf16 %v10051_v6 }
 0xcfd   :  { %7449 = vmatpush1.bf16.msra.mxu0 %v10251_v62  ;;  %7257 = vmatprep.subr.bf16.mxu1 %v10256_v40  ;;  %v10048_v55 = vunpack.i.h.bf16 %v10046_v53  ;;  %v10047_v46 = vunpack.i.l.bf16 %v10046_v53  ;;  %v14727_v62 = vld [vmem:[#allocation74_spill] sm:$0xff] }
 0xcfe   :  { %7450 = vmatprep.subr.bf16.mxu0 %v10259_v41  ;;  %v6715_v37 = vsel %vm6700_vm5, %v6682_v0, %v10052_v14  ;;  %v6716_v29 = vsel %vm6700_vm5, %v6683_v10, %v10053_v61 }
 0xcff   :  { %v6713_v52 = vsel %vm6700_vm5, %v6680_v26, %v10047_v46  ;;  %v6714_v54 = vsel %vm6700_vm5, %v6681_v7, %v10048_v55 }
 0xd00   :  { %7258 = vmatpush1.bf16.msra.mxu1 %v10254_v25  ;;  %v14728_v25 = vld [vmem:[#allocation77_spill] sm:$0xff] }
 0xd01   :  { %7451 = vmatpush1.bf16.msra.mxu0 %v10257_v49  ;;  %7259 = vmatprep.subr.bf16.mxu1 %v10262_v22  ;;  %v14729_v22 = vld [vmem:[#allocation75_spill] sm:$0xff] }
 0xd02   :  { %7452 = vmatprep.subr.bf16.mxu0 %v10265_v17 }
 0xd04   :  { %7260 = vmatpush1.bf16.msra.mxu1 %v10260_v60 }
 0xd05   :  { %7453 = vmatpush1.bf16.msra.mxu0 %v10263_v56  ;;  %7261 = vmatprep.subr.bf16.mxu1 %v10268_v42 }
 0xd06   :  { %7454 = vmatprep.subr.bf16.mxu0 %v10271_v1 }
 0xd08   :  { %7262 = vmatpush1.bf16.msra.mxu1 %v10266_v44 }
 0xd09   :  { %7455 = vmatpush1.bf16.msra.mxu0 %v10269_v36 }
 0xd20   :  { %v10061_v58 = vpop.permute.xlu1 %10060 }
 0xd21   :  { %v10063_v50 = vunpack.i.h.bf16 %v10061_v58  ;;  %v10062_v47 = vunpack.i.l.bf16 %v10061_v58  ;;  %v10056_v4 = vpop.permute.xlu0 %10055 }
 0xd22   :  { %v10058_v51 = vunpack.i.h.bf16 %v10056_v4  ;;  %v10057_v3 = vunpack.i.l.bf16 %v10056_v4  ;;  %v14731_v4 = vld [vmem:[#allocation82_spill] sm:$0xff] }
 0xd23   :  { %v6748_v19 = vsel %vm6733_vm6, %v6715_v37, %v10062_v47  ;;  %v6749_v45 = vsel %vm6733_vm6, %v6716_v29, %v10063_v50  ;;  %v14730_v50 = vld [vmem:[#allocation84_spill] sm:$0xff] }
 0xd24   :  { %v10071_v34 = vpop.permute.xlu1 %10070  ;;  %v6746_v9 = vsel %vm6733_vm6, %v6713_v52, %v10057_v3  ;;  %v6747_v33 = vsel %vm6733_vm6, %v6714_v54, %v10058_v51  ;;  %v6773_v31 = vpack.c.bf16 %v6749_v45, %v6748_v19  ;;  %v14732_v51 = vld [vmem:[#allocation85_spill] sm:$0xff]  ;;  %v14733_v52 = vld [vmem:[#allocation83_spill] sm:$0xff] }
 0xd25   :  { %v10066_v18 = vpop.permute.xlu0 %10065  ;;  %v6772_v43 = vpack.c.bf16 %v6747_v33, %v6746_v9  ;;  %v10073_v16 = vunpack.i.h.bf16 %v10071_v34  ;;  %v10072_v57 = vunpack.i.l.bf16 %v10071_v34 }
 0xd26   :  { %v10068_v48 = vunpack.i.h.bf16 %v10066_v18  ;;  %v10067_v28 = vunpack.i.l.bf16 %v10066_v18 }
 0xd27   :  { %9826 = vmatprep.mubr.bf16.mxu0 %v6772_v43  ;;  %v6687_v30 = vsel %vm715_vm0, %v14726_v23, %v10073_v16  ;;  %v6686_v40 = vsel %vm715_vm0, %v14727_v62, %v10072_v57 }
 0xd28   :  { %v10081_v32 = vpop.permute.xlu1 %10080  ;;  %9827 = vmatmul.mubr.bf16.gmra.mrb[180].mxu0 %v6773_v31  ;;  %v6685_v49 = vsel %vm715_vm0, %v14728_v25, %v10068_v48  ;;  %v6684_v17 = vsel %vm715_vm0, %v14729_v22, %v10067_v28 }
 0xd29   :  { %v10076_v15 = vpop.permute.xlu0 %10075  ;;  %v10083_v20 = vunpack.i.h.bf16 %v10081_v32  ;;  %v10082_v8 = vunpack.i.l.bf16 %v10081_v32 }
 0xd2a   :  { %v10078_v35 = vunpack.i.h.bf16 %v10076_v15  ;;  %v10077_v12 = vunpack.i.l.bf16 %v10076_v15 }
 0xd2b   :  { %v6719_v1 = vsel %vm6700_vm5, %v6686_v40, %v10082_v8  ;;  %v6720_v24 = vsel %vm6700_vm5, %v6687_v30, %v10083_v20 }
 0xd2c   :  { %v10091_v41 = vpop.permute.xlu1 %10090  ;;  %v6717_v5 = vsel %vm6700_vm5, %v6684_v17, %v10077_v12  ;;  %v6718_v6 = vsel %vm6700_vm5, %v6685_v49, %v10078_v35 }
 0xd2d   :  { %v10093_v60 = vunpack.i.h.bf16 %v10091_v41  ;;  %v10092_v56 = vunpack.i.l.bf16 %v10091_v41  ;;  %v10086_v42 = vpop.permute.xlu0 %10085 }
 0xd2e   :  { %v10088_v44 = vunpack.i.h.bf16 %v10086_v42  ;;  %v10087_v36 = vunpack.i.l.bf16 %v10086_v42  ;;  %v14735_v42 = vld [vmem:[#allocation78_spill] sm:$0xff] }
 0xd2f   :  { %v6752_v2 = vsel %vm6733_vm6, %v6719_v1, %v10092_v56  ;;  %v6753_v21 = vsel %vm6733_vm6, %v6720_v24, %v10093_v60  ;;  %v14734_v60 = vld [vmem:[#allocation80_spill] sm:$0xff] }
 0xd30   :  { %v10101_v53 = vpop.permute.xlu1 %10100  ;;  %v6750_v13 = vsel %vm6733_vm6, %v6717_v5, %v10087_v36  ;;  %v6751_v63 = vsel %vm6733_vm6, %v6718_v6, %v10088_v44  ;;  %v6775_v61 = vpack.c.bf16 %v6753_v21, %v6752_v2  ;;  %v14736_v44 = vld [vmem:[#allocation81_spill] sm:$0xff]  ;;  %v14737_v5 = vld [vmem:[#allocation79_spill] sm:$0xff] }
 0xd31   :  { %v10096_v14 = vpop.permute.xlu0 %10095  ;;  %v6774_v55 = vpack.c.bf16 %v6751_v63, %v6750_v13  ;;  %v10103_v46 = vunpack.i.h.bf16 %v10101_v53  ;;  %v10102_v11 = vunpack.i.l.bf16 %v10101_v53 }
 0xd32   :  { %v10098_v39 = vunpack.i.h.bf16 %v10096_v14  ;;  %v10097_v0 = vunpack.i.l.bf16 %v10096_v14 }
 0xd33   :  { %9830 = vmatprep.mubr.bf16.mxu0 %v6774_v55  ;;  %v6691_v47 = vsel %vm715_vm0, %v14730_v50, %v10103_v46  ;;  %v6690_v37 = vsel %vm715_vm0, %v14731_v4, %v10102_v11 }
 0xd34   :  { %v10111_v10 = vpop.permute.xlu1 %10110  ;;  %9831 = vmatmul.mubr.bf16.gmra.mrb[184].mxu0 %v6775_v61  ;;  %v6689_v3 = vsel %vm715_vm0, %v14732_v51, %v10098_v39  ;;  %v6688_v54 = vsel %vm715_vm0, %v14733_v52, %v10097_v0 }
 0xd35   :  { %v10106_v58 = vpop.permute.xlu0 %10105  ;;  %v10113_v38 = vunpack.i.h.bf16 %v10111_v10  ;;  %v10112_v7 = vunpack.i.l.bf16 %v10111_v10 }
 0xd36   :  { %v10108_v59 = vunpack.i.h.bf16 %v10106_v58  ;;  %v10107_v26 = vunpack.i.l.bf16 %v10106_v58 }
 0xd37   :  { %v6723_v9 = vsel %vm6700_vm5, %v6690_v37, %v10112_v7  ;;  %v6724_v33 = vsel %vm6700_vm5, %v6691_v47, %v10113_v38 }
 0xd38   :  { %v10121_v29 = vpop.permute.xlu1 %10120  ;;  %v6721_v43 = vsel %vm6700_vm5, %v6688_v54, %v10107_v26  ;;  %v6722_v16 = vsel %vm6700_vm5, %v6689_v3, %v10108_v59 }
 0xd39   :  { %v10123_v19 = vunpack.i.h.bf16 %v10121_v29  ;;  %v10122_v45 = vunpack.i.l.bf16 %v10121_v29  ;;  %v10116_v34 = vpop.permute.xlu0 %10115 }
 0xd3a   :  { %v10118_v31 = vunpack.i.h.bf16 %v10116_v34  ;;  %v10117_v18 = vunpack.i.l.bf16 %v10116_v34  ;;  %v14739_v34 = vld [vmem:[#allocation86_spill] sm:$0xff] }
 0xd3b   :  { %v6756_v57 = vsel %vm6733_vm6, %v6723_v9, %v10122_v45  ;;  %v6757_v32 = vsel %vm6733_vm6, %v6724_v33, %v10123_v19  ;;  %v14738_v19 = vld [vmem:[#allocation88_spill] sm:$0xff] }
 0xd3c   :  { %v6754_v48 = vsel %vm6733_vm6, %v6721_v43, %v10117_v18  ;;  %v6755_v28 = vsel %vm6733_vm6, %v6722_v16, %v10118_v31  ;;  %v6777_v15 = vpack.c.bf16 %v6757_v32, %v6756_v57  ;;  %v10131_v8 = vpop.permute.xlu1 %10130  ;;  %v14740_v31 = vld [vmem:[#allocation89_spill] sm:$0xff]  ;;  %v14741_v43 = vld [vmem:[#allocation87_spill] sm:$0xff] }
 0xd3d   :  { %v6776_v20 = vpack.c.bf16 %v6755_v28, %v6754_v48  ;;  %v10126_v35 = vpop.permute.xlu0 %10125  ;;  %v10133_v23 = vunpack.i.h.bf16 %v10131_v8  ;;  %v10132_v30 = vunpack.i.l.bf16 %v10131_v8 }
 0xd3e   :  { %v10128_v40 = vunpack.i.h.bf16 %v10126_v35  ;;  %v10127_v41 = vunpack.i.l.bf16 %v10126_v35 }
 0xd3f   :  { %9834 = vmatprep.mubr.bf16.mxu0 %v6776_v20  ;;  %v6695_v56 = vsel %vm715_vm0, %v14734_v60, %v10133_v23  ;;  %v6694_v1 = vsel %vm715_vm0, %v14735_v42, %v10132_v30 }
 0xd40   :  { %9835 = vmatmul.mubr.bf16.gmra.mrb[188].mxu0 %v6777_v15  ;;  %v10141_v12 = vpop.permute.xlu1 %10140  ;;  %v6693_v36 = vsel %vm715_vm0, %v14736_v44, %v10128_v40  ;;  %v6692_v6 = vsel %vm715_vm0, %v14737_v5, %v10127_v41 }
 0xd41   :  { %v10136_v62 = vpop.permute.xlu0 %10135  ;;  %v10143_v25 = vunpack.i.h.bf16 %v10141_v12  ;;  %v10142_v49 = vunpack.i.l.bf16 %v10141_v12 }
 0xd42   :  { %v10138_v22 = vunpack.i.h.bf16 %v10136_v62  ;;  %v10137_v17 = vunpack.i.l.bf16 %v10136_v62 }
 0xd43   :  { %v6727_v13 = vsel %vm6700_vm5, %v6694_v1, %v10142_v49  ;;  %v6728_v63 = vsel %vm6700_vm5, %v6695_v56, %v10143_v25  ;;  %v10816_v56 = vld [vmem:[#allocation2] sm:$0xff]  ;;  %v10817_v1 = vld [vmem:[#allocation2 + $0x8] sm:$0xff] }
 0xd44   :  { %v6725_v55 = vsel %vm6700_vm5, %v6692_v6, %v10137_v17  ;;  %v6726_v46 = vsel %vm6700_vm5, %v6693_v36, %v10138_v22  ;;  %v10818_v36 = vld [vmem:[#allocation2 + $0x18] sm:$0xff]  ;;  %v10819_v6 = vld [vmem:[#allocation2 + $0x10] sm:$0xff] }
 0xd5f   :  { %v10151_v24 = vpop.permute.xlu1 %10150 }
 0xd60   :  { %v10153_v2 = vunpack.i.h.bf16 %v10151_v24  ;;  %v10152_v21 = vunpack.i.l.bf16 %v10151_v24  ;;  %v10146_v53 = vpop.permute.xlu0 %10145 }
 0xd61   :  { %v10148_v61 = vunpack.i.h.bf16 %v10146_v53  ;;  %v10147_v14 = vunpack.i.l.bf16 %v10146_v53 }
 0xd62   :  { %v6760_v11 = vsel %vm6733_vm6, %v6727_v13, %v10152_v21  ;;  %v6761_v10 = vsel %vm6733_vm6, %v6728_v63, %v10153_v2 }
 0xd63   :  { %v10161_v39 = vpop.permute.xlu1 %10160  ;;  %v6758_v0 = vsel %vm6733_vm6, %v6725_v55, %v10147_v14  ;;  %v6759_v58 = vsel %vm6733_vm6, %v6726_v46, %v10148_v61  ;;  %v6779_v38 = vpack.c.bf16 %v6761_v10, %v6760_v11  ;;  %v10820_v14 = vld [vmem:[#allocation2 + $0x20] sm:$0xff]  ;;  %v10821_v46 = vld [vmem:[#allocation2 + $0x28] sm:$0xff] }
 0xd64   :  { %v10156_v7 = vpop.permute.xlu0 %10155  ;;  %v6778_v59 = vpack.c.bf16 %v6759_v58, %v6758_v0  ;;  %v10163_v50 = vunpack.i.h.bf16 %v10161_v39  ;;  %v10162_v47 = vunpack.i.l.bf16 %v10161_v39  ;;  %v10822_v39 = vld [vmem:[#allocation2 + $0x38] sm:$0xff]  ;;  %v10823_v58 = vld [vmem:[#allocation2 + $0x30] sm:$0xff] }
 0xd65   :  { %v10158_v37 = vunpack.i.h.bf16 %v10156_v7  ;;  %v10157_v29 = vunpack.i.l.bf16 %v10156_v7 }
 0xd66   :  { %9838 = vmatprep.mubr.bf16.mxu0 %v6778_v59  ;;  %v6699_v45 = vsel %vm715_vm0, %v14738_v19, %v10163_v50  ;;  %v6698_v9 = vsel %vm715_vm0, %v14739_v34, %v10162_v47 }
 0xd67   :  { %9839 = vmatmul.mubr.bf16.gmra.mrb[192].mxu0 %v6779_v38  ;;  %v10171_v26 = vpop.permute.xlu1 %10170  ;;  %v6697_v18 = vsel %vm715_vm0, %v14740_v31, %v10158_v37  ;;  %v6696_v16 = vsel %vm715_vm0, %v14741_v43, %v10157_v29  ;;  %v10273_v37 = vld [vmem:[#allocation10 + $0xc0] sm:$0xff]   ;;  %v10279_v31 = vld [vmem:[#allocation10 + $0x88] sm:$0xff]   ;;  %v10281_v43 = vld [vmem:[#allocation10 + $0xd0] sm:$0xff]  }
 0xd68   :  { %v10166_v4 = vpop.permute.xlu0 %10165  ;;  %v10173_v51 = vunpack.i.h.bf16 %v10171_v26  ;;  %v10172_v3 = vunpack.i.l.bf16 %v10171_v26  ;;  %v10274_v29 = vld [vmem:[#allocation10] sm:$0xff]   ;;  %9126 = vmatprep.subr.bf16.mxu0 %v10273_v37 }
 0xd69   :  { %v10168_v52 = vunpack.i.h.bf16 %v10166_v4  ;;  %v10167_v54 = vunpack.i.l.bf16 %v10166_v4  ;;  %v10272_v4 = vld [vmem:[#allocation10 + $0x40] sm:$0xff]  }
 0xd6a   :  { %v6731_v28 = vsel %vm6700_vm5, %v6698_v9, %v10172_v3  ;;  %v6732_v15 = vsel %vm6700_vm5, %v6699_v45, %v10173_v51  ;;  %v10275_v51 = vld [vmem:[#allocation10 + $0x80] sm:$0xff]   ;;  %v10276_v3 = vld [vmem:[#allocation10 + $0x48] sm:$0xff]   ;;  %9014 = vmatprep.subr.bf16.mxu1 %v10272_v4 }
 0xd6b   :  { %v6729_v35 = vsel %vm6700_vm5, %v6696_v16, %v10167_v54  ;;  %v6730_v12 = vsel %vm6700_vm5, %v6697_v18, %v10168_v52  ;;  %v10277_v52 = vld [vmem:[#allocation10 + $0xc8] sm:$0xff]   ;;  %v10825_v45 = vld [vmem:[#allocation2 + $0x40] sm:$0xff]  ;;  %v10280_v18 = vld [vmem:[#allocation10 + $0x50] sm:$0xff]  }
 0xd6c   :  { %v10824_v54 = vld [vmem:[#allocation2 + $0x48] sm:$0xff]  ;;  %v10826_v16 = vld [vmem:[#allocation2 + $0x58] sm:$0xff] }
 0xd6d   :  { %v10181_v33 = vpop.permute.xlu1 %10180 }
 0xd6e   :  { %v10183_v57 = vunpack.i.h.bf16 %v10181_v33  ;;  %v10182_v32 = vunpack.i.l.bf16 %v10181_v33  ;;  %v10176_v48 = vpop.permute.xlu0 %10175  ;;  %v10278_v33 = vld [vmem:[#allocation10 + $0x8] sm:$0xff]  }
 0xd6f   :  { %v10178_v20 = vunpack.i.h.bf16 %v10176_v48  ;;  %v10177_v8 = vunpack.i.l.bf16 %v10176_v48  ;;  %v10283_v48 = vld [vmem:[#allocation10 + $0x90] sm:$0xff]  }
 0xd70   :  { %v6764_v23 = vsel %vm6733_vm6, %v6731_v28, %v10182_v32  ;;  %v6765_v30 = vsel %vm6733_vm6, %v6732_v15, %v10183_v57  ;;  %v10282_v32 = vld [vmem:[#allocation10 + $0x10] sm:$0xff]   ;;  %v10284_v28 = vld [vmem:[#allocation10 + $0x58] sm:$0xff]  }
 0xd71   :  { %v6762_v62 = vsel %vm6733_vm6, %v6729_v35, %v10177_v8  ;;  %v6763_v40 = vsel %vm6733_vm6, %v6730_v12, %v10178_v20  ;;  %v6781_v41 = vpack.c.bf16 %v6765_v30, %v6764_v23  ;;  %v10285_v15 = vld [vmem:[#allocation10 + $0xd8] sm:$0xff]   ;;  %v10827_v20 = vld [vmem:[#allocation2 + $0x50] sm:$0xff]  ;;  %v10288_v30 = vld [vmem:[#allocation10 + $0x60] sm:$0xff]  }
 0xd72   :  { %v6780_v25 = vpack.c.bf16 %v6763_v40, %v6762_v62  ;;  %v10286_v12 = vld [vmem:[#allocation10 + $0x18] sm:$0xff]   ;;  %v10289_v62 = vld [vmem:[#allocation10 + $0xe0] sm:$0xff]  }
 0xd73   :  { %v10287_v23 = vld [vmem:[#allocation10 + $0x98] sm:$0xff]   ;;  %v10290_v40 = vld [vmem:[#allocation10 + $0x20] sm:$0xff]  }
 0xd74   :  { %9842 = vmatprep.mubr.bf16.mxu0 %v6780_v25  ;;  %v10292_v25 = vld [vmem:[#allocation10 + $0x68] sm:$0xff]  }
 0xd75   :  { %9843 = vmatmul.mubr.bf16.gmra.mrb[196].mxu0 %v6781_v41  ;;  %v10291_v41 = vld [vmem:[#allocation10 + $0xa0] sm:$0xff]  }
 0xd76   :  { %7472 = vmatprep.mubr.bf16.mxu0 %v14629_v27 }
 0xd91   :  { %v9816_v49 = vpop.f32.mrb[168].mxu0 }
 0xd92   :  { %v6880_v22 = vpop.f32.mrb[169].mxu0  ;;  %v13984_v2 = vadd.f32 %v10819_v6, %v9816_v49  ;;  %v10293_v49 = vld [vmem:[#allocation10 + $0xe8] sm:$0xff]   ;;  %v10301_v6 = vld [vmem:[#allocation10 + $0xf8] sm:$0xff]  }
 0xd93   :  { %v9817_v17 = vpop.f32.mrb[170].mxu0  ;;  %v13974_v42 = vadd.f32 %v10816_v56, %v6880_v22  ;;  %v10294_v22 = vld [vmem:[#allocation10 + $0x28] sm:$0xff]   ;;  %v10297_v56 = vld [vmem:[#allocation10 + $0xf0] sm:$0xff]  }
 0xd94   :  { %v6883_v60 = vpop.f32.mrb[171].mxu0  ;;  %v13982_v5 = vadd.f32 %v10818_v36, %v9817_v17  ;;  %v10295_v17 = vld [vmem:[#allocation10 + $0xa8] sm:$0xff]   ;;  %v10300_v36 = vld [vmem:[#allocation10 + $0x78] sm:$0xff]  }
 0xd95   :  { %v13976_v24 = vadd.f32 %v10817_v1, %v6883_v60  ;;  %v10296_v60 = vld [vmem:[#allocation10 + $0x70] sm:$0xff]  }
 0xd96   :  { %v7040_v21 = vpack.c.bf16 %v13982_v5, %v13984_v2  ;;  %v10298_v1 = vld [vmem:[#allocation10 + $0x30] sm:$0xff]  }
 0xd97   :  { %v7039_v44 = vpack.c.bf16 %v13976_v24, %v13974_v42 }
 0xd99   :  { %7280 = vmatmul.mubr.bf16.vlgmr.msra.gmra.mrb[184].mxu1 %v7039_v44  ;;  %7473 = vmatmul.mubr.bf16.vlgmr.msra.gmra.mrb[200].mxu0 %v7039_v44  ;;  %v10299_v44 = vld [vmem:[#allocation10 + $0xb0] sm:$0xff]  }
 0xd9a   :  { %7289 = vmatprep.mubr.bf16.mxu1 %v14629_v27  ;;  %7482 = vmatprep.mubr.bf16.mxu0 %v14629_v27 }
 0xd9b   :  { %9015 = vmatpush3.bf16.msra.mxu1 %v10274_v29  ;;  %9127 = vmatpush3.bf16.msra.mxu0 %v10275_v51 }
 0xd9c   :  { %9016 = vmatprep.subr.bf16.mxu1 %v10276_v3  ;;  %9128 = vmatprep.subr.bf16.mxu0 %v10277_v52  ;;  %v10832_v52 = vld [vmem:[#allocation2 + $0x88] sm:$0xff] }
 0xd9f   :  { %9017 = vmatpush3.bf16.msra.mxu1 %v10278_v33  ;;  %9129 = vmatpush3.bf16.msra.mxu0 %v10279_v31 }
 0xda0   :  { %9018 = vmatprep.subr.bf16.mxu1 %v10280_v18  ;;  %9130 = vmatprep.subr.bf16.mxu0 %v10281_v43  ;;  %v10834_v43 = vld [vmem:[#allocation2 + $0x98] sm:$0xff] }
 0xda1   :  { %7290 = vmatmul.mubr.bf16.gmra.mrb[188].mxu1 %v7040_v21  ;;  %7483 = vmatmul.mubr.bf16.gmra.mrb[204].mxu0 %v7040_v21  ;;  %v10302_v21 = vld [vmem:[#allocation10 + $0x38] sm:$0xff]  }
 0xda2   :  { %7299 = vmatprep.mubr.bf16.mxu1 %v14629_v27  ;;  %7492 = vmatprep.mubr.bf16.mxu0 %v14629_v27 }
 0xda3   :  { %9019 = vmatpush3.bf16.msra.mxu1 %v10282_v32  ;;  %9131 = vmatpush3.bf16.msra.mxu0 %v10283_v48 }
 0xda4   :  { %9020 = vmatprep.subr.bf16.mxu1 %v10284_v28  ;;  %9132 = vmatprep.subr.bf16.mxu0 %v10285_v15  ;;  %v10835_v28 = vld [vmem:[#allocation2 + $0x90] sm:$0xff] }
 0xda7   :  { %9021 = vmatpush3.bf16.msra.mxu1 %v10286_v12  ;;  %9133 = vmatpush3.bf16.msra.mxu0 %v10287_v23  ;;  %v10837_v23 = vld [vmem:[#allocation2 + $0xa0] sm:$0xff] }
 0xda8   :  { %9022 = vmatprep.subr.bf16.mxu1 %v10288_v30  ;;  %9134 = vmatprep.subr.bf16.mxu0 %v10289_v62 }
 0xdab   :  { %9023 = vmatpush3.bf16.msra.mxu1 %v10290_v40  ;;  %9135 = vmatpush3.bf16.msra.mxu0 %v10291_v41  ;;  %v10838_v40 = vld [vmem:[#allocation2 + $0xb8] sm:$0xff] }
 0xdac   :  { %9024 = vmatprep.subr.bf16.mxu1 %v10292_v25  ;;  %9136 = vmatprep.subr.bf16.mxu0 %v10293_v49  ;;  %v10839_v25 = vld [vmem:[#allocation2 + $0xb0] sm:$0xff] }
 0xdaf   :  { %9025 = vmatpush3.bf16.msra.mxu1 %v10294_v22  ;;  %9137 = vmatpush3.bf16.msra.mxu0 %v10295_v17 }
 0xdb0   :  { %9026 = vmatprep.subr.bf16.mxu1 %v10296_v60  ;;  %9138 = vmatprep.subr.bf16.mxu0 %v10297_v56 }
 0xdb3   :  { %9027 = vmatpush3.bf16.msra.mxu1 %v10298_v1  ;;  %9139 = vmatpush3.bf16.msra.mxu0 %v10299_v44  ;;  %v10840_v44 = vld [vmem:[#allocation2 + $0xc0] sm:$0xff] }
 0xdb4   :  { %9028 = vmatprep.subr.bf16.mxu1 %v10300_v36  ;;  %9140 = vmatprep.subr.bf16.mxu0 %v10301_v6  ;;  %v10841_v6 = vld [vmem:[#allocation2 + $0xc8] sm:$0xff] }
 0xdb7   :  { %9029 = vmatpush3.bf16.msra.mxu1 %v10302_v21 }
 0xdc2   :  { %v9820_v53 = vpop.f32.mrb[172].mxu0 }
 0xdc3   :  { %v6896_v13 = vpop.f32.mrb[173].mxu0  ;;  %v14000_v38 = vadd.f32 %v10823_v58, %v9820_v53  ;;  %v10303_v53 = vld [vmem:[#allocation10 + $0xb8] sm:$0xff]  }
 0xdc4   :  { %v9821_v63 = vpop.f32.mrb[174].mxu0  ;;  %v13990_v55 = vadd.f32 %v10820_v14, %v6896_v13  ;;  %9141 = vmatpush3.bf16.msra.mxu0 %v10303_v53 }
 0xdc5   :  { %v6899_v61 = vpop.f32.mrb[175].mxu0  ;;  %v13998_v0 = vadd.f32 %v10822_v39, %v9821_v63  ;;  %v10829_v39 = vld [vmem:[#allocation2 + $0x68] sm:$0xff] }
 0xdc6   :  { %v13992_v11 = vadd.f32 %v10821_v46, %v6899_v61  ;;  %v10828_v46 = vld [vmem:[#allocation2 + $0x60] sm:$0xff] }
 0xdc7   :  { %v7042_v26 = vpack.c.bf16 %v13998_v0, %v14000_v38 }
 0xdc8   :  { %v7041_v10 = vpack.c.bf16 %v13992_v11, %v13990_v55 }
 0xdca   :  { %7300 = vmatmul.mubr.bf16.gmra.mrb[192].mxu1 %v7041_v10  ;;  %7493 = vmatmul.mubr.bf16.gmra.mrb[208].mxu0 %v7041_v10 }
 0xdcb   :  { %7309 = vmatprep.mubr.bf16.mxu1 %v14629_v27  ;;  %7502 = vmatprep.mubr.bf16.mxu0 %v14629_v27 }
 0xdce   :  { %v9824_v7 = vpop.f32.mrb[176].mxu0 }
 0xdcf   :  { %v6912_v59 = vpop.f32.mrb[177].mxu0  ;;  %v14016_v8 = vadd.f32 %v10827_v20, %v9824_v7 }
 0xdd0   :  { %v9825_v50 = vpop.f32.mrb[178].mxu0  ;;  %v14008_v34 = vadd.f32 %v10825_v45, %v6912_v59  ;;  %v10830_v59 = vld [vmem:[#allocation2 + $0x78] sm:$0xff]  ;;  %v10833_v45 = vld [vmem:[#allocation2 + $0x80] sm:$0xff] }
 0xdd1   :  { %v6915_v47 = vpop.f32.mrb[179].mxu0  ;;  %v14014_v57 = vadd.f32 %v10826_v16, %v9825_v50  ;;  %v10831_v50 = vld [vmem:[#allocation2 + $0x70] sm:$0xff] }
 0xdd2   :  { %7310 = vmatmul.mubr.bf16.gmra.mrb[196].mxu1 %v7042_v26  ;;  %7503 = vmatmul.mubr.bf16.gmra.mrb[212].mxu0 %v7042_v26  ;;  %v14006_v19 = vadd.f32 %v10824_v54, %v6915_v47 }
 0xdd3   :  { %7319 = vmatprep.mubr.bf16.mxu1 %v14629_v27  ;;  %7512 = vmatprep.mubr.bf16.mxu0 %v14629_v27  ;;  %v7044_v35 = vpack.c.bf16 %v14014_v57, %v14016_v8 }
 0xdd4   :  { %v7043_v9 = vpack.c.bf16 %v14006_v19, %v14008_v34 }
 0xdda   :  { %7320 = vmatmul.mubr.bf16.gmra.mrb[200].mxu1 %v7043_v9  ;;  %7513 = vmatmul.mubr.bf16.gmra.mrb[216].mxu0 %v7043_v9 }
 0xddb   :  { %7329 = vmatprep.mubr.bf16.mxu1 %v14629_v27  ;;  %7522 = vmatprep.mubr.bf16.mxu0 %v14629_v27 }
 0xde2   :  { %7330 = vmatmul.mubr.bf16.gmra.mrb[204].mxu1 %v7044_v35  ;;  %7523 = vmatmul.mubr.bf16.gmra.mrb[220].mxu0 %v7044_v35  ;;  %v10836_v35 = vld [vmem:[#allocation2 + $0xa8] sm:$0xff] }
 0xde3   :  { %7339 = vmatprep.mubr.bf16.mxu1 %v14629_v27  ;;  %7532 = vmatprep.mubr.bf16.mxu0 %v14629_v27 }
 0xdfb   :  { %v9828_v13 = vpop.f32.mrb[180].mxu0 }
 0xdfc   :  { %v6928_v63 = vpop.f32.mrb[181].mxu0  ;;  %v14032_v47 = vadd.f32 %v10831_v50, %v9828_v13  ;;  %v10842_v13 = vld [vmem:[#allocation2 + $0xd8] sm:$0xff] }
 0xdfd   :  { %v9829_v61 = vpop.f32.mrb[182].mxu0  ;;  %v14022_v10 = vadd.f32 %v10828_v46, %v6928_v63 }
 0xdfe   :  { %v6931_v14 = vpop.f32.mrb[183].mxu0  ;;  %v14030_v26 = vadd.f32 %v10830_v59, %v9829_v61  ;;  %v10843_v61 = vld [vmem:[#allocation2 + $0xd0] sm:$0xff] }
 0xdff   :  { %v14024_v58 = vadd.f32 %v10829_v39, %v6931_v14 }
 0xe00   :  { %v7046_v29 = vpack.c.bf16 %v14030_v26, %v14032_v47 }
 0xe01   :  { %v7045_v7 = vpack.c.bf16 %v14024_v58, %v14022_v10 }
 0xe03   :  { %7340 = vmatmul.mubr.bf16.gmra.mrb[208].mxu1 %v7045_v7  ;;  %7533 = vmatmul.mubr.bf16.gmra.mrb[224].mxu0 %v7045_v7 }
 0xe04   :  { %7349 = vmatprep.mubr.bf16.mxu1 %v14629_v27  ;;  %7542 = vmatprep.mubr.bf16.mxu0 %v14629_v27 }
 0xe07   :  { %v9832_v4 = vpop.f32.mrb[184].mxu0 }
 0xe08   :  { %v6944_v37 = vpop.f32.mrb[185].mxu0  ;;  %v14048_v15 = vadd.f32 %v10835_v28, %v9832_v4  ;;  %v10844_v4 = vld [vmem:[#allocation2 + $0xe8] sm:$0xff] }
 0xe09   :  { %v9833_v51 = vpop.f32.mrb[186].mxu0  ;;  %v14040_v9 = vadd.f32 %v10833_v45, %v6944_v37 }
 0xe0a   :  { %v6947_v3 = vpop.f32.mrb[187].mxu0  ;;  %v14046_v16 = vadd.f32 %v10834_v43, %v9833_v51 }
 0xe0b   :  { %7350 = vmatmul.mubr.bf16.gmra.mrb[212].mxu1 %v7046_v29  ;;  %7543 = vmatmul.mubr.bf16.gmra.mrb[228].mxu0 %v7046_v29  ;;  %v14038_v54 = vadd.f32 %v10832_v52, %v6947_v3  ;;  %v10845_v29 = vld [vmem:[#allocation2 + $0xe0] sm:$0xff]  ;;  %v10846_v52 = vld [vmem:[#allocation2 + $0xf8] sm:$0xff] }
 0xe0c   :  { %7359 = vmatprep.mubr.bf16.mxu1 %v14629_v27  ;;  %7552 = vmatprep.mubr.bf16.mxu0 %v14629_v27  ;;  %v7048_v20 = vpack.c.bf16 %v14046_v16, %v14048_v15 }
 0xe0d   :  { %v7047_v33 = vpack.c.bf16 %v14038_v54, %v14040_v9 }
 0xe13   :  { %v9836_v31 = vpop.f32.mrb[188].mxu0  ;;  %7360 = vmatmul.mubr.bf16.gmra.mrb[216].mxu1 %v7047_v33  ;;  %7553 = vmatmul.mubr.bf16.gmra.mrb[232].mxu0 %v7047_v33  ;;  %v10847_v33 = vld [vmem:[#allocation2 + $0xf0] sm:$0xff] }
 0xe14   :  { %v6960_v18 = vpop.f32.mrb[189].mxu0  ;;  %7369 = vmatprep.mubr.bf16.mxu1 %v14629_v27  ;;  %7562 = vmatprep.mubr.bf16.mxu0 %v14629_v27  ;;  %v14064_v49 = vadd.f32 %v10839_v25, %v9836_v31 }
 0xe15   :  { %v9837_v32 = vpop.f32.mrb[190].mxu0  ;;  %v14056_v30 = vadd.f32 %v10837_v23, %v6960_v18 }
 0xe16   :  { %v6963_v48 = vpop.f32.mrb[191].mxu0  ;;  %v14062_v41 = vadd.f32 %v10838_v40, %v9837_v32 }
 0xe17   :  { %v14054_v12 = vadd.f32 %v10836_v35, %v6963_v48 }
 0xe18   :  { %v7050_v22 = vpack.c.bf16 %v14062_v41, %v14064_v49 }
 0xe19   :  { %v7049_v62 = vpack.c.bf16 %v14054_v12, %v14056_v30 }
 0xe1b   :  { %7370 = vmatmul.mubr.bf16.gmra.mrb[220].mxu1 %v7048_v20  ;;  %7563 = vmatmul.mubr.bf16.gmra.mrb[236].mxu0 %v7048_v20 }
 0xe1c   :  { %7379 = vmatprep.mubr.bf16.mxu1 %v14629_v27  ;;  %7572 = vmatprep.mubr.bf16.mxu0 %v14629_v27 }
 0xe23   :  { %7380 = vmatmul.mubr.bf16.gmra.mrb[224].mxu1 %v7049_v62  ;;  %7573 = vmatmul.mubr.bf16.gmra.mrb[240].mxu0 %v7049_v62 }
 0xe24   :  { %7389 = vmatprep.mubr.bf16.mxu1 %v14629_v27  ;;  %7582 = vmatprep.mubr.bf16.mxu0 %v14629_v27 }
 0xe2b   :  { %7390 = vmatmul.mubr.bf16.gmra.mrb[228].mxu1 %v7050_v22  ;;  %7583 = vmatmul.mubr.bf16.gmra.mrb[244].mxu0 %v7050_v22 }
 0xe2c   :  { %7399 = vmatprep.mubr.bf16.mxu1 %v14629_v27  ;;  %7592 = vmatprep.mubr.bf16.mxu0 %v14629_v27 }
 0xe3a   :  { %v9840_v17 = vpop.f32.mrb[192].mxu0 }
 0xe3b   :  { %v6976_v60 = vpop.f32.mrb[193].mxu0  ;;  %v14080_v14 = vadd.f32 %v10843_v61, %v9840_v17 }
 0xe3c   :  { %v9841_v56 = vpop.f32.mrb[194].mxu0  ;;  %v14070_v36 = vadd.f32 %v10840_v44, %v6976_v60 }
 0xe3d   :  { %v6979_v1 = vpop.f32.mrb[195].mxu0  ;;  %v14078_v63 = vadd.f32 %v10842_v13, %v9841_v56 }
 0xe3e   :  { %v14072_v21 = vadd.f32 %v10841_v6, %v6979_v1 }
 0xe3f   :  { %v7052_v46 = vpack.c.bf16 %v14078_v63, %v14080_v14 }
 0xe40   :  { %v7051_v53 = vpack.c.bf16 %v14072_v21, %v14070_v36 }
 0xe42   :  { %7400 = vmatmul.mubr.bf16.gmra.mrb[232].mxu1 %v7051_v53  ;;  %7593 = vmatmul.mubr.bf16.gmra.mrb[248].mxu0 %v7051_v53 }
 0xe43   :  { %7409 = vmatprep.mubr.bf16.mxu1 %v14629_v27  ;;  %7602 = vmatprep.mubr.bf16.mxu0 %v14629_v27 }
 0xe48   :  { %v9844_v39 = vpop.f32.mrb[196].mxu0 }
 0xe49   :  { %v6992_v7 = vpop.f32.mrb[197].mxu0  ;;  %v14096_v31 = vadd.f32 %v10847_v33, %v9844_v39 }
 0xe4a   :  { %v9845_v59 = vpop.f32.mrb[198].mxu0  ;;  %7410 = vmatmul.mubr.bf16.gmra.mrb[236].mxu1 %v7052_v46  ;;  %7603 = vmatmul.mubr.bf16.gmra.mrb[252].mxu0 %v7052_v46  ;;  %v14088_v51 = vadd.f32 %v10845_v29, %v6992_v7 }
 0xe4b   :  { %v6995_v50 = vpop.f32.mrb[199].mxu0  ;;  %7419 = vmatprep.mubr.bf16.mxu1 %v14629_v27  ;;  %7612 = vmatprep.mubr.bf16.mxu0 %v14629_v27  ;;  %v14094_v45 = vadd.f32 %v10846_v52, %v9845_v59 }
 0xe4c   :  { %v14086_v37 = vadd.f32 %v10844_v4, %v6995_v50 }
 0xe4d   :  { %v7054_v18 = vpack.c.bf16 %v14094_v45, %v14096_v31 }
 0xe4e   :  { %v7053_v3 = vpack.c.bf16 %v14086_v37, %v14088_v51 }
 0xe52   :  { %7420 = vmatmul.mubr.bf16.gmra.mrb[240].mxu1 %v7053_v3  ;;  %7613 = vmatmul.mubr.bf16.gmra.mrb[0].mxu0 %v7053_v3 }
 0xe53   :  { %7429 = vmatprep.mubr.bf16.mxu1 %v14629_v27  ;;  %7622 = vmatprep.mubr.bf16.mxu0 %v14629_v27 }
 0xe5a   :  { %7430 = vmatmul.mubr.bf16.gmra.mrb[244].mxu1 %v7054_v18  ;;  %7623 = vmatmul.mubr.bf16.gmra.mrb[4].mxu0 %v7054_v18 }
 0xe6c   :  { %v7281_v43 = vpop.f32.mrb[184].mxu1  ;;  %v7474_v32 = vpop.f32.mrb[200].mxu0 }
 0xe6d   :  { %v7283_v48 = vpop.f32.mrb[185].mxu1  ;;  %v7476_v28 = vpop.f32.mrb[201].mxu0  ;;  %v7633_v23 = vmax.f32 %v7281_v43, 0.0  ;;  %v7635_v62 = vmax.f32 %v7474_v32, 0.0 }
 0xe6e   :  { %v7285_v20 = vpop.f32.mrb[186].mxu1  ;;  %v7478_v35 = vpop.f32.mrb[202].mxu0  ;;  %v7634_v17 = vmax.f32 %v7283_v48, 0.0  ;;  %v7636_v60 = vmax.f32 %v7476_v28, 0.0 }
 0xe6f   :  { %v7637_v27 = vmax.f32 %v7285_v20, 0.0  ;;  %v7639_v40 = vmax.f32 %v7478_v35, 0.0  ;;  %v7287_v25 = vpop.f32.mrb[187].mxu1  ;;  %v7480_v22 = vpop.f32.mrb[203].mxu0 }
 0xe70   :  { %v7638_v56 = vmax.f32 %v7287_v25, 0.0  ;;  %v7640_v1 = vmax.f32 %v7480_v22, 0.0 }
 0xe71   :  { %v7761_v44 = vpack.c.bf16 %v7637_v27, %v7633_v23  ;;  %v7763_v6 = vpack.c.bf16 %v7639_v40, %v7635_v62 }
 0xe72   :  { %v7762_v53 = vpack.c.bf16 %v7638_v56, %v7634_v17  ;;  %v7764_v13 = vpack.c.bf16 %v7640_v1, %v7636_v60 }
 0xe74   :  { %v7291_v61 = vpop.f32.mrb[188].mxu1  ;;  %v7484_v46 = vpop.f32.mrb[204].mxu0  ;;  %8113 = vmatprep.mubr.bf16.mxu1 %v7762_v53  ;;  %8274 = vmatprep.mubr.bf16.mxu0 %v7764_v13 }
 0xe75   :  { %v7293_v39 = vpop.f32.mrb[189].mxu1  ;;  %v7486_v7 = vpop.f32.mrb[205].mxu0  ;;  %8114 = vmatmul.mubr.bf16.vlgmr.msra.gmra.mrb[248].mxu1 %v7761_v44  ;;  %8275 = vmatmul.mubr.bf16.vlgmr.msra.gmra.mrb[8].mxu0 %v7763_v6  ;;  %v7641_v4 = vmax.f32 %v7291_v61, 0.0  ;;  %v7643_v29 = vmax.f32 %v7484_v46, 0.0 }
 0xe76   :  { %v7295_v59 = vpop.f32.mrb[190].mxu1  ;;  %v7488_v50 = vpop.f32.mrb[206].mxu0  ;;  %v7642_v43 = vmax.f32 %v7293_v39, 0.0  ;;  %v7644_v32 = vmax.f32 %v7486_v7, 0.0 }
 0xe77   :  { %v7645_v3 = vmax.f32 %v7295_v59, 0.0  ;;  %v7647_v52 = vmax.f32 %v7488_v50, 0.0  ;;  %v7297_v33 = vpop.f32.mrb[191].mxu1  ;;  %v7490_v18 = vpop.f32.mrb[207].mxu0 }
 0xe78   :  { %v7646_v48 = vmax.f32 %v7297_v33, 0.0  ;;  %v7648_v28 = vmax.f32 %v7490_v18, 0.0 }
 0xe79   :  { %v7765_v20 = vpack.c.bf16 %v7645_v3, %v7641_v4  ;;  %v7767_v35 = vpack.c.bf16 %v7647_v52, %v7643_v29 }
 0xe7a   :  { %v7766_v23 = vpack.c.bf16 %v7646_v48, %v7642_v43  ;;  %v7768_v62 = vpack.c.bf16 %v7648_v28, %v7644_v32 }
 0xe7c   :  { %8121 = vmatprep.mubr.bf16.mxu1 %v7766_v23  ;;  %8282 = vmatprep.mubr.bf16.mxu0 %v7768_v62 }
 0xe7d   :  { %8122 = vmatmul.mubr.bf16.gmra.mrb[252].mxu1 %v7765_v20  ;;  %8283 = vmatmul.mubr.bf16.gmra.mrb[12].mxu0 %v7767_v35 }
 0xe9d   :  { %v7301_v27 = vpop.f32.mrb[192].mxu1  ;;  %v7494_v40 = vpop.f32.mrb[208].mxu0 }
 0xe9e   :  { %v7303_v25 = vpop.f32.mrb[193].mxu1  ;;  %v7496_v22 = vpop.f32.mrb[209].mxu0  ;;  %v7649_v56 = vmax.f32 %v7301_v27, 0.0  ;;  %v7651_v1 = vmax.f32 %v7494_v40, 0.0 }
 0xe9f   :  { %v7305_v17 = vpop.f32.mrb[194].mxu1  ;;  %v7498_v60 = vpop.f32.mrb[210].mxu0  ;;  %v7650_v61 = vmax.f32 %v7303_v25, 0.0  ;;  %v7652_v46 = vmax.f32 %v7496_v22, 0.0 }
 0xea0   :  { %v7653_v44 = vmax.f32 %v7305_v17, 0.0  ;;  %v7655_v6 = vmax.f32 %v7498_v60, 0.0  ;;  %v7307_v53 = vpop.f32.mrb[195].mxu1  ;;  %v7500_v13 = vpop.f32.mrb[211].mxu0 }
 0xea1   :  { %v7654_v39 = vmax.f32 %v7307_v53, 0.0  ;;  %v7656_v7 = vmax.f32 %v7500_v13, 0.0 }
 0xea2   :  { %v7769_v59 = vpack.c.bf16 %v7653_v44, %v7649_v56  ;;  %v7771_v50 = vpack.c.bf16 %v7655_v6, %v7651_v1 }
 0xea3   :  { %v7770_v4 = vpack.c.bf16 %v7654_v39, %v7650_v61  ;;  %v7772_v29 = vpack.c.bf16 %v7656_v7, %v7652_v46 }
 0xea5   :  { %v7311_v3 = vpop.f32.mrb[196].mxu1  ;;  %v7504_v52 = vpop.f32.mrb[212].mxu0  ;;  %8129 = vmatprep.mubr.bf16.mxu1 %v7770_v4  ;;  %8290 = vmatprep.mubr.bf16.mxu0 %v7772_v29 }
 0xea6   :  { %v7313_v33 = vpop.f32.mrb[197].mxu1  ;;  %v7506_v18 = vpop.f32.mrb[213].mxu0  ;;  %8130 = vmatmul.mubr.bf16.gmra.mrb[0].mxu1 %v7769_v59  ;;  %8291 = vmatmul.mubr.bf16.gmra.mrb[16].mxu0 %v7771_v50  ;;  %v7657_v48 = vmax.f32 %v7311_v3, 0.0  ;;  %v7659_v28 = vmax.f32 %v7504_v52, 0.0 }
 0xea7   :  { %v7315_v43 = vpop.f32.mrb[198].mxu1  ;;  %v7508_v32 = vpop.f32.mrb[214].mxu0  ;;  %v7658_v27 = vmax.f32 %v7313_v33, 0.0  ;;  %v7660_v40 = vmax.f32 %v7506_v18, 0.0 }
 0xea8   :  { %v7661_v20 = vmax.f32 %v7315_v43, 0.0  ;;  %v7663_v35 = vmax.f32 %v7508_v32, 0.0  ;;  %v7317_v23 = vpop.f32.mrb[199].mxu1  ;;  %v7510_v62 = vpop.f32.mrb[215].mxu0 }
 0xea9   :  { %v7662_v25 = vmax.f32 %v7317_v23, 0.0  ;;  %v7664_v22 = vmax.f32 %v7510_v62, 0.0 }
 0xeaa   :  { %v7773_v17 = vpack.c.bf16 %v7661_v20, %v7657_v48  ;;  %v7775_v60 = vpack.c.bf16 %v7663_v35, %v7659_v28 }
 0xeab   :  { %v7774_v56 = vpack.c.bf16 %v7662_v25, %v7658_v27  ;;  %v7776_v1 = vpack.c.bf16 %v7664_v22, %v7660_v40 }
 0xead   :  { %v7321_v44 = vpop.f32.mrb[200].mxu1  ;;  %v7514_v6 = vpop.f32.mrb[216].mxu0  ;;  %8137 = vmatprep.mubr.bf16.mxu1 %v7774_v56  ;;  %8298 = vmatprep.mubr.bf16.mxu0 %v7776_v1 }
 0xeae   :  { %v7323_v53 = vpop.f32.mrb[201].mxu1  ;;  %v7516_v13 = vpop.f32.mrb[217].mxu0  ;;  %8138 = vmatmul.mubr.bf16.gmra.mrb[4].mxu1 %v7773_v17  ;;  %8299 = vmatmul.mubr.bf16.gmra.mrb[20].mxu0 %v7775_v60  ;;  %v7665_v39 = vmax.f32 %v7321_v44, 0.0  ;;  %v7667_v7 = vmax.f32 %v7514_v6, 0.0 }
 0xeaf   :  { %v7325_v61 = vpop.f32.mrb[202].mxu1  ;;  %v7518_v46 = vpop.f32.mrb[218].mxu0  ;;  %v7666_v3 = vmax.f32 %v7323_v53, 0.0  ;;  %v7668_v52 = vmax.f32 %v7516_v13, 0.0 }
 0xeb0   :  { %v7669_v59 = vmax.f32 %v7325_v61, 0.0  ;;  %v7671_v50 = vmax.f32 %v7518_v46, 0.0  ;;  %v7327_v4 = vpop.f32.mrb[203].mxu1  ;;  %v7520_v29 = vpop.f32.mrb[219].mxu0 }
 0xeb1   :  { %v7670_v33 = vmax.f32 %v7327_v4, 0.0  ;;  %v7672_v18 = vmax.f32 %v7520_v29, 0.0 }
 0xeb2   :  { %v7777_v43 = vpack.c.bf16 %v7669_v59, %v7665_v39  ;;  %v7779_v32 = vpack.c.bf16 %v7671_v50, %v7667_v7 }
 0xeb3   :  { %v7778_v48 = vpack.c.bf16 %v7670_v33, %v7666_v3  ;;  %v7780_v28 = vpack.c.bf16 %v7672_v18, %v7668_v52 }
 0xeb5   :  { %v7331_v20 = vpop.f32.mrb[204].mxu1  ;;  %v7524_v35 = vpop.f32.mrb[220].mxu0  ;;  %8145 = vmatprep.mubr.bf16.mxu1 %v7778_v48  ;;  %8306 = vmatprep.mubr.bf16.mxu0 %v7780_v28 }
 0xeb6   :  { %v7333_v23 = vpop.f32.mrb[205].mxu1  ;;  %v7526_v62 = vpop.f32.mrb[221].mxu0  ;;  %8146 = vmatmul.mubr.bf16.gmra.mrb[8].mxu1 %v7777_v43  ;;  %8307 = vmatmul.mubr.bf16.gmra.mrb[24].mxu0 %v7779_v32  ;;  %v7673_v25 = vmax.f32 %v7331_v20, 0.0  ;;  %v7675_v22 = vmax.f32 %v7524_v35, 0.0 }
 0xeb7   :  { %v7335_v27 = vpop.f32.mrb[206].mxu1  ;;  %v7528_v40 = vpop.f32.mrb[222].mxu0  ;;  %v7674_v44 = vmax.f32 %v7333_v23, 0.0  ;;  %v7676_v6 = vmax.f32 %v7526_v62, 0.0 }
 0xeb8   :  { %v7677_v17 = vmax.f32 %v7335_v27, 0.0  ;;  %v7679_v60 = vmax.f32 %v7528_v40, 0.0  ;;  %v7337_v56 = vpop.f32.mrb[207].mxu1  ;;  %v7530_v1 = vpop.f32.mrb[223].mxu0 }
 0xeb9   :  { %v7678_v53 = vmax.f32 %v7337_v56, 0.0  ;;  %v7680_v13 = vmax.f32 %v7530_v1, 0.0 }
 0xeba   :  { %v7781_v61 = vpack.c.bf16 %v7677_v17, %v7673_v25  ;;  %v7783_v46 = vpack.c.bf16 %v7679_v60, %v7675_v22 }
 0xebb   :  { %v7782_v39 = vpack.c.bf16 %v7678_v53, %v7674_v44  ;;  %v7784_v7 = vpack.c.bf16 %v7680_v13, %v7676_v6 }
 0xebd   :  { %8153 = vmatprep.mubr.bf16.mxu1 %v7782_v39  ;;  %8314 = vmatprep.mubr.bf16.mxu0 %v7784_v7 }
 0xebe   :  { %8154 = vmatmul.mubr.bf16.gmra.mrb[12].mxu1 %v7781_v61  ;;  %8315 = vmatmul.mubr.bf16.gmra.mrb[28].mxu0 %v7783_v46 }
 0xed6   :  { %v7341_v59 = vpop.f32.mrb[208].mxu1  ;;  %v7534_v50 = vpop.f32.mrb[224].mxu0 }
 0xed7   :  { %v7343_v4 = vpop.f32.mrb[209].mxu1  ;;  %v7536_v29 = vpop.f32.mrb[225].mxu0  ;;  %v7681_v33 = vmax.f32 %v7341_v59, 0.0  ;;  %v7683_v18 = vmax.f32 %v7534_v50, 0.0 }
 0xed8   :  { %v7345_v3 = vpop.f32.mrb[210].mxu1  ;;  %v7538_v52 = vpop.f32.mrb[226].mxu0  ;;  %v7682_v20 = vmax.f32 %v7343_v4, 0.0  ;;  %v7684_v35 = vmax.f32 %v7536_v29, 0.0 }
 0xed9   :  { %v7685_v43 = vmax.f32 %v7345_v3, 0.0  ;;  %v7687_v32 = vmax.f32 %v7538_v52, 0.0  ;;  %v7347_v48 = vpop.f32.mrb[211].mxu1  ;;  %v7540_v28 = vpop.f32.mrb[227].mxu0 }
 0xeda   :  { %v7686_v23 = vmax.f32 %v7347_v48, 0.0  ;;  %v7688_v62 = vmax.f32 %v7540_v28, 0.0 }
 0xedb   :  { %v7785_v27 = vpack.c.bf16 %v7685_v43, %v7681_v33  ;;  %v7787_v40 = vpack.c.bf16 %v7687_v32, %v7683_v18 }
 0xedc   :  { %v7786_v25 = vpack.c.bf16 %v7686_v23, %v7682_v20  ;;  %v7788_v22 = vpack.c.bf16 %v7688_v62, %v7684_v35 }
 0xede   :  { %v7351_v17 = vpop.f32.mrb[212].mxu1  ;;  %v7544_v60 = vpop.f32.mrb[228].mxu0  ;;  %8161 = vmatprep.mubr.bf16.mxu1 %v7786_v25  ;;  %8322 = vmatprep.mubr.bf16.mxu0 %v7788_v22 }
 0xedf   :  { %v7353_v56 = vpop.f32.mrb[213].mxu1  ;;  %v7546_v1 = vpop.f32.mrb[229].mxu0  ;;  %8162 = vmatmul.mubr.bf16.gmra.mrb[16].mxu1 %v7785_v27  ;;  %8323 = vmatmul.mubr.bf16.gmra.mrb[32].mxu0 %v7787_v40  ;;  %v7689_v53 = vmax.f32 %v7351_v17, 0.0  ;;  %v7691_v13 = vmax.f32 %v7544_v60, 0.0 }
 0xee0   :  { %v7355_v44 = vpop.f32.mrb[214].mxu1  ;;  %v7548_v6 = vpop.f32.mrb[230].mxu0  ;;  %v7690_v59 = vmax.f32 %v7353_v56, 0.0  ;;  %v7692_v50 = vmax.f32 %v7546_v1, 0.0 }
 0xee1   :  { %v7693_v61 = vmax.f32 %v7355_v44, 0.0  ;;  %v7695_v46 = vmax.f32 %v7548_v6, 0.0  ;;  %v7357_v39 = vpop.f32.mrb[215].mxu1  ;;  %v7550_v7 = vpop.f32.mrb[231].mxu0 }
 0xee2   :  { %v7694_v4 = vmax.f32 %v7357_v39, 0.0  ;;  %v7696_v29 = vmax.f32 %v7550_v7, 0.0 }
 0xee3   :  { %v7789_v3 = vpack.c.bf16 %v7693_v61, %v7689_v53  ;;  %v7791_v52 = vpack.c.bf16 %v7695_v46, %v7691_v13 }
 0xee4   :  { %v7790_v33 = vpack.c.bf16 %v7694_v4, %v7690_v59  ;;  %v7792_v18 = vpack.c.bf16 %v7696_v29, %v7692_v50 }
 0xee6   :  { %v7361_v43 = vpop.f32.mrb[216].mxu1  ;;  %v7554_v32 = vpop.f32.mrb[232].mxu0  ;;  %8169 = vmatprep.mubr.bf16.mxu1 %v7790_v33  ;;  %8330 = vmatprep.mubr.bf16.mxu0 %v7792_v18 }
 0xee7   :  { %v7363_v48 = vpop.f32.mrb[217].mxu1  ;;  %v7556_v28 = vpop.f32.mrb[233].mxu0  ;;  %8170 = vmatmul.mubr.bf16.gmra.mrb[20].mxu1 %v7789_v3  ;;  %8331 = vmatmul.mubr.bf16.gmra.mrb[36].mxu0 %v7791_v52  ;;  %v7697_v23 = vmax.f32 %v7361_v43, 0.0  ;;  %v7699_v62 = vmax.f32 %v7554_v32, 0.0 }
 0xee8   :  { %v7365_v20 = vpop.f32.mrb[218].mxu1  ;;  %v7558_v35 = vpop.f32.mrb[234].mxu0  ;;  %v7698_v17 = vmax.f32 %v7363_v48, 0.0  ;;  %v7700_v60 = vmax.f32 %v7556_v28, 0.0 }
 0xee9   :  { %v7701_v27 = vmax.f32 %v7365_v20, 0.0  ;;  %v7703_v40 = vmax.f32 %v7558_v35, 0.0  ;;  %v7367_v25 = vpop.f32.mrb[219].mxu1  ;;  %v7560_v22 = vpop.f32.mrb[235].mxu0 }
 0xeea   :  { %v7702_v56 = vmax.f32 %v7367_v25, 0.0  ;;  %v7704_v1 = vmax.f32 %v7560_v22, 0.0 }
 0xeeb   :  { %v7793_v44 = vpack.c.bf16 %v7701_v27, %v7697_v23  ;;  %v7795_v6 = vpack.c.bf16 %v7703_v40, %v7699_v62 }
 0xeec   :  { %v7794_v53 = vpack.c.bf16 %v7702_v56, %v7698_v17  ;;  %v7796_v13 = vpack.c.bf16 %v7704_v1, %v7700_v60 }
 0xeee   :  { %v7371_v61 = vpop.f32.mrb[220].mxu1  ;;  %v7564_v46 = vpop.f32.mrb[236].mxu0  ;;  %8177 = vmatprep.mubr.bf16.mxu1 %v7794_v53  ;;  %8338 = vmatprep.mubr.bf16.mxu0 %v7796_v13 }
 0xeef   :  { %v7373_v39 = vpop.f32.mrb[221].mxu1  ;;  %v7566_v7 = vpop.f32.mrb[237].mxu0  ;;  %8178 = vmatmul.mubr.bf16.gmra.mrb[24].mxu1 %v7793_v44  ;;  %8339 = vmatmul.mubr.bf16.gmra.mrb[40].mxu0 %v7795_v6  ;;  %v7705_v4 = vmax.f32 %v7371_v61, 0.0  ;;  %v7707_v29 = vmax.f32 %v7564_v46, 0.0 }
 0xef0   :  { %v7375_v59 = vpop.f32.mrb[222].mxu1  ;;  %v7568_v50 = vpop.f32.mrb[238].mxu0  ;;  %v7706_v43 = vmax.f32 %v7373_v39, 0.0  ;;  %v7708_v32 = vmax.f32 %v7566_v7, 0.0 }
 0xef1   :  { %v7709_v3 = vmax.f32 %v7375_v59, 0.0  ;;  %v7711_v52 = vmax.f32 %v7568_v50, 0.0  ;;  %v7377_v33 = vpop.f32.mrb[223].mxu1  ;;  %v7570_v18 = vpop.f32.mrb[239].mxu0 }
 0xef2   :  { %v7710_v48 = vmax.f32 %v7377_v33, 0.0  ;;  %v7712_v28 = vmax.f32 %v7570_v18, 0.0 }
 0xef3   :  { %v7797_v20 = vpack.c.bf16 %v7709_v3, %v7705_v4  ;;  %v7799_v35 = vpack.c.bf16 %v7711_v52, %v7707_v29 }
 0xef4   :  { %v7798_v23 = vpack.c.bf16 %v7710_v48, %v7706_v43  ;;  %v7800_v62 = vpack.c.bf16 %v7712_v28, %v7708_v32 }
 0xef6   :  { %v7381_v27 = vpop.f32.mrb[224].mxu1  ;;  %v7574_v40 = vpop.f32.mrb[240].mxu0  ;;  %8185 = vmatprep.mubr.bf16.mxu1 %v7798_v23  ;;  %8346 = vmatprep.mubr.bf16.mxu0 %v7800_v62 }
 0xef7   :  { %v7383_v25 = vpop.f32.mrb[225].mxu1  ;;  %v7576_v22 = vpop.f32.mrb[241].mxu0  ;;  %8186 = vmatmul.mubr.bf16.gmra.mrb[28].mxu1 %v7797_v20  ;;  %8347 = vmatmul.mubr.bf16.gmra.mrb[44].mxu0 %v7799_v35  ;;  %v7713_v56 = vmax.f32 %v7381_v27, 0.0  ;;  %v7715_v1 = vmax.f32 %v7574_v40, 0.0 }
 0xef8   :  { %v7385_v17 = vpop.f32.mrb[226].mxu1  ;;  %v7578_v60 = vpop.f32.mrb[242].mxu0  ;;  %v7714_v61 = vmax.f32 %v7383_v25, 0.0  ;;  %v7716_v46 = vmax.f32 %v7576_v22, 0.0 }
 0xef9   :  { %v7717_v44 = vmax.f32 %v7385_v17, 0.0  ;;  %v7719_v6 = vmax.f32 %v7578_v60, 0.0  ;;  %v7387_v53 = vpop.f32.mrb[227].mxu1  ;;  %v7580_v13 = vpop.f32.mrb[243].mxu0 }
 0xefa   :  { %v7718_v39 = vmax.f32 %v7387_v53, 0.0  ;;  %v7720_v7 = vmax.f32 %v7580_v13, 0.0 }
 0xefb   :  { %v7801_v59 = vpack.c.bf16 %v7717_v44, %v7713_v56  ;;  %v7803_v50 = vpack.c.bf16 %v7719_v6, %v7715_v1 }
 0xefc   :  { %v7802_v4 = vpack.c.bf16 %v7718_v39, %v7714_v61  ;;  %v7804_v29 = vpack.c.bf16 %v7720_v7, %v7716_v46 }
 0xefe   :  { %v7391_v3 = vpop.f32.mrb[228].mxu1  ;;  %v7584_v52 = vpop.f32.mrb[244].mxu0  ;;  %8193 = vmatprep.mubr.bf16.mxu1 %v7802_v4  ;;  %8354 = vmatprep.mubr.bf16.mxu0 %v7804_v29 }
 0xeff   :  { %v7393_v33 = vpop.f32.mrb[229].mxu1  ;;  %v7586_v18 = vpop.f32.mrb[245].mxu0  ;;  %8194 = vmatmul.mubr.bf16.gmra.mrb[32].mxu1 %v7801_v59  ;;  %8355 = vmatmul.mubr.bf16.gmra.mrb[48].mxu0 %v7803_v50  ;;  %v7721_v48 = vmax.f32 %v7391_v3, 0.0  ;;  %v7723_v28 = vmax.f32 %v7584_v52, 0.0 }
 0xf00   :  { %v7395_v43 = vpop.f32.mrb[230].mxu1  ;;  %v7588_v32 = vpop.f32.mrb[246].mxu0  ;;  %v7722_v27 = vmax.f32 %v7393_v33, 0.0  ;;  %v7724_v40 = vmax.f32 %v7586_v18, 0.0 }
 0xf01   :  { %v7725_v20 = vmax.f32 %v7395_v43, 0.0  ;;  %v7727_v35 = vmax.f32 %v7588_v32, 0.0  ;;  %v7397_v23 = vpop.f32.mrb[231].mxu1  ;;  %v7590_v62 = vpop.f32.mrb[247].mxu0 }
 0xf02   :  { %v7726_v25 = vmax.f32 %v7397_v23, 0.0  ;;  %v7728_v22 = vmax.f32 %v7590_v62, 0.0 }
 0xf03   :  { %v7805_v17 = vpack.c.bf16 %v7725_v20, %v7721_v48  ;;  %v7807_v60 = vpack.c.bf16 %v7727_v35, %v7723_v28 }
 0xf04   :  { %v7806_v56 = vpack.c.bf16 %v7726_v25, %v7722_v27  ;;  %v7808_v1 = vpack.c.bf16 %v7728_v22, %v7724_v40 }
 0xf06   :  { %8201 = vmatprep.mubr.bf16.mxu1 %v7806_v56  ;;  %8362 = vmatprep.mubr.bf16.mxu0 %v7808_v1 }
 0xf07   :  { %8202 = vmatmul.mubr.bf16.gmra.mrb[36].mxu1 %v7805_v17  ;;  %8363 = vmatmul.mubr.bf16.gmra.mrb[52].mxu0 %v7807_v60 }
 0xf15   :  { %v7401_v44 = vpop.f32.mrb[232].mxu1  ;;  %v7594_v6 = vpop.f32.mrb[248].mxu0 }
 0xf16   :  { %v7403_v53 = vpop.f32.mrb[233].mxu1  ;;  %v7596_v13 = vpop.f32.mrb[249].mxu0  ;;  %v7729_v39 = vmax.f32 %v7401_v44, 0.0  ;;  %v7731_v7 = vmax.f32 %v7594_v6, 0.0 }
 0xf17   :  { %v7405_v61 = vpop.f32.mrb[234].mxu1  ;;  %v7598_v46 = vpop.f32.mrb[250].mxu0  ;;  %v7730_v3 = vmax.f32 %v7403_v53, 0.0  ;;  %v7732_v52 = vmax.f32 %v7596_v13, 0.0 }
 0xf18   :  { %v7733_v59 = vmax.f32 %v7405_v61, 0.0  ;;  %v7735_v50 = vmax.f32 %v7598_v46, 0.0  ;;  %v7407_v4 = vpop.f32.mrb[235].mxu1  ;;  %v7600_v29 = vpop.f32.mrb[251].mxu0 }
 0xf19   :  { %v7734_v33 = vmax.f32 %v7407_v4, 0.0  ;;  %v7736_v18 = vmax.f32 %v7600_v29, 0.0 }
 0xf1a   :  { %v7809_v43 = vpack.c.bf16 %v7733_v59, %v7729_v39  ;;  %v7811_v32 = vpack.c.bf16 %v7735_v50, %v7731_v7 }
 0xf1b   :  { %v7810_v48 = vpack.c.bf16 %v7734_v33, %v7730_v3  ;;  %v7812_v28 = vpack.c.bf16 %v7736_v18, %v7732_v52 }
 0xf1d   :  { %v7411_v20 = vpop.f32.mrb[236].mxu1  ;;  %v7604_v35 = vpop.f32.mrb[252].mxu0  ;;  %8209 = vmatprep.mubr.bf16.mxu1 %v7810_v48  ;;  %8370 = vmatprep.mubr.bf16.mxu0 %v7812_v28 }
 0xf1e   :  { %v7413_v23 = vpop.f32.mrb[237].mxu1  ;;  %v7606_v62 = vpop.f32.mrb[253].mxu0  ;;  %8210 = vmatmul.mubr.bf16.gmra.mrb[40].mxu1 %v7809_v43  ;;  %8371 = vmatmul.mubr.bf16.gmra.mrb[56].mxu0 %v7811_v32  ;;  %v7737_v25 = vmax.f32 %v7411_v20, 0.0  ;;  %v7739_v22 = vmax.f32 %v7604_v35, 0.0 }
 0xf1f   :  { %v7415_v27 = vpop.f32.mrb[238].mxu1  ;;  %v7608_v40 = vpop.f32.mrb[254].mxu0  ;;  %v7738_v44 = vmax.f32 %v7413_v23, 0.0  ;;  %v7740_v6 = vmax.f32 %v7606_v62, 0.0 }
 0xf20   :  { %v7741_v17 = vmax.f32 %v7415_v27, 0.0  ;;  %v7743_v60 = vmax.f32 %v7608_v40, 0.0  ;;  %v7417_v56 = vpop.f32.mrb[239].mxu1  ;;  %v7610_v1 = vpop.f32.mrb[255].mxu0 }
 0xf21   :  { %v7742_v53 = vmax.f32 %v7417_v56, 0.0  ;;  %v7744_v13 = vmax.f32 %v7610_v1, 0.0 }
 0xf22   :  { %v7813_v61 = vpack.c.bf16 %v7741_v17, %v7737_v25  ;;  %v7815_v46 = vpack.c.bf16 %v7743_v60, %v7739_v22 }
 0xf23   :  { %v7814_v39 = vpack.c.bf16 %v7742_v53, %v7738_v44  ;;  %v7816_v7 = vpack.c.bf16 %v7744_v13, %v7740_v6 }
 0xf25   :  { %v7421_v59 = vpop.f32.mrb[240].mxu1  ;;  %v7614_v50 = vpop.f32.mrb[0].mxu0  ;;  %8217 = vmatprep.mubr.bf16.mxu1 %v7814_v39  ;;  %8378 = vmatprep.mubr.bf16.mxu0 %v7816_v7 }
 0xf26   :  { %v7423_v4 = vpop.f32.mrb[241].mxu1  ;;  %v7616_v29 = vpop.f32.mrb[1].mxu0  ;;  %8218 = vmatmul.mubr.bf16.gmra.mrb[44].mxu1 %v7813_v61  ;;  %8379 = vmatmul.mubr.bf16.gmra.mrb[60].mxu0 %v7815_v46  ;;  %v7745_v33 = vmax.f32 %v7421_v59, 0.0  ;;  %v7747_v18 = vmax.f32 %v7614_v50, 0.0 }
 0xf27   :  { %v7425_v3 = vpop.f32.mrb[242].mxu1  ;;  %v7618_v52 = vpop.f32.mrb[2].mxu0  ;;  %v7746_v20 = vmax.f32 %v7423_v4, 0.0  ;;  %v7748_v35 = vmax.f32 %v7616_v29, 0.0 }
 0xf28   :  { %v7749_v43 = vmax.f32 %v7425_v3, 0.0  ;;  %v7751_v32 = vmax.f32 %v7618_v52, 0.0  ;;  %v7427_v48 = vpop.f32.mrb[243].mxu1  ;;  %v7620_v28 = vpop.f32.mrb[3].mxu0 }
 0xf29   :  { %v7750_v23 = vmax.f32 %v7427_v48, 0.0  ;;  %v7752_v62 = vmax.f32 %v7620_v28, 0.0 }
 0xf2a   :  { %v7817_v27 = vpack.c.bf16 %v7749_v43, %v7745_v33  ;;  %v7819_v40 = vpack.c.bf16 %v7751_v32, %v7747_v18 }
 0xf2b   :  { %v7818_v25 = vpack.c.bf16 %v7750_v23, %v7746_v20  ;;  %v7820_v22 = vpack.c.bf16 %v7752_v62, %v7748_v35 }
 0xf2d   :  { %v7431_v17 = vpop.f32.mrb[244].mxu1  ;;  %v7624_v60 = vpop.f32.mrb[4].mxu0  ;;  %8225 = vmatprep.mubr.bf16.mxu1 %v7818_v25  ;;  %8386 = vmatprep.mubr.bf16.mxu0 %v7820_v22 }
 0xf2e   :  { %v7433_v56 = vpop.f32.mrb[245].mxu1  ;;  %v7626_v1 = vpop.f32.mrb[5].mxu0  ;;  %8226 = vmatmul.mubr.bf16.gmra.mrb[48].mxu1 %v7817_v27  ;;  %8387 = vmatmul.mubr.bf16.gmra.mrb[64].mxu0 %v7819_v40  ;;  %v7753_v53 = vmax.f32 %v7431_v17, 0.0  ;;  %v7755_v13 = vmax.f32 %v7624_v60, 0.0 }
 0xf2f   :  { %v7435_v44 = vpop.f32.mrb[246].mxu1  ;;  %v7628_v6 = vpop.f32.mrb[6].mxu0  ;;  %v7754_v59 = vmax.f32 %v7433_v56, 0.0  ;;  %v7756_v50 = vmax.f32 %v7626_v1, 0.0 }
 0xf30   :  { %v7757_v61 = vmax.f32 %v7435_v44, 0.0  ;;  %v7759_v46 = vmax.f32 %v7628_v6, 0.0  ;;  %v7437_v39 = vpop.f32.mrb[247].mxu1  ;;  %v7630_v7 = vpop.f32.mrb[7].mxu0 }
 0xf31   :  { %v7758_v4 = vmax.f32 %v7437_v39, 0.0  ;;  %v7760_v29 = vmax.f32 %v7630_v7, 0.0 }
 0xf32   :  { %v7821_v3 = vpack.c.bf16 %v7757_v61, %v7753_v53  ;;  %v7823_v52 = vpack.c.bf16 %v7759_v46, %v7755_v13 }
 0xf33   :  { %v7822_v33 = vpack.c.bf16 %v7758_v4, %v7754_v59  ;;  %v7824_v18 = vpack.c.bf16 %v7760_v29, %v7756_v50 }
 0xf35   :  { %8233 = vmatprep.mubr.bf16.mxu1 %v7822_v33  ;;  %8394 = vmatprep.mubr.bf16.mxu0 %v7824_v18 }
 0xf36   :  { %8234 = vmatmul.mubr.bf16.gmra.mrb[52].mxu1 %v7821_v3  ;;  %8395 = vmatmul.mubr.bf16.gmra.mrb[68].mxu0 %v7823_v52 }
 0xf48   :  { %v9030_v43 = vpop.f32.mrb[248].mxu1  ;;  %v9142_v32 = vpop.f32.mrb[8].mxu0 }
 0xf49   :  { %v9031_v48 = vpop.f32.mrb[249].mxu1  ;;  %v9143_v28 = vpop.f32.mrb[9].mxu0 }
 0xf4a   :  { %v9032_v20 = vadd.f32 %v9031_v48, %v9030_v43  ;;  %v9144_v35 = vadd.f32 %v9143_v28, %v9142_v32  ;;  %v9033_v23 = vpop.f32.mrb[250].mxu1  ;;  %v9145_v62 = vpop.f32.mrb[10].mxu0 }
 0xf4b   :  { %v9034_v27 = vpop.f32.mrb[251].mxu1  ;;  %v9146_v40 = vpop.f32.mrb[11].mxu0 }
 0xf4c   :  { %v8277_v25 = vadd.f32 %v9144_v35, %v9032_v20  ;;  %v9035_v22 = vadd.f32 %v9034_v27, %v9033_v23  ;;  %v9147_v17 = vadd.f32 %v9146_v40, %v9145_v62 }
 0xf4e   :  { %v8403_v60 = vadd.f32 %v8277_v25, %v13974_v42  ;;  %v8280_v56 = vadd.f32 %v9147_v17, %v9035_v22 }
 0xf50   :  { %8435 = vst [vmem:[#allocation11] sm:$0xff] %v8403_v60  ;;  %v8404_v1 = vadd.f32 %v8280_v56, %v13976_v24  ;;  %v9036_v44 = vpop.f32.mrb[252].mxu1  ;;  %v9148_v6 = vpop.f32.mrb[12].mxu0 }
 0xf51   :  { %v9037_v53 = vpop.f32.mrb[253].mxu1  ;;  %v9149_v13 = vpop.f32.mrb[13].mxu0 }
 0xf52   :  { %8436 = vst [vmem:[#allocation11 + $0x8] sm:$0xff] %v8404_v1  ;;  %v9038_v61 = vadd.f32 %v9037_v53, %v9036_v44  ;;  %v9150_v46 = vadd.f32 %v9149_v13, %v9148_v6  ;;  %v9039_v39 = vpop.f32.mrb[254].mxu1  ;;  %v9151_v7 = vpop.f32.mrb[14].mxu0 }
 0xf53   :  { %v9040_v59 = vpop.f32.mrb[255].mxu1  ;;  %v9152_v50 = vpop.f32.mrb[15].mxu0 }
 0xf54   :  { %v8285_v4 = vadd.f32 %v9150_v46, %v9038_v61  ;;  %v9041_v29 = vadd.f32 %v9040_v59, %v9039_v39  ;;  %v9153_v3 = vadd.f32 %v9152_v50, %v9151_v7 }
 0xf56   :  { %v8405_v42 = vadd.f32 %v8285_v4, %v13984_v2  ;;  %v8288_v52 = vadd.f32 %v9153_v3, %v9041_v29 }
 0xf58   :  { %8437 = vst [vmem:[#allocation11 + $0x10] sm:$0xff] %v8405_v42  ;;  %v8406_v24 = vadd.f32 %v8288_v52, %v13982_v5 }
 0xf5a   :  { %8438 = vst [vmem:[#allocation11 + $0x18] sm:$0xff] %v8406_v24 }
 0xf79   :  { %v9042_v33 = vpop.f32.mrb[0].mxu1  ;;  %v9154_v18 = vpop.f32.mrb[16].mxu0 }
 0xf7a   :  { %v9043_v43 = vpop.f32.mrb[1].mxu1  ;;  %v9155_v32 = vpop.f32.mrb[17].mxu0 }
 0xf7b   :  { %v9044_v48 = vadd.f32 %v9043_v43, %v9042_v33  ;;  %v9156_v28 = vadd.f32 %v9155_v32, %v9154_v18  ;;  %v9045_v20 = vpop.f32.mrb[2].mxu1  ;;  %v9157_v35 = vpop.f32.mrb[18].mxu0 }
 0xf7c   :  { %v9046_v23 = vpop.f32.mrb[3].mxu1  ;;  %v9158_v62 = vpop.f32.mrb[19].mxu0 }
 0xf7d   :  { %v8293_v27 = vadd.f32 %v9156_v28, %v9044_v48  ;;  %v9047_v40 = vadd.f32 %v9046_v23, %v9045_v20  ;;  %v9159_v25 = vadd.f32 %v9158_v62, %v9157_v35 }
 0xf7f   :  { %v8407_v2 = vadd.f32 %v8293_v27, %v13990_v55  ;;  %v8296_v22 = vadd.f32 %v9159_v25, %v9047_v40 }
 0xf81   :  { %8439 = vst [vmem:[#allocation11 + $0x20] sm:$0xff] %v8407_v2  ;;  %v8408_v5 = vadd.f32 %v8296_v22, %v13992_v11  ;;  %v9048_v17 = vpop.f32.mrb[4].mxu1  ;;  %v9160_v60 = vpop.f32.mrb[20].mxu0 }
 0xf82   :  { %v9049_v56 = vpop.f32.mrb[5].mxu1  ;;  %v9161_v1 = vpop.f32.mrb[21].mxu0 }
 0xf83   :  { %8440 = vst [vmem:[#allocation11 + $0x28] sm:$0xff] %v8408_v5  ;;  %v9050_v44 = vadd.f32 %v9049_v56, %v9048_v17  ;;  %v9162_v6 = vadd.f32 %v9161_v1, %v9160_v60  ;;  %v9051_v53 = vpop.f32.mrb[6].mxu1  ;;  %v9163_v13 = vpop.f32.mrb[22].mxu0 }
 0xf84   :  { %v9052_v61 = vpop.f32.mrb[7].mxu1  ;;  %v9164_v46 = vpop.f32.mrb[23].mxu0 }
 0xf85   :  { %v8301_v39 = vadd.f32 %v9162_v6, %v9050_v44  ;;  %v9053_v7 = vadd.f32 %v9052_v61, %v9051_v53  ;;  %v9165_v59 = vadd.f32 %v9164_v46, %v9163_v13 }
 0xf87   :  { %v8409_v55 = vadd.f32 %v8301_v39, %v14000_v38  ;;  %v8304_v50 = vadd.f32 %v9165_v59, %v9053_v7 }
 0xf89   :  { %8441 = vst [vmem:[#allocation11 + $0x30] sm:$0xff] %v8409_v55  ;;  %v8410_v11 = vadd.f32 %v8304_v50, %v13998_v0  ;;  %v9054_v4 = vpop.f32.mrb[8].mxu1  ;;  %v9166_v29 = vpop.f32.mrb[24].mxu0 }
 0xf8a   :  { %v9055_v3 = vpop.f32.mrb[9].mxu1  ;;  %v9167_v42 = vpop.f32.mrb[25].mxu0 }
 0xf8b   :  { %8442 = vst [vmem:[#allocation11 + $0x38] sm:$0xff] %v8410_v11  ;;  %v9056_v52 = vadd.f32 %v9055_v3, %v9054_v4  ;;  %v9168_v24 = vadd.f32 %v9167_v42, %v9166_v29  ;;  %v9057_v33 = vpop.f32.mrb[10].mxu1  ;;  %v9169_v18 = vpop.f32.mrb[26].mxu0 }
 0xf8c   :  { %v9058_v43 = vpop.f32.mrb[11].mxu1  ;;  %v9170_v32 = vpop.f32.mrb[27].mxu0 }
 0xf8d   :  { %v8309_v48 = vadd.f32 %v9168_v24, %v9056_v52  ;;  %v9059_v28 = vadd.f32 %v9058_v43, %v9057_v33  ;;  %v9171_v20 = vadd.f32 %v9170_v32, %v9169_v18 }
 0xf8f   :  { %v8411_v38 = vadd.f32 %v8309_v48, %v14008_v34  ;;  %v8312_v35 = vadd.f32 %v9171_v20, %v9059_v28 }
 0xf91   :  { %8443 = vst [vmem:[#allocation11 + $0x40] sm:$0xff] %v8411_v38  ;;  %v8412_v0 = vadd.f32 %v8312_v35, %v14006_v19  ;;  %v9060_v23 = vpop.f32.mrb[12].mxu1  ;;  %v9172_v62 = vpop.f32.mrb[28].mxu0 }
 0xf92   :  { %v9061_v27 = vpop.f32.mrb[13].mxu1  ;;  %v9173_v40 = vpop.f32.mrb[29].mxu0 }
 0xf93   :  { %8444 = vst [vmem:[#allocation11 + $0x48] sm:$0xff] %v8412_v0  ;;  %v9062_v25 = vadd.f32 %v9061_v27, %v9060_v23  ;;  %v9174_v2 = vadd.f32 %v9173_v40, %v9172_v62  ;;  %v9063_v22 = vpop.f32.mrb[14].mxu1  ;;  %v9175_v5 = vpop.f32.mrb[30].mxu0 }
 0xf94   :  { %v9064_v17 = vpop.f32.mrb[15].mxu1  ;;  %v9176_v60 = vpop.f32.mrb[31].mxu0 }
 0xf95   :  { %v8317_v56 = vadd.f32 %v9174_v2, %v9062_v25  ;;  %v9065_v1 = vadd.f32 %v9064_v17, %v9063_v22  ;;  %v9177_v44 = vadd.f32 %v9176_v60, %v9175_v5 }
 0xf97   :  { %v8413_v34 = vadd.f32 %v8317_v56, %v14016_v8  ;;  %v8320_v6 = vadd.f32 %v9177_v44, %v9065_v1 }
 0xf99   :  { %8445 = vst [vmem:[#allocation11 + $0x50] sm:$0xff] %v8413_v34  ;;  %v8414_v19 = vadd.f32 %v8320_v6, %v14014_v57 }
 0xf9b   :  { %8446 = vst [vmem:[#allocation11 + $0x58] sm:$0xff] %v8414_v19 }
 0xfb2   :  { %v9066_v53 = vpop.f32.mrb[16].mxu1  ;;  %v9178_v13 = vpop.f32.mrb[32].mxu0 }
 0xfb3   :  { %v9067_v61 = vpop.f32.mrb[17].mxu1  ;;  %v9179_v46 = vpop.f32.mrb[33].mxu0 }
 0xfb4   :  { %v9068_v39 = vadd.f32 %v9067_v61, %v9066_v53  ;;  %v9180_v7 = vadd.f32 %v9179_v46, %v9178_v13  ;;  %v9069_v59 = vpop.f32.mrb[18].mxu1  ;;  %v9181_v55 = vpop.f32.mrb[34].mxu0 }
 0xfb5   :  { %v9070_v50 = vpop.f32.mrb[19].mxu1  ;;  %v9182_v11 = vpop.f32.mrb[35].mxu0 }
 0xfb6   :  { %v8325_v4 = vadd.f32 %v9180_v7, %v9068_v39  ;;  %v9071_v29 = vadd.f32 %v9070_v50, %v9069_v59  ;;  %v9183_v3 = vadd.f32 %v9182_v11, %v9181_v55 }
 0xfb8   :  { %v8415_v8 = vadd.f32 %v8325_v4, %v14022_v10  ;;  %v8328_v42 = vadd.f32 %v9183_v3, %v9071_v29 }
 0xfba   :  { %8447 = vst [vmem:[#allocation11 + $0x60] sm:$0xff] %v8415_v8  ;;  %v8416_v57 = vadd.f32 %v8328_v42, %v14024_v58  ;;  %v9072_v52 = vpop.f32.mrb[20].mxu1  ;;  %v9184_v24 = vpop.f32.mrb[36].mxu0 }
 0xfbb   :  { %v9073_v33 = vpop.f32.mrb[21].mxu1  ;;  %v9185_v18 = vpop.f32.mrb[37].mxu0 }
 0xfbc   :  { %8448 = vst [vmem:[#allocation11 + $0x68] sm:$0xff] %v8416_v57  ;;  %v9074_v43 = vadd.f32 %v9073_v33, %v9072_v52  ;;  %v9186_v32 = vadd.f32 %v9185_v18, %v9184_v24  ;;  %v9075_v48 = vpop.f32.mrb[22].mxu1  ;;  %v9187_v28 = vpop.f32.mrb[38].mxu0 }
 0xfbd   :  { %v9076_v20 = vpop.f32.mrb[23].mxu1  ;;  %v9188_v38 = vpop.f32.mrb[39].mxu0 }
 0xfbe   :  { %v8333_v35 = vadd.f32 %v9186_v32, %v9074_v43  ;;  %v9077_v0 = vadd.f32 %v9076_v20, %v9075_v48  ;;  %v9189_v23 = vadd.f32 %v9188_v38, %v9187_v28 }
 0xfc0   :  { %v8417_v10 = vadd.f32 %v8333_v35, %v14032_v47  ;;  %v8336_v62 = vadd.f32 %v9189_v23, %v9077_v0 }
 0xfc2   :  { %8449 = vst [vmem:[#allocation11 + $0x70] sm:$0xff] %v8417_v10  ;;  %v8418_v58 = vadd.f32 %v8336_v62, %v14030_v26  ;;  %v9078_v27 = vpop.f32.mrb[24].mxu1  ;;  %v9190_v40 = vpop.f32.mrb[40].mxu0 }
 0xfc3   :  { %v9079_v25 = vpop.f32.mrb[25].mxu1  ;;  %v9191_v2 = vpop.f32.mrb[41].mxu0 }
 0xfc4   :  { %8450 = vst [vmem:[#allocation11 + $0x78] sm:$0xff] %v8418_v58  ;;  %v9080_v22 = vadd.f32 %v9079_v25, %v9078_v27  ;;  %v9192_v5 = vadd.f32 %v9191_v2, %v9190_v40  ;;  %v9081_v17 = vpop.f32.mrb[26].mxu1  ;;  %v9193_v60 = vpop.f32.mrb[42].mxu0 }
 0xfc5   :  { %v9082_v56 = vpop.f32.mrb[27].mxu1  ;;  %v9194_v1 = vpop.f32.mrb[43].mxu0 }
 0xfc6   :  { %v8341_v44 = vadd.f32 %v9192_v5, %v9080_v22  ;;  %v9083_v34 = vadd.f32 %v9082_v56, %v9081_v17  ;;  %v9195_v6 = vadd.f32 %v9194_v1, %v9193_v60 }
 0xfc8   :  { %v8419_v47 = vadd.f32 %v8341_v44, %v14040_v9  ;;  %v8344_v19 = vadd.f32 %v9195_v6, %v9083_v34 }
 0xfca   :  { %8451 = vst [vmem:[#allocation11 + $0x80] sm:$0xff] %v8419_v47  ;;  %v8420_v26 = vadd.f32 %v8344_v19, %v14038_v54  ;;  %v9084_v53 = vpop.f32.mrb[28].mxu1  ;;  %v9196_v13 = vpop.f32.mrb[44].mxu0 }
 0xfcb   :  { %v9085_v61 = vpop.f32.mrb[29].mxu1  ;;  %v9197_v46 = vpop.f32.mrb[45].mxu0 }
 0xfcc   :  { %8452 = vst [vmem:[#allocation11 + $0x88] sm:$0xff] %v8420_v26  ;;  %v9086_v39 = vadd.f32 %v9085_v61, %v9084_v53  ;;  %v9198_v7 = vadd.f32 %v9197_v46, %v9196_v13  ;;  %v9087_v59 = vpop.f32.mrb[30].mxu1  ;;  %v9199_v55 = vpop.f32.mrb[46].mxu0 }
 0xfcd   :  { %v9088_v50 = vpop.f32.mrb[31].mxu1  ;;  %v9200_v11 = vpop.f32.mrb[47].mxu0 }
 0xfce   :  { %v8349_v4 = vadd.f32 %v9198_v7, %v9086_v39  ;;  %v9089_v29 = vadd.f32 %v9088_v50, %v9087_v59  ;;  %v9201_v3 = vadd.f32 %v9200_v11, %v9199_v55 }
 0xfd0   :  { %v8421_v9 = vadd.f32 %v8349_v4, %v14048_v15  ;;  %v8352_v8 = vadd.f32 %v9201_v3, %v9089_v29 }
 0xfd2   :  { %8453 = vst [vmem:[#allocation11 + $0x90] sm:$0xff] %v8421_v9  ;;  %v8422_v54 = vadd.f32 %v8352_v8, %v14046_v16  ;;  %v9090_v42 = vpop.f32.mrb[32].mxu1  ;;  %v9202_v57 = vpop.f32.mrb[48].mxu0 }
 0xfd3   :  { %v9091_v52 = vpop.f32.mrb[33].mxu1  ;;  %v9203_v24 = vpop.f32.mrb[49].mxu0 }
 0xfd4   :  { %8454 = vst [vmem:[#allocation11 + $0x98] sm:$0xff] %v8422_v54  ;;  %v9092_v33 = vadd.f32 %v9091_v52, %v9090_v42  ;;  %v9204_v18 = vadd.f32 %v9203_v24, %v9202_v57  ;;  %v9093_v43 = vpop.f32.mrb[34].mxu1  ;;  %v9205_v32 = vpop.f32.mrb[50].mxu0 }
 0xfd5   :  { %v9094_v48 = vpop.f32.mrb[35].mxu1  ;;  %v9206_v28 = vpop.f32.mrb[51].mxu0 }
 0xfd6   :  { %v8357_v20 = vadd.f32 %v9204_v18, %v9092_v33  ;;  %v9095_v38 = vadd.f32 %v9094_v48, %v9093_v43  ;;  %v9207_v35 = vadd.f32 %v9206_v28, %v9205_v32 }
 0xfd8   :  { %v8423_v15 = vadd.f32 %v8357_v20, %v14056_v30  ;;  %v8360_v0 = vadd.f32 %v9207_v35, %v9095_v38 }
 0xfda   :  { %8455 = vst [vmem:[#allocation11 + $0xa0] sm:$0xff] %v8423_v15  ;;  %v8424_v16 = vadd.f32 %v8360_v0, %v14054_v12  ;;  %v9096_v23 = vpop.f32.mrb[36].mxu1  ;;  %v9208_v10 = vpop.f32.mrb[52].mxu0 }
 0xfdb   :  { %v9097_v62 = vpop.f32.mrb[37].mxu1  ;;  %v9209_v58 = vpop.f32.mrb[53].mxu0 }
 0xfdc   :  { %8456 = vst [vmem:[#allocation11 + $0xa8] sm:$0xff] %v8424_v16  ;;  %v9098_v27 = vadd.f32 %v9097_v62, %v9096_v23  ;;  %v9210_v40 = vadd.f32 %v9209_v58, %v9208_v10  ;;  %v9099_v25 = vpop.f32.mrb[38].mxu1  ;;  %v9211_v2 = vpop.f32.mrb[54].mxu0 }
 0xfdd   :  { %v9100_v22 = vpop.f32.mrb[39].mxu1  ;;  %v9212_v5 = vpop.f32.mrb[55].mxu0 }
 0xfde   :  { %v8365_v17 = vadd.f32 %v9210_v40, %v9098_v27  ;;  %v9101_v60 = vadd.f32 %v9100_v22, %v9099_v25  ;;  %v9213_v56 = vadd.f32 %v9212_v5, %v9211_v2 }
 0xfe0   :  { %v8425_v30 = vadd.f32 %v8365_v17, %v14064_v49  ;;  %v8368_v1 = vadd.f32 %v9213_v56, %v9101_v60 }
 0xfe2   :  { %8457 = vst [vmem:[#allocation11 + $0xb0] sm:$0xff] %v8425_v30  ;;  %v8426_v12 = vadd.f32 %v8368_v1, %v14062_v41 }
 0xfe4   :  { %8458 = vst [vmem:[#allocation11 + $0xb8] sm:$0xff] %v8426_v12 }
 0xff1   :  { %v9102_v44 = vpop.f32.mrb[40].mxu1  ;;  %v9214_v34 = vpop.f32.mrb[56].mxu0 }
 0xff2   :  { %v9103_v6 = vpop.f32.mrb[41].mxu1  ;;  %v9215_v47 = vpop.f32.mrb[57].mxu0 }
 0xff3   :  { %v9104_v19 = vadd.f32 %v9103_v6, %v9102_v44  ;;  %v9216_v26 = vadd.f32 %v9215_v47, %v9214_v34  ;;  %v9105_v53 = vpop.f32.mrb[42].mxu1  ;;  %v9217_v13 = vpop.f32.mrb[58].mxu0 }
 0xff4   :  { %v9106_v61 = vpop.f32.mrb[43].mxu1  ;;  %v9218_v46 = vpop.f32.mrb[59].mxu0 }
 0xff5   :  { %v8373_v39 = vadd.f32 %v9216_v26, %v9104_v19  ;;  %v9107_v7 = vadd.f32 %v9106_v61, %v9105_v53  ;;  %v9219_v59 = vadd.f32 %v9218_v46, %v9217_v13 }
 0xff7   :  { %v8427_v49 = vadd.f32 %v8373_v39, %v14070_v36  ;;  %v8376_v55 = vadd.f32 %v9219_v59, %v9107_v7 }
 0xff9   :  { %8459 = vst [vmem:[#allocation11 + $0xc0] sm:$0xff] %v8427_v49  ;;  %v8428_v41 = vadd.f32 %v8376_v55, %v14072_v21  ;;  %v9108_v50 = vpop.f32.mrb[44].mxu1  ;;  %v9220_v11 = vpop.f32.mrb[60].mxu0 }
 0xffa   :  { %v9109_v4 = vpop.f32.mrb[45].mxu1  ;;  %v9221_v29 = vpop.f32.mrb[61].mxu0 }
 0xffb   :  { %8460 = vst [vmem:[#allocation11 + $0xc8] sm:$0xff] %v8428_v41  ;;  %v9110_v3 = vadd.f32 %v9109_v4, %v9108_v50  ;;  %v9222_v9 = vadd.f32 %v9221_v29, %v9220_v11  ;;  %v9111_v8 = vpop.f32.mrb[46].mxu1  ;;  %v9223_v54 = vpop.f32.mrb[62].mxu0 }
 0xffc   :  { %v9112_v42 = vpop.f32.mrb[47].mxu1  ;;  %v9224_v57 = vpop.f32.mrb[63].mxu0 }
 0xffd   :  { %v8381_v52 = vadd.f32 %v9222_v9, %v9110_v3  ;;  %v9113_v24 = vadd.f32 %v9112_v42, %v9111_v8  ;;  %v9225_v33 = vadd.f32 %v9224_v57, %v9223_v54 }
 0xfff   :  { %v8429_v36 = vadd.f32 %v8381_v52, %v14080_v14  ;;  %v8384_v18 = vadd.f32 %v9225_v33, %v9113_v24 }
0x1001   :  { %8461 = vst [vmem:[#allocation11 + $0xd0] sm:$0xff] %v8429_v36  ;;  %v8430_v21 = vadd.f32 %v8384_v18, %v14078_v63  ;;  %v9114_v43 = vpop.f32.mrb[48].mxu1  ;;  %v9226_v32 = vpop.f32.mrb[64].mxu0 }
0x1002   :  { %v9115_v48 = vpop.f32.mrb[49].mxu1  ;;  %v9227_v28 = vpop.f32.mrb[65].mxu0 }
0x1003   :  { %8462 = vst [vmem:[#allocation11 + $0xd8] sm:$0xff] %v8430_v21  ;;  %v9116_v20 = vadd.f32 %v9115_v48, %v9114_v43  ;;  %v9228_v38 = vadd.f32 %v9227_v28, %v9226_v32  ;;  %v9117_v35 = vpop.f32.mrb[50].mxu1  ;;  %v9229_v15 = vpop.f32.mrb[66].mxu0 }
0x1004   :  { %v9118_v0 = vpop.f32.mrb[51].mxu1  ;;  %v9230_v16 = vpop.f32.mrb[67].mxu0 }
0x1005   :  { %v8389_v23 = vadd.f32 %v9228_v38, %v9116_v20  ;;  %v9119_v10 = vadd.f32 %v9118_v0, %v9117_v35  ;;  %v9231_v62 = vadd.f32 %v9230_v16, %v9229_v15 }
0x1007   :  { %v8431_v14 = vadd.f32 %v8389_v23, %v14088_v51  ;;  %v8392_v58 = vadd.f32 %v9231_v62, %v9119_v10 }
0x1009   :  { %8463 = vst [vmem:[#allocation11 + $0xe0] sm:$0xff] %v8431_v14  ;;  %v8432_v63 = vadd.f32 %v8392_v58, %v14086_v37  ;;  %v9120_v27 = vpop.f32.mrb[52].mxu1  ;;  %v9232_v40 = vpop.f32.mrb[68].mxu0 }
0x100a   :  { %v9121_v25 = vpop.f32.mrb[53].mxu1  ;;  %v9233_v2 = vpop.f32.mrb[69].mxu0 }
0x100b   :  { %8464 = vst [vmem:[#allocation11 + $0xe8] sm:$0xff] %v8432_v63  ;;  %v9122_v22 = vadd.f32 %v9121_v25, %v9120_v27  ;;  %v9234_v5 = vadd.f32 %v9233_v2, %v9232_v40  ;;  %v9123_v17 = vpop.f32.mrb[54].mxu1  ;;  %v9235_v60 = vpop.f32.mrb[70].mxu0 }
0x100c   :  { %v9124_v56 = vpop.f32.mrb[55].mxu1  ;;  %v9236_v30 = vpop.f32.mrb[71].mxu0 }
0x100d   :  { %v8397_v1 = vadd.f32 %v9234_v5, %v9122_v22  ;;  %v9125_v12 = vadd.f32 %v9124_v56, %v9123_v17  ;;  %v9237_v44 = vadd.f32 %v9236_v30, %v9235_v60 }
0x100f   :  { %v8433_v51 = vadd.f32 %v8397_v1, %v14096_v31  ;;  %v8400_v34 = vadd.f32 %v9237_v44, %v9125_v12 }
0x1011   :  { %8465 = vst [vmem:[#allocation11 + $0xf0] sm:$0xff] %v8433_v51  ;;  %v8434_v37 = vadd.f32 %v8400_v34, %v14094_v45 }
0x1013   :  { %8466 = vst [vmem:[#allocation11 + $0xf8] sm:$0xff] %v8434_v37 }
0x1014   :  { %10969 = shalt.err (!%p10966_p2)
}
0x1015   :  { %s10970_s13 = scalar_lea.hbm %s14152_s5, 4096 }
0x1016   :  { %p10971_p3 = scmp.ne.s32.totalorder %s14152_s5, %s10970_s13  ;;  %p10974_p4 = scmp.lt.u32.totalorder %s10970_s13, %s14152_s5 }
0x1018   :  { %p10976_p5 = pnand %p10974_p4, %p10971_p3 }
0x101a   :  { %10979 = shalt.err (!%p10976_p5)
}
0x101b   :  { %8478 = dma.vmem_to_hbm [thread:$0]  %s8473_s9, 4096, %s14152_s5, [#allocation4], %s10995_s3, %s10995_s3, %s10996_s30  }
0x101c   :  { %10986 = dma.done.wait [#allocation4], 4096  }
0x101d   :  { %10987 = vsyncadd [#allocation4], 4294963200 }
0x101e   :  { %8482 = vsyncpa [#allocation3], 1 }
0x101f   :  { %8483 = vsyncpa [#allocation6], 1 }
0x1020   :  { %8484 = vsyncpa [#allocation9], 1 }
0x1021   :  { %8485 = vsyncpa [#allocation4], 1 }

</bundles_post_ra>
